<compile_context>
chip_gen: v6e
topology: v6e:2x2x1
jax: 0.10.0
libtpu: 0.0.40
codegen_flags: <defaults>
</compile_context>

<pallas_src>
import functools

import numpy as np
import jax
import jax.numpy as jnp
from jax import lax
from jax.experimental import pallas as pl
from jax.experimental.pallas import tpu as pltpu


# ---------------------------------------------------------------------------
# Static layout of the two packed constant slabs (rows are offsets; cols used)
# ---------------------------------------------------------------------------
_VPS_LAYOUT = [                       # f32 slab: depthwise taps + biases (VPU side)
    ("enc1_dw", 9, 3), ("enc2_dw", 9, 20), ("bot_dw", 9, 40),
    ("dec2_dw_a", 9, 40), ("dec2_dw_b", 9, 40),
    ("dec1_dw_a", 9, 20), ("dec1_dw_b", 9, 20),
    ("up2_b", 1, 40), ("up1_b", 1, 20), ("final_b", 1, 3),
]
_MXS_LAYOUT = [                       # bf16 slab: all matmul (MXU) weights
    ("enc1_pw", 3, 20), ("enc2_pw", 20, 40), ("bot_pw", 40, 80),
    ("up2_w", 320, 40),               # 4 taps x Cin=80 rows
    ("dec2_pw_a", 40, 20), ("dec2_pw_b", 40, 20),
    ("up1_w", 80, 20),                # 4 taps x Cin=20 rows
    ("dec1_pw_a", 20, 20), ("dec1_pw_b", 20, 20),
    ("final_w", 20, 3),
]


def _layout_offsets(layout):
    offs, off = {}, 0
    for name, rows, cols in layout:
        offs[name] = (off, rows, cols)
        off += rows
    return offs, off


_VPS_OFF, _VPS_ROWS = _layout_offsets(_VPS_LAYOUT)
_MXS_OFF, _MXS_ROWS = _layout_offsets(_MXS_LAYOUT)
_VPS_COLS, _MXS_COLS = 40, 80


def _pads(W):
    """Halo sizes per resolution level (>= W+1, sublane-friendly base offset)."""
    return W + 8, W // 2 + 8, W // 4 + 8


# ---------------------------------------------------------------------------
# In-kernel building blocks
# ---------------------------------------------------------------------------
def _zero_halo(hs_ref, pad, n, C):
    zer = jnp.zeros((pad, C), jnp.float32)
    hs_ref[pl.ds(0, pad), pl.ds(0, C)] = zer
    hs_ref[pl.ds(pad + n, pad), pl.ds(0, C)] = zer


def _dw_store(hs_ref, x, pad, C):
    """Write activation x (n, C) into the middle of the halo scratch, zero halos."""
    n = x.shape[0]
    _zero_halo(hs_ref, pad, n, C)
    hs_ref[pl.ds(pad, n), pl.ds(0, C)] = x


def _dw_compute(hs_ref, w9, H, W, pad, C):
    """Depthwise 3x3 (stride 1, zero pad 1) + ReLU, reading from the halo scratch.

    3 column-shifted slabs, each masked ONCE; row (dh) shifts are plain
    aligned slices; dh border handling comes for free from the zero halo.
    w9: (9, C) taps, row k = kh*3 + kw  (== torch weight[c, 0, kh, kw]).
    """
    n = H * W
    m = n + 2 * W                              # extended row range [-W, n+W)
    base = pad - W                             # == 8 for all levels
    col = lax.broadcasted_iota(jnp.int32, (m, C), 0) & (W - 1)
    s_c = hs_ref[pl.ds(base, m), pl.ds(0, C)]
    s_l = jnp.where(col >= 1, hs_ref[pl.ds(base - 1, m), pl.ds(0, C)], 0.0)
    s_r = jnp.where(col <= W - 2, hs_ref[pl.ds(base + 1, m), pl.ds(0, C)], 0.0)
    slabs = (s_l, s_c, s_r)                    # kw = 0, 1, 2

    acc = jnp.zeros((n, C), jnp.float32)
    for kh in range(3):
        off = kh * W                           # == W + (kh-1)*W
        for kw in range(3):
            k = kh * 3 + kw
            acc = acc + slabs[kw][off:off + n, :] * w9[k:k + 1, :]
    return jnp.maximum(acc, 0.0)


def _maxpool2x2(hs_ref, x, H, W):
    """2x2 / stride-2 max pool: 2 shifted VPU maxes + strided stride-2 reads.

    hs_ref is a scratch with exactly C lanes; its previous contents are dead.
    """
    n, C = x.shape
    xz = jnp.concatenate([x, jnp.zeros((8, C), jnp.float32)], axis=0)
    cm = jnp.maximum(xz[0:n, :], xz[1:1 + n, :])        # column-pair max
    wm = jnp.maximum(cm[0:n - W, :], cm[W:n, :])        # + row-pair max
    hs_ref[pl.ds(0, n - W), :] = wm
    pieces = [hs_ref[pl.ds(2 * ho * W, W // 2, stride=2), :]   # even h, even w
              for ho in range(H // 2)]
    return jnp.concatenate(pieces, axis=0)              # (n // 4, C)


def _upconv2x2_into(hs_ref, pad, x, mxs_ref, name, bias, Hq, Wq):
    """ConvTranspose2d(kernel=2, stride=2) scattered directly into the halo
    scratch that the following depthwise conv will read (rows [pad, pad+4HqWq)).

    4 small bf16 matmuls; placement = stride-2 sublane stores (no one-hot matmuls).
    """
    off, rows, Cout = _MXS_OFF[name]
    Cin = rows // 4
    n_out = 4 * Hq * Wq
    Wo = 2 * Wq
    _zero_halo(hs_ref, pad, n_out, Cout)
    xb = x.astype(jnp.bfloat16)
    for kh in range(2):
        for kw in range(2):
            k = kh * 2 + kw
            wk = mxs_ref[pl.ds(off + k * Cin, Cin), pl.ds(0, Cout)]      # bf16
            yk = jnp.dot(xb, wk, preferred_element_type=jnp.float32) + bias
            for h in range(Hq):
                dst = pad + (2 * h + kh) * Wo + kw
                hs_ref[pl.ds(dst, Wq, stride=2), :] = yk[h * Wq:(h + 1) * Wq, :]


# ---------------------------------------------------------------------------
# The fused forward-pass kernel (one program == one image of the batch)
# ---------------------------------------------------------------------------
def _student_kernel(x_ref, vps_ref, mxs_ref, o_ref,
                    hs_full, hs_half, hs_quar, *, H, W):
    relu = lambda v: jnp.maximum(v, 0.0)

    def vget(name):                                  # f32 (VPU-side) constants
        off, r, c = _VPS_OFF[name]
        return vps_ref[pl.ds(off, r), pl.ds(0, c)]

    def mm(a, name):                                 # bf16 MXU matmul, f32 acc
        off, r, c = _MXS_OFF[name]
        w = mxs_ref[pl.ds(off, r), pl.ds(0, c)]
        return jnp.dot(a.astype(jnp.bfloat16), w, preferred_element_type=jnp.float32)

    H2, W2, H4, W4 = H // 2, W // 2, H // 4, W // 4
    pf, ph, pq = _pads(W)

    x = x_ref[...]                                                   # (H*W, 3)

    # ---- encoder ----------------------------------------------------------
    _dw_store(hs_full, x, pf, 3)
    e1 = relu(mm(_dw_compute(hs_full, vget("enc1_dw"), H, W, pf, 3), "enc1_pw"))
    p1 = _maxpool2x2(hs_full, e1, H, W)

    _dw_store(hs_half, p1, ph, 20)
    e2 = relu(mm(_dw_compute(hs_half, vget("enc2_dw"), H2, W2, ph, 20), "enc2_pw"))
    p2 = _maxpool2x2(hs_half, e2, H2, W2)

    _dw_store(hs_quar, p2, pq, 40)
    bt = relu(mm(_dw_compute(hs_quar, vget("bot_dw"), H4, W4, pq, 40), "bot_pw"))

    # ---- decoder level 2: up2 then dec2 on cat([d2_up, e2]) ----------------
    _upconv2x2_into(hs_half, ph, bt, mxs_ref, "up2_w", vget("up2_b"), H4, W4)
    ha = _dw_compute(hs_half, vget("dec2_dw_a"), H2, W2, ph, 40)
    _dw_store(hs_half, e2, ph, 40)
    hb = _dw_compute(hs_half, vget("dec2_dw_b"), H2, W2, ph, 40)
    d2 = relu(mm(ha, "dec2_pw_a") + mm(hb, "dec2_pw_b"))

    # ---- decoder level 1: up1 then dec1 on cat([d1_up, e1]) ----------------
    _upconv2x2_into(hs_full, pf, d2, mxs_ref, "up1_w", vget("up1_b"), H2, W2)
    ha = _dw_compute(hs_full, vget("dec1_dw_a"), H, W, pf, 20)
    _dw_store(hs_full, e1, pf, 20)
    hb = _dw_compute(hs_full, vget("dec1_dw_b"), H, W, pf, 20)
    d1 = relu(mm(ha, "dec1_pw_a") + mm(hb, "dec1_pw_b"))

    # ---- final 1x1 conv + bias + numerically-stable sigmoid ----------------
    y = mm(d1, "final_w") + vget("final_b")
    z = jnp.exp(-jnp.abs(y))                         # single EUP exp
    o_ref[...] = jnp.where(y >= 0.0, 1.0, z) / (1.0 + z)


# ---------------------------------------------------------------------------
# Parameters: deterministic synthetic torch-layout weights, packed once
# ---------------------------------------------------------------------------
def init_params(key):
    """Synthetic StudentNet weights in the PyTorch layouts."""
    def nrm(k, shape, scale=0.1):
        return scale * jax.random.normal(k, shape, jnp.float32)

    ks = jax.random.split(key, 16)
    return {
        "enc1_dw": nrm(ks[0], (3, 1, 3, 3)),      # depthwise, bias=False
        "enc1_pw": nrm(ks[1], (20, 3, 1, 1)),     # pointwise, bias=False
        "enc2_dw": nrm(ks[2], (20, 1, 3, 3)),
        "enc2_pw": nrm(ks[3], (40, 20, 1, 1)),
        "bot_dw": nrm(ks[4], (40, 1, 3, 3)),
        "bot_pw": nrm(ks[5], (80, 40, 1, 1)),
        "up2_w": nrm(ks[6], (80, 40, 2, 2)),      # ConvTranspose2d (has bias)
        "up2_b": nrm(ks[7], (40,)),
        "dec2_dw": nrm(ks[8], (80, 1, 3, 3)),
        "dec2_pw": nrm(ks[9], (20, 80, 1, 1)),
        "up1_w": nrm(ks[10], (20, 20, 2, 2)),
        "up1_b": nrm(ks[11], (20,)),
        "dec1_dw": nrm(ks[12], (40, 1, 3, 3)),
        "dec1_pw": nrm(ks[13], (20, 40, 1, 1)),
        "final_w": nrm(ks[14], (3, 20, 1, 1)),    # Conv2d(20,3,1) (has bias)
        "final_b": nrm(ks[15], (3,)),
    }


def pack_params(tp):
    """Permute torch-layout weights into kernel layouts and pack them into two
    constant slabs (f32 VPU slab + bf16 MXU slab).  Runs once, outside jit."""
    dw = lambda w: np.transpose(np.asarray(w)[:, 0], (1, 2, 0)).reshape(9, -1)
    pw = lambda w: np.transpose(np.asarray(w)[:, :, 0, 0], (1, 0))
    ct = lambda w: np.transpose(np.asarray(w), (2, 3, 0, 1)).reshape(-1, w.shape[1])

    dec2_dw, dec2_pw = dw(tp["dec2_dw"]), pw(tp["dec2_pw"])   # cat = [d2_up | e2]
    dec1_dw, dec1_pw = dw(tp["dec1_dw"]), pw(tp["dec1_pw"])   # cat = [d1_up | e1]

    vps_entries = {
        "enc1_dw": dw(tp["enc1_dw"]), "enc2_dw": dw(tp["enc2_dw"]),
        "bot_dw": dw(tp["bot_dw"]),
        "dec2_dw_a": dec2_dw[:, :40], "dec2_dw_b": dec2_dw[:, 40:],
        "dec1_dw_a": dec1_dw[:, :20], "dec1_dw_b": dec1_dw[:, 20:],
        "up2_b": np.asarray(tp["up2_b"]).reshape(1, -1),
        "up1_b": np.asarray(tp["up1_b"]).reshape(1, -1),
        "final_b": np.asarray(tp["final_b"]).reshape(1, -1),
    }
    mxs_entries = {
        "enc1_pw": pw(tp["enc1_pw"]), "enc2_pw": pw(tp["enc2_pw"]),
        "bot_pw": pw(tp["bot_pw"]),
        "up2_w": ct(tp["up2_w"]),
        "dec2_pw_a": dec2_pw[:40], "dec2_pw_b": dec2_pw[40:],
        "up1_w": ct(tp["up1_w"]),
        "dec1_pw_a": dec1_pw[:20], "dec1_pw_b": dec1_pw[20:],
        "final_w": pw(tp["final_w"]),
    }

    vps = np.zeros((_VPS_ROWS, _VPS_COLS), np.float32)
    for name, (off, r, c) in _VPS_OFF.items():
        vps[off:off + r, :c] = vps_entries[name]
    mxs = np.zeros((_MXS_ROWS, _MXS_COLS), np.float32)
    for name, (off, r, c) in _MXS_OFF.items():
        mxs[off:off + r, :c] = mxs_entries[name]

    return {"vps": jnp.asarray(vps, jnp.float32),
            "mxs": jnp.asarray(mxs).astype(jnp.bfloat16)}


# ---------------------------------------------------------------------------
# Full forward (input / output are NCHW, like the PyTorch module)
# ---------------------------------------------------------------------------
@jax.jit
def student_net_forward(x_nchw, params):
    B, Cin, H, W = x_nchw.shape
    assert Cin == 3 and H % 4 == 0 and W >= 8 and (W & (W - 1)) == 0, \
        "need 3 input channels, pow-2 W >= 8, H % 4 == 0"
    n = H * W
    pf, ph, pq = _pads(W)

    # NCHW -> row-flattened NHWC rows ((b*H + h)*W + w, c); tiny boundary op.
    x_flat = jnp.transpose(x_nchw, (0, 2, 3, 1)).reshape(B * n, Cin)
    x_flat = x_flat.astype(jnp.float32)

    vps, mxs = params["vps"], params["mxs"]

    out_flat = pl.pallas_call(
        functools.partial(_student_kernel, H=H, W=W),
        out_shape=jax.ShapeDtypeStruct((B * n, 3), jnp.float32),
        grid_spec=pltpu.PrefetchScalarGridSpec(
            num_scalar_prefetch=0,
            grid=(B,),                                   # one program per image
            in_specs=[
                pl.BlockSpec((n, Cin), lambda b: (b, 0)),
                pl.BlockSpec(vps.shape, lambda b: (0, 0)),   # grid-invariant
                pl.BlockSpec(mxs.shape, lambda b: (0, 0)),   # grid-invariant
            ],
            out_specs=pl.BlockSpec((n, 3), lambda b: (b, 0)),
            scratch_shapes=[
                pltpu.VMEM((n + 2 * pf, 20), jnp.float32),        # full-res halo
                pltpu.VMEM((n // 4 + 2 * ph, 40), jnp.float32),   # half-res halo
                pltpu.VMEM((n // 16 + 2 * pq, 40), jnp.float32),  # quarter-res halo
            ],
        ),
        compiler_params=pltpu.CompilerParams(
            dimension_semantics=("parallel",),           # both TCs on v7x
            vmem_limit_bytes=32 * 1024 * 1024,
        ),
    )(x_flat, vps, mxs)

    # flattened NHWC -> NCHW (tiny boundary op)
    return jnp.transpose(out_flat.reshape(B, H, W, 3), (0, 3, 1, 2))


if __name__ == "__main__":
    root = jax.random.PRNGKey(0)
    k_x, k_p = jax.random.split(root)

    x = jax.random.normal(k_x, (2, 3, 16, 16), jnp.float32)   # NCHW like PyTorch
    params = pack_params(init_params(k_p))

    y = student_net_forward(x, params)
    y = jax.block_until_ready(y)

    assert y.shape == (2, 3, 16, 16), y.shape
    assert y.dtype == jnp.float32
    assert bool(jnp.all(jnp.isfinite(y)))
    assert bool(jnp.all((y >= 0.0) & (y <= 1.0)))   # sigmoid range

    print("KERNEL_OK")
</pallas_src>

<mosaic_0001>
module attributes {stable_mosaic.version = 11 : i64} {
  func.func @_student_kernel(%arg0: i32, %arg1: memref<256x3xf32, #tpu.memory_space<vmem>>, %arg2: memref<66x40xf32, #tpu.memory_space<vmem>>, %arg3: memref<603x80xbf16, #tpu.memory_space<vmem>>, %arg4: memref<256x3xf32, #tpu.memory_space<vmem>>, %arg5: memref<304x20xf32, #tpu.memory_space<vmem>>, %arg6: memref<96x40xf32, #tpu.memory_space<vmem>>, %arg7: memref<40x40xf32, #tpu.memory_space<vmem>>) attributes {dimension_semantics = [#tpu.dimension_semantics<parallel>], iteration_bounds = array<i64: 2>, scalar_prefetch = 0 : i64, scratch_operands = 3 : i64, tpu.core_type = #tpu.core_type<tc>, window_params = [{transform_indices = @transform_0, window_bounds = array<i64: 256, 3>}, {pipeline_mode = #tpu.pipeline_mode<synchronous>, transform_indices = @transform_1, window_bounds = array<i64: 66, 40>}, {pipeline_mode = #tpu.pipeline_mode<synchronous>, transform_indices = @transform_2, window_bounds = array<i64: 603, 80>}, {transform_indices = @transform_3, window_bounds = array<i64: 256, 3>}]} {
    %c0 = arith.constant 0 : index
    %c0_0 = arith.constant 0 : index
    %0 = vector.load %arg1[%c0, %c0_0] : memref<256x3xf32, #tpu.memory_space<vmem>>, vector<256x3xf32>
    %cst = arith.constant 0.000000e+00 : f32
    %1 = vector.broadcast %cst : f32 to vector<24x3xf32>
    %c0_1 = arith.constant 0 : index
    %c0_2 = arith.constant 0 : index
    %2 = vector.load %arg5[%c0_1, %c0_2] : memref<304x20xf32, #tpu.memory_space<vmem>>, vector<24x3xf32>
    tpu.vector_store %arg5[%c0_1, %c0_2], %1 {strides = array<i32>} : memref<304x20xf32, #tpu.memory_space<vmem>>, vector<24x3xf32>,
    %c280 = arith.constant 280 : index
    %c0_3 = arith.constant 0 : index
    %3 = vector.load %arg5[%c280, %c0_3] : memref<304x20xf32, #tpu.memory_space<vmem>>, vector<24x3xf32>
    tpu.vector_store %arg5[%c280, %c0_3], %1 {strides = array<i32>} : memref<304x20xf32, #tpu.memory_space<vmem>>, vector<24x3xf32>,
    %c24 = arith.constant 24 : index
    %c0_4 = arith.constant 0 : index
    %4 = vector.load %arg5[%c24, %c0_4] : memref<304x20xf32, #tpu.memory_space<vmem>>, vector<256x3xf32>
    tpu.vector_store %arg5[%c24, %c0_4], %0 {strides = array<i32>} : memref<304x20xf32, #tpu.memory_space<vmem>>, vector<256x3xf32>,
    %c0_5 = arith.constant 0 : index
    %c0_6 = arith.constant 0 : index
    %5 = vector.load %arg2[%c0_5, %c0_6] : memref<66x40xf32, #tpu.memory_space<vmem>>, vector<9x3xf32>
    %6 = tpu.iota {dimensions = array<i32: 0>} : vector<288x3xi32>
    %c15_i32 = arith.constant 15 : i32
    %7 = vector.broadcast %c15_i32 : i32 to vector<288x3xi32>
    %8 = arith.andi %6, %7 : vector<288x3xi32>
    %c8 = arith.constant 8 : index
    %c0_7 = arith.constant 0 : index
    %9 = vector.load %arg5[%c8, %c0_7] : memref<304x20xf32, #tpu.memory_space<vmem>>, vector<288x3xf32>
    %c1_i32 = arith.constant 1 : i32
    %10 = vector.broadcast %c1_i32 : i32 to vector<288x3xi32>
    %11 = arith.cmpi sge, %8, %10 : vector<288x3xi32>
    %c7 = arith.constant 7 : index
    %c0_8 = arith.constant 0 : index
    %12 = vector.load %arg5[%c7, %c0_8] : memref<304x20xf32, #tpu.memory_space<vmem>>, vector<288x3xf32>
    %cst_9 = arith.constant 0.000000e+00 : f32
    %13 = vector.broadcast %cst_9 : f32 to vector<288x3xf32>
    %14 = arith.select %11, %12, %13 : vector<288x3xi1>, vector<288x3xf32>
    %c14_i32 = arith.constant 14 : i32
    %15 = vector.broadcast %c14_i32 : i32 to vector<288x3xi32>
    %16 = arith.cmpi sle, %8, %15 : vector<288x3xi32>
    %c9 = arith.constant 9 : index
    %c0_10 = arith.constant 0 : index
    %17 = vector.load %arg5[%c9, %c0_10] : memref<304x20xf32, #tpu.memory_space<vmem>>, vector<288x3xf32>
    %cst_11 = arith.constant 0.000000e+00 : f32
    %18 = vector.broadcast %cst_11 : f32 to vector<288x3xf32>
    %19 = arith.select %16, %17, %18 : vector<288x3xi1>, vector<288x3xf32>
    %cst_12 = arith.constant 0.000000e+00 : f32
    %20 = vector.broadcast %cst_12 : f32 to vector<256x3xf32>
    %21 = vector.extract_strided_slice %14 {offsets = [0, 0], sizes = [256, 3], strides = [1, 1]} : vector<288x3xf32> to vector<256x3xf32>
    %22 = vector.extract_strided_slice %5 {offsets = [0, 0], sizes = [1, 3], strides = [1, 1]} : vector<9x3xf32> to vector<1x3xf32>
    %23 = vector.broadcast %22 : vector<1x3xf32> to vector<256x3xf32>
    %24 = arith.mulf %21, %23 : vector<256x3xf32>
    %25 = arith.addf %20, %24 : vector<256x3xf32>
    %26 = vector.extract_strided_slice %9 {offsets = [0, 0], sizes = [256, 3], strides = [1, 1]} : vector<288x3xf32> to vector<256x3xf32>
    %27 = vector.extract_strided_slice %5 {offsets = [1, 0], sizes = [1, 3], strides = [1, 1]} : vector<9x3xf32> to vector<1x3xf32>
    %28 = vector.broadcast %27 : vector<1x3xf32> to vector<256x3xf32>
    %29 = arith.mulf %26, %28 : vector<256x3xf32>
    %30 = arith.addf %25, %29 : vector<256x3xf32>
    %31 = vector.extract_strided_slice %19 {offsets = [0, 0], sizes = [256, 3], strides = [1, 1]} : vector<288x3xf32> to vector<256x3xf32>
    %32 = vector.extract_strided_slice %5 {offsets = [2, 0], sizes = [1, 3], strides = [1, 1]} : vector<9x3xf32> to vector<1x3xf32>
    %33 = vector.broadcast %32 : vector<1x3xf32> to vector<256x3xf32>
    %34 = arith.mulf %31, %33 : vector<256x3xf32>
    %35 = arith.addf %30, %34 : vector<256x3xf32>
    %36 = vector.extract_strided_slice %14 {offsets = [16, 0], sizes = [256, 3], strides = [1, 1]} : vector<288x3xf32> to vector<256x3xf32>
    %37 = vector.extract_strided_slice %5 {offsets = [3, 0], sizes = [1, 3], strides = [1, 1]} : vector<9x3xf32> to vector<1x3xf32>
    %38 = vector.broadcast %37 : vector<1x3xf32> to vector<256x3xf32>
    %39 = arith.mulf %36, %38 : vector<256x3xf32>
    %40 = arith.addf %35, %39 : vector<256x3xf32>
    %41 = vector.extract_strided_slice %9 {offsets = [16, 0], sizes = [256, 3], strides = [1, 1]} : vector<288x3xf32> to vector<256x3xf32>
    %42 = vector.extract_strided_slice %5 {offsets = [4, 0], sizes = [1, 3], strides = [1, 1]} : vector<9x3xf32> to vector<1x3xf32>
    %43 = vector.broadcast %42 : vector<1x3xf32> to vector<256x3xf32>
    %44 = arith.mulf %41, %43 : vector<256x3xf32>
    %45 = arith.addf %40, %44 : vector<256x3xf32>
    %46 = vector.extract_strided_slice %19 {offsets = [16, 0], sizes = [256, 3], strides = [1, 1]} : vector<288x3xf32> to vector<256x3xf32>
    %47 = vector.extract_strided_slice %5 {offsets = [5, 0], sizes = [1, 3], strides = [1, 1]} : vector<9x3xf32> to vector<1x3xf32>
    %48 = vector.broadcast %47 : vector<1x3xf32> to vector<256x3xf32>
    %49 = arith.mulf %46, %48 : vector<256x3xf32>
    %50 = arith.addf %45, %49 : vector<256x3xf32>
    %51 = vector.extract_strided_slice %14 {offsets = [32, 0], sizes = [256, 3], strides = [1, 1]} : vector<288x3xf32> to vector<256x3xf32>
    %52 = vector.extract_strided_slice %5 {offsets = [6, 0], sizes = [1, 3], strides = [1, 1]} : vector<9x3xf32> to vector<1x3xf32>
    %53 = vector.broadcast %52 : vector<1x3xf32> to vector<256x3xf32>
    %54 = arith.mulf %51, %53 : vector<256x3xf32>
    %55 = arith.addf %50, %54 : vector<256x3xf32>
    %56 = vector.extract_strided_slice %9 {offsets = [32, 0], sizes = [256, 3], strides = [1, 1]} : vector<288x3xf32> to vector<256x3xf32>
    %57 = vector.extract_strided_slice %5 {offsets = [7, 0], sizes = [1, 3], strides = [1, 1]} : vector<9x3xf32> to vector<1x3xf32>
    %58 = vector.broadcast %57 : vector<1x3xf32> to vector<256x3xf32>
    %59 = arith.mulf %56, %58 : vector<256x3xf32>
    %60 = arith.addf %55, %59 : vector<256x3xf32>
    %61 = vector.extract_strided_slice %19 {offsets = [32, 0], sizes = [256, 3], strides = [1, 1]} : vector<288x3xf32> to vector<256x3xf32>
    %62 = vector.extract_strided_slice %5 {offsets = [8, 0], sizes = [1, 3], strides = [1, 1]} : vector<9x3xf32> to vector<1x3xf32>
    %63 = vector.broadcast %62 : vector<1x3xf32> to vector<256x3xf32>
    %64 = arith.mulf %61, %63 : vector<256x3xf32>
    %65 = arith.addf %60, %64 : vector<256x3xf32>
    %cst_13 = arith.constant 0.000000e+00 : f32
    %66 = vector.broadcast %cst_13 : f32 to vector<256x3xf32>
    %67 = arith.maximumf %65, %66 : vector<256x3xf32>
    %c0_14 = arith.constant 0 : index
    %c0_15 = arith.constant 0 : index
    %68 = vector.load %arg3[%c0_14, %c0_15] : memref<603x80xbf16, #tpu.memory_space<vmem>>, vector<3x20xbf16>
    %69 = arith.truncf %67 : vector<256x3xf32> to vector<256x3xbf16>
    %cst_16 = arith.constant dense<0.000000e+00> : vector<256x20xf32>
    %70 = tpu.matmul %69, %68, %cst_16 {dimension_numbers = #tpu.dot_dimension_numbers<[1], [0], [0], [1], [0, 0, 1, 1], [], []>} : vector<256x3xbf16>, vector<3x20xbf16>, vector<256x20xf32> -> vector<256x20xf32>
    %cst_17 = arith.constant 0.000000e+00 : f32
    %71 = vector.broadcast %cst_17 : f32 to vector<256x20xf32>
    %72 = arith.maximumf %70, %71 : vector<256x20xf32>
    %cst_18 = arith.constant 0.000000e+00 : f32
    %73 = vector.broadcast %cst_18 : f32 to vector<8x20xf32>
    %74 = tpu.concatenate %72, %73 in 0 : vector<256x20xf32>, vector<8x20xf32> -> vector<264x20xf32>
    %75 = vector.extract_strided_slice %74 {offsets = [0, 0], sizes = [256, 20], strides = [1, 1]} : vector<264x20xf32> to vector<256x20xf32>
    %76 = vector.extract_strided_slice %74 {offsets = [1, 0], sizes = [256, 20], strides = [1, 1]} : vector<264x20xf32> to vector<256x20xf32>
    %77 = arith.maximumf %75, %76 : vector<256x20xf32>
    %78 = vector.extract_strided_slice %77 {offsets = [0, 0], sizes = [240, 20], strides = [1, 1]} : vector<256x20xf32> to vector<240x20xf32>
    %79 = vector.extract_strided_slice %77 {offsets = [16, 0], sizes = [240, 20], strides = [1, 1]} : vector<256x20xf32> to vector<240x20xf32>
    %80 = arith.maximumf %78, %79 : vector<240x20xf32>
    %c0_19 = arith.constant 0 : index
    %c0_20 = arith.constant 0 : index
    %81 = vector.load %arg5[%c0_19, %c0_20] : memref<304x20xf32, #tpu.memory_space<vmem>>, vector<240x20xf32>
    tpu.vector_store %arg5[%c0_19, %c0_20], %80 {strides = array<i32>} : memref<304x20xf32, #tpu.memory_space<vmem>>, vector<240x20xf32>,
    %c0_21 = arith.constant 0 : index
    %c0_22 = arith.constant 0 : index
    %82 = tpu.strided_load %arg5[%c0_21, %c0_22] {strides = array<i32: 2, 1>} : memref<304x20xf32, #tpu.memory_space<vmem>>, vector<8x20xf32>
    %c32 = arith.constant 32 : index
    %c0_23 = arith.constant 0 : index
    %83 = tpu.strided_load %arg5[%c32, %c0_23] {strides = array<i32: 2, 1>} : memref<304x20xf32, #tpu.memory_space<vmem>>, vector<8x20xf32>
    %c64 = arith.constant 64 : index
    %c0_24 = arith.constant 0 : index
    %84 = tpu.strided_load %arg5[%c64, %c0_24] {strides = array<i32: 2, 1>} : memref<304x20xf32, #tpu.memory_space<vmem>>, vector<8x20xf32>
    %c96 = arith.constant 96 : index
    %c0_25 = arith.constant 0 : index
    %85 = tpu.strided_load %arg5[%c96, %c0_25] {strides = array<i32: 2, 1>} : memref<304x20xf32, #tpu.memory_space<vmem>>, vector<8x20xf32>
    %c128 = arith.constant 128 : index
    %c0_26 = arith.constant 0 : index
    %86 = tpu.strided_load %arg5[%c128, %c0_26] {strides = array<i32: 2, 1>} : memref<304x20xf32, #tpu.memory_space<vmem>>, vector<8x20xf32>
    %c160 = arith.constant 160 : index
    %c0_27 = arith.constant 0 : index
    %87 = tpu.strided_load %arg5[%c160, %c0_27] {strides = array<i32: 2, 1>} : memref<304x20xf32, #tpu.memory_space<vmem>>, vector<8x20xf32>
    %c192 = arith.constant 192 : index
    %c0_28 = arith.constant 0 : index
    %88 = tpu.strided_load %arg5[%c192, %c0_28] {strides = array<i32: 2, 1>} : memref<304x20xf32, #tpu.memory_space<vmem>>, vector<8x20xf32>
    %c224 = arith.constant 224 : index
    %c0_29 = arith.constant 0 : index
    %89 = tpu.strided_load %arg5[%c224, %c0_29] {strides = array<i32: 2, 1>} : memref<304x20xf32, #tpu.memory_space<vmem>>, vector<8x20xf32>
    %90 = tpu.concatenate %82, %83, %84, %85, %86, %87, %88, %89 in 0 : vector<8x20xf32>, vector<8x20xf32>, vector<8x20xf32>, vector<8x20xf32>, vector<8x20xf32>, vector<8x20xf32>, vector<8x20xf32>, vector<8x20xf32> -> vector<64x20xf32>
    %cst_30 = arith.constant 0.000000e+00 : f32
    %91 = vector.broadcast %cst_30 : f32 to vector<16x20xf32>
    %c0_31 = arith.constant 0 : index
    %c0_32 = arith.constant 0 : index
    %92 = vector.load %arg6[%c0_31, %c0_32] : memref<96x40xf32, #tpu.memory_space<vmem>>, vector<16x20xf32>
    tpu.vector_store %arg6[%c0_31, %c0_32], %91 {strides = array<i32>} : memref<96x40xf32, #tpu.memory_space<vmem>>, vector<16x20xf32>,
    %c80 = arith.constant 80 : index
    %c0_33 = arith.constant 0 : index
    %93 = vector.load %arg6[%c80, %c0_33] : memref<96x40xf32, #tpu.memory_space<vmem>>, vector<16x20xf32>
    tpu.vector_store %arg6[%c80, %c0_33], %91 {strides = array<i32>} : memref<96x40xf32, #tpu.memory_space<vmem>>, vector<16x20xf32>,
    %c16 = arith.constant 16 : index
    %c0_34 = arith.constant 0 : index
    %94 = vector.load %arg6[%c16, %c0_34] : memref<96x40xf32, #tpu.memory_space<vmem>>, vector<64x20xf32>
    tpu.vector_store %arg6[%c16, %c0_34], %90 {strides = array<i32>} : memref<96x40xf32, #tpu.memory_space<vmem>>, vector<64x20xf32>,
    %c9_35 = arith.constant 9 : index
    %c0_36 = arith.constant 0 : index
    %95 = vector.load %arg2[%c9_35, %c0_36] : memref<66x40xf32, #tpu.memory_space<vmem>>, vector<9x20xf32>
    %96 = tpu.iota {dimensions = array<i32: 0>} : vector<80x20xi32>
    %c7_i32 = arith.constant 7 : i32
    %97 = vector.broadcast %c7_i32 : i32 to vector<80x20xi32>
    %98 = arith.andi %96, %97 : vector<80x20xi32>
    %c8_37 = arith.constant 8 : index
    %c0_38 = arith.constant 0 : index
    %99 = vector.load %arg6[%c8_37, %c0_38] : memref<96x40xf32, #tpu.memory_space<vmem>>, vector<80x20xf32>
    %c1_i32_39 = arith.constant 1 : i32
    %100 = vector.broadcast %c1_i32_39 : i32 to vector<80x20xi32>
    %101 = arith.cmpi sge, %98, %100 : vector<80x20xi32>
    %c7_40 = arith.constant 7 : index
    %c0_41 = arith.constant 0 : index
    %102 = vector.load %arg6[%c7_40, %c0_41] : memref<96x40xf32, #tpu.memory_space<vmem>>, vector<80x20xf32>
    %cst_42 = arith.constant 0.000000e+00 : f32
    %103 = vector.broadcast %cst_42 : f32 to vector<80x20xf32>
    %104 = arith.select %101, %102, %103 : vector<80x20xi1>, vector<80x20xf32>
    %c6_i32 = arith.constant 6 : i32
    %105 = vector.broadcast %c6_i32 : i32 to vector<80x20xi32>
    %106 = arith.cmpi sle, %98, %105 : vector<80x20xi32>
    %c9_43 = arith.constant 9 : index
    %c0_44 = arith.constant 0 : index
    %107 = vector.load %arg6[%c9_43, %c0_44] : memref<96x40xf32, #tpu.memory_space<vmem>>, vector<80x20xf32>
    %cst_45 = arith.constant 0.000000e+00 : f32
    %108 = vector.broadcast %cst_45 : f32 to vector<80x20xf32>
    %109 = arith.select %106, %107, %108 : vector<80x20xi1>, vector<80x20xf32>
    %cst_46 = arith.constant 0.000000e+00 : f32
    %110 = vector.broadcast %cst_46 : f32 to vector<64x20xf32>
    %111 = vector.extract_strided_slice %104 {offsets = [0, 0], sizes = [64, 20], strides = [1, 1]} : vector<80x20xf32> to vector<64x20xf32>
    %112 = vector.extract_strided_slice %95 {offsets = [0, 0], sizes = [1, 20], strides = [1, 1]} : vector<9x20xf32> to vector<1x20xf32>
    %113 = vector.broadcast %112 : vector<1x20xf32> to vector<64x20xf32>
    %114 = arith.mulf %111, %113 : vector<64x20xf32>
    %115 = arith.addf %110, %114 : vector<64x20xf32>
    %116 = vector.extract_strided_slice %99 {offsets = [0, 0], sizes = [64, 20], strides = [1, 1]} : vector<80x20xf32> to vector<64x20xf32>
    %117 = vector.extract_strided_slice %95 {offsets = [1, 0], sizes = [1, 20], strides = [1, 1]} : vector<9x20xf32> to vector<1x20xf32>
    %118 = vector.broadcast %117 : vector<1x20xf32> to vector<64x20xf32>
    %119 = arith.mulf %116, %118 : vector<64x20xf32>
    %120 = arith.addf %115, %119 : vector<64x20xf32>
    %121 = vector.extract_strided_slice %109 {offsets = [0, 0], sizes = [64, 20], strides = [1, 1]} : vector<80x20xf32> to vector<64x20xf32>
    %122 = vector.extract_strided_slice %95 {offsets = [2, 0], sizes = [1, 20], strides = [1, 1]} : vector<9x20xf32> to vector<1x20xf32>
    %123 = vector.broadcast %122 : vector<1x20xf32> to vector<64x20xf32>
    %124 = arith.mulf %121, %123 : vector<64x20xf32>
    %125 = arith.addf %120, %124 : vector<64x20xf32>
    %126 = vector.extract_strided_slice %104 {offsets = [8, 0], sizes = [64, 20], strides = [1, 1]} : vector<80x20xf32> to vector<64x20xf32>
    %127 = vector.extract_strided_slice %95 {offsets = [3, 0], sizes = [1, 20], strides = [1, 1]} : vector<9x20xf32> to vector<1x20xf32>
    %128 = vector.broadcast %127 : vector<1x20xf32> to vector<64x20xf32>
    %129 = arith.mulf %126, %128 : vector<64x20xf32>
    %130 = arith.addf %125, %129 : vector<64x20xf32>
    %131 = vector.extract_strided_slice %99 {offsets = [8, 0], sizes = [64, 20], strides = [1, 1]} : vector<80x20xf32> to vector<64x20xf32>
    %132 = vector.extract_strided_slice %95 {offsets = [4, 0], sizes = [1, 20], strides = [1, 1]} : vector<9x20xf32> to vector<1x20xf32>
    %133 = vector.broadcast %132 : vector<1x20xf32> to vector<64x20xf32>
    %134 = arith.mulf %131, %133 : vector<64x20xf32>
    %135 = arith.addf %130, %134 : vector<64x20xf32>
    %136 = vector.extract_strided_slice %109 {offsets = [8, 0], sizes = [64, 20], strides = [1, 1]} : vector<80x20xf32> to vector<64x20xf32>
    %137 = vector.extract_strided_slice %95 {offsets = [5, 0], sizes = [1, 20], strides = [1, 1]} : vector<9x20xf32> to vector<1x20xf32>
    %138 = vector.broadcast %137 : vector<1x20xf32> to vector<64x20xf32>
    %139 = arith.mulf %136, %138 : vector<64x20xf32>
    %140 = arith.addf %135, %139 : vector<64x20xf32>
    %141 = vector.extract_strided_slice %104 {offsets = [16, 0], sizes = [64, 20], strides = [1, 1]} : vector<80x20xf32> to vector<64x20xf32>
    %142 = vector.extract_strided_slice %95 {offsets = [6, 0], sizes = [1, 20], strides = [1, 1]} : vector<9x20xf32> to vector<1x20xf32>
    %143 = vector.broadcast %142 : vector<1x20xf32> to vector<64x20xf32>
    %144 = arith.mulf %141, %143 : vector<64x20xf32>
    %145 = arith.addf %140, %144 : vector<64x20xf32>
    %146 = vector.extract_strided_slice %99 {offsets = [16, 0], sizes = [64, 20], strides = [1, 1]} : vector<80x20xf32> to vector<64x20xf32>
    %147 = vector.extract_strided_slice %95 {offsets = [7, 0], sizes = [1, 20], strides = [1, 1]} : vector<9x20xf32> to vector<1x20xf32>
    %148 = vector.broadcast %147 : vector<1x20xf32> to vector<64x20xf32>
    %149 = arith.mulf %146, %148 : vector<64x20xf32>
    %150 = arith.addf %145, %149 : vector<64x20xf32>
    %151 = vector.extract_strided_slice %109 {offsets = [16, 0], sizes = [64, 20], strides = [1, 1]} : vector<80x20xf32> to vector<64x20xf32>
    %152 = vector.extract_strided_slice %95 {offsets = [8, 0], sizes = [1, 20], strides = [1, 1]} : vector<9x20xf32> to vector<1x20xf32>
    %153 = vector.broadcast %152 : vector<1x20xf32> to vector<64x20xf32>
    %154 = arith.mulf %151, %153 : vector<64x20xf32>
    %155 = arith.addf %150, %154 : vector<64x20xf32>
    %cst_47 = arith.constant 0.000000e+00 : f32
    %156 = vector.broadcast %cst_47 : f32 to vector<64x20xf32>
    %157 = arith.maximumf %155, %156 : vector<64x20xf32>
    %c3 = arith.constant 3 : index
    %c0_48 = arith.constant 0 : index
    %158 = vector.load %arg3[%c3, %c0_48] : memref<603x80xbf16, #tpu.memory_space<vmem>>, vector<20x40xbf16>
    %159 = arith.truncf %157 : vector<64x20xf32> to vector<64x20xbf16>
    %cst_49 = arith.constant dense<0.000000e+00> : vector<64x40xf32>
    %160 = tpu.matmul %159, %158, %cst_49 {dimension_numbers = #tpu.dot_dimension_numbers<[1], [0], [0], [1], [0, 0, 1, 1], [], []>} : vector<64x20xbf16>, vector<20x40xbf16>, vector<64x40xf32> -> vector<64x40xf32>
    %cst_50 = arith.constant 0.000000e+00 : f32
    %161 = vector.broadcast %cst_50 : f32 to vector<64x40xf32>
    %162 = arith.maximumf %160, %161 : vector<64x40xf32>
    %cst_51 = arith.constant 0.000000e+00 : f32
    %163 = vector.broadcast %cst_51 : f32 to vector<8x40xf32>
    %164 = tpu.concatenate %162, %163 in 0 : vector<64x40xf32>, vector<8x40xf32> -> vector<72x40xf32>
    %165 = vector.extract_strided_slice %164 {offsets = [0, 0], sizes = [64, 40], strides = [1, 1]} : vector<72x40xf32> to vector<64x40xf32>
    %166 = vector.extract_strided_slice %164 {offsets = [1, 0], sizes = [64, 40], strides = [1, 1]} : vector<72x40xf32> to vector<64x40xf32>
    %167 = arith.maximumf %165, %166 : vector<64x40xf32>
    %168 = vector.extract_strided_slice %167 {offsets = [0, 0], sizes = [56, 40], strides = [1, 1]} : vector<64x40xf32> to vector<56x40xf32>
    %169 = vector.extract_strided_slice %167 {offsets = [8, 0], sizes = [56, 40], strides = [1, 1]} : vector<64x40xf32> to vector<56x40xf32>
    %170 = arith.maximumf %168, %169 : vector<56x40xf32>
    %c0_52 = arith.constant 0 : index
    %c0_53 = arith.constant 0 : index
    %171 = vector.load %arg6[%c0_52, %c0_53] : memref<96x40xf32, #tpu.memory_space<vmem>>, vector<56x40xf32>
    tpu.vector_store %arg6[%c0_52, %c0_53], %170 {strides = array<i32>} : memref<96x40xf32, #tpu.memory_space<vmem>>, vector<56x40xf32>,
    %c0_54 = arith.constant 0 : index
    %c0_55 = arith.constant 0 : index
    %172 = tpu.strided_load %arg6[%c0_54, %c0_55] {strides = array<i32: 2, 1>} : memref<96x40xf32, #tpu.memory_space<vmem>>, vector<4x40xf32>
    %c16_56 = arith.constant 16 : index
    %c0_57 = arith.constant 0 : index
    %173 = tpu.strided_load %arg6[%c16_56, %c0_57] {strides = array<i32: 2, 1>} : memref<96x40xf32, #tpu.memory_space<vmem>>, vector<4x40xf32>
    %c32_58 = arith.constant 32 : index
    %c0_59 = arith.constant 0 : index
    %174 = tpu.strided_load %arg6[%c32_58, %c0_59] {strides = array<i32: 2, 1>} : memref<96x40xf32, #tpu.memory_space<vmem>>, vector<4x40xf32>
    %c48 = arith.constant 48 : index
    %c0_60 = arith.constant 0 : index
    %175 = tpu.strided_load %arg6[%c48, %c0_60] {strides = array<i32: 2, 1>} : memref<96x40xf32, #tpu.memory_space<vmem>>, vector<4x40xf32>
    %176 = tpu.concatenate %172, %173, %174, %175 in 0 : vector<4x40xf32>, vector<4x40xf32>, vector<4x40xf32>, vector<4x40xf32> -> vector<16x40xf32>
    %cst_61 = arith.constant 0.000000e+00 : f32
    %177 = vector.broadcast %cst_61 : f32 to vector<12x40xf32>
    %c0_62 = arith.constant 0 : index
    %c0_63 = arith.constant 0 : index
    %178 = vector.load %arg7[%c0_62, %c0_63] : memref<40x40xf32, #tpu.memory_space<vmem>>, vector<12x40xf32>
    tpu.vector_store %arg7[%c0_62, %c0_63], %177 {strides = array<i32>} : memref<40x40xf32, #tpu.memory_space<vmem>>, vector<12x40xf32>,
    %c28 = arith.constant 28 : index
    %c0_64 = arith.constant 0 : index
    %179 = vector.load %arg7[%c28, %c0_64] : memref<40x40xf32, #tpu.memory_space<vmem>>, vector<12x40xf32>
    tpu.vector_store %arg7[%c28, %c0_64], %177 {strides = array<i32>} : memref<40x40xf32, #tpu.memory_space<vmem>>, vector<12x40xf32>,
    %c12 = arith.constant 12 : index
    %c0_65 = arith.constant 0 : index
    %180 = vector.load %arg7[%c12, %c0_65] : memref<40x40xf32, #tpu.memory_space<vmem>>, vector<16x40xf32>
    tpu.vector_store %arg7[%c12, %c0_65], %176 {strides = array<i32>} : memref<40x40xf32, #tpu.memory_space<vmem>>, vector<16x40xf32>,
    %c18 = arith.constant 18 : index
    %c0_66 = arith.constant 0 : index
    %181 = vector.load %arg2[%c18, %c0_66] : memref<66x40xf32, #tpu.memory_space<vmem>>, vector<9x40xf32>
    %182 = tpu.iota {dimensions = array<i32: 0>} : vector<24x40xi32>
    %c3_i32 = arith.constant 3 : i32
    %183 = vector.broadcast %c3_i32 : i32 to vector<24x40xi32>
    %184 = arith.andi %182, %183 : vector<24x40xi32>
    %c8_67 = arith.constant 8 : index
    %c0_68 = arith.constant 0 : index
    %185 = vector.load %arg7[%c8_67, %c0_68] : memref<40x40xf32, #tpu.memory_space<vmem>>, vector<24x40xf32>
    %c1_i32_69 = arith.constant 1 : i32
    %186 = vector.broadcast %c1_i32_69 : i32 to vector<24x40xi32>
    %187 = arith.cmpi sge, %184, %186 : vector<24x40xi32>
    %c7_70 = arith.constant 7 : index
    %c0_71 = arith.constant 0 : index
    %188 = vector.load %arg7[%c7_70, %c0_71] : memref<40x40xf32, #tpu.memory_space<vmem>>, vector<24x40xf32>
    %cst_72 = arith.constant 0.000000e+00 : f32
    %189 = vector.broadcast %cst_72 : f32 to vector<24x40xf32>
    %190 = arith.select %187, %188, %189 : vector<24x40xi1>, vector<24x40xf32>
    %c2_i32 = arith.constant 2 : i32
    %191 = vector.broadcast %c2_i32 : i32 to vector<24x40xi32>
    %192 = arith.cmpi sle, %184, %191 : vector<24x40xi32>
    %c9_73 = arith.constant 9 : index
    %c0_74 = arith.constant 0 : index
    %193 = vector.load %arg7[%c9_73, %c0_74] : memref<40x40xf32, #tpu.memory_space<vmem>>, vector<24x40xf32>
    %cst_75 = arith.constant 0.000000e+00 : f32
    %194 = vector.broadcast %cst_75 : f32 to vector<24x40xf32>
    %195 = arith.select %192, %193, %194 : vector<24x40xi1>, vector<24x40xf32>
    %cst_76 = arith.constant 0.000000e+00 : f32
    %196 = vector.broadcast %cst_76 : f32 to vector<16x40xf32>
    %197 = vector.extract_strided_slice %190 {offsets = [0, 0], sizes = [16, 40], strides = [1, 1]} : vector<24x40xf32> to vector<16x40xf32>
    %198 = vector.extract_strided_slice %181 {offsets = [0, 0], sizes = [1, 40], strides = [1, 1]} : vector<9x40xf32> to vector<1x40xf32>
    %199 = vector.broadcast %198 : vector<1x40xf32> to vector<16x40xf32>
    %200 = arith.mulf %197, %199 : vector<16x40xf32>
    %201 = arith.addf %196, %200 : vector<16x40xf32>
    %202 = vector.extract_strided_slice %185 {offsets = [0, 0], sizes = [16, 40], strides = [1, 1]} : vector<24x40xf32> to vector<16x40xf32>
    %203 = vector.extract_strided_slice %181 {offsets = [1, 0], sizes = [1, 40], strides = [1, 1]} : vector<9x40xf32> to vector<1x40xf32>
    %204 = vector.broadcast %203 : vector<1x40xf32> to vector<16x40xf32>
    %205 = arith.mulf %202, %204 : vector<16x40xf32>
    %206 = arith.addf %201, %205 : vector<16x40xf32>
    %207 = vector.extract_strided_slice %195 {offsets = [0, 0], sizes = [16, 40], strides = [1, 1]} : vector<24x40xf32> to vector<16x40xf32>
    %208 = vector.extract_strided_slice %181 {offsets = [2, 0], sizes = [1, 40], strides = [1, 1]} : vector<9x40xf32> to vector<1x40xf32>
    %209 = vector.broadcast %208 : vector<1x40xf32> to vector<16x40xf32>
    %210 = arith.mulf %207, %209 : vector<16x40xf32>
    %211 = arith.addf %206, %210 : vector<16x40xf32>
    %212 = vector.extract_strided_slice %190 {offsets = [4, 0], sizes = [16, 40], strides = [1, 1]} : vector<24x40xf32> to vector<16x40xf32>
    %213 = vector.extract_strided_slice %181 {offsets = [3, 0], sizes = [1, 40], strides = [1, 1]} : vector<9x40xf32> to vector<1x40xf32>
    %214 = vector.broadcast %213 : vector<1x40xf32> to vector<16x40xf32>
    %215 = arith.mulf %212, %214 : vector<16x40xf32>
    %216 = arith.addf %211, %215 : vector<16x40xf32>
    %217 = vector.extract_strided_slice %185 {offsets = [4, 0], sizes = [16, 40], strides = [1, 1]} : vector<24x40xf32> to vector<16x40xf32>
    %218 = vector.extract_strided_slice %181 {offsets = [4, 0], sizes = [1, 40], strides = [1, 1]} : vector<9x40xf32> to vector<1x40xf32>
    %219 = vector.broadcast %218 : vector<1x40xf32> to vector<16x40xf32>
    %220 = arith.mulf %217, %219 : vector<16x40xf32>
    %221 = arith.addf %216, %220 : vector<16x40xf32>
    %222 = vector.extract_strided_slice %195 {offsets = [4, 0], sizes = [16, 40], strides = [1, 1]} : vector<24x40xf32> to vector<16x40xf32>
    %223 = vector.extract_strided_slice %181 {offsets = [5, 0], sizes = [1, 40], strides = [1, 1]} : vector<9x40xf32> to vector<1x40xf32>
    %224 = vector.broadcast %223 : vector<1x40xf32> to vector<16x40xf32>
    %225 = arith.mulf %222, %224 : vector<16x40xf32>
    %226 = arith.addf %221, %225 : vector<16x40xf32>
    %227 = vector.extract_strided_slice %190 {offsets = [8, 0], sizes = [16, 40], strides = [1, 1]} : vector<24x40xf32> to vector<16x40xf32>
    %228 = vector.extract_strided_slice %181 {offsets = [6, 0], sizes = [1, 40], strides = [1, 1]} : vector<9x40xf32> to vector<1x40xf32>
    %229 = vector.broadcast %228 : vector<1x40xf32> to vector<16x40xf32>
    %230 = arith.mulf %227, %229 : vector<16x40xf32>
    %231 = arith.addf %226, %230 : vector<16x40xf32>
    %232 = vector.extract_strided_slice %185 {offsets = [8, 0], sizes = [16, 40], strides = [1, 1]} : vector<24x40xf32> to vector<16x40xf32>
    %233 = vector.extract_strided_slice %181 {offsets = [7, 0], sizes = [1, 40], strides = [1, 1]} : vector<9x40xf32> to vector<1x40xf32>
    %234 = vector.broadcast %233 : vector<1x40xf32> to vector<16x40xf32>
    %235 = arith.mulf %232, %234 : vector<16x40xf32>
    %236 = arith.addf %231, %235 : vector<16x40xf32>
    %237 = vector.extract_strided_slice %195 {offsets = [8, 0], sizes = [16, 40], strides = [1, 1]} : vector<24x40xf32> to vector<16x40xf32>
    %238 = vector.extract_strided_slice %181 {offsets = [8, 0], sizes = [1, 40], strides = [1, 1]} : vector<9x40xf32> to vector<1x40xf32>
    %239 = vector.broadcast %238 : vector<1x40xf32> to vector<16x40xf32>
    %240 = arith.mulf %237, %239 : vector<16x40xf32>
    %241 = arith.addf %236, %240 : vector<16x40xf32>
    %cst_77 = arith.constant 0.000000e+00 : f32
    %242 = vector.broadcast %cst_77 : f32 to vector<16x40xf32>
    %243 = arith.maximumf %241, %242 : vector<16x40xf32>
    %c23 = arith.constant 23 : index
    %c0_78 = arith.constant 0 : index
    %244 = vector.load %arg3[%c23, %c0_78] : memref<603x80xbf16, #tpu.memory_space<vmem>>, vector<40x80xbf16>
    %245 = arith.truncf %243 : vector<16x40xf32> to vector<16x40xbf16>
    %cst_79 = arith.constant dense<0.000000e+00> : vector<16x80xf32>
    %246 = tpu.matmul %245, %244, %cst_79 {dimension_numbers = #tpu.dot_dimension_numbers<[1], [0], [0], [1], [0, 0, 1, 1], [], []>} : vector<16x40xbf16>, vector<40x80xbf16>, vector<16x80xf32> -> vector<16x80xf32>
    %cst_80 = arith.constant 0.000000e+00 : f32
    %247 = vector.broadcast %cst_80 : f32 to vector<16x80xf32>
    %248 = arith.maximumf %246, %247 : vector<16x80xf32>
    %c63 = arith.constant 63 : index
    %c0_81 = arith.constant 0 : index
    %249 = vector.load %arg2[%c63, %c0_81] : memref<66x40xf32, #tpu.memory_space<vmem>>, vector<1x40xf32>
    %cst_82 = arith.constant 0.000000e+00 : f32
    %250 = vector.broadcast %cst_82 : f32 to vector<16x40xf32>
    %c0_83 = arith.constant 0 : index
    %c0_84 = arith.constant 0 : index
    %251 = vector.load %arg6[%c0_83, %c0_84] : memref<96x40xf32, #tpu.memory_space<vmem>>, vector<16x40xf32>
    tpu.vector_store %arg6[%c0_83, %c0_84], %250 {strides = array<i32>} : memref<96x40xf32, #tpu.memory_space<vmem>>, vector<16x40xf32>,
    %c80_85 = arith.constant 80 : index
    %c0_86 = arith.constant 0 : index
    %252 = vector.load %arg6[%c80_85, %c0_86] : memref<96x40xf32, #tpu.memory_space<vmem>>, vector<16x40xf32>
    tpu.vector_store %arg6[%c80_85, %c0_86], %250 {strides = array<i32>} : memref<96x40xf32, #tpu.memory_space<vmem>>, vector<16x40xf32>,
    %253 = arith.truncf %248 : vector<16x80xf32> to vector<16x80xbf16>
    %c63_87 = arith.constant 63 : index
    %c0_88 = arith.constant 0 : index
    %254 = vector.load %arg3[%c63_87, %c0_88] : memref<603x80xbf16, #tpu.memory_space<vmem>>, vector<80x40xbf16>
    %cst_89 = arith.constant dense<0.000000e+00> : vector<16x40xf32>
    %255 = tpu.matmul %253, %254, %cst_89 {dimension_numbers = #tpu.dot_dimension_numbers<[1], [0], [0], [1], [0, 0, 1, 1], [], []>} : vector<16x80xbf16>, vector<80x40xbf16>, vector<16x40xf32> -> vector<16x40xf32>
    %256 = vector.broadcast %249 : vector<1x40xf32> to vector<16x40xf32>
    %257 = arith.addf %255, %256 : vector<16x40xf32>
    %258 = vector.extract_strided_slice %257 {offsets = [0, 0], sizes = [4, 40], strides = [1, 1]} : vector<16x40xf32> to vector<4x40xf32>
    %c16_90 = arith.constant 16 : index
    %c0_91 = arith.constant 0 : index
    %259 = tpu.strided_load %arg6[%c16_90, %c0_91] {strides = array<i32: 2, 1>} : memref<96x40xf32, #tpu.memory_space<vmem>>, vector<4x40xf32>
    tpu.strided_store %arg6[%c16_90, %c0_91], %258 {strides = array<i32: 2, 1>} : memref<96x40xf32, #tpu.memory_space<vmem>>, vector<4x40xf32>
    %260 = vector.extract_strided_slice %257 {offsets = [4, 0], sizes = [4, 40], strides = [1, 1]} : vector<16x40xf32> to vector<4x40xf32>
    %c32_92 = arith.constant 32 : index
    %c0_93 = arith.constant 0 : index
    %261 = tpu.strided_load %arg6[%c32_92, %c0_93] {strides = array<i32: 2, 1>} : memref<96x40xf32, #tpu.memory_space<vmem>>, vector<4x40xf32>
    tpu.strided_store %arg6[%c32_92, %c0_93], %260 {strides = array<i32: 2, 1>} : memref<96x40xf32, #tpu.memory_space<vmem>>, vector<4x40xf32>
    %262 = vector.extract_strided_slice %257 {offsets = [8, 0], sizes = [4, 40], strides = [1, 1]} : vector<16x40xf32> to vector<4x40xf32>
    %c48_94 = arith.constant 48 : index
    %c0_95 = arith.constant 0 : index
    %263 = tpu.strided_load %arg6[%c48_94, %c0_95] {strides = array<i32: 2, 1>} : memref<96x40xf32, #tpu.memory_space<vmem>>, vector<4x40xf32>
    tpu.strided_store %arg6[%c48_94, %c0_95], %262 {strides = array<i32: 2, 1>} : memref<96x40xf32, #tpu.memory_space<vmem>>, vector<4x40xf32>
    %264 = vector.extract_strided_slice %257 {offsets = [12, 0], sizes = [4, 40], strides = [1, 1]} : vector<16x40xf32> to vector<4x40xf32>
    %c64_96 = arith.constant 64 : index
    %c0_97 = arith.constant 0 : index
    %265 = tpu.strided_load %arg6[%c64_96, %c0_97] {strides = array<i32: 2, 1>} : memref<96x40xf32, #tpu.memory_space<vmem>>, vector<4x40xf32>
    tpu.strided_store %arg6[%c64_96, %c0_97], %264 {strides = array<i32: 2, 1>} : memref<96x40xf32, #tpu.memory_space<vmem>>, vector<4x40xf32>
    %c143 = arith.constant 143 : index
    %c0_98 = arith.constant 0 : index
    %266 = vector.load %arg3[%c143, %c0_98] : memref<603x80xbf16, #tpu.memory_space<vmem>>, vector<80x40xbf16>
    %cst_99 = arith.constant dense<0.000000e+00> : vector<16x40xf32>
    %267 = tpu.matmul %253, %266, %cst_99 {dimension_numbers = #tpu.dot_dimension_numbers<[1], [0], [0], [1], [0, 0, 1, 1], [], []>} : vector<16x80xbf16>, vector<80x40xbf16>, vector<16x40xf32> -> vector<16x40xf32>
    %268 = vector.broadcast %249 : vector<1x40xf32> to vector<16x40xf32>
    %269 = arith.addf %267, %268 : vector<16x40xf32>
    %270 = vector.extract_strided_slice %269 {offsets = [0, 0], sizes = [4, 40], strides = [1, 1]} : vector<16x40xf32> to vector<4x40xf32>
    %c17 = arith.constant 17 : index
    %c0_100 = arith.constant 0 : index
    %271 = tpu.strided_load %arg6[%c17, %c0_100] {strides = array<i32: 2, 1>} : memref<96x40xf32, #tpu.memory_space<vmem>>, vector<4x40xf32>
    tpu.strided_store %arg6[%c17, %c0_100], %270 {strides = array<i32: 2, 1>} : memref<96x40xf32, #tpu.memory_space<vmem>>, vector<4x40xf32>
    %272 = vector.extract_strided_slice %269 {offsets = [4, 0], sizes = [4, 40], strides = [1, 1]} : vector<16x40xf32> to vector<4x40xf32>
    %c33 = arith.constant 33 : index
    %c0_101 = arith.constant 0 : index
    %273 = tpu.strided_load %arg6[%c33, %c0_101] {strides = array<i32: 2, 1>} : memref<96x40xf32, #tpu.memory_space<vmem>>, vector<4x40xf32>
    tpu.strided_store %arg6[%c33, %c0_101], %272 {strides = array<i32: 2, 1>} : memref<96x40xf32, #tpu.memory_space<vmem>>, vector<4x40xf32>
    %274 = vector.extract_strided_slice %269 {offsets = [8, 0], sizes = [4, 40], strides = [1, 1]} : vector<16x40xf32> to vector<4x40xf32>
    %c49 = arith.constant 49 : index
    %c0_102 = arith.constant 0 : index
    %275 = tpu.strided_load %arg6[%c49, %c0_102] {strides = array<i32: 2, 1>} : memref<96x40xf32, #tpu.memory_space<vmem>>, vector<4x40xf32>
    tpu.strided_store %arg6[%c49, %c0_102], %274 {strides = array<i32: 2, 1>} : memref<96x40xf32, #tpu.memory_space<vmem>>, vector<4x40xf32>
    %276 = vector.extract_strided_slice %269 {offsets = [12, 0], sizes = [4, 40], strides = [1, 1]} : vector<16x40xf32> to vector<4x40xf32>
    %c65 = arith.constant 65 : index
    %c0_103 = arith.constant 0 : index
    %277 = tpu.strided_load %arg6[%c65, %c0_103] {strides = array<i32: 2, 1>} : memref<96x40xf32, #tpu.memory_space<vmem>>, vector<4x40xf32>
    tpu.strided_store %arg6[%c65, %c0_103], %276 {strides = array<i32: 2, 1>} : memref<96x40xf32, #tpu.memory_space<vmem>>, vector<4x40xf32>
    %c223 = arith.constant 223 : index
    %c0_104 = arith.constant 0 : index
    %278 = vector.load %arg3[%c223, %c0_104] : memref<603x80xbf16, #tpu.memory_space<vmem>>, vector<80x40xbf16>
    %cst_105 = arith.constant dense<0.000000e+00> : vector<16x40xf32>
    %279 = tpu.matmul %253, %278, %cst_105 {dimension_numbers = #tpu.dot_dimension_numbers<[1], [0], [0], [1], [0, 0, 1, 1], [], []>} : vector<16x80xbf16>, vector<80x40xbf16>, vector<16x40xf32> -> vector<16x40xf32>
    %280 = vector.broadcast %249 : vector<1x40xf32> to vector<16x40xf32>
    %281 = arith.addf %279, %280 : vector<16x40xf32>
    %282 = vector.extract_strided_slice %281 {offsets = [0, 0], sizes = [4, 40], strides = [1, 1]} : vector<16x40xf32> to vector<4x40xf32>
    %c24_106 = arith.constant 24 : index
    %c0_107 = arith.constant 0 : index
    %283 = tpu.strided_load %arg6[%c24_106, %c0_107] {strides = array<i32: 2, 1>} : memref<96x40xf32, #tpu.memory_space<vmem>>, vector<4x40xf32>
    tpu.strided_store %arg6[%c24_106, %c0_107], %282 {strides = array<i32: 2, 1>} : memref<96x40xf32, #tpu.memory_space<vmem>>, vector<4x40xf32>
    %284 = vector.extract_strided_slice %281 {offsets = [4, 0], sizes = [4, 40], strides = [1, 1]} : vector<16x40xf32> to vector<4x40xf32>
    %c40 = arith.constant 40 : index
    %c0_108 = arith.constant 0 : index
    %285 = tpu.strided_load %arg6[%c40, %c0_108] {strides = array<i32: 2, 1>} : memref<96x40xf32, #tpu.memory_space<vmem>>, vector<4x40xf32>
    tpu.strided_store %arg6[%c40, %c0_108], %284 {strides = array<i32: 2, 1>} : memref<96x40xf32, #tpu.memory_space<vmem>>, vector<4x40xf32>
    %286 = vector.extract_strided_slice %281 {offsets = [8, 0], sizes = [4, 40], strides = [1, 1]} : vector<16x40xf32> to vector<4x40xf32>
    %c56 = arith.constant 56 : index
    %c0_109 = arith.constant 0 : index
    %287 = tpu.strided_load %arg6[%c56, %c0_109] {strides = array<i32: 2, 1>} : memref<96x40xf32, #tpu.memory_space<vmem>>, vector<4x40xf32>
    tpu.strided_store %arg6[%c56, %c0_109], %286 {strides = array<i32: 2, 1>} : memref<96x40xf32, #tpu.memory_space<vmem>>, vector<4x40xf32>
    %288 = vector.extract_strided_slice %281 {offsets = [12, 0], sizes = [4, 40], strides = [1, 1]} : vector<16x40xf32> to vector<4x40xf32>
    %c72 = arith.constant 72 : index
    %c0_110 = arith.constant 0 : index
    %289 = tpu.strided_load %arg6[%c72, %c0_110] {strides = array<i32: 2, 1>} : memref<96x40xf32, #tpu.memory_space<vmem>>, vector<4x40xf32>
    tpu.strided_store %arg6[%c72, %c0_110], %288 {strides = array<i32: 2, 1>} : memref<96x40xf32, #tpu.memory_space<vmem>>, vector<4x40xf32>
    %c303 = arith.constant 303 : index
    %c0_111 = arith.constant 0 : index
    %290 = vector.load %arg3[%c303, %c0_111] : memref<603x80xbf16, #tpu.memory_space<vmem>>, vector<80x40xbf16>
    %cst_112 = arith.constant dense<0.000000e+00> : vector<16x40xf32>
    %291 = tpu.matmul %253, %290, %cst_112 {dimension_numbers = #tpu.dot_dimension_numbers<[1], [0], [0], [1], [0, 0, 1, 1], [], []>} : vector<16x80xbf16>, vector<80x40xbf16>, vector<16x40xf32> -> vector<16x40xf32>
    %292 = vector.broadcast %249 : vector<1x40xf32> to vector<16x40xf32>
    %293 = arith.addf %291, %292 : vector<16x40xf32>
    %294 = vector.extract_strided_slice %293 {offsets = [0, 0], sizes = [4, 40], strides = [1, 1]} : vector<16x40xf32> to vector<4x40xf32>
    %c25 = arith.constant 25 : index
    %c0_113 = arith.constant 0 : index
    %295 = tpu.strided_load %arg6[%c25, %c0_113] {strides = array<i32: 2, 1>} : memref<96x40xf32, #tpu.memory_space<vmem>>, vector<4x40xf32>
    tpu.strided_store %arg6[%c25, %c0_113], %294 {strides = array<i32: 2, 1>} : memref<96x40xf32, #tpu.memory_space<vmem>>, vector<4x40xf32>
    %296 = vector.extract_strided_slice %293 {offsets = [4, 0], sizes = [4, 40], strides = [1, 1]} : vector<16x40xf32> to vector<4x40xf32>
    %c41 = arith.constant 41 : index
    %c0_114 = arith.constant 0 : index
    %297 = tpu.strided_load %arg6[%c41, %c0_114] {strides = array<i32: 2, 1>} : memref<96x40xf32, #tpu.memory_space<vmem>>, vector<4x40xf32>
    tpu.strided_store %arg6[%c41, %c0_114], %296 {strides = array<i32: 2, 1>} : memref<96x40xf32, #tpu.memory_space<vmem>>, vector<4x40xf32>
    %298 = vector.extract_strided_slice %293 {offsets = [8, 0], sizes = [4, 40], strides = [1, 1]} : vector<16x40xf32> to vector<4x40xf32>
    %c57 = arith.constant 57 : index
    %c0_115 = arith.constant 0 : index
    %299 = tpu.strided_load %arg6[%c57, %c0_115] {strides = array<i32: 2, 1>} : memref<96x40xf32, #tpu.memory_space<vmem>>, vector<4x40xf32>
    tpu.strided_store %arg6[%c57, %c0_115], %298 {strides = array<i32: 2, 1>} : memref<96x40xf32, #tpu.memory_space<vmem>>, vector<4x40xf32>
    %300 = vector.extract_strided_slice %293 {offsets = [12, 0], sizes = [4, 40], strides = [1, 1]} : vector<16x40xf32> to vector<4x40xf32>
    %c73 = arith.constant 73 : index
    %c0_116 = arith.constant 0 : index
    %301 = tpu.strided_load %arg6[%c73, %c0_116] {strides = array<i32: 2, 1>} : memref<96x40xf32, #tpu.memory_space<vmem>>, vector<4x40xf32>
    tpu.strided_store %arg6[%c73, %c0_116], %300 {strides = array<i32: 2, 1>} : memref<96x40xf32, #tpu.memory_space<vmem>>, vector<4x40xf32>
    %c27 = arith.constant 27 : index
    %c0_117 = arith.constant 0 : index
    %302 = vector.load %arg2[%c27, %c0_117] : memref<66x40xf32, #tpu.memory_space<vmem>>, vector<9x40xf32>
    %303 = tpu.iota {dimensions = array<i32: 0>} : vector<80x40xi32>
    %c7_i32_118 = arith.constant 7 : i32
    %304 = vector.broadcast %c7_i32_118 : i32 to vector<80x40xi32>
    %305 = arith.andi %303, %304 : vector<80x40xi32>
    %c8_119 = arith.constant 8 : index
    %c0_120 = arith.constant 0 : index
    %306 = vector.load %arg6[%c8_119, %c0_120] : memref<96x40xf32, #tpu.memory_space<vmem>>, vector<80x40xf32>
    %c1_i32_121 = arith.constant 1 : i32
    %307 = vector.broadcast %c1_i32_121 : i32 to vector<80x40xi32>
    %308 = arith.cmpi sge, %305, %307 : vector<80x40xi32>
    %c7_122 = arith.constant 7 : index
    %c0_123 = arith.constant 0 : index
    %309 = vector.load %arg6[%c7_122, %c0_123] : memref<96x40xf32, #tpu.memory_space<vmem>>, vector<80x40xf32>
    %cst_124 = arith.constant 0.000000e+00 : f32
    %310 = vector.broadcast %cst_124 : f32 to vector<80x40xf32>
    %311 = arith.select %308, %309, %310 : vector<80x40xi1>, vector<80x40xf32>
    %c6_i32_125 = arith.constant 6 : i32
    %312 = vector.broadcast %c6_i32_125 : i32 to vector<80x40xi32>
    %313 = arith.cmpi sle, %305, %312 : vector<80x40xi32>
    %c9_126 = arith.constant 9 : index
    %c0_127 = arith.constant 0 : index
    %314 = vector.load %arg6[%c9_126, %c0_127] : memref<96x40xf32, #tpu.memory_space<vmem>>, vector<80x40xf32>
    %cst_128 = arith.constant 0.000000e+00 : f32
    %315 = vector.broadcast %cst_128 : f32 to vector<80x40xf32>
    %316 = arith.select %313, %314, %315 : vector<80x40xi1>, vector<80x40xf32>
    %cst_129 = arith.constant 0.000000e+00 : f32
    %317 = vector.broadcast %cst_129 : f32 to vector<64x40xf32>
    %318 = vector.extract_strided_slice %311 {offsets = [0, 0], sizes = [64, 40], strides = [1, 1]} : vector<80x40xf32> to vector<64x40xf32>
    %319 = vector.extract_strided_slice %302 {offsets = [0, 0], sizes = [1, 40], strides = [1, 1]} : vector<9x40xf32> to vector<1x40xf32>
    %320 = vector.broadcast %319 : vector<1x40xf32> to vector<64x40xf32>
    %321 = arith.mulf %318, %320 : vector<64x40xf32>
    %322 = arith.addf %317, %321 : vector<64x40xf32>
    %323 = vector.extract_strided_slice %306 {offsets = [0, 0], sizes = [64, 40], strides = [1, 1]} : vector<80x40xf32> to vector<64x40xf32>
    %324 = vector.extract_strided_slice %302 {offsets = [1, 0], sizes = [1, 40], strides = [1, 1]} : vector<9x40xf32> to vector<1x40xf32>
    %325 = vector.broadcast %324 : vector<1x40xf32> to vector<64x40xf32>
    %326 = arith.mulf %323, %325 : vector<64x40xf32>
    %327 = arith.addf %322, %326 : vector<64x40xf32>
    %328 = vector.extract_strided_slice %316 {offsets = [0, 0], sizes = [64, 40], strides = [1, 1]} : vector<80x40xf32> to vector<64x40xf32>
    %329 = vector.extract_strided_slice %302 {offsets = [2, 0], sizes = [1, 40], strides = [1, 1]} : vector<9x40xf32> to vector<1x40xf32>
    %330 = vector.broadcast %329 : vector<1x40xf32> to vector<64x40xf32>
    %331 = arith.mulf %328, %330 : vector<64x40xf32>
    %332 = arith.addf %327, %331 : vector<64x40xf32>
    %333 = vector.extract_strided_slice %311 {offsets = [8, 0], sizes = [64, 40], strides = [1, 1]} : vector<80x40xf32> to vector<64x40xf32>
    %334 = vector.extract_strided_slice %302 {offsets = [3, 0], sizes = [1, 40], strides = [1, 1]} : vector<9x40xf32> to vector<1x40xf32>
    %335 = vector.broadcast %334 : vector<1x40xf32> to vector<64x40xf32>
    %336 = arith.mulf %333, %335 : vector<64x40xf32>
    %337 = arith.addf %332, %336 : vector<64x40xf32>
    %338 = vector.extract_strided_slice %306 {offsets = [8, 0], sizes = [64, 40], strides = [1, 1]} : vector<80x40xf32> to vector<64x40xf32>
    %339 = vector.extract_strided_slice %302 {offsets = [4, 0], sizes = [1, 40], strides = [1, 1]} : vector<9x40xf32> to vector<1x40xf32>
    %340 = vector.broadcast %339 : vector<1x40xf32> to vector<64x40xf32>
    %341 = arith.mulf %338, %340 : vector<64x40xf32>
    %342 = arith.addf %337, %341 : vector<64x40xf32>
    %343 = vector.extract_strided_slice %316 {offsets = [8, 0], sizes = [64, 40], strides = [1, 1]} : vector<80x40xf32> to vector<64x40xf32>
    %344 = vector.extract_strided_slice %302 {offsets = [5, 0], sizes = [1, 40], strides = [1, 1]} : vector<9x40xf32> to vector<1x40xf32>
    %345 = vector.broadcast %344 : vector<1x40xf32> to vector<64x40xf32>
    %346 = arith.mulf %343, %345 : vector<64x40xf32>
    %347 = arith.addf %342, %346 : vector<64x40xf32>
    %348 = vector.extract_strided_slice %311 {offsets = [16, 0], sizes = [64, 40], strides = [1, 1]} : vector<80x40xf32> to vector<64x40xf32>
    %349 = vector.extract_strided_slice %302 {offsets = [6, 0], sizes = [1, 40], strides = [1, 1]} : vector<9x40xf32> to vector<1x40xf32>
    %350 = vector.broadcast %349 : vector<1x40xf32> to vector<64x40xf32>
    %351 = arith.mulf %348, %350 : vector<64x40xf32>
    %352 = arith.addf %347, %351 : vector<64x40xf32>
    %353 = vector.extract_strided_slice %306 {offsets = [16, 0], sizes = [64, 40], strides = [1, 1]} : vector<80x40xf32> to vector<64x40xf32>
    %354 = vector.extract_strided_slice %302 {offsets = [7, 0], sizes = [1, 40], strides = [1, 1]} : vector<9x40xf32> to vector<1x40xf32>
    %355 = vector.broadcast %354 : vector<1x40xf32> to vector<64x40xf32>
    %356 = arith.mulf %353, %355 : vector<64x40xf32>
    %357 = arith.addf %352, %356 : vector<64x40xf32>
    %358 = vector.extract_strided_slice %316 {offsets = [16, 0], sizes = [64, 40], strides = [1, 1]} : vector<80x40xf32> to vector<64x40xf32>
    %359 = vector.extract_strided_slice %302 {offsets = [8, 0], sizes = [1, 40], strides = [1, 1]} : vector<9x40xf32> to vector<1x40xf32>
    %360 = vector.broadcast %359 : vector<1x40xf32> to vector<64x40xf32>
    %361 = arith.mulf %358, %360 : vector<64x40xf32>
    %362 = arith.addf %357, %361 : vector<64x40xf32>
    %cst_130 = arith.constant 0.000000e+00 : f32
    %363 = vector.broadcast %cst_130 : f32 to vector<64x40xf32>
    %364 = arith.maximumf %362, %363 : vector<64x40xf32>
    %cst_131 = arith.constant 0.000000e+00 : f32
    %365 = vector.broadcast %cst_131 : f32 to vector<16x40xf32>
    %c0_132 = arith.constant 0 : index
    %c0_133 = arith.constant 0 : index
    %366 = vector.load %arg6[%c0_132, %c0_133] : memref<96x40xf32, #tpu.memory_space<vmem>>, vector<16x40xf32>
    tpu.vector_store %arg6[%c0_132, %c0_133], %365 {strides = array<i32>} : memref<96x40xf32, #tpu.memory_space<vmem>>, vector<16x40xf32>,
    %c80_134 = arith.constant 80 : index
    %c0_135 = arith.constant 0 : index
    %367 = vector.load %arg6[%c80_134, %c0_135] : memref<96x40xf32, #tpu.memory_space<vmem>>, vector<16x40xf32>
    tpu.vector_store %arg6[%c80_134, %c0_135], %365 {strides = array<i32>} : memref<96x40xf32, #tpu.memory_space<vmem>>, vector<16x40xf32>,
    %c16_136 = arith.constant 16 : index
    %c0_137 = arith.constant 0 : index
    %368 = vector.load %arg6[%c16_136, %c0_137] : memref<96x40xf32, #tpu.memory_space<vmem>>, vector<64x40xf32>
    tpu.vector_store %arg6[%c16_136, %c0_137], %162 {strides = array<i32>} : memref<96x40xf32, #tpu.memory_space<vmem>>, vector<64x40xf32>,
    %c36 = arith.constant 36 : index
    %c0_138 = arith.constant 0 : index
    %369 = vector.load %arg2[%c36, %c0_138] : memref<66x40xf32, #tpu.memory_space<vmem>>, vector<9x40xf32>
    %370 = tpu.iota {dimensions = array<i32: 0>} : vector<80x40xi32>
    %c7_i32_139 = arith.constant 7 : i32
    %371 = vector.broadcast %c7_i32_139 : i32 to vector<80x40xi32>
    %372 = arith.andi %370, %371 : vector<80x40xi32>
    %c8_140 = arith.constant 8 : index
    %c0_141 = arith.constant 0 : index
    %373 = vector.load %arg6[%c8_140, %c0_141] : memref<96x40xf32, #tpu.memory_space<vmem>>, vector<80x40xf32>
    %c1_i32_142 = arith.constant 1 : i32
    %374 = vector.broadcast %c1_i32_142 : i32 to vector<80x40xi32>
    %375 = arith.cmpi sge, %372, %374 : vector<80x40xi32>
    %c7_143 = arith.constant 7 : index
    %c0_144 = arith.constant 0 : index
    %376 = vector.load %arg6[%c7_143, %c0_144] : memref<96x40xf32, #tpu.memory_space<vmem>>, vector<80x40xf32>
    %cst_145 = arith.constant 0.000000e+00 : f32
    %377 = vector.broadcast %cst_145 : f32 to vector<80x40xf32>
    %378 = arith.select %375, %376, %377 : vector<80x40xi1>, vector<80x40xf32>
    %c6_i32_146 = arith.constant 6 : i32
    %379 = vector.broadcast %c6_i32_146 : i32 to vector<80x40xi32>
    %380 = arith.cmpi sle, %372, %379 : vector<80x40xi32>
    %c9_147 = arith.constant 9 : index
    %c0_148 = arith.constant 0 : index
    %381 = vector.load %arg6[%c9_147, %c0_148] : memref<96x40xf32, #tpu.memory_space<vmem>>, vector<80x40xf32>
    %cst_149 = arith.constant 0.000000e+00 : f32
    %382 = vector.broadcast %cst_149 : f32 to vector<80x40xf32>
    %383 = arith.select %380, %381, %382 : vector<80x40xi1>, vector<80x40xf32>
    %cst_150 = arith.constant 0.000000e+00 : f32
    %384 = vector.broadcast %cst_150 : f32 to vector<64x40xf32>
    %385 = vector.extract_strided_slice %378 {offsets = [0, 0], sizes = [64, 40], strides = [1, 1]} : vector<80x40xf32> to vector<64x40xf32>
    %386 = vector.extract_strided_slice %369 {offsets = [0, 0], sizes = [1, 40], strides = [1, 1]} : vector<9x40xf32> to vector<1x40xf32>
    %387 = vector.broadcast %386 : vector<1x40xf32> to vector<64x40xf32>
    %388 = arith.mulf %385, %387 : vector<64x40xf32>
    %389 = arith.addf %384, %388 : vector<64x40xf32>
    %390 = vector.extract_strided_slice %373 {offsets = [0, 0], sizes = [64, 40], strides = [1, 1]} : vector<80x40xf32> to vector<64x40xf32>
    %391 = vector.extract_strided_slice %369 {offsets = [1, 0], sizes = [1, 40], strides = [1, 1]} : vector<9x40xf32> to vector<1x40xf32>
    %392 = vector.broadcast %391 : vector<1x40xf32> to vector<64x40xf32>
    %393 = arith.mulf %390, %392 : vector<64x40xf32>
    %394 = arith.addf %389, %393 : vector<64x40xf32>
    %395 = vector.extract_strided_slice %383 {offsets = [0, 0], sizes = [64, 40], strides = [1, 1]} : vector<80x40xf32> to vector<64x40xf32>
    %396 = vector.extract_strided_slice %369 {offsets = [2, 0], sizes = [1, 40], strides = [1, 1]} : vector<9x40xf32> to vector<1x40xf32>
    %397 = vector.broadcast %396 : vector<1x40xf32> to vector<64x40xf32>
    %398 = arith.mulf %395, %397 : vector<64x40xf32>
    %399 = arith.addf %394, %398 : vector<64x40xf32>
    %400 = vector.extract_strided_slice %378 {offsets = [8, 0], sizes = [64, 40], strides = [1, 1]} : vector<80x40xf32> to vector<64x40xf32>
    %401 = vector.extract_strided_slice %369 {offsets = [3, 0], sizes = [1, 40], strides = [1, 1]} : vector<9x40xf32> to vector<1x40xf32>
    %402 = vector.broadcast %401 : vector<1x40xf32> to vector<64x40xf32>
    %403 = arith.mulf %400, %402 : vector<64x40xf32>
    %404 = arith.addf %399, %403 : vector<64x40xf32>
    %405 = vector.extract_strided_slice %373 {offsets = [8, 0], sizes = [64, 40], strides = [1, 1]} : vector<80x40xf32> to vector<64x40xf32>
    %406 = vector.extract_strided_slice %369 {offsets = [4, 0], sizes = [1, 40], strides = [1, 1]} : vector<9x40xf32> to vector<1x40xf32>
    %407 = vector.broadcast %406 : vector<1x40xf32> to vector<64x40xf32>
    %408 = arith.mulf %405, %407 : vector<64x40xf32>
    %409 = arith.addf %404, %408 : vector<64x40xf32>
    %410 = vector.extract_strided_slice %383 {offsets = [8, 0], sizes = [64, 40], strides = [1, 1]} : vector<80x40xf32> to vector<64x40xf32>
    %411 = vector.extract_strided_slice %369 {offsets = [5, 0], sizes = [1, 40], strides = [1, 1]} : vector<9x40xf32> to vector<1x40xf32>
    %412 = vector.broadcast %411 : vector<1x40xf32> to vector<64x40xf32>
    %413 = arith.mulf %410, %412 : vector<64x40xf32>
    %414 = arith.addf %409, %413 : vector<64x40xf32>
    %415 = vector.extract_strided_slice %378 {offsets = [16, 0], sizes = [64, 40], strides = [1, 1]} : vector<80x40xf32> to vector<64x40xf32>
    %416 = vector.extract_strided_slice %369 {offsets = [6, 0], sizes = [1, 40], strides = [1, 1]} : vector<9x40xf32> to vector<1x40xf32>
    %417 = vector.broadcast %416 : vector<1x40xf32> to vector<64x40xf32>
    %418 = arith.mulf %415, %417 : vector<64x40xf32>
    %419 = arith.addf %414, %418 : vector<64x40xf32>
    %420 = vector.extract_strided_slice %373 {offsets = [16, 0], sizes = [64, 40], strides = [1, 1]} : vector<80x40xf32> to vector<64x40xf32>
    %421 = vector.extract_strided_slice %369 {offsets = [7, 0], sizes = [1, 40], strides = [1, 1]} : vector<9x40xf32> to vector<1x40xf32>
    %422 = vector.broadcast %421 : vector<1x40xf32> to vector<64x40xf32>
    %423 = arith.mulf %420, %422 : vector<64x40xf32>
    %424 = arith.addf %419, %423 : vector<64x40xf32>
    %425 = vector.extract_strided_slice %383 {offsets = [16, 0], sizes = [64, 40], strides = [1, 1]} : vector<80x40xf32> to vector<64x40xf32>
    %426 = vector.extract_strided_slice %369 {offsets = [8, 0], sizes = [1, 40], strides = [1, 1]} : vector<9x40xf32> to vector<1x40xf32>
    %427 = vector.broadcast %426 : vector<1x40xf32> to vector<64x40xf32>
    %428 = arith.mulf %425, %427 : vector<64x40xf32>
    %429 = arith.addf %424, %428 : vector<64x40xf32>
    %cst_151 = arith.constant 0.000000e+00 : f32
    %430 = vector.broadcast %cst_151 : f32 to vector<64x40xf32>
    %431 = arith.maximumf %429, %430 : vector<64x40xf32>
    %c383 = arith.constant 383 : index
    %c0_152 = arith.constant 0 : index
    %432 = vector.load %arg3[%c383, %c0_152] : memref<603x80xbf16, #tpu.memory_space<vmem>>, vector<40x20xbf16>
    %433 = arith.truncf %364 : vector<64x40xf32> to vector<64x40xbf16>
    %cst_153 = arith.constant dense<0.000000e+00> : vector<64x20xf32>
    %434 = tpu.matmul %433, %432, %cst_153 {dimension_numbers = #tpu.dot_dimension_numbers<[1], [0], [0], [1], [0, 0, 1, 1], [], []>} : vector<64x40xbf16>, vector<40x20xbf16>, vector<64x20xf32> -> vector<64x20xf32>
    %c423 = arith.constant 423 : index
    %c0_154 = arith.constant 0 : index
    %435 = vector.load %arg3[%c423, %c0_154] : memref<603x80xbf16, #tpu.memory_space<vmem>>, vector<40x20xbf16>
    %436 = arith.truncf %431 : vector<64x40xf32> to vector<64x40xbf16>
    %cst_155 = arith.constant dense<0.000000e+00> : vector<64x20xf32>
    %437 = tpu.matmul %436, %435, %cst_155 {dimension_numbers = #tpu.dot_dimension_numbers<[1], [0], [0], [1], [0, 0, 1, 1], [], []>} : vector<64x40xbf16>, vector<40x20xbf16>, vector<64x20xf32> -> vector<64x20xf32>
    %438 = arith.addf %434, %437 : vector<64x20xf32>
    %cst_156 = arith.constant 0.000000e+00 : f32
    %439 = vector.broadcast %cst_156 : f32 to vector<64x20xf32>
    %440 = arith.maximumf %438, %439 : vector<64x20xf32>
    %c64_157 = arith.constant 64 : index
    %c0_158 = arith.constant 0 : index
    %441 = vector.load %arg2[%c64_157, %c0_158] : memref<66x40xf32, #tpu.memory_space<vmem>>, vector<1x20xf32>
    %cst_159 = arith.constant 0.000000e+00 : f32
    %442 = vector.broadcast %cst_159 : f32 to vector<24x20xf32>
    %c0_160 = arith.constant 0 : index
    %c0_161 = arith.constant 0 : index
    %443 = vector.load %arg5[%c0_160, %c0_161] : memref<304x20xf32, #tpu.memory_space<vmem>>, vector<24x20xf32>
    tpu.vector_store %arg5[%c0_160, %c0_161], %442 {strides = array<i32>} : memref<304x20xf32, #tpu.memory_space<vmem>>, vector<24x20xf32>,
    %c280_162 = arith.constant 280 : index
    %c0_163 = arith.constant 0 : index
    %444 = vector.load %arg5[%c280_162, %c0_163] : memref<304x20xf32, #tpu.memory_space<vmem>>, vector<24x20xf32>
    tpu.vector_store %arg5[%c280_162, %c0_163], %442 {strides = array<i32>} : memref<304x20xf32, #tpu.memory_space<vmem>>, vector<24x20xf32>,
    %445 = arith.truncf %440 : vector<64x20xf32> to vector<64x20xbf16>
    %c463 = arith.constant 463 : index
    %c0_164 = arith.constant 0 : index
    %446 = vector.load %arg3[%c463, %c0_164] : memref<603x80xbf16, #tpu.memory_space<vmem>>, vector<20x20xbf16>
    %cst_165 = arith.constant dense<0.000000e+00> : vector<64x20xf32>
    %447 = tpu.matmul %445, %446, %cst_165 {dimension_numbers = #tpu.dot_dimension_numbers<[1], [0], [0], [1], [0, 0, 1, 1], [], []>} : vector<64x20xbf16>, vector<20x20xbf16>, vector<64x20xf32> -> vector<64x20xf32>
    %448 = vector.broadcast %441 : vector<1x20xf32> to vector<64x20xf32>
    %449 = arith.addf %447, %448 : vector<64x20xf32>
    %450 = vector.extract_strided_slice %449 {offsets = [0, 0], sizes = [8, 20], strides = [1, 1]} : vector<64x20xf32> to vector<8x20xf32>
    %c24_166 = arith.constant 24 : index
    %c0_167 = arith.constant 0 : index
    %451 = tpu.strided_load %arg5[%c24_166, %c0_167] {strides = array<i32: 2, 1>} : memref<304x20xf32, #tpu.memory_space<vmem>>, vector<8x20xf32>
    tpu.strided_store %arg5[%c24_166, %c0_167], %450 {strides = array<i32: 2, 1>} : memref<304x20xf32, #tpu.memory_space<vmem>>, vector<8x20xf32>
    %452 = vector.extract_strided_slice %449 {offsets = [8, 0], sizes = [8, 20], strides = [1, 1]} : vector<64x20xf32> to vector<8x20xf32>
    %c56_168 = arith.constant 56 : index
    %c0_169 = arith.constant 0 : index
    %453 = tpu.strided_load %arg5[%c56_168, %c0_169] {strides = array<i32: 2, 1>} : memref<304x20xf32, #tpu.memory_space<vmem>>, vector<8x20xf32>
    tpu.strided_store %arg5[%c56_168, %c0_169], %452 {strides = array<i32: 2, 1>} : memref<304x20xf32, #tpu.memory_space<vmem>>, vector<8x20xf32>
    %454 = vector.extract_strided_slice %449 {offsets = [16, 0], sizes = [8, 20], strides = [1, 1]} : vector<64x20xf32> to vector<8x20xf32>
    %c88 = arith.constant 88 : index
    %c0_170 = arith.constant 0 : index
    %455 = tpu.strided_load %arg5[%c88, %c0_170] {strides = array<i32: 2, 1>} : memref<304x20xf32, #tpu.memory_space<vmem>>, vector<8x20xf32>
    tpu.strided_store %arg5[%c88, %c0_170], %454 {strides = array<i32: 2, 1>} : memref<304x20xf32, #tpu.memory_space<vmem>>, vector<8x20xf32>
    %456 = vector.extract_strided_slice %449 {offsets = [24, 0], sizes = [8, 20], strides = [1, 1]} : vector<64x20xf32> to vector<8x20xf32>
    %c120 = arith.constant 120 : index
    %c0_171 = arith.constant 0 : index
    %457 = tpu.strided_load %arg5[%c120, %c0_171] {strides = array<i32: 2, 1>} : memref<304x20xf32, #tpu.memory_space<vmem>>, vector<8x20xf32>
    tpu.strided_store %arg5[%c120, %c0_171], %456 {strides = array<i32: 2, 1>} : memref<304x20xf32, #tpu.memory_space<vmem>>, vector<8x20xf32>
    %458 = vector.extract_strided_slice %449 {offsets = [32, 0], sizes = [8, 20], strides = [1, 1]} : vector<64x20xf32> to vector<8x20xf32>
    %c152 = arith.constant 152 : index
    %c0_172 = arith.constant 0 : index
    %459 = tpu.strided_load %arg5[%c152, %c0_172] {strides = array<i32: 2, 1>} : memref<304x20xf32, #tpu.memory_space<vmem>>, vector<8x20xf32>
    tpu.strided_store %arg5[%c152, %c0_172], %458 {strides = array<i32: 2, 1>} : memref<304x20xf32, #tpu.memory_space<vmem>>, vector<8x20xf32>
    %460 = vector.extract_strided_slice %449 {offsets = [40, 0], sizes = [8, 20], strides = [1, 1]} : vector<64x20xf32> to vector<8x20xf32>
    %c184 = arith.constant 184 : index
    %c0_173 = arith.constant 0 : index
    %461 = tpu.strided_load %arg5[%c184, %c0_173] {strides = array<i32: 2, 1>} : memref<304x20xf32, #tpu.memory_space<vmem>>, vector<8x20xf32>
    tpu.strided_store %arg5[%c184, %c0_173], %460 {strides = array<i32: 2, 1>} : memref<304x20xf32, #tpu.memory_space<vmem>>, vector<8x20xf32>
    %462 = vector.extract_strided_slice %449 {offsets = [48, 0], sizes = [8, 20], strides = [1, 1]} : vector<64x20xf32> to vector<8x20xf32>
    %c216 = arith.constant 216 : index
    %c0_174 = arith.constant 0 : index
    %463 = tpu.strided_load %arg5[%c216, %c0_174] {strides = array<i32: 2, 1>} : memref<304x20xf32, #tpu.memory_space<vmem>>, vector<8x20xf32>
    tpu.strided_store %arg5[%c216, %c0_174], %462 {strides = array<i32: 2, 1>} : memref<304x20xf32, #tpu.memory_space<vmem>>, vector<8x20xf32>
    %464 = vector.extract_strided_slice %449 {offsets = [56, 0], sizes = [8, 20], strides = [1, 1]} : vector<64x20xf32> to vector<8x20xf32>
    %c248 = arith.constant 248 : index
    %c0_175 = arith.constant 0 : index
    %465 = tpu.strided_load %arg5[%c248, %c0_175] {strides = array<i32: 2, 1>} : memref<304x20xf32, #tpu.memory_space<vmem>>, vector<8x20xf32>
    tpu.strided_store %arg5[%c248, %c0_175], %464 {strides = array<i32: 2, 1>} : memref<304x20xf32, #tpu.memory_space<vmem>>, vector<8x20xf32>
    %c483 = arith.constant 483 : index
    %c0_176 = arith.constant 0 : index
    %466 = vector.load %arg3[%c483, %c0_176] : memref<603x80xbf16, #tpu.memory_space<vmem>>, vector<20x20xbf16>
    %cst_177 = arith.constant dense<0.000000e+00> : vector<64x20xf32>
    %467 = tpu.matmul %445, %466, %cst_177 {dimension_numbers = #tpu.dot_dimension_numbers<[1], [0], [0], [1], [0, 0, 1, 1], [], []>} : vector<64x20xbf16>, vector<20x20xbf16>, vector<64x20xf32> -> vector<64x20xf32>
    %468 = vector.broadcast %441 : vector<1x20xf32> to vector<64x20xf32>
    %469 = arith.addf %467, %468 : vector<64x20xf32>
    %470 = vector.extract_strided_slice %469 {offsets = [0, 0], sizes = [8, 20], strides = [1, 1]} : vector<64x20xf32> to vector<8x20xf32>
    %c25_178 = arith.constant 25 : index
    %c0_179 = arith.constant 0 : index
    %471 = tpu.strided_load %arg5[%c25_178, %c0_179] {strides = array<i32: 2, 1>} : memref<304x20xf32, #tpu.memory_space<vmem>>, vector<8x20xf32>
    tpu.strided_store %arg5[%c25_178, %c0_179], %470 {strides = array<i32: 2, 1>} : memref<304x20xf32, #tpu.memory_space<vmem>>, vector<8x20xf32>
    %472 = vector.extract_strided_slice %469 {offsets = [8, 0], sizes = [8, 20], strides = [1, 1]} : vector<64x20xf32> to vector<8x20xf32>
    %c57_180 = arith.constant 57 : index
    %c0_181 = arith.constant 0 : index
    %473 = tpu.strided_load %arg5[%c57_180, %c0_181] {strides = array<i32: 2, 1>} : memref<304x20xf32, #tpu.memory_space<vmem>>, vector<8x20xf32>
    tpu.strided_store %arg5[%c57_180, %c0_181], %472 {strides = array<i32: 2, 1>} : memref<304x20xf32, #tpu.memory_space<vmem>>, vector<8x20xf32>
    %474 = vector.extract_strided_slice %469 {offsets = [16, 0], sizes = [8, 20], strides = [1, 1]} : vector<64x20xf32> to vector<8x20xf32>
    %c89 = arith.constant 89 : index
    %c0_182 = arith.constant 0 : index
    %475 = tpu.strided_load %arg5[%c89, %c0_182] {strides = array<i32: 2, 1>} : memref<304x20xf32, #tpu.memory_space<vmem>>, vector<8x20xf32>
    tpu.strided_store %arg5[%c89, %c0_182], %474 {strides = array<i32: 2, 1>} : memref<304x20xf32, #tpu.memory_space<vmem>>, vector<8x20xf32>
    %476 = vector.extract_strided_slice %469 {offsets = [24, 0], sizes = [8, 20], strides = [1, 1]} : vector<64x20xf32> to vector<8x20xf32>
    %c121 = arith.constant 121 : index
    %c0_183 = arith.constant 0 : index
    %477 = tpu.strided_load %arg5[%c121, %c0_183] {strides = array<i32: 2, 1>} : memref<304x20xf32, #tpu.memory_space<vmem>>, vector<8x20xf32>
    tpu.strided_store %arg5[%c121, %c0_183], %476 {strides = array<i32: 2, 1>} : memref<304x20xf32, #tpu.memory_space<vmem>>, vector<8x20xf32>
    %478 = vector.extract_strided_slice %469 {offsets = [32, 0], sizes = [8, 20], strides = [1, 1]} : vector<64x20xf32> to vector<8x20xf32>
    %c153 = arith.constant 153 : index
    %c0_184 = arith.constant 0 : index
    %479 = tpu.strided_load %arg5[%c153, %c0_184] {strides = array<i32: 2, 1>} : memref<304x20xf32, #tpu.memory_space<vmem>>, vector<8x20xf32>
    tpu.strided_store %arg5[%c153, %c0_184], %478 {strides = array<i32: 2, 1>} : memref<304x20xf32, #tpu.memory_space<vmem>>, vector<8x20xf32>
    %480 = vector.extract_strided_slice %469 {offsets = [40, 0], sizes = [8, 20], strides = [1, 1]} : vector<64x20xf32> to vector<8x20xf32>
    %c185 = arith.constant 185 : index
    %c0_185 = arith.constant 0 : index
    %481 = tpu.strided_load %arg5[%c185, %c0_185] {strides = array<i32: 2, 1>} : memref<304x20xf32, #tpu.memory_space<vmem>>, vector<8x20xf32>
    tpu.strided_store %arg5[%c185, %c0_185], %480 {strides = array<i32: 2, 1>} : memref<304x20xf32, #tpu.memory_space<vmem>>, vector<8x20xf32>
    %482 = vector.extract_strided_slice %469 {offsets = [48, 0], sizes = [8, 20], strides = [1, 1]} : vector<64x20xf32> to vector<8x20xf32>
    %c217 = arith.constant 217 : index
    %c0_186 = arith.constant 0 : index
    %483 = tpu.strided_load %arg5[%c217, %c0_186] {strides = array<i32: 2, 1>} : memref<304x20xf32, #tpu.memory_space<vmem>>, vector<8x20xf32>
    tpu.strided_store %arg5[%c217, %c0_186], %482 {strides = array<i32: 2, 1>} : memref<304x20xf32, #tpu.memory_space<vmem>>, vector<8x20xf32>
    %484 = vector.extract_strided_slice %469 {offsets = [56, 0], sizes = [8, 20], strides = [1, 1]} : vector<64x20xf32> to vector<8x20xf32>
    %c249 = arith.constant 249 : index
    %c0_187 = arith.constant 0 : index
    %485 = tpu.strided_load %arg5[%c249, %c0_187] {strides = array<i32: 2, 1>} : memref<304x20xf32, #tpu.memory_space<vmem>>, vector<8x20xf32>
    tpu.strided_store %arg5[%c249, %c0_187], %484 {strides = array<i32: 2, 1>} : memref<304x20xf32, #tpu.memory_space<vmem>>, vector<8x20xf32>
    %c503 = arith.constant 503 : index
    %c0_188 = arith.constant 0 : index
    %486 = vector.load %arg3[%c503, %c0_188] : memref<603x80xbf16, #tpu.memory_space<vmem>>, vector<20x20xbf16>
    %cst_189 = arith.constant dense<0.000000e+00> : vector<64x20xf32>
    %487 = tpu.matmul %445, %486, %cst_189 {dimension_numbers = #tpu.dot_dimension_numbers<[1], [0], [0], [1], [0, 0, 1, 1], [], []>} : vector<64x20xbf16>, vector<20x20xbf16>, vector<64x20xf32> -> vector<64x20xf32>
    %488 = vector.broadcast %441 : vector<1x20xf32> to vector<64x20xf32>
    %489 = arith.addf %487, %488 : vector<64x20xf32>
    %490 = vector.extract_strided_slice %489 {offsets = [0, 0], sizes = [8, 20], strides = [1, 1]} : vector<64x20xf32> to vector<8x20xf32>
    %c40_190 = arith.constant 40 : index
    %c0_191 = arith.constant 0 : index
    %491 = tpu.strided_load %arg5[%c40_190, %c0_191] {strides = array<i32: 2, 1>} : memref<304x20xf32, #tpu.memory_space<vmem>>, vector<8x20xf32>
    tpu.strided_store %arg5[%c40_190, %c0_191], %490 {strides = array<i32: 2, 1>} : memref<304x20xf32, #tpu.memory_space<vmem>>, vector<8x20xf32>
    %492 = vector.extract_strided_slice %489 {offsets = [8, 0], sizes = [8, 20], strides = [1, 1]} : vector<64x20xf32> to vector<8x20xf32>
    %c72_192 = arith.constant 72 : index
    %c0_193 = arith.constant 0 : index
    %493 = tpu.strided_load %arg5[%c72_192, %c0_193] {strides = array<i32: 2, 1>} : memref<304x20xf32, #tpu.memory_space<vmem>>, vector<8x20xf32>
    tpu.strided_store %arg5[%c72_192, %c0_193], %492 {strides = array<i32: 2, 1>} : memref<304x20xf32, #tpu.memory_space<vmem>>, vector<8x20xf32>
    %494 = vector.extract_strided_slice %489 {offsets = [16, 0], sizes = [8, 20], strides = [1, 1]} : vector<64x20xf32> to vector<8x20xf32>
    %c104 = arith.constant 104 : index
    %c0_194 = arith.constant 0 : index
    %495 = tpu.strided_load %arg5[%c104, %c0_194] {strides = array<i32: 2, 1>} : memref<304x20xf32, #tpu.memory_space<vmem>>, vector<8x20xf32>
    tpu.strided_store %arg5[%c104, %c0_194], %494 {strides = array<i32: 2, 1>} : memref<304x20xf32, #tpu.memory_space<vmem>>, vector<8x20xf32>
    %496 = vector.extract_strided_slice %489 {offsets = [24, 0], sizes = [8, 20], strides = [1, 1]} : vector<64x20xf32> to vector<8x20xf32>
    %c136 = arith.constant 136 : index
    %c0_195 = arith.constant 0 : index
    %497 = tpu.strided_load %arg5[%c136, %c0_195] {strides = array<i32: 2, 1>} : memref<304x20xf32, #tpu.memory_space<vmem>>, vector<8x20xf32>
    tpu.strided_store %arg5[%c136, %c0_195], %496 {strides = array<i32: 2, 1>} : memref<304x20xf32, #tpu.memory_space<vmem>>, vector<8x20xf32>
    %498 = vector.extract_strided_slice %489 {offsets = [32, 0], sizes = [8, 20], strides = [1, 1]} : vector<64x20xf32> to vector<8x20xf32>
    %c168 = arith.constant 168 : index
    %c0_196 = arith.constant 0 : index
    %499 = tpu.strided_load %arg5[%c168, %c0_196] {strides = array<i32: 2, 1>} : memref<304x20xf32, #tpu.memory_space<vmem>>, vector<8x20xf32>
    tpu.strided_store %arg5[%c168, %c0_196], %498 {strides = array<i32: 2, 1>} : memref<304x20xf32, #tpu.memory_space<vmem>>, vector<8x20xf32>
    %500 = vector.extract_strided_slice %489 {offsets = [40, 0], sizes = [8, 20], strides = [1, 1]} : vector<64x20xf32> to vector<8x20xf32>
    %c200 = arith.constant 200 : index
    %c0_197 = arith.constant 0 : index
    %501 = tpu.strided_load %arg5[%c200, %c0_197] {strides = array<i32: 2, 1>} : memref<304x20xf32, #tpu.memory_space<vmem>>, vector<8x20xf32>
    tpu.strided_store %arg5[%c200, %c0_197], %500 {strides = array<i32: 2, 1>} : memref<304x20xf32, #tpu.memory_space<vmem>>, vector<8x20xf32>
    %502 = vector.extract_strided_slice %489 {offsets = [48, 0], sizes = [8, 20], strides = [1, 1]} : vector<64x20xf32> to vector<8x20xf32>
    %c232 = arith.constant 232 : index
    %c0_198 = arith.constant 0 : index
    %503 = tpu.strided_load %arg5[%c232, %c0_198] {strides = array<i32: 2, 1>} : memref<304x20xf32, #tpu.memory_space<vmem>>, vector<8x20xf32>
    tpu.strided_store %arg5[%c232, %c0_198], %502 {strides = array<i32: 2, 1>} : memref<304x20xf32, #tpu.memory_space<vmem>>, vector<8x20xf32>
    %504 = vector.extract_strided_slice %489 {offsets = [56, 0], sizes = [8, 20], strides = [1, 1]} : vector<64x20xf32> to vector<8x20xf32>
    %c264 = arith.constant 264 : index
    %c0_199 = arith.constant 0 : index
    %505 = tpu.strided_load %arg5[%c264, %c0_199] {strides = array<i32: 2, 1>} : memref<304x20xf32, #tpu.memory_space<vmem>>, vector<8x20xf32>
    tpu.strided_store %arg5[%c264, %c0_199], %504 {strides = array<i32: 2, 1>} : memref<304x20xf32, #tpu.memory_space<vmem>>, vector<8x20xf32>
    %c523 = arith.constant 523 : index
    %c0_200 = arith.constant 0 : index
    %506 = vector.load %arg3[%c523, %c0_200] : memref<603x80xbf16, #tpu.memory_space<vmem>>, vector<20x20xbf16>
    %cst_201 = arith.constant dense<0.000000e+00> : vector<64x20xf32>
    %507 = tpu.matmul %445, %506, %cst_201 {dimension_numbers = #tpu.dot_dimension_numbers<[1], [0], [0], [1], [0, 0, 1, 1], [], []>} : vector<64x20xbf16>, vector<20x20xbf16>, vector<64x20xf32> -> vector<64x20xf32>
    %508 = vector.broadcast %441 : vector<1x20xf32> to vector<64x20xf32>
    %509 = arith.addf %507, %508 : vector<64x20xf32>
    %510 = vector.extract_strided_slice %509 {offsets = [0, 0], sizes = [8, 20], strides = [1, 1]} : vector<64x20xf32> to vector<8x20xf32>
    %c41_202 = arith.constant 41 : index
    %c0_203 = arith.constant 0 : index
    %511 = tpu.strided_load %arg5[%c41_202, %c0_203] {strides = array<i32: 2, 1>} : memref<304x20xf32, #tpu.memory_space<vmem>>, vector<8x20xf32>
    tpu.strided_store %arg5[%c41_202, %c0_203], %510 {strides = array<i32: 2, 1>} : memref<304x20xf32, #tpu.memory_space<vmem>>, vector<8x20xf32>
    %512 = vector.extract_strided_slice %509 {offsets = [8, 0], sizes = [8, 20], strides = [1, 1]} : vector<64x20xf32> to vector<8x20xf32>
    %c73_204 = arith.constant 73 : index
    %c0_205 = arith.constant 0 : index
    %513 = tpu.strided_load %arg5[%c73_204, %c0_205] {strides = array<i32: 2, 1>} : memref<304x20xf32, #tpu.memory_space<vmem>>, vector<8x20xf32>
    tpu.strided_store %arg5[%c73_204, %c0_205], %512 {strides = array<i32: 2, 1>} : memref<304x20xf32, #tpu.memory_space<vmem>>, vector<8x20xf32>
    %514 = vector.extract_strided_slice %509 {offsets = [16, 0], sizes = [8, 20], strides = [1, 1]} : vector<64x20xf32> to vector<8x20xf32>
    %c105 = arith.constant 105 : index
    %c0_206 = arith.constant 0 : index
    %515 = tpu.strided_load %arg5[%c105, %c0_206] {strides = array<i32: 2, 1>} : memref<304x20xf32, #tpu.memory_space<vmem>>, vector<8x20xf32>
    tpu.strided_store %arg5[%c105, %c0_206], %514 {strides = array<i32: 2, 1>} : memref<304x20xf32, #tpu.memory_space<vmem>>, vector<8x20xf32>
    %516 = vector.extract_strided_slice %509 {offsets = [24, 0], sizes = [8, 20], strides = [1, 1]} : vector<64x20xf32> to vector<8x20xf32>
    %c137 = arith.constant 137 : index
    %c0_207 = arith.constant 0 : index
    %517 = tpu.strided_load %arg5[%c137, %c0_207] {strides = array<i32: 2, 1>} : memref<304x20xf32, #tpu.memory_space<vmem>>, vector<8x20xf32>
    tpu.strided_store %arg5[%c137, %c0_207], %516 {strides = array<i32: 2, 1>} : memref<304x20xf32, #tpu.memory_space<vmem>>, vector<8x20xf32>
    %518 = vector.extract_strided_slice %509 {offsets = [32, 0], sizes = [8, 20], strides = [1, 1]} : vector<64x20xf32> to vector<8x20xf32>
    %c169 = arith.constant 169 : index
    %c0_208 = arith.constant 0 : index
    %519 = tpu.strided_load %arg5[%c169, %c0_208] {strides = array<i32: 2, 1>} : memref<304x20xf32, #tpu.memory_space<vmem>>, vector<8x20xf32>
    tpu.strided_store %arg5[%c169, %c0_208], %518 {strides = array<i32: 2, 1>} : memref<304x20xf32, #tpu.memory_space<vmem>>, vector<8x20xf32>
    %520 = vector.extract_strided_slice %509 {offsets = [40, 0], sizes = [8, 20], strides = [1, 1]} : vector<64x20xf32> to vector<8x20xf32>
    %c201 = arith.constant 201 : index
    %c0_209 = arith.constant 0 : index
    %521 = tpu.strided_load %arg5[%c201, %c0_209] {strides = array<i32: 2, 1>} : memref<304x20xf32, #tpu.memory_space<vmem>>, vector<8x20xf32>
    tpu.strided_store %arg5[%c201, %c0_209], %520 {strides = array<i32: 2, 1>} : memref<304x20xf32, #tpu.memory_space<vmem>>, vector<8x20xf32>
    %522 = vector.extract_strided_slice %509 {offsets = [48, 0], sizes = [8, 20], strides = [1, 1]} : vector<64x20xf32> to vector<8x20xf32>
    %c233 = arith.constant 233 : index
    %c0_210 = arith.constant 0 : index
    %523 = tpu.strided_load %arg5[%c233, %c0_210] {strides = array<i32: 2, 1>} : memref<304x20xf32, #tpu.memory_space<vmem>>, vector<8x20xf32>
    tpu.strided_store %arg5[%c233, %c0_210], %522 {strides = array<i32: 2, 1>} : memref<304x20xf32, #tpu.memory_space<vmem>>, vector<8x20xf32>
    %524 = vector.extract_strided_slice %509 {offsets = [56, 0], sizes = [8, 20], strides = [1, 1]} : vector<64x20xf32> to vector<8x20xf32>
    %c265 = arith.constant 265 : index
    %c0_211 = arith.constant 0 : index
    %525 = tpu.strided_load %arg5[%c265, %c0_211] {strides = array<i32: 2, 1>} : memref<304x20xf32, #tpu.memory_space<vmem>>, vector<8x20xf32>
    tpu.strided_store %arg5[%c265, %c0_211], %524 {strides = array<i32: 2, 1>} : memref<304x20xf32, #tpu.memory_space<vmem>>, vector<8x20xf32>
    %c45 = arith.constant 45 : index
    %c0_212 = arith.constant 0 : index
    %526 = vector.load %arg2[%c45, %c0_212] : memref<66x40xf32, #tpu.memory_space<vmem>>, vector<9x20xf32>
    %527 = tpu.iota {dimensions = array<i32: 0>} : vector<288x20xi32>
    %c15_i32_213 = arith.constant 15 : i32
    %528 = vector.broadcast %c15_i32_213 : i32 to vector<288x20xi32>
    %529 = arith.andi %527, %528 : vector<288x20xi32>
    %c8_214 = arith.constant 8 : index
    %c0_215 = arith.constant 0 : index
    %530 = vector.load %arg5[%c8_214, %c0_215] : memref<304x20xf32, #tpu.memory_space<vmem>>, vector<288x20xf32>
    %c1_i32_216 = arith.constant 1 : i32
    %531 = vector.broadcast %c1_i32_216 : i32 to vector<288x20xi32>
    %532 = arith.cmpi sge, %529, %531 : vector<288x20xi32>
    %c7_217 = arith.constant 7 : index
    %c0_218 = arith.constant 0 : index
    %533 = vector.load %arg5[%c7_217, %c0_218] : memref<304x20xf32, #tpu.memory_space<vmem>>, vector<288x20xf32>
    %cst_219 = arith.constant 0.000000e+00 : f32
    %534 = vector.broadcast %cst_219 : f32 to vector<288x20xf32>
    %535 = arith.select %532, %533, %534 : vector<288x20xi1>, vector<288x20xf32>
    %c14_i32_220 = arith.constant 14 : i32
    %536 = vector.broadcast %c14_i32_220 : i32 to vector<288x20xi32>
    %537 = arith.cmpi sle, %529, %536 : vector<288x20xi32>
    %c9_221 = arith.constant 9 : index
    %c0_222 = arith.constant 0 : index
    %538 = vector.load %arg5[%c9_221, %c0_222] : memref<304x20xf32, #tpu.memory_space<vmem>>, vector<288x20xf32>
    %cst_223 = arith.constant 0.000000e+00 : f32
    %539 = vector.broadcast %cst_223 : f32 to vector<288x20xf32>
    %540 = arith.select %537, %538, %539 : vector<288x20xi1>, vector<288x20xf32>
    %cst_224 = arith.constant 0.000000e+00 : f32
    %541 = vector.broadcast %cst_224 : f32 to vector<256x20xf32>
    %542 = vector.extract_strided_slice %535 {offsets = [0, 0], sizes = [256, 20], strides = [1, 1]} : vector<288x20xf32> to vector<256x20xf32>
    %543 = vector.extract_strided_slice %526 {offsets = [0, 0], sizes = [1, 20], strides = [1, 1]} : vector<9x20xf32> to vector<1x20xf32>
    %544 = vector.broadcast %543 : vector<1x20xf32> to vector<256x20xf32>
    %545 = arith.mulf %542, %544 : vector<256x20xf32>
    %546 = arith.addf %541, %545 : vector<256x20xf32>
    %547 = vector.extract_strided_slice %530 {offsets = [0, 0], sizes = [256, 20], strides = [1, 1]} : vector<288x20xf32> to vector<256x20xf32>
    %548 = vector.extract_strided_slice %526 {offsets = [1, 0], sizes = [1, 20], strides = [1, 1]} : vector<9x20xf32> to vector<1x20xf32>
    %549 = vector.broadcast %548 : vector<1x20xf32> to vector<256x20xf32>
    %550 = arith.mulf %547, %549 : vector<256x20xf32>
    %551 = arith.addf %546, %550 : vector<256x20xf32>
    %552 = vector.extract_strided_slice %540 {offsets = [0, 0], sizes = [256, 20], strides = [1, 1]} : vector<288x20xf32> to vector<256x20xf32>
    %553 = vector.extract_strided_slice %526 {offsets = [2, 0], sizes = [1, 20], strides = [1, 1]} : vector<9x20xf32> to vector<1x20xf32>
    %554 = vector.broadcast %553 : vector<1x20xf32> to vector<256x20xf32>
    %555 = arith.mulf %552, %554 : vector<256x20xf32>
    %556 = arith.addf %551, %555 : vector<256x20xf32>
    %557 = vector.extract_strided_slice %535 {offsets = [16, 0], sizes = [256, 20], strides = [1, 1]} : vector<288x20xf32> to vector<256x20xf32>
    %558 = vector.extract_strided_slice %526 {offsets = [3, 0], sizes = [1, 20], strides = [1, 1]} : vector<9x20xf32> to vector<1x20xf32>
    %559 = vector.broadcast %558 : vector<1x20xf32> to vector<256x20xf32>
    %560 = arith.mulf %557, %559 : vector<256x20xf32>
    %561 = arith.addf %556, %560 : vector<256x20xf32>
    %562 = vector.extract_strided_slice %530 {offsets = [16, 0], sizes = [256, 20], strides = [1, 1]} : vector<288x20xf32> to vector<256x20xf32>
    %563 = vector.extract_strided_slice %526 {offsets = [4, 0], sizes = [1, 20], strides = [1, 1]} : vector<9x20xf32> to vector<1x20xf32>
    %564 = vector.broadcast %563 : vector<1x20xf32> to vector<256x20xf32>
    %565 = arith.mulf %562, %564 : vector<256x20xf32>
    %566 = arith.addf %561, %565 : vector<256x20xf32>
    %567 = vector.extract_strided_slice %540 {offsets = [16, 0], sizes = [256, 20], strides = [1, 1]} : vector<288x20xf32> to vector<256x20xf32>
    %568 = vector.extract_strided_slice %526 {offsets = [5, 0], sizes = [1, 20], strides = [1, 1]} : vector<9x20xf32> to vector<1x20xf32>
    %569 = vector.broadcast %568 : vector<1x20xf32> to vector<256x20xf32>
    %570 = arith.mulf %567, %569 : vector<256x20xf32>
    %571 = arith.addf %566, %570 : vector<256x20xf32>
    %572 = vector.extract_strided_slice %535 {offsets = [32, 0], sizes = [256, 20], strides = [1, 1]} : vector<288x20xf32> to vector<256x20xf32>
    %573 = vector.extract_strided_slice %526 {offsets = [6, 0], sizes = [1, 20], strides = [1, 1]} : vector<9x20xf32> to vector<1x20xf32>
    %574 = vector.broadcast %573 : vector<1x20xf32> to vector<256x20xf32>
    %575 = arith.mulf %572, %574 : vector<256x20xf32>
    %576 = arith.addf %571, %575 : vector<256x20xf32>
    %577 = vector.extract_strided_slice %530 {offsets = [32, 0], sizes = [256, 20], strides = [1, 1]} : vector<288x20xf32> to vector<256x20xf32>
    %578 = vector.extract_strided_slice %526 {offsets = [7, 0], sizes = [1, 20], strides = [1, 1]} : vector<9x20xf32> to vector<1x20xf32>
    %579 = vector.broadcast %578 : vector<1x20xf32> to vector<256x20xf32>
    %580 = arith.mulf %577, %579 : vector<256x20xf32>
    %581 = arith.addf %576, %580 : vector<256x20xf32>
    %582 = vector.extract_strided_slice %540 {offsets = [32, 0], sizes = [256, 20], strides = [1, 1]} : vector<288x20xf32> to vector<256x20xf32>
    %583 = vector.extract_strided_slice %526 {offsets = [8, 0], sizes = [1, 20], strides = [1, 1]} : vector<9x20xf32> to vector<1x20xf32>
    %584 = vector.broadcast %583 : vector<1x20xf32> to vector<256x20xf32>
    %585 = arith.mulf %582, %584 : vector<256x20xf32>
    %586 = arith.addf %581, %585 : vector<256x20xf32>
    %cst_225 = arith.constant 0.000000e+00 : f32
    %587 = vector.broadcast %cst_225 : f32 to vector<256x20xf32>
    %588 = arith.maximumf %586, %587 : vector<256x20xf32>
    %cst_226 = arith.constant 0.000000e+00 : f32
    %589 = vector.broadcast %cst_226 : f32 to vector<24x20xf32>
    %c0_227 = arith.constant 0 : index
    %c0_228 = arith.constant 0 : index
    %590 = vector.load %arg5[%c0_227, %c0_228] : memref<304x20xf32, #tpu.memory_space<vmem>>, vector<24x20xf32>
    tpu.vector_store %arg5[%c0_227, %c0_228], %589 {strides = array<i32>} : memref<304x20xf32, #tpu.memory_space<vmem>>, vector<24x20xf32>,
    %c280_229 = arith.constant 280 : index
    %c0_230 = arith.constant 0 : index
    %591 = vector.load %arg5[%c280_229, %c0_230] : memref<304x20xf32, #tpu.memory_space<vmem>>, vector<24x20xf32>
    tpu.vector_store %arg5[%c280_229, %c0_230], %589 {strides = array<i32>} : memref<304x20xf32, #tpu.memory_space<vmem>>, vector<24x20xf32>,
    %c24_231 = arith.constant 24 : index
    %c0_232 = arith.constant 0 : index
    %592 = vector.load %arg5[%c24_231, %c0_232] : memref<304x20xf32, #tpu.memory_space<vmem>>, vector<256x20xf32>
    tpu.vector_store %arg5[%c24_231, %c0_232], %72 {strides = array<i32>} : memref<304x20xf32, #tpu.memory_space<vmem>>, vector<256x20xf32>,
    %c54 = arith.constant 54 : index
    %c0_233 = arith.constant 0 : index
    %593 = vector.load %arg2[%c54, %c0_233] : memref<66x40xf32, #tpu.memory_space<vmem>>, vector<9x20xf32>
    %594 = tpu.iota {dimensions = array<i32: 0>} : vector<288x20xi32>
    %c15_i32_234 = arith.constant 15 : i32
    %595 = vector.broadcast %c15_i32_234 : i32 to vector<288x20xi32>
    %596 = arith.andi %594, %595 : vector<288x20xi32>
    %c8_235 = arith.constant 8 : index
    %c0_236 = arith.constant 0 : index
    %597 = vector.load %arg5[%c8_235, %c0_236] : memref<304x20xf32, #tpu.memory_space<vmem>>, vector<288x20xf32>
    %c1_i32_237 = arith.constant 1 : i32
    %598 = vector.broadcast %c1_i32_237 : i32 to vector<288x20xi32>
    %599 = arith.cmpi sge, %596, %598 : vector<288x20xi32>
    %c7_238 = arith.constant 7 : index
    %c0_239 = arith.constant 0 : index
    %600 = vector.load %arg5[%c7_238, %c0_239] : memref<304x20xf32, #tpu.memory_space<vmem>>, vector<288x20xf32>
    %cst_240 = arith.constant 0.000000e+00 : f32
    %601 = vector.broadcast %cst_240 : f32 to vector<288x20xf32>
    %602 = arith.select %599, %600, %601 : vector<288x20xi1>, vector<288x20xf32>
    %c14_i32_241 = arith.constant 14 : i32
    %603 = vector.broadcast %c14_i32_241 : i32 to vector<288x20xi32>
    %604 = arith.cmpi sle, %596, %603 : vector<288x20xi32>
    %c9_242 = arith.constant 9 : index
    %c0_243 = arith.constant 0 : index
    %605 = vector.load %arg5[%c9_242, %c0_243] : memref<304x20xf32, #tpu.memory_space<vmem>>, vector<288x20xf32>
    %cst_244 = arith.constant 0.000000e+00 : f32
    %606 = vector.broadcast %cst_244 : f32 to vector<288x20xf32>
    %607 = arith.select %604, %605, %606 : vector<288x20xi1>, vector<288x20xf32>
    %cst_245 = arith.constant 0.000000e+00 : f32
    %608 = vector.broadcast %cst_245 : f32 to vector<256x20xf32>
    %609 = vector.extract_strided_slice %602 {offsets = [0, 0], sizes = [256, 20], strides = [1, 1]} : vector<288x20xf32> to vector<256x20xf32>
    %610 = vector.extract_strided_slice %593 {offsets = [0, 0], sizes = [1, 20], strides = [1, 1]} : vector<9x20xf32> to vector<1x20xf32>
    %611 = vector.broadcast %610 : vector<1x20xf32> to vector<256x20xf32>
    %612 = arith.mulf %609, %611 : vector<256x20xf32>
    %613 = arith.addf %608, %612 : vector<256x20xf32>
    %614 = vector.extract_strided_slice %597 {offsets = [0, 0], sizes = [256, 20], strides = [1, 1]} : vector<288x20xf32> to vector<256x20xf32>
    %615 = vector.extract_strided_slice %593 {offsets = [1, 0], sizes = [1, 20], strides = [1, 1]} : vector<9x20xf32> to vector<1x20xf32>
    %616 = vector.broadcast %615 : vector<1x20xf32> to vector<256x20xf32>
    %617 = arith.mulf %614, %616 : vector<256x20xf32>
    %618 = arith.addf %613, %617 : vector<256x20xf32>
    %619 = vector.extract_strided_slice %607 {offsets = [0, 0], sizes = [256, 20], strides = [1, 1]} : vector<288x20xf32> to vector<256x20xf32>
    %620 = vector.extract_strided_slice %593 {offsets = [2, 0], sizes = [1, 20], strides = [1, 1]} : vector<9x20xf32> to vector<1x20xf32>
    %621 = vector.broadcast %620 : vector<1x20xf32> to vector<256x20xf32>
    %622 = arith.mulf %619, %621 : vector<256x20xf32>
    %623 = arith.addf %618, %622 : vector<256x20xf32>
    %624 = vector.extract_strided_slice %602 {offsets = [16, 0], sizes = [256, 20], strides = [1, 1]} : vector<288x20xf32> to vector<256x20xf32>
    %625 = vector.extract_strided_slice %593 {offsets = [3, 0], sizes = [1, 20], strides = [1, 1]} : vector<9x20xf32> to vector<1x20xf32>
    %626 = vector.broadcast %625 : vector<1x20xf32> to vector<256x20xf32>
    %627 = arith.mulf %624, %626 : vector<256x20xf32>
    %628 = arith.addf %623, %627 : vector<256x20xf32>
    %629 = vector.extract_strided_slice %597 {offsets = [16, 0], sizes = [256, 20], strides = [1, 1]} : vector<288x20xf32> to vector<256x20xf32>
    %630 = vector.extract_strided_slice %593 {offsets = [4, 0], sizes = [1, 20], strides = [1, 1]} : vector<9x20xf32> to vector<1x20xf32>
    %631 = vector.broadcast %630 : vector<1x20xf32> to vector<256x20xf32>
    %632 = arith.mulf %629, %631 : vector<256x20xf32>
    %633 = arith.addf %628, %632 : vector<256x20xf32>
    %634 = vector.extract_strided_slice %607 {offsets = [16, 0], sizes = [256, 20], strides = [1, 1]} : vector<288x20xf32> to vector<256x20xf32>
    %635 = vector.extract_strided_slice %593 {offsets = [5, 0], sizes = [1, 20], strides = [1, 1]} : vector<9x20xf32> to vector<1x20xf32>
    %636 = vector.broadcast %635 : vector<1x20xf32> to vector<256x20xf32>
    %637 = arith.mulf %634, %636 : vector<256x20xf32>
    %638 = arith.addf %633, %637 : vector<256x20xf32>
    %639 = vector.extract_strided_slice %602 {offsets = [32, 0], sizes = [256, 20], strides = [1, 1]} : vector<288x20xf32> to vector<256x20xf32>
    %640 = vector.extract_strided_slice %593 {offsets = [6, 0], sizes = [1, 20], strides = [1, 1]} : vector<9x20xf32> to vector<1x20xf32>
    %641 = vector.broadcast %640 : vector<1x20xf32> to vector<256x20xf32>
    %642 = arith.mulf %639, %641 : vector<256x20xf32>
    %643 = arith.addf %638, %642 : vector<256x20xf32>
    %644 = vector.extract_strided_slice %597 {offsets = [32, 0], sizes = [256, 20], strides = [1, 1]} : vector<288x20xf32> to vector<256x20xf32>
    %645 = vector.extract_strided_slice %593 {offsets = [7, 0], sizes = [1, 20], strides = [1, 1]} : vector<9x20xf32> to vector<1x20xf32>
    %646 = vector.broadcast %645 : vector<1x20xf32> to vector<256x20xf32>
    %647 = arith.mulf %644, %646 : vector<256x20xf32>
    %648 = arith.addf %643, %647 : vector<256x20xf32>
    %649 = vector.extract_strided_slice %607 {offsets = [32, 0], sizes = [256, 20], strides = [1, 1]} : vector<288x20xf32> to vector<256x20xf32>
    %650 = vector.extract_strided_slice %593 {offsets = [8, 0], sizes = [1, 20], strides = [1, 1]} : vector<9x20xf32> to vector<1x20xf32>
    %651 = vector.broadcast %650 : vector<1x20xf32> to vector<256x20xf32>
    %652 = arith.mulf %649, %651 : vector<256x20xf32>
    %653 = arith.addf %648, %652 : vector<256x20xf32>
    %cst_246 = arith.constant 0.000000e+00 : f32
    %654 = vector.broadcast %cst_246 : f32 to vector<256x20xf32>
    %655 = arith.maximumf %653, %654 : vector<256x20xf32>
    %c543 = arith.constant 543 : index
    %c0_247 = arith.constant 0 : index
    %656 = vector.load %arg3[%c543, %c0_247] : memref<603x80xbf16, #tpu.memory_space<vmem>>, vector<20x20xbf16>
    %657 = arith.truncf %588 : vector<256x20xf32> to vector<256x20xbf16>
    %cst_248 = arith.constant dense<0.000000e+00> : vector<256x20xf32>
    %658 = tpu.matmul %657, %656, %cst_248 {dimension_numbers = #tpu.dot_dimension_numbers<[1], [0], [0], [1], [0, 0, 1, 1], [], []>} : vector<256x20xbf16>, vector<20x20xbf16>, vector<256x20xf32> -> vector<256x20xf32>
    %c563 = arith.constant 563 : index
    %c0_249 = arith.constant 0 : index
    %659 = vector.load %arg3[%c563, %c0_249] : memref<603x80xbf16, #tpu.memory_space<vmem>>, vector<20x20xbf16>
    %660 = arith.truncf %655 : vector<256x20xf32> to vector<256x20xbf16>
    %cst_250 = arith.constant dense<0.000000e+00> : vector<256x20xf32>
    %661 = tpu.matmul %660, %659, %cst_250 {dimension_numbers = #tpu.dot_dimension_numbers<[1], [0], [0], [1], [0, 0, 1, 1], [], []>} : vector<256x20xbf16>, vector<20x20xbf16>, vector<256x20xf32> -> vector<256x20xf32>
    %662 = arith.addf %658, %661 : vector<256x20xf32>
    %cst_251 = arith.constant 0.000000e+00 : f32
    %663 = vector.broadcast %cst_251 : f32 to vector<256x20xf32>
    %664 = arith.maximumf %662, %663 : vector<256x20xf32>
    %c583 = arith.constant 583 : index
    %c0_252 = arith.constant 0 : index
    %665 = vector.load %arg3[%c583, %c0_252] : memref<603x80xbf16, #tpu.memory_space<vmem>>, vector<20x3xbf16>
    %666 = arith.truncf %664 : vector<256x20xf32> to vector<256x20xbf16>
    %cst_253 = arith.constant dense<0.000000e+00> : vector<256x3xf32>
    %667 = tpu.matmul %666, %665, %cst_253 {dimension_numbers = #tpu.dot_dimension_numbers<[1], [0], [0], [1], [0, 0, 1, 1], [], []>} : vector<256x20xbf16>, vector<20x3xbf16>, vector<256x3xf32> -> vector<256x3xf32>
    %c65_254 = arith.constant 65 : index
    %c0_255 = arith.constant 0 : index
    %668 = vector.load %arg2[%c65_254, %c0_255] : memref<66x40xf32, #tpu.memory_space<vmem>>, vector<1x3xf32>
    %669 = vector.broadcast %668 : vector<1x3xf32> to vector<256x3xf32>
    %670 = arith.addf %667, %669 : vector<256x3xf32>
    %671 = math.absf %670 : vector<256x3xf32>
    %cst_256 = arith.constant 0.000000e+00 : f32
    %672 = vector.broadcast %cst_256 : f32 to vector<256x3xf32>
    %673 = arith.subf %672, %671 : vector<256x3xf32>
    %674 = math.exp %673 : vector<256x3xf32>
    %cst_257 = arith.constant 0.000000e+00 : f32
    %675 = vector.broadcast %cst_257 : f32 to vector<256x3xf32>
    %676 = arith.cmpf oge, %670, %675 : vector<256x3xf32>
    %cst_258 = arith.constant 1.000000e+00 : f32
    %677 = vector.broadcast %cst_258 : f32 to vector<256x3xf32>
    %678 = arith.select %676, %677, %674 : vector<256x3xi1>, vector<256x3xf32>
    %cst_259 = arith.constant 1.000000e+00 : f32
    %679 = vector.broadcast %cst_259 : f32 to vector<256x3xf32>
    %680 = arith.addf %679, %674 : vector<256x3xf32>
    %681 = arith.divf %678, %680 : vector<256x3xf32>
    %c0_260 = arith.constant 0 : index
    %c0_261 = arith.constant 0 : index
    %682 = vector.load %arg4[%c0_260, %c0_261] : memref<256x3xf32, #tpu.memory_space<vmem>>, vector<256x3xf32>
    tpu.vector_store %arg4[%c0_260, %c0_261], %681 {strides = array<i32>} : memref<256x3xf32, #tpu.memory_space<vmem>>, vector<256x3xf32>,
    return
  }
  func.func @transform_0(%arg0: i32) -> (i32, i32) {
    %c0_i32 = arith.constant 0 : i32
    %c0_i32_0 = arith.constant 0 : i32
    return %arg0, %c0_i32 : i32, i32
  }
  func.func @transform_1(%arg0: i32) -> (i32, i32) {
    %c0_i32 = arith.constant 0 : i32
    %c0_i32_0 = arith.constant 0 : i32
    %c0_i32_1 = arith.constant 0 : i32
    return %c0_i32, %c0_i32_0 : i32, i32
  }
  func.func @transform_2(%arg0: i32) -> (i32, i32) {
    %c0_i32 = arith.constant 0 : i32
    %c0_i32_0 = arith.constant 0 : i32
    %c0_i32_1 = arith.constant 0 : i32
    return %c0_i32, %c0_i32_0 : i32, i32
  }
  func.func @transform_3(%arg0: i32) -> (i32, i32) {
    %c0_i32 = arith.constant 0 : i32
    %c0_i32_0 = arith.constant 0 : i32
    return %arg0, %c0_i32 : i32, i32
  }
}

</mosaic_0001>

<bundles_post_ra>
// kernel: student_net_forward.1
= control target key start
LH: loop header
LB: loop body
LE: loop exit
PB: predicated region body
PF: predicated region fallthrough
CT: control target
= control target key end

     0   :  { %s8036_s12 = smov 0   ;;  %s12772_s0 = inlined_call_operand.vmem [shape: f32[512,3], index: 0, kind: input, shape index: {}]   ;;  %s12773_s1 = inlined_call_operand.vmem [shape: f32[66,40], index: 1, kind: input, shape index: {}]   ;;  %s12774_s2 = inlined_call_operand.vmem [shape: bf16[603,80], index: 2, kind: input, shape index: {}]   ;;  %s12775_s3 = inlined_call_operand.vmem [shape: f32[512,3], index: 3, kind: output, shape index: {}]  }
   0x1 LB: > { %s7186_s13 = sadd.s32 4294967295, %s8011_s12   ;;  %p7190_p0 = scmp.ge.s32.totalorder %s8011_s12, 1  ;;  %s8011_s12 = sphi %s8036_s12, %s13_s12  }
   0x2   : > { %p138_p1 = scmp.lt.s32.totalorder %s8011_s12, 3 }
   0x4   : > { %p139_p2 = pnand %p7190_p0, %p138_p1 }
   0x6   : > { %142 = sbr.rel (%p139_p2) target bundleno = 2482 (0x9b2), region = 32 }
   0xb   : > { %v1217_v0 = vld [vmem:[%s12774_s2] sm:$0x3]  ;;  %vm1282_vm0 = vcmask 1040384   ;;  %vm12822_vm1 = vcmask 1041408   ;;  %s7191_s16 = sshll.u32 %s7186_s13, 5  ;;  %v248_v1 = vlaneseq  ;;  %v8013_v2 = vmov 65535  }
   0xc   : > { %v1284_v3 = vsel %vm1282_vm0, 4294967295, %v8013_v2  ;;  %p163_p3 = scmp.lt.s32.totalorder %s7191_s16, 63  ;;  %vm12823_vm2 = vcmask 23552   ;;  %v12776_v5 = vmov 0.0   ;;  %v8067_v8 = vld [vmem:[%s12773_s1] sm:$0xff]  ;;  %v13162_v20 = vmov 0 }
   0xd   : > { %v1285_v4 = vsel %vm12822_vm1, %v1284_v3, 0  ;;  %208 = vst.msk [vmem:[#allocation2] sm:$0xff] %vm12823_vm2, %v12776_v5  ;;  %209 = vst.msk [vmem:[#allocation2 + $0x8] sm:$0xff] %vm12823_vm2, %v12776_v5  ;;  %v8054_v6 = vshrl.u32 %v248_v1, 7  ;;  %v13171_v55 = vmov 0  ;;  %v13174_v56 = vmov 0 }
   0xe   : > { %210 = vst.msk [vmem:[#allocation2 + $0x10] sm:$0xff] %vm12823_vm2, %v12776_v5  ;;  %211 = vst.msk [vmem:[#allocation2 + $0x118] sm:$0xff] %vm12823_vm2, %v12776_v5  ;;  %v1287_v7 = vand.u32 %v1285_v4, %v1217_v0  ;;  %s14176_s16 = smov (!%p163_p3, %s7191_s16), 63  ;;  %v13177_v62 = vmov 0  ;;  %v13180_v63 = vmov 0  ;;  %v13183_v0 = vmov 0 }
   0xf   : > { %212 = vst.msk [vmem:[#allocation2 + $0x120] sm:$0xff] %vm12823_vm2, %v12776_v5  ;;  %213 = vst.msk [vmem:[#allocation2 + $0x128] sm:$0xff] %vm12823_vm2, %v12776_v5  ;;  %v8070_v9 = vadd.s32 8, %v8054_v6  ;;  %v8073_v10 = vadd.s32 16, %v8054_v6  ;;  %v8076_v11 = vadd.s32 24, %v8054_v6  ;;  %v8079_v12 = vadd.s32 32, %v8054_v6 }
  0x10   : > { %7496 = vmatprep.subr.bf16.mxu0 %v1287_v7  ;;  %7792 = vmatprep.subr.bf16.mxu1 %v1287_v7  ;;  %s7192_s19 = sshll.u32 %s14176_s16, 3  ;;  %v8083_v13 = vadd.s32 40, %v8054_v6  ;;  %v285_v14 = vand.u32 15, %v8054_v6  ;;  %v8087_v15 = vsub.s32 0, %v8054_v6  ;;  %v8090_v16 = vsub.s32 1, %v8054_v6 }
  0x11   : > { %13155 = vst [vmem:[#allocation5_spill] sm:$0xff] %v8070_v9  ;;  %13156 = vst [vmem:[#allocation6_spill] sm:$0xff] %v8073_v10  ;;  %7497 = vmatpush3.bf16.msra.mxu0 %v1287_v7  ;;  %7793 = vmatpush3.bf16.msra.mxu1 %v1287_v7  ;;  %s8097_s22 = scalar_lea.vmem %s12772_s0, %s7192_s19  ;;  %v286_v26 = vand.u32 15, %v8070_v9  ;;  %v287_v27 = vand.u32 15, %v8073_v10  ;;  %v288_v28 = vand.u32 15, %v8076_v11  ;;  %v289_v29 = vand.u32 15, %v8079_v12  ;;  %s12620_s21 = scalar_lea.vmem %s12775_s3, %s7192_s19 }
  0x12   : > { %13157 = vst [vmem:[#allocation7_spill] sm:$0xff] %v8076_v11  ;;  %13158 = vst [vmem:[#allocation8_spill] sm:$0xff] %v8079_v12  ;;  %v175_v17 = vld [vmem:[%s8097_s22] sm:$0xff]  ;;  %v176_v18 = vld [vmem:[%s8097_s22 + $0x8] sm:$0xff]  ;;  %vm8102_vm3 = vcmp.ge.s32.totalorder %v285_v14, 1  ;;  %v8108_v21 = vrot.slane %v8067_v8, %v8087_v15  ;;  %v8112_v22 = vrot.slane %v8067_v8, %v8090_v16  ;;  %7580 = vmatprep.subr.bf16.mxu0 %v12776_v5  ;;  %v290_v30 = vand.u32 15, %v8083_v13 }
  0x13   : > { %13159 = vst [vmem:[#allocation9_spill] sm:$0xff] %v8083_v13  ;;  %13160 = vst [vmem:[#allocation10_spill] sm:$0xff] %v8087_v15  ;;  %v177_v19 = vld [vmem:[%s8097_s22 + $0x10] sm:$0xff]  ;;  %v13163_v20 = vsel %vm8102_vm3, 4294967295, %v13162_v20  ;;  %v178_v23 = vld [vmem:[%s8097_s22 + $0x18] sm:$0xff]  ;;  %v8130_v34 = vsub.s32 2, %v8054_v6 }
  0x14   : > { %13161 = vst [vmem:[#allocation11_spill] sm:$0xff] %v8090_v16  ;;  %13164 = vst [vmem:[#allocation12_spill] sm:$0xff] %v13163_v20  ;;  %v179_v24 = vld [vmem:[%s8097_s22 + $0x20] sm:$0xff]  ;;  %v180_v25 = vld [vmem:[%s8097_s22 + $0x28] sm:$0xff]  ;;  %v8137_v40 = vsub.s32 3, %v8054_v6  ;;  %v8147_v45 = vsub.s32 4, %v8054_v6 }
  0x15   : > { %214 = vst.msk [vmem:[#allocation2 + $0x18] sm:$0xff] %vm12823_vm2, %v175_v17  ;;  %215 = vst.msk [vmem:[#allocation2 + $0x20] sm:$0xff] %vm12823_vm2, %v176_v18  ;;  %v321_v31 = vld [vmem:[#allocation2 + $0x8] sm:$0xff]  ;;  %v322_v32 = vld [vmem:[#allocation2 + $0x10] sm:$0xff]  ;;  %v8144_v44 = vrot.slane %v8067_v8, %v8130_v34  ;;  %v8154_v49 = vsub.s32 5, %v8054_v6  ;;  %v8157_v50 = vsub.s32 6, %v8054_v6 }
  0x16   : > { %216 = vst.msk [vmem:[#allocation2 + $0x28] sm:$0xff] %vm12823_vm2, %v177_v19  ;;  %217 = vst.msk [vmem:[#allocation2 + $0x30] sm:$0xff] %vm12823_vm2, %v178_v23  ;;  %v393_v33 = vld [vmem:[#allocation2 + $0x7] sm:$0xff]  ;;  %v394_v35 = vld [vmem:[#allocation2 + $0xf] sm:$0xff]  ;;  %v645_v38 = vmul.f32 %v8112_v22, %v321_v31  ;;  %v646_v39 = vmul.f32 %v8112_v22, %v322_v32  ;;  %v8160_v51 = vsub.s32 7, %v8054_v6  ;;  %vm8168_vm4 = vcmp.ge.s32.totalorder %v287_v27, 1 }
  0x17   : > { %218 = vst.msk [vmem:[#allocation2 + $0x38] sm:$0xff] %vm12823_vm2, %v179_v24  ;;  %219 = vst.msk [vmem:[#allocation2 + $0x40] sm:$0xff] %vm12823_vm2, %v180_v25  ;;  %v429_v36 = vsel %vm8102_vm3, %v393_v33, 0.0  ;;  %v501_v37 = vld [vmem:[#allocation2 + $0x9] sm:$0xff]  ;;  %v578_v43 = vmul.f32 %v8108_v21, %v394_v35  ;;  %v194_v48 = vld [vmem:[%s8097_s22 + $0x98] sm:$0xff]  ;;  %v13172_v55 = vsel %vm8168_vm4, 4294967295, %v13171_v55  ;;  %v8203_v17 = vrot.slane %v8067_v8, %v8137_v40 }
  0x18   : > { %13165 = vst [vmem:[#allocation13_spill] sm:$0xff] %v8130_v34  ;;  %13166 = vst [vmem:[#allocation14_spill] sm:$0xff] %v8137_v40  ;;  %v181_v41 = vld [vmem:[%s8097_s22 + $0x30] sm:$0xff]  ;;  %v577_v42 = vmul.f32 %v8108_v21, %v429_v36  ;;  %v192_v46 = vld [vmem:[%s8097_s22 + $0x88] sm:$0xff]  ;;  %vm8172_vm5 = vcmp.ge.s32.totalorder %v289_v29, 1  ;;  %v713_v58 = vmul.f32 %v8144_v44, %v501_v37  ;;  %vm8183_vm6 = vcmp.le.s32.totalorder %v286_v26, 14 }
  0x19   : > { %13167 = vst [vmem:[#allocation15_spill] sm:$0xff] %v8147_v45  ;;  %220 = vst.msk [vmem:[#allocation2 + $0x48] sm:$0xff] %vm12823_vm2, %v181_v41  ;;  %v193_v47 = vld [vmem:[%s8097_s22 + $0x90] sm:$0xff]  ;;  %v195_v52 = vld [vmem:[%s8097_s22 + $0xa0] sm:$0xff]  ;;  %v13175_v56 = vsel %vm8172_vm5, 4294967295, %v13174_v56  ;;  %v13178_v62 = vsel %vm8183_vm6, 4294967295, %v13177_v62  ;;  %v678_v14 = vadd.f32 %v646_v39, %v578_v43  ;;  %v8207_v18 = vrot.slane %v8067_v8, %v8147_v45 }
  0x1a   : > { %13168 = vst [vmem:[#allocation16_spill] sm:$0xff] %v8154_v49  ;;  %13169 = vst [vmem:[#allocation17_spill] sm:$0xff] %v8157_v50  ;;  %v196_v53 = vld [vmem:[%s8097_s22 + $0xa8] sm:$0xff]  ;;  %v197_v54 = vld [vmem:[%s8097_s22 + $0xb0] sm:$0xff]  ;;  %v677_v57 = vadd.f32 %v645_v38, %v577_v42  ;;  %vm8187_vm7 = vcmp.le.s32.totalorder %v288_v28, 14  ;;  %vm8191_vm8 = vcmp.le.s32.totalorder %v290_v30, 14  ;;  %v8211_v19 = vrot.slane %v8067_v8, %v8154_v49 }
  0x1b   : > { %13170 = vst [vmem:[#allocation18_spill] sm:$0xff] %v8160_v51  ;;  %231 = vst.msk [vmem:[#allocation2 + $0xa0] sm:$0xff] %vm12823_vm2, %v192_v46  ;;  %v198_v59 = vld [vmem:[%s8097_s22 + $0xb8] sm:$0xff]  ;;  %v199_v60 = vld [vmem:[%s8097_s22 + $0xc0] sm:$0xff]  ;;  %v13181_v63 = vsel %vm8187_vm7, 4294967295, %v13180_v63  ;;  %v13184_v0 = vsel %vm8191_vm8, 4294967295, %v13183_v0  ;;  %v8223_v28 = vrot.slane %v8067_v8, %v8157_v50  ;;  %v8227_v29 = vrot.slane %v8067_v8, %v8160_v51 }
  0x1c   : > { %232 = vst.msk [vmem:[#allocation2 + $0xa8] sm:$0xff] %vm12823_vm2, %v193_v47  ;;  %233 = vst.msk [vmem:[#allocation2 + $0xb0] sm:$0xff] %vm12823_vm2, %v194_v48  ;;  %v200_v61 = vld [vmem:[%s8097_s22 + $0xc8] sm:$0xff]  ;;  %v201_v1 = vld [vmem:[%s8097_s22 + $0xd0] sm:$0xff]  ;;  %v745_v27 = vadd.f32 %v713_v58, %v677_v57  ;;  %v8235_v37 = vadd.s32 48, %v8054_v6  ;;  %v8261_v5 = vadd.s32 56, %v8054_v6 }
  0x1d   : > { %13173 = vst [vmem:[#allocation19_spill] sm:$0xff] %v13172_v55  ;;  %13176 = vst [vmem:[#allocation20_spill] sm:$0xff] %v13175_v56  ;;  %v182_v2 = vld [vmem:[%s8097_s22 + $0x38] sm:$0xff]  ;;  %v183_v3 = vld [vmem:[%s8097_s22 + $0x40] sm:$0xff] }
  0x1e   : > { %234 = vst.msk [vmem:[#allocation2 + $0xb8] sm:$0xff] %vm12823_vm2, %v195_v52  ;;  %235 = vst.msk [vmem:[#allocation2 + $0xc0] sm:$0xff] %vm12823_vm2, %v196_v53  ;;  %v323_v4 = vld [vmem:[#allocation2 + $0x18] sm:$0xff]  ;;  %v324_v7 = vld [vmem:[#allocation2 + $0x20] sm:$0xff] }
  0x1f   : > { %236 = vst.msk [vmem:[#allocation2 + $0xc8] sm:$0xff] %vm12823_vm2, %v197_v54  ;;  %13179 = vst [vmem:[#allocation21_spill] sm:$0xff] %v13178_v62  ;;  %v8216_v23 = vld [vmem:[#allocation2 + $0x28] sm:$0xff]  ;;  %v8218_v24 = vld [vmem:[#allocation2 + $0x30] sm:$0xff]  ;;  %v648_v26 = vmul.f32 %v8112_v22, %v324_v7  ;;  %v647_v35 = vmul.f32 %v8112_v22, %v323_v4 }
  0x20   : > { %13182 = vst [vmem:[#allocation22_spill] sm:$0xff] %v13181_v63  ;;  %13185 = vst [vmem:[#allocation23_spill] sm:$0xff] %v13184_v0  ;;  %v395_v25 = vld [vmem:[#allocation2 + $0x17] sm:$0xff]  ;;  %v396_v30 = vld [vmem:[#allocation2 + $0x1f] sm:$0xff]  ;;  %v650_v36 = vmul.f32 %v8112_v22, %v8218_v24  ;;  %v649_v53 = vmul.f32 %v8112_v22, %v8216_v23 }
  0x21   : > { %237 = vst.msk [vmem:[#allocation2 + $0xd0] sm:$0xff] %vm12823_vm2, %v198_v59  ;;  %238 = vst.msk [vmem:[#allocation2 + $0xd8] sm:$0xff] %vm12823_vm2, %v199_v60  ;;  %v397_v31 = vld [vmem:[#allocation2 + $0x27] sm:$0xff]  ;;  %v398_v32 = vld [vmem:[#allocation2 + $0x2f] sm:$0xff]  ;;  %v431_v33 = vsel %vm8168_vm4, %v395_v25, 0.0  ;;  %v580_v42 = vmul.f32 %v8108_v21, %v396_v30 }
  0x22   : > { %239 = vst.msk [vmem:[#allocation2 + $0xe0] sm:$0xff] %vm12823_vm2, %v200_v61  ;;  %240 = vst.msk [vmem:[#allocation2 + $0xe8] sm:$0xff] %vm12823_vm2, %v201_v1  ;;  %v433_v38 = vsel %vm8172_vm5, %v397_v31, 0.0  ;;  %v502_v39 = vld [vmem:[#allocation2 + $0x11] sm:$0xff]  ;;  %v503_v8 = vld [vmem:[#allocation2 + $0x19] sm:$0xff]  ;;  %v579_v41 = vmul.f32 %v8108_v21, %v431_v33  ;;  %v582_v43 = vmul.f32 %v8108_v21, %v398_v32  ;;  %v781_v60 = vmul.f32 %v8203_v17, %v431_v33 }
  0x23   : > { %221 = vst.msk [vmem:[#allocation2 + $0x50] sm:$0xff] %vm12823_vm2, %v182_v2  ;;  %222 = vst.msk [vmem:[#allocation2 + $0x58] sm:$0xff] %vm12823_vm2, %v183_v3  ;;  %v504_v46 = vld [vmem:[#allocation2 + $0x21] sm:$0xff]  ;;  %v506_v47 = vld [vmem:[#allocation2 + $0x31] sm:$0xff]  ;;  %v538_v48 = vsel %vm8183_vm6, %v502_v39, 0.0  ;;  %v581_v52 = vmul.f32 %v8108_v21, %v433_v38  ;;  %v715_v54 = vmul.f32 %v8144_v44, %v503_v8  ;;  %v680_v59 = vadd.f32 %v648_v26, %v580_v42 }
  0x24   : > { %13186 = vst [vmem:[#allocation24_spill] sm:$0xff] %v8235_v37  ;;  %v540_v57 = vsel %vm8187_vm7, %v504_v46, 0.0  ;;  %v542_v58 = vsel %vm8191_vm8, %v506_v47, 0.0  ;;  %v679_v61 = vadd.f32 %v647_v35, %v579_v41  ;;  %v682_v1 = vadd.f32 %v650_v36, %v582_v43  ;;  %v8255_v25 = vld [vmem:[#allocation2 + $0x29] sm:$0xff]  ;;  %13187 = vst [vmem:[#allocation25_spill] sm:$0xff] %v8261_v5  ;;  %v8263_v26 = vld [vmem:[#allocation2 + $0x3f] sm:$0xff] }
  0x25   : > { %v714_v2 = vmul.f32 %v8144_v44, %v538_v48  ;;  %v716_v3 = vmul.f32 %v8144_v44, %v540_v57  ;;  %v718_v31 = vmul.f32 %v8144_v44, %v542_v58  ;;  %v782_v39 = vmul.f32 %v8203_v17, %v396_v30  ;;  %v8272_v63 = vld [vmem:[#allocation2 + $0x40] sm:$0xff] }
  0x26   : > { %v849_v46 = vmul.f32 %v8207_v18, %v323_v4  ;;  %v784_v36 = vmul.f32 %v8203_v17, %v398_v32  ;;  %v850_v41 = vmul.f32 %v8207_v18, %v324_v7  ;;  %v681_v42 = vadd.f32 %v649_v53, %v581_v52 }
  0x27   : > { %v746_v33 = vadd.f32 %v714_v2, %v678_v14  ;;  %v748_v35 = vadd.f32 %v716_v3, %v680_v59  ;;  %v750_v43 = vadd.f32 %v718_v31, %v682_v1  ;;  %v786_v47 = vmul.f32 %v8203_v17, %v8263_v26 }
  0x28   : > { %v813_v48 = vadd.f32 %v781_v60, %v745_v27  ;;  %v717_v4 = vmul.f32 %v8144_v44, %v8255_v25  ;;  %v747_v30 = vadd.f32 %v715_v54, %v679_v61  ;;  %v783_v0 = vmul.f32 %v8203_v17, %v433_v38  ;;  %v8280_v27 = vld [vmem:[%s12773_s1 + $0x8] ss:$0 sm:$0xff] }
  0x29   : > { %v814_v56 = vadd.f32 %v782_v39, %v746_v33  ;;  %v816_v14 = vadd.f32 %v784_v36, %v748_v35  ;;  %v852_v59 = vmul.f32 %v8207_v18, %v8218_v24  ;;  %v917_v52 = vmul.f32 %v8211_v19, %v503_v8  ;;  %v420_v45 = vld [vmem:[#allocation2 + $0xdf] sm:$0xff] }
  0x2a   : > { %v881_v7 = vadd.f32 %v849_v46, %v813_v48  ;;  %v818_v53 = vadd.f32 %v786_v47, %v750_v43  ;;  %v854_v54 = vmul.f32 %v8207_v18, %v8272_v63  ;;  %v918_v61 = vmul.f32 %v8211_v19, %v540_v57  ;;  %v184_v43 = vld [vmem:[%s8097_s22 + $0x48] sm:$0xff] }
  0x2b   : > { %v882_v60 = vadd.f32 %v850_v41, %v814_v56  ;;  %v851_v1 = vmul.f32 %v8207_v18, %v8216_v23  ;;  %v985_v3 = vmul.f32 %v8223_v28, %v433_v38  ;;  %v986_v8 = vmul.f32 %v8223_v28, %v398_v32  ;;  %v8297_v38 = vld [vmem:[#allocation2 + $0x38] sm:$0xff]  ;;  %223 = vst.msk [vmem:[#allocation2 + $0x60] sm:$0xff] %vm12823_vm2, %v184_v43 }
  0x2c   : > { %v949_v2 = vadd.f32 %v917_v52, %v881_v7  ;;  %v815_v31 = vadd.f32 %v783_v0, %v747_v30  ;;  %v1053_v46 = vmul.f32 %v8227_v29, %v8216_v23  ;;  %v1054_v56 = vmul.f32 %v8227_v29, %v8218_v24  ;;  %v185_v24 = vld [vmem:[%s8097_s22 + $0x50] sm:$0xff]  ;;  %v508_v30 = vld [vmem:[#allocation2 + $0x41] sm:$0xff] }
  0x2d   : > { %v950_v39 = vadd.f32 %v918_v61, %v882_v60  ;;  %v8293_v33 = vadd.f32 %v717_v4, %v681_v42  ;;  %v884_v57 = vadd.f32 %v852_v59, %v816_v14  ;;  %v1121_v36 = vmul.f32 %v8280_v27, %v8255_v25  ;;  %v399_v4 = vld [vmem:[#allocation2 + $0x37] sm:$0xff]  ;;  %224 = vst.msk [vmem:[#allocation2 + $0x68] sm:$0xff] %vm12823_vm2, %v185_v24 }
  0x2e   : > { %v1017_v35 = vadd.f32 %v985_v3, %v949_v2  ;;  %v8299_v41 = vadd.f32 %v854_v54, %v818_v53  ;;  %v920_v0 = vmul.f32 %v8211_v19, %v542_v58  ;;  %v1122_v23 = vmul.f32 %v8280_v27, %v542_v58  ;;  %v202_v58 = vld [vmem:[%s8097_s22 + $0xd8] sm:$0xff]  ;;  %v203_v54 = vld [vmem:[%s8097_s22 + $0xe0] sm:$0xff] }
  0x2f   : > { %v1018_v32 = vadd.f32 %v986_v8, %v950_v39  ;;  %v291_v47 = vand.u32 15, %v8235_v37  ;;  %v292_v48 = vand.u32 15, %v8261_v5  ;;  %v584_v14 = vmul.f32 %v8108_v21, %v8263_v26  ;;  %241 = vst.msk [vmem:[#allocation2 + $0xf0] sm:$0xff] %vm12823_vm2, %v202_v58  ;;  %242 = vst.msk [vmem:[#allocation2 + $0xf8] sm:$0xff] %vm12823_vm2, %v203_v54  ;;  %v205_v8 = vld [vmem:[%s8097_s22 + $0xf0] sm:$0xff]  ;;  %v206_v24 = vld [vmem:[%s8097_s22 + $0xf8] sm:$0xff] }
  0x30   : > { %v1085_v42 = vadd.f32 %v1053_v46, %v1017_v35  ;;  %v651_v7 = vmul.f32 %v8112_v22, %v8297_v38  ;;  %v652_v52 = vmul.f32 %v8112_v22, %v8272_v63  ;;  %v883_v53 = vadd.f32 %v851_v1, %v815_v31  ;;  %v204_v1 = vld [vmem:[%s8097_s22 + $0xe8] sm:$0xff]  ;;  %v186_v31 = vld [vmem:[%s8097_s22 + $0x58] sm:$0xff]  ;;  %244 = vst.msk [vmem:[#allocation2 + $0x108] sm:$0xff] %vm12823_vm2, %v205_v8 }
  0x31   : > { %v1086_v59 = vadd.f32 %v1054_v56, %v1018_v32  ;;  %vm8318_vm9 = vcmp.ge.s32.totalorder %v291_v47, 1  ;;  %v13188_v61 = vmov 0  ;;  %vm8322_vm10 = vcmp.le.s32.totalorder %v292_v48, 14  ;;  %243 = vst.msk [vmem:[#allocation2 + $0x100] sm:$0xff] %vm12823_vm2, %v204_v1  ;;  %225 = vst.msk [vmem:[#allocation2 + $0x70] sm:$0xff] %vm12823_vm2, %v186_v31  ;;  %v189_v32 = vld [vmem:[%s8097_s22 + $0x70] sm:$0xff] }
  0x32   : > { %v1153_v60 = vadd.f32 %v1121_v36, %v1085_v42  ;;  %v13189_v61 = vsel %vm8318_vm9, 4294967295, %v13188_v61  ;;  %v13191_v2 = vmov 0  ;;  %v919_v3 = vmul.f32 %v8211_v19, %v8255_v25  ;;  %v187_v36 = vld [vmem:[%s8097_s22 + $0x60] sm:$0xff]  ;;  %v188_v25 = vld [vmem:[%s8097_s22 + $0x68] sm:$0xff]  ;;  %228 = vst.msk [vmem:[#allocation2 + $0x88] sm:$0xff] %vm12823_vm2, %v189_v32  ;;  %245 = vst.msk [vmem:[#allocation2 + $0x110] sm:$0xff] %vm12823_vm2, %v206_v24 }
  0x33   : > { %13190 = vst [vmem:[#allocation26_spill] sm:$0xff] %v13189_v61  ;;  %v13192_v2 = vsel %vm8322_vm10, 4294967295, %v13191_v2  ;;  %v952_v39 = vadd.f32 %v920_v0, %v884_v57  ;;  %v1154_v46 = vadd.f32 %v1122_v23, %v1086_v59  ;;  %v435_v56 = vsel %vm8318_vm9, %v399_v4, 0.0  ;;  %226 = vst.msk [vmem:[#allocation2 + $0x78] sm:$0xff] %vm12823_vm2, %v187_v36  ;;  %v8352_v47 = vld [vmem:[#allocation2 + $0x39] sm:$0xff]  ;;  %v413_v24 = vld [vmem:[#allocation2 + $0xa7] sm:$0xff] }
  0x34   : > { %13193 = vst [vmem:[#allocation27_spill] sm:$0xff] %v13192_v2  ;;  %v544_v35 = vsel %vm8322_vm10, %v508_v30, 0.0  ;;  %v1185_v43 = vmax.f32 %v1153_v60, 0.0  ;;  %v583_v57 = vmul.f32 %v8108_v21, %v435_v56  ;;  %v8343_v0 = vadd.f32 %v652_v52, %v584_v14  ;;  %227 = vst.msk [vmem:[#allocation2 + $0x80] sm:$0xff] %vm12823_vm2, %v188_v25  ;;  %v190_v54 = vld [vmem:[%s8097_s22 + $0x78] sm:$0xff]  ;;  %v191_v60 = vld [vmem:[%s8097_s22 + $0x80] sm:$0xff] }
  0x35   : > { %v8346_v23 = vmul.f32 %v8144_v44, %v544_v35  ;;  %v1186_v42 = vmax.f32 %v1154_v46, 0.0  ;;  %v8355_v48 = vmul.f32 %v8203_v17, %v435_v56  ;;  %v951_v4 = vadd.f32 %v919_v3, %v883_v53  ;;  %229 = vst.msk [vmem:[#allocation2 + $0x90] sm:$0xff] %vm12823_vm2, %v190_v54  ;;  %230 = vst.msk [vmem:[#allocation2 + $0x98] sm:$0xff] %vm12823_vm2, %v191_v60  ;;  %v417_v54 = vld [vmem:[#allocation2 + $0xc7] sm:$0xff]  ;;  %v523_v2 = vld [vmem:[#allocation2 + $0xb9] sm:$0xff] }
  0x36   : > { %v987_v30 = vmul.f32 %v8223_v28, %v435_v56  ;;  %v8359_v14 = vadd.f32 %v651_v7, %v583_v57  ;;  %v8362_v58 = vmul.f32 %v8211_v19, %v544_v35  ;;  %v988_v59 = vmul.f32 %v8223_v28, %v8263_v26  ;;  %v521_v61 = vld [vmem:[#allocation2 + $0xa9] sm:$0xff] }
  0x37   : > { %v1055_v52 = vmul.f32 %v8227_v29, %v8297_v38  ;;  %v1218_v1 = vpack.c.bf16 %v1186_v42, %v1185_v43  ;;  %v1056_v53 = vmul.f32 %v8227_v29, %v8272_v63  ;;  %v1123_v7 = vmul.f32 %v8280_v27, %v8352_v47 }
  0x38   : > { %v1019_v8 = vadd.f32 %v987_v30, %v951_v4  ;;  %v1020_v3 = vadd.f32 %v988_v59, %v952_v39  ;;  %v1124_v26 = vmul.f32 %v8280_v27, %v544_v35  ;;  %v269_v31 = vadd.s32 160, %v8054_v6  ;;  %v415_v59 = vld [vmem:[#allocation2 + $0xb7] sm:$0xff] }
  0x39   : > { %v270_v46 = vadd.s32 168, %v8054_v6  ;;  %7498 = vmatprep.mubr.msk.bf16.mxu0 %vm12823_vm2, %v1218_v1  ;;  %v271_v36 = vadd.s32 176, %v8054_v6  ;;  %v272_v63 = vadd.s32 184, %v8054_v6  ;;  %v273_v25 = vadd.s32 192, %v8054_v6  ;;  %v341_v1 = vld [vmem:[#allocation2 + $0xa8] sm:$0xff] }
  0x3a   : > { %v1087_v56 = vadd.f32 %v1055_v52, %v1019_v8  ;;  %v1088_v32 = vadd.f32 %v1056_v53, %v1020_v3  ;;  %v274_v43 = vadd.s32 200, %v8054_v6  ;;  %v305_v57 = vand.u32 15, %v269_v31  ;;  %v522_v3 = vld [vmem:[#allocation2 + $0xb1] sm:$0xff]  ;;  %v524_v31 = vld [vmem:[#allocation2 + $0xc1] sm:$0xff] }
  0x3b   : > { %v306_v39 = vand.u32 15, %v270_v46  ;;  %v307_v42 = vand.u32 15, %v271_v36  ;;  %v308_v4 = vand.u32 15, %v272_v63  ;;  %v309_v30 = vand.u32 15, %v273_v25  ;;  %v526_v63 = vld [vmem:[#allocation2 + $0xd1] sm:$0xff] }
  0x3c   : > { %v1155_v35 = vadd.f32 %v1123_v7, %v1087_v56  ;;  %v1156_v60 = vadd.f32 %v1124_v26, %v1088_v32  ;;  %v310_v52 = vand.u32 15, %v274_v43  ;;  %vm8384_vm11 = vcmp.ge.s32.totalorder %v305_v57, 1  ;;  %v414_v26 = vld [vmem:[#allocation2 + $0xaf] sm:$0xff]  ;;  %v416_v43 = vld [vmem:[#allocation2 + $0xbf] sm:$0xff] }
  0x3d   : > { %v13194_v8 = vmov 0  ;;  %vm8388_vm12 = vcmp.le.s32.totalorder %v306_v39, 14  ;;  %v13197_v53 = vmov 0  ;;  %vm8392_vm13 = vcmp.ge.s32.totalorder %v307_v42, 1  ;;  %v342_v32 = vld [vmem:[#allocation2 + $0xb0] sm:$0xff]  ;;  %v343_v42 = vld [vmem:[#allocation2 + $0xb8] sm:$0xff] }
  0x3e   : > { %v13195_v8 = vsel %vm8384_vm11, 4294967295, %v13194_v8  ;;  %v13198_v53 = vsel %vm8388_vm12, 4294967295, %v13197_v53  ;;  %v1187_v46 = vmax.f32 %v1155_v35, 0.0  ;;  %v13200_v7 = vmov 0 }
  0x3f   : > { %13196 = vst [vmem:[#allocation28_spill] sm:$0xff] %v13195_v8  ;;  %13199 = vst [vmem:[#allocation29_spill] sm:$0xff] %v13198_v53  ;;  %v13201_v7 = vsel %vm8392_vm13, 4294967295, %v13200_v7  ;;  %vm8396_vm14 = vcmp.ge.s32.totalorder %v309_v30, 1  ;;  %v13203_v56 = vmov 0  ;;  %v8402_v36 = vsel %vm8384_vm11, %v413_v24, 0.0 }
  0x40   : > { %13202 = vst [vmem:[#allocation30_spill] sm:$0xff] %v13201_v7  ;;  %v13204_v56 = vsel %vm8396_vm14, 4294967295, %v13203_v56  ;;  %v1188_v25 = vmax.f32 %v1156_v60, 0.0  ;;  %v8406_v57 = vsel %vm8392_vm13, %v415_v59, 0.0  ;;  %v8410_v39 = vsel %vm8396_vm14, %v417_v54, 0.0  ;;  %v344_v30 = vld [vmem:[#allocation2 + $0xc0] sm:$0xff] }
  0x41   : > { %13205 = vst [vmem:[#allocation31_spill] sm:$0xff] %v13204_v56  ;;  %13206 = vst [vmem:[#allocation32_spill] sm:$0xff] %v8406_v57  ;;  %vm8412_vm15 = vcmp.le.s32.totalorder %v308_v4, 14  ;;  %v13207_v35 = vmov 0  ;;  %v8416_v24 = vld [vmem:[#allocation2 + $0xc8] sm:$0xff]  ;;  %vm8418_vm0 = vcmp.le.s32.totalorder %v310_v52, 14  ;;  %v597_v4 = vmul.f32 %v8108_v21, %v8402_v36 }
  0x42   : > { %v13208_v35 = vsel %vm8412_vm15, 4294967295, %v13207_v35  ;;  %v13210_v60 = vmov 0  ;;  %v8424_v59 = vsel %vm8388_vm12, %v522_v3, 0.0  ;;  %v8428_v54 = vsel %vm8412_vm15, %v524_v31, 0.0  ;;  %v8432_v7 = vld [vmem:[#allocation2 + $0xd0] sm:$0xff] }
  0x43   : > { %13209 = vst [vmem:[#allocation33_spill] sm:$0xff] %v13208_v35  ;;  %v13211_v60 = vsel %vm8418_vm0, 4294967295, %v13210_v60  ;;  %13213 = vst [vmem:[#allocation35_spill] sm:$0xff] %v8428_v54  ;;  %v1219_v56 = vpack.c.bf16 %v1188_v25, %v1187_v46  ;;  %v418_v8 = vld [vmem:[#allocation2 + $0xcf] sm:$0xff]  ;;  %v8436_v52 = vsel %vm8418_vm0, %v526_v63, 0.0  ;;  %v598_v53 = vmul.f32 %v8108_v21, %v414_v26 }
  0x44   : > { %13212 = vst [vmem:[#allocation34_spill] sm:$0xff] %v13211_v60  ;;  %v599_v3 = vmul.f32 %v8108_v21, %v8406_v57  ;;  %v600_v31 = vmul.f32 %v8108_v21, %v416_v43  ;;  %v601_v35 = vmul.f32 %v8108_v21, %v8410_v39  ;;  %v602_v46 = vmul.f32 %v8108_v21, %v418_v8  ;;  %v8447_v60 = vld [vmem:[#allocation2 + $0xc9] sm:$0xff] }
  0x45   : > { %v665_v25 = vmul.f32 %v8112_v22, %v341_v1  ;;  %7499 = vmatmul.mubr.msk.bf16.vlgmr.msra.gmra.mxu0 %vm12823_vm2, %v1219_v56  ;;  %v666_v63 = vmul.f32 %v8112_v22, %v342_v32  ;;  %v667_v26 = vmul.f32 %v8112_v22, %v343_v42  ;;  %v668_v55 = vmul.f32 %v8112_v22, %v344_v30 }
  0x46   : > { %v669_v62 = vmul.f32 %v8112_v22, %v8416_v24  ;;  %v670_v20 = vmul.f32 %v8112_v22, %v8432_v7  ;;  %v733_v1 = vmul.f32 %v8144_v44, %v521_v61  ;;  %v734_v56 = vmul.f32 %v8144_v44, %v8424_v59 }
  0x47   : > { %v697_v51 = vadd.f32 %v665_v25, %v597_v4  ;;  %v698_v50 = vadd.f32 %v666_v63, %v598_v53  ;;  %v699_v13 = vadd.f32 %v667_v26, %v599_v3  ;;  %v700_v11 = vadd.f32 %v668_v55, %v600_v31  ;;  %v8473_v3 = vld [vmem:[#allocation2 + $0xe0] sm:$0xff] }
  0x48   : > { %v701_v32 = vadd.f32 %v669_v62, %v601_v35  ;;  %v702_v37 = vadd.f32 %v670_v20, %v602_v46  ;;  %v735_v49 = vmul.f32 %v8144_v44, %v523_v2  ;;  %v736_v40 = vmul.f32 %v8144_v44, %v8428_v54 }
  0x49   : > { %v737_v5 = vmul.f32 %v8144_v44, %v8447_v60  ;;  %v738_v61 = vmul.f32 %v8144_v44, %v8436_v52  ;;  %v765_v4 = vadd.f32 %v733_v1, %v697_v51  ;;  %v766_v25 = vadd.f32 %v734_v56, %v698_v50 }
  0x4a   : > { %v801_v53 = vmul.f32 %v8203_v17, %v8406_v57  ;;  %v8470_v20 = vadd.f32 %v8346_v23, %v8343_v0  ;;  %v767_v55 = vadd.f32 %v735_v49, %v699_v13  ;;  %v768_v62 = vadd.f32 %v736_v40, %v700_v11 }
  0x4b   : > { %v802_v35 = vmul.f32 %v8203_v17, %v416_v43  ;;  %v770_v31 = vadd.f32 %v738_v61, %v702_v37  ;;  %v803_v46 = vmul.f32 %v8203_v17, %v8410_v39  ;;  %v804_v51 = vmul.f32 %v8203_v17, %v418_v8 }
  0x4c   : > { %v806_v50 = vmul.f32 %v8203_v17, %v420_v45  ;;  %v833_v63 = vadd.f32 %v801_v53, %v765_v4  ;;  %v869_v1 = vmul.f32 %v8207_v18, %v343_v42  ;;  %v870_v0 = vmul.f32 %v8207_v18, %v344_v30 }
  0x4d   : > { %v834_v26 = vadd.f32 %v802_v35, %v766_v25  ;;  %v8481_v13 = vadd.f32 %v737_v5, %v701_v32  ;;  %v835_v11 = vadd.f32 %v803_v46, %v767_v55  ;;  %v836_v40 = vadd.f32 %v804_v51, %v768_v62  ;;  %v8494_v32 = vld [vmem:[#allocation2 + $0xd8] sm:$0xff] }
  0x4e   : > { %v838_v49 = vadd.f32 %v806_v50, %v770_v31  ;;  %v872_v37 = vmul.f32 %v8207_v18, %v8432_v7  ;;  %v874_v23 = vmul.f32 %v8207_v18, %v8473_v3  ;;  %v901_v43 = vadd.f32 %v869_v1, %v833_v63  ;;  %v419_v63 = vld [vmem:[#allocation2 + $0xd7] sm:$0xff] }
  0x4f   : > { %v902_v56 = vadd.f32 %v870_v0, %v834_v26  ;;  %v937_v61 = vmul.f32 %v8211_v19, %v523_v2  ;;  %v938_v42 = vmul.f32 %v8211_v19, %v8428_v54  ;;  %v940_v5 = vmul.f32 %v8211_v19, %v8436_v52  ;;  %v528_v26 = vld [vmem:[#allocation2 + $0xe1] sm:$0xff] }
  0x50   : > { %v1005_v30 = vmul.f32 %v8223_v28, %v8410_v39  ;;  %v871_v4 = vmul.f32 %v8207_v18, %v8416_v24  ;;  %v904_v25 = vadd.f32 %v872_v37, %v836_v40  ;;  %v8498_v53 = vadd.f32 %v874_v23, %v838_v49 }
  0x51   : > { %v1006_v55 = vmul.f32 %v8223_v28, %v418_v8  ;;  %v969_v2 = vadd.f32 %v937_v61, %v901_v43  ;;  %v970_v62 = vadd.f32 %v938_v42, %v902_v56  ;;  %v1073_v35 = vmul.f32 %v8227_v29, %v8416_v24 }
  0x52   : > { %v1074_v31 = vmul.f32 %v8227_v29, %v8432_v7  ;;  %v972_v46 = vadd.f32 %v940_v5, %v904_v25  ;;  %v1141_v39 = vmul.f32 %v8280_v27, %v8447_v60  ;;  %v275_v51 = vadd.s32 208, %v8054_v6 }
  0x53   : > { %v276_v50 = vadd.s32 216, %v8054_v6  ;;  %v1037_v1 = vadd.f32 %v1005_v30, %v969_v2  ;;  %v1038_v8 = vadd.f32 %v1006_v55, %v970_v62  ;;  %v1142_v0 = vmul.f32 %v8280_v27, %v8436_v52 }
  0x54   : > { %v604_v24 = vmul.f32 %v8108_v21, %v420_v45  ;;  %v311_v40 = vand.u32 15, %v275_v51  ;;  %v671_v7 = vmul.f32 %v8112_v22, %v8494_v32  ;;  %v672_v37 = vmul.f32 %v8112_v22, %v8473_v3 }
  0x55   : > { %v312_v49 = vand.u32 15, %v276_v50  ;;  %v1105_v23 = vadd.f32 %v1073_v35, %v1037_v1  ;;  %v1106_v43 = vadd.f32 %v1074_v31, %v1038_v8  ;;  %v903_v56 = vadd.f32 %v871_v4, %v835_v11  ;;  %v8540_v31 = vld [vmem:[#allocation2 + $0x50] sm:$0xff] }
  0x56   : > { %v939_v61 = vmul.f32 %v8211_v19, %v8447_v60  ;;  %vm8518_vm1 = vcmp.ge.s32.totalorder %v311_v40, 1  ;;  %v13214_v42 = vmov 0  ;;  %v13217_v52 = vmov 0  ;;  %v8531_v60 = vld [vmem:[#allocation2 + $0xd9] sm:$0xff]  ;;  %v8552_v40 = vld [vmem:[#allocation2 + $0x4f] sm:$0xff] }
  0x57   : > { %v13215_v42 = vsel %vm8518_vm1, 4294967295, %v13214_v42  ;;  %vm8522_vm2 = vcmp.le.s32.totalorder %v312_v49, 14  ;;  %v704_v5 = vadd.f32 %v672_v37, %v604_v24  ;;  %v1008_v30 = vmul.f32 %v8223_v28, %v420_v45  ;;  %v8550_v24 = vld [vmem:[#allocation2 + $0x48] sm:$0xff] }
  0x58   : > { %13216 = vst [vmem:[#allocation36_spill] sm:$0xff] %v13215_v42  ;;  %v13218_v52 = vsel %vm8522_vm2, 4294967295, %v13217_v52  ;;  %v1173_v25 = vadd.f32 %v1141_v39, %v1105_v23  ;;  %v1174_v55 = vadd.f32 %v1142_v0, %v1106_v43  ;;  %v455_v2 = vsel %vm8518_vm1, %v419_v63, 0.0 }
  0x59   : > { %13219 = vst [vmem:[#allocation37_spill] sm:$0xff] %v13218_v52  ;;  %v564_v11 = vsel %vm8522_vm2, %v528_v26, 0.0  ;;  %v603_v4 = vmul.f32 %v8108_v21, %v455_v2  ;;  %v8536_v35 = vmul.f32 %v8203_v17, %v455_v2  ;;  %v1075_v45 = vmul.f32 %v8227_v29, %v8494_v32 }
  0x5a   : > { %v740_v62 = vmul.f32 %v8144_v44, %v564_v11  ;;  %v1205_v39 = vmax.f32 %v1173_v25, 0.0  ;;  %v1206_v51 = vmax.f32 %v1174_v55, 0.0  ;;  %v971_v50 = vadd.f32 %v939_v61, %v903_v56 }
  0x5b   : > { %v1007_v63 = vmul.f32 %v8223_v28, %v455_v2  ;;  %v8543_v26 = vadd.f32 %v671_v7, %v603_v4  ;;  %v8546_v1 = vmul.f32 %v8211_v19, %v564_v11  ;;  %v1040_v8 = vadd.f32 %v1008_v30, %v972_v46  ;;  %v510_v30 = vld [vmem:[#allocation2 + $0x51] sm:$0xff] }
  0x5c   : > { %v1076_v0 = vmul.f32 %v8227_v29, %v8473_v3  ;;  %v1228_v49 = vpack.c.bf16 %v1206_v51, %v1205_v39  ;;  %v1143_v23 = vmul.f32 %v8280_v27, %v8531_v60  ;;  %v1144_v43 = vmul.f32 %v8280_v27, %v564_v11  ;;  %v401_v3 = vld [vmem:[#allocation2 + $0x47] sm:$0xff] }
  0x5d   : > { %v1039_v37 = vadd.f32 %v1007_v63, %v971_v50  ;;  %v8557_v7 = vadd.f32 %v740_v62, %v704_v5  ;;  %v8560_v61 = vadd.s32 64, %v8054_v6  ;;  %v8563_v46 = vadd.s32 72, %v8054_v6 }
  0x5e   : > { %v1108_v56 = vadd.f32 %v1076_v0, %v1040_v8  ;;  %vm13222_vm2 = vcmask 23552   ;;  %v586_v55 = vmul.f32 %v8108_v21, %v8552_v40  ;;  %v654_v2 = vmul.f32 %v8112_v22, %v8540_v31 }
  0x5f   : > { %13220 = vst [vmem:[#allocation38_spill] sm:$0xff] %v8560_v61  ;;  %13221 = vst [vmem:[#allocation39_spill] sm:$0xff] %v8563_v46  ;;  %7518 = vmatprep.mubr.msk.bf16.mxu1 %vm13222_vm2, %v1228_v49  ;;  %v1107_v25 = vadd.f32 %v1075_v45, %v1039_v37  ;;  %v817_v5 = vadd.f32 %v8355_v48, %v8293_v33  ;;  %v293_v4 = vand.u32 15, %v8560_v61  ;;  %v294_v62 = vand.u32 15, %v8563_v46 }
  0x60   : > { %v1176_v11 = vadd.f32 %v1144_v43, %v1108_v56  ;;  %v853_v39 = vmul.f32 %v8207_v18, %v8297_v38  ;;  %v653_v45 = vmul.f32 %v8112_v22, %v8550_v24  ;;  %v921_v50 = vmul.f32 %v8211_v19, %v8352_v47 }
  0x61   : > { %v1175_v51 = vadd.f32 %v1143_v23, %v1107_v25  ;;  %v954_v63 = vadd.f32 %v8362_v58, %v8299_v41  ;;  %vm8582_vm2 = vcmp.ge.s32.totalorder %v293_v4, 1  ;;  %v13223_v33 = vmov 0  ;;  %v8596_v58 = vld [vmem:[#allocation2 + $0x5f] sm:$0xff]  ;;  %v8598_v23 = vld [vmem:[#allocation2 + $0x49] sm:$0xff] }
  0x62   : > { %v1208_v8 = vmax.f32 %v1176_v11, 0.0  ;;  %v13224_v33 = vsel %vm8582_vm2, 4294967295, %v13223_v33  ;;  %vm8586_vm1 = vcmp.le.s32.totalorder %v294_v62, 14  ;;  %v13226_v48 = vmov 0  ;;  %v8603_v11 = vld [vmem:[#allocation2 + $0x60] sm:$0xff] }
  0x63   : > { %13225 = vst [vmem:[#allocation40_spill] sm:$0xff] %v13224_v33  ;;  %v13227_v48 = vsel %vm8586_vm1, 4294967295, %v13226_v48  ;;  %v885_v38 = vadd.f32 %v853_v39, %v817_v5  ;;  %v1207_v0 = vmax.f32 %v1175_v51, 0.0  ;;  %v437_v49 = vsel %vm8582_vm2, %v401_v3, 0.0  ;;  %v512_v33 = vld [vmem:[#allocation2 + $0x61] sm:$0xff] }
  0x64   : > { %13228 = vst [vmem:[#allocation41_spill] sm:$0xff] %v13227_v48  ;;  %v546_v37 = vsel %vm8586_vm1, %v510_v30, 0.0  ;;  %v990_v41 = vmul.f32 %v8223_v28, %v8552_v40  ;;  %v585_v43 = vmul.f32 %v8108_v21, %v437_v49  ;;  %v686_v56 = vadd.f32 %v654_v2, %v586_v55 }
  0x65   : > { %v722_v25 = vmul.f32 %v8144_v44, %v546_v37  ;;  %v787_v5 = vmul.f32 %v8203_v17, %v437_v49  ;;  %v1229_v3 = vpack.c.bf16 %v1208_v8, %v1207_v0  ;;  %v953_v4 = vadd.f32 %v921_v50, %v885_v38 }
  0x66   : > { %v989_v30 = vmul.f32 %v8223_v28, %v437_v49  ;;  %v1022_v62 = vadd.f32 %v990_v41, %v954_v63  ;;  %v8606_v39 = vadd.f32 %v653_v45, %v585_v43  ;;  %v924_v51 = vmul.f32 %v8211_v19, %v546_v37  ;;  %v8618_v45 = vld [vmem:[#allocation2 + $0x58] sm:$0xff] }
  0x67   : > { %v1057_v52 = vmul.f32 %v8227_v29, %v8550_v24  ;;  %v1058_v55 = vmul.f32 %v8227_v29, %v8540_v31  ;;  %vm13229_vm0 = vcmask 23552   ;;  %v1125_v8 = vmul.f32 %v8280_v27, %v8598_v23 }
  0x68   : > { %7519 = vmatmul.mubr.msk.bf16.vlgmr.msra.gmra.mxu1 %vm13229_vm0, %v1229_v3  ;;  %v1021_v2 = vadd.f32 %v989_v30, %v953_v4  ;;  %v1126_v50 = vmul.f32 %v8280_v27, %v546_v37  ;;  %v259_v63 = vadd.s32 80, %v8054_v6  ;;  %v8620_v38 = vadd.f32 %v722_v25, %v686_v56  ;;  %v403_v4 = vld [vmem:[#allocation2 + $0x57] sm:$0xff] }
  0x69   : > { %v1090_v0 = vadd.f32 %v1058_v55, %v1022_v62  ;;  %v260_v49 = vadd.s32 88, %v8054_v6  ;;  %v588_v41 = vmul.f32 %v8108_v21, %v8596_v58  ;;  %v656_v30 = vmul.f32 %v8112_v22, %v8603_v11 }
  0x6a   : > { %v1089_v43 = vadd.f32 %v1057_v52, %v1021_v2  ;;  %v295_v3 = vand.u32 15, %v259_v63  ;;  %v719_v37 = vmul.f32 %v8144_v44, %v8352_v47  ;;  %v655_v56 = vmul.f32 %v8112_v22, %v8618_v45 }
  0x6b   : > { %v1158_v42 = vadd.f32 %v1126_v50, %v1090_v0  ;;  %v296_v48 = vand.u32 15, %v260_v49  ;;  %v788_v25 = vmul.f32 %v8203_v17, %v8552_v40  ;;  %v13230_v52 = vmov 0 }
  0x6c   : > { %v1157_v62 = vadd.f32 %v1125_v8, %v1089_v43  ;;  %vm8633_vm0 = vcmp.ge.s32.totalorder %v295_v3, 1  ;;  %v751_v55 = vadd.f32 %v719_v37, %v8359_v14  ;;  %v855_v2 = vmul.f32 %v8207_v18, %v8550_v24  ;;  %v8663_v37 = vld [vmem:[#allocation2 + $0x59] sm:$0xff] }
  0x6d   : > { %v13231_v52 = vsel %vm8633_vm0, 4294967295, %v13230_v52  ;;  %v1190_v47 = vmax.f32 %v1158_v42, 0.0  ;;  %v439_v50 = vsel %vm8633_vm0, %v403_v4, 0.0  ;;  %vm8642_vm14 = vcmp.le.s32.totalorder %v296_v48, 14 }
  0x6e   : > { %13232 = vst [vmem:[#allocation42_spill] sm:$0xff] %v13231_v52  ;;  %v13233_v63 = vmov 0  ;;  %v820_v40 = vadd.f32 %v788_v25, %v8470_v20  ;;  %v1189_v8 = vmax.f32 %v1157_v62, 0.0  ;;  %v548_v0 = vsel %vm8642_vm14, %v512_v33, 0.0  ;;  %v8668_v25 = vld [vmem:[#allocation2 + $0xf0] sm:$0xff] }
  0x6f   : > { %v13234_v63 = vsel %vm8642_vm14, 4294967295, %v13233_v63  ;;  %v587_v49 = vmul.f32 %v8108_v21, %v439_v50  ;;  %v688_v14 = vadd.f32 %v656_v30, %v588_v41  ;;  %v724_v43 = vmul.f32 %v8144_v44, %v548_v0 }
  0x70   : > { %13235 = vst [vmem:[#allocation43_spill] sm:$0xff] %v13234_v63  ;;  %v819_v24 = vadd.f32 %v787_v5, %v751_v55  ;;  %v856_v42 = vmul.f32 %v8207_v18, %v8540_v31  ;;  %v923_v48 = vmul.f32 %v8211_v19, %v8598_v23  ;;  %v1220_v3 = vpack.c.bf16 %v1190_v47, %v1189_v8  ;;  %v530_v63 = vld [vmem:[#allocation2 + $0xf1] sm:$0xff] }
  0x71   : > { %v8655_v4 = vadd.f32 %v655_v56, %v587_v49  ;;  %v8658_v20 = vmul.f32 %v8203_v17, %v439_v50  ;;  %v8661_v33 = vmul.f32 %v8211_v19, %v548_v0  ;;  %v991_v5 = vmul.f32 %v8223_v28, %v439_v50  ;;  %v8681_v49 = vld [vmem:[#allocation2 + $0xe8] sm:$0xff] }
  0x72   : > { %v887_v41 = vadd.f32 %v855_v2, %v819_v24  ;;  %v888_v30 = vadd.f32 %v856_v42, %v820_v40  ;;  %v992_v31 = vmul.f32 %v8223_v28, %v8596_v58  ;;  %vm13236_vm15 = vcmask 23552   ;;  %v422_v24 = vld [vmem:[#allocation2 + $0xef] sm:$0xff] }
  0x73   : > { %7502 = vmatprep.mubr.msk.bf16.mxu0 %vm13236_vm15, %v1220_v3  ;;  %v8671_v56 = vadd.f32 %v724_v43, %v688_v14  ;;  %v1059_v62 = vmul.f32 %v8227_v29, %v8618_v45  ;;  %v1060_v55 = vmul.f32 %v8227_v29, %v8603_v11  ;;  %v1127_v2 = vmul.f32 %v8280_v27, %v8663_v37 }
  0x74   : > { %v955_v47 = vadd.f32 %v923_v48, %v887_v41  ;;  %v956_v50 = vadd.f32 %v924_v51, %v888_v30  ;;  %v277_v40 = vadd.s32 224, %v8054_v6  ;;  %v278_v8 = vadd.s32 232, %v8054_v6  ;;  %v421_v30 = vld [vmem:[#allocation2 + $0xe7] sm:$0xff] }
  0x75   : > { %v1128_v14 = vmul.f32 %v8280_v27, %v548_v0  ;;  %v606_v43 = vmul.f32 %v8108_v21, %v422_v24  ;;  %v674_v42 = vmul.f32 %v8112_v22, %v8668_v25  ;;  %v837_v3 = vadd.f32 %v8536_v35, %v8481_v13 }
  0x76   : > { %v1023_v52 = vadd.f32 %v991_v5, %v955_v47  ;;  %v1024_v48 = vadd.f32 %v992_v31, %v956_v50  ;;  %v313_v51 = vand.u32 15, %v277_v40  ;;  %v314_v41 = vand.u32 15, %v278_v8 }
  0x77   : > { %v673_v46 = vmul.f32 %v8112_v22, %v8681_v49  ;;  %v873_v0 = vmul.f32 %v8207_v18, %v8494_v32  ;;  %v941_v61 = vmul.f32 %v8211_v19, %v8531_v60  ;;  %v974_v34 = vadd.f32 %v8546_v1, %v8498_v53 }
  0x78   : > { %v1091_v10 = vadd.f32 %v1059_v62, %v1023_v52  ;;  %v1092_v13 = vadd.f32 %v1060_v55, %v1024_v48  ;;  %vm8697_vm15 = vcmp.ge.s32.totalorder %v313_v51, 1  ;;  %v13237_v35 = vmov 0 }
  0x79   : > { %v13238_v35 = vsel %vm8697_vm15, 4294967295, %v13237_v35  ;;  %vm8701_vm13 = vcmp.le.s32.totalorder %v314_v41, 14  ;;  %v13240_v5 = vmov 0  ;;  %v457_v31 = vsel %vm8697_vm15, %v421_v30, 0.0 }
  0x7a   : > { %13239 = vst [vmem:[#allocation44_spill] sm:$0xff] %v13238_v35  ;;  %v13241_v5 = vsel %vm8701_vm13, 4294967295, %v13240_v5  ;;  %v566_v32 = vsel %vm8701_vm13, %v530_v63, 0.0  ;;  %v905_v47 = vadd.f32 %v873_v0, %v837_v3  ;;  %v1010_v50 = vmul.f32 %v8223_v28, %v422_v24  ;;  %v8717_v3 = vld [vmem:[#allocation2 + $0xe9] sm:$0xff] }
  0x7b   : > { %13242 = vst [vmem:[#allocation45_spill] sm:$0xff] %v13241_v5  ;;  %v1159_v53 = vadd.f32 %v1127_v2, %v1091_v10  ;;  %v1160_v1 = vadd.f32 %v1128_v14, %v1092_v13  ;;  %v605_v52 = vmul.f32 %v8108_v21, %v457_v31  ;;  %v706_v62 = vadd.f32 %v674_v42, %v606_v43  ;;  %v8723_v42 = vld [vmem:[#allocation2 + $0x100] sm:$0xff] }
  0x7c   : > { %v742_v55 = vmul.f32 %v8144_v44, %v566_v32  ;;  %v807_v40 = vmul.f32 %v8203_v17, %v457_v31  ;;  %v973_v8 = vadd.f32 %v941_v61, %v905_v47  ;;  %v1009_v48 = vmul.f32 %v8223_v28, %v457_v31  ;;  %v8725_v61 = vld [vmem:[#allocation2 + $0xff] sm:$0xff] }
  0x7d   : > { %v1191_v51 = vmax.f32 %v1159_v53, 0.0  ;;  %v1192_v41 = vmax.f32 %v1160_v1, 0.0  ;;  %v8714_v30 = vadd.f32 %v673_v46, %v605_v52  ;;  %v944_v63 = vmul.f32 %v8211_v19, %v566_v32  ;;  %v8734_v1 = vld [vmem:[#allocation2 + $0xf8] sm:$0xff] }
  0x7e   : > { %v1041_v10 = vadd.f32 %v1009_v48, %v973_v8  ;;  %v1042_v2 = vadd.f32 %v1010_v50, %v974_v34  ;;  %v1077_v14 = vmul.f32 %v8227_v29, %v8681_v49  ;;  %v1078_v43 = vmul.f32 %v8227_v29, %v8668_v25  ;;  %v423_v8 = vld [vmem:[#allocation2 + $0xf7] sm:$0xff] }
  0x7f   : > { %v1221_v0 = vpack.c.bf16 %v1192_v41, %v1191_v51  ;;  %v1145_v46 = vmul.f32 %v8280_v27, %v8717_v3  ;;  %v1146_v13 = vmul.f32 %v8280_v27, %v566_v32  ;;  %v279_v31 = vadd.s32 240, %v8054_v6  ;;  %v532_v41 = vld [vmem:[#allocation2 + $0x101] sm:$0xff] }
  0x80   : > { %v8731_v47 = vadd.f32 %v742_v55, %v706_v62  ;;  %v1109_v34 = vadd.f32 %v1077_v14, %v1041_v10  ;;  %v1110_v50 = vadd.f32 %v1078_v43, %v1042_v2  ;;  %v280_v53 = vadd.s32 248, %v8054_v6 }
  0x81   : > { %vm13243_vm13 = vcmask 23552   ;;  %v315_v52 = vand.u32 15, %v279_v31  ;;  %v608_v48 = vmul.f32 %v8108_v21, %v8725_v61  ;;  %v676_v27 = vmul.f32 %v8112_v22, %v8723_v42 }
  0x82   : > { %7503 = vmatmul.mubr.msk.bf16.gmra.mxu0 %vm13243_vm13, %v1221_v0  ;;  %v739_v32 = vmul.f32 %v8144_v44, %v8531_v60  ;;  %v1177_v62 = vadd.f32 %v1145_v46, %v1109_v34  ;;  %v1178_v55 = vadd.f32 %v1146_v13, %v1110_v50  ;;  %v316_v51 = vand.u32 15, %v280_v53 }
  0x83   : > { %v808_v10 = vmul.f32 %v8203_v17, %v422_v24  ;;  %vm8744_vm15 = vcmp.ge.s32.totalorder %v315_v52, 1  ;;  %v13244_v2 = vmov 0  ;;  %v675_v14 = vmul.f32 %v8112_v22, %v8734_v1 }
  0x84   : > { %v13245_v2 = vsel %vm8744_vm15, 4294967295, %v13244_v2  ;;  %v771_v43 = vadd.f32 %v739_v32, %v8543_v26  ;;  %v875_v0 = vmul.f32 %v8207_v18, %v8681_v49  ;;  %v1209_v31 = vmax.f32 %v1177_v62, 0.0 }
  0x85   : > { %13246 = vst [vmem:[#allocation46_spill] sm:$0xff] %v13245_v2  ;;  %v1210_v60 = vmax.f32 %v1178_v55, 0.0  ;;  %v459_v46 = vsel %vm8744_vm15, %v423_v8, 0.0  ;;  %vm8755_vm13 = vcmp.le.s32.totalorder %v316_v51, 14  ;;  %v13247_v13 = vmov 0  ;;  %v514_v2 = vld [vmem:[#allocation2 + $0x71] sm:$0xff] }
  0x86   : > { %v13248_v13 = vsel %vm8755_vm13, 4294967295, %v13247_v13  ;;  %v568_v24 = vsel %vm8755_vm13, %v532_v41, 0.0  ;;  %v607_v34 = vmul.f32 %v8108_v21, %v459_v46  ;;  %v708_v50 = vadd.f32 %v676_v27, %v608_v48  ;;  %v8780_v27 = vld [vmem:[#allocation2 + $0x70] sm:$0xff]  ;;  %v8782_v41 = vld [vmem:[#allocation2 + $0xf9] sm:$0xff] }
  0x87   : > { %13249 = vst [vmem:[#allocation47_spill] sm:$0xff] %v13248_v13  ;;  %v839_v53 = vadd.f32 %v807_v40, %v771_v43  ;;  %v1230_v26 = vpack.c.bf16 %v1210_v60, %v1209_v31  ;;  %v744_v52 = vmul.f32 %v8144_v44, %v568_v24  ;;  %v840_v49 = vadd.f32 %v808_v10, %v8557_v7  ;;  %v8793_v60 = vld [vmem:[%s12773_s1 + $0x8] ss:$0 sm:$0xff] }
  0x88   : > { %v876_v32 = vmul.f32 %v8207_v18, %v8668_v25  ;;  %v8766_v8 = vadd.f32 %v675_v14, %v607_v34  ;;  %v8769_v62 = vmul.f32 %v8203_v17, %v459_v46  ;;  %v943_v51 = vmul.f32 %v8211_v19, %v8717_v3  ;;  %v405_v13 = vld [vmem:[#allocation2 + $0x67] sm:$0xff] }
  0x89   : > { %v907_v55 = vadd.f32 %v875_v0, %v839_v53  ;;  %vm13250_vm13 = vcmask 23552   ;;  %v8775_v48 = vmul.f32 %v8211_v19, %v568_v24  ;;  %v1011_v7 = vmul.f32 %v8223_v28, %v459_v46  ;;  %v8799_v53 = vld [vmem:[#allocation2 + $0x68] sm:$0xff] }
  0x8a   : > { %7522 = vmatprep.mubr.msk.bf16.mxu1 %vm13250_vm13, %v1230_v26  ;;  %v908_v40 = vadd.f32 %v876_v32, %v840_v49  ;;  %v1012_v25 = vmul.f32 %v8223_v28, %v8725_v61  ;;  %v8784_v10 = vadd.f32 %v744_v52, %v708_v50  ;;  %v1079_v43 = vmul.f32 %v8227_v29, %v8734_v1  ;;  %v8801_v26 = vld [vmem:[#allocation2 + $0x6f] sm:$0xff] }
  0x8b   : > { %v975_v14 = vadd.f32 %v943_v51, %v907_v55  ;;  %v1080_v0 = vmul.f32 %v8227_v29, %v8723_v42  ;;  %v1147_v46 = vmul.f32 %v8793_v60, %v8782_v41  ;;  %v261_v34 = vadd.s32 96, %v8054_v6 }
  0x8c   : > { %v976_v31 = vadd.f32 %v944_v63, %v908_v40  ;;  %v262_v50 = vadd.s32 104, %v8054_v6  ;;  %v1148_v49 = vmul.f32 %v8793_v60, %v568_v24  ;;  %v590_v63 = vmul.f32 %v8108_v21, %v8801_v26 }
  0x8d   : > { %v1043_v52 = vadd.f32 %v1011_v7, %v975_v14  ;;  %v658_v32 = vmul.f32 %v8112_v22, %v8780_v27  ;;  %v297_v51 = vand.u32 15, %v261_v34  ;;  %v721_v5 = vmul.f32 %v8144_v44, %v8598_v23 }
  0x8e   : > { %v1044_v55 = vadd.f32 %v1012_v25, %v976_v31  ;;  %v298_v40 = vand.u32 15, %v262_v50  ;;  %v657_v7 = vmul.f32 %v8112_v22, %v8799_v53  ;;  %v790_v24 = vmul.f32 %v8203_v17, %v8596_v58 }
  0x8f   : > { %v1111_v35 = vadd.f32 %v1079_v43, %v1043_v52  ;;  %v857_v14 = vmul.f32 %v8207_v18, %v8618_v45  ;;  %vm8816_vm13 = vcmp.ge.s32.totalorder %v297_v51, 1  ;;  %v13251_v25 = vmov 0 }
  0x90   : > { %v1112_v12 = vadd.f32 %v1080_v0, %v1044_v55  ;;  %v13252_v25 = vsel %vm8816_vm13, 4294967295, %v13251_v25  ;;  %vm8820_vm15 = vcmp.le.s32.totalorder %v298_v40, 14  ;;  %v13254_v31 = vmov 0 }
  0x91   : > { %13253 = vst [vmem:[#allocation48_spill] sm:$0xff] %v13252_v25  ;;  %v13255_v31 = vsel %vm8820_vm15, 4294967295, %v13254_v31  ;;  %v753_v23 = vadd.f32 %v721_v5, %v8606_v39  ;;  %v1179_v43 = vadd.f32 %v1147_v46, %v1111_v35  ;;  %v441_v34 = vsel %vm8816_vm13, %v405_v13, 0.0  ;;  %v8837_v13 = vld [vmem:[#allocation2 + $0x69] sm:$0xff] }
  0x92   : > { %13256 = vst [vmem:[#allocation49_spill] sm:$0xff] %v13255_v31  ;;  %v550_v58 = vsel %vm8820_vm15, %v514_v2, 0.0  ;;  %v822_v45 = vadd.f32 %v790_v24, %v8620_v38  ;;  %v1180_v0 = vadd.f32 %v1148_v49, %v1112_v12  ;;  %v589_v50 = vmul.f32 %v8108_v21, %v441_v34  ;;  %v8850_v24 = vld [vmem:[#allocation2 + $0x7f] sm:$0xff] }
  0x93   : > { %v690_v52 = vadd.f32 %v658_v32, %v590_v63  ;;  %v726_v55 = vmul.f32 %v8144_v44, %v550_v58  ;;  %v1211_v51 = vmax.f32 %v1179_v43, 0.0  ;;  %v821_v40 = vadd.f32 %v8658_v20, %v753_v23  ;;  %v8848_v32 = vld [vmem:[#allocation2 + $0x80] sm:$0xff] }
  0x94   : > { %v858_v39 = vmul.f32 %v8207_v18, %v8603_v11  ;;  %v925_v35 = vmul.f32 %v8211_v19, %v8663_v37  ;;  %v1212_v5 = vmax.f32 %v1180_v0, 0.0  ;;  %v8839_v2 = vadd.f32 %v657_v7, %v589_v50  ;;  %v8846_v11 = vld [vmem:[#allocation2 + $0x78] sm:$0xff] }
  0x95   : > { %v791_v12 = vmul.f32 %v8203_v17, %v441_v34  ;;  %v928_v38 = vmul.f32 %v8211_v19, %v550_v58  ;;  %v889_v46 = vadd.f32 %v857_v14, %v821_v40  ;;  %v993_v63 = vmul.f32 %v8223_v28, %v441_v34 }
  0x96   : > { %v890_v49 = vadd.f32 %v858_v39, %v822_v45  ;;  %v994_v20 = vmul.f32 %v8223_v28, %v8801_v26  ;;  %v1231_v23 = vpack.c.bf16 %v1212_v5, %v1211_v51  ;;  %v1061_v7 = vmul.f32 %v8227_v29, %v8799_v53 }
  0x97   : > { %v1062_v43 = vmul.f32 %v8227_v29, %v8780_v27  ;;  %v1129_v14 = vmul.f32 %v8793_v60, %v8837_v13  ;;  %v957_v34 = vadd.f32 %v925_v35, %v889_v46  ;;  %v1130_v0 = vmul.f32 %v8793_v60, %v550_v58 }
  0x98   : > { %v958_v45 = vadd.f32 %v8661_v33, %v890_v49  ;;  %v263_v50 = vadd.s32 112, %v8054_v6  ;;  %vm13257_vm12 = vcmask 23552   ;;  %v264_v51 = vadd.s32 120, %v8054_v6  ;;  %v407_v49 = vld [vmem:[#allocation2 + $0x77] sm:$0xff] }
  0x99   : > { %7523 = vmatmul.mubr.msk.bf16.gmra.mxu1 %vm13257_vm12, %v1231_v23  ;;  %v592_v40 = vmul.f32 %v8108_v21, %v8850_v24  ;;  %v659_v39 = vmul.f32 %v8112_v22, %v8846_v11  ;;  %v660_v5 = vmul.f32 %v8112_v22, %v8848_v32  ;;  %v1025_v35 = vadd.f32 %v993_v63, %v957_v34  ;;  %v516_v23 = vld [vmem:[#allocation2 + $0x81] sm:$0xff] }
  0x9a   : > { %v1026_v46 = vadd.f32 %v994_v20, %v958_v45  ;;  %v299_v33 = vand.u32 15, %v263_v50  ;;  %v723_v58 = vmul.f32 %v8144_v44, %v8663_v37  ;;  %v300_v31 = vand.u32 15, %v264_v51 }
  0x9b   : > { %v692_v25 = vadd.f32 %v660_v5, %v592_v40  ;;  %v792_v16 = vmul.f32 %v8203_v17, %v8801_v26  ;;  %v859_v15 = vmul.f32 %v8207_v18, %v8799_v53  ;;  %v1093_v9 = vadd.f32 %v1061_v7, %v1025_v35 }
  0x9c   : > { %v1094_v54 = vadd.f32 %v1062_v43, %v1026_v46  ;;  %vm8875_vm12 = vcmp.ge.s32.totalorder %v299_v33, 1  ;;  %v13258_v57 = vmov 0  ;;  %v755_v63 = vadd.f32 %v723_v58, %v8655_v4 }
  0x9d   : > { %v13259_v57 = vsel %vm8875_vm12, 4294967295, %v13258_v57  ;;  %v443_v37 = vsel %vm8875_vm12, %v407_v49, 0.0  ;;  %vm8882_vm11 = vcmp.le.s32.totalorder %v300_v31, 14  ;;  %v13261_v20 = vmov 0 }
  0x9e   : > { %13260 = vst [vmem:[#allocation50_spill] sm:$0xff] %v13259_v57  ;;  %v13262_v20 = vsel %vm8882_vm11, 4294967295, %v13261_v20  ;;  %v824_v26 = vadd.f32 %v792_v16, %v8671_v56  ;;  %v860_v53 = vmul.f32 %v8207_v18, %v8780_v27  ;;  %v1161_v7 = vadd.f32 %v1129_v14, %v1093_v9 }
  0x9f   : > { %13263 = vst [vmem:[#allocation51_spill] sm:$0xff] %v13262_v20  ;;  %v1162_v43 = vadd.f32 %v1130_v0, %v1094_v54  ;;  %v8891_v34 = vsel %vm8882_vm11, %v516_v23, 0.0  ;;  %v591_v4 = vmul.f32 %v8108_v21, %v443_v37  ;;  %v8894_v45 = vadd.f32 %v726_v55, %v690_v52  ;;  %v8907_v0 = vld [vmem:[#allocation2 + $0x79] sm:$0xff] }
  0xa0   : > { %v728_v31 = vmul.f32 %v8144_v44, %v8891_v34  ;;  %v823_v50 = vadd.f32 %v791_v12, %v755_v63  ;;  %v892_v51 = vadd.f32 %v860_v53, %v824_v26  ;;  %v1193_v40 = vmax.f32 %v1161_v7, 0.0 }
  0xa1   : > { %v1194_v16 = vmax.f32 %v1162_v43, 0.0  ;;  %v8899_v56 = vmul.f32 %v8203_v17, %v443_v37  ;;  %v927_v9 = vmul.f32 %v8211_v19, %v8837_v13  ;;  %v8903_v54 = vadd.f32 %v659_v39, %v591_v4  ;;  %v425_v4 = vld [vmem:[#allocation2 + $0x107] sm:$0xff] }
  0xa2   : > { %v8905_v27 = vadd.f32 %v728_v31, %v692_v25  ;;  %v891_v14 = vadd.f32 %v859_v15, %v823_v50  ;;  %v960_v52 = vadd.f32 %v928_v38, %v892_v51  ;;  %v995_v12 = vmul.f32 %v8223_v28, %v443_v37  ;;  %v426_v31 = vld [vmem:[#allocation2 + $0x10f] sm:$0xff] }
  0xa3   : > { %v1222_v55 = vpack.c.bf16 %v1194_v16, %v1193_v40  ;;  %v996_v5 = vmul.f32 %v8223_v28, %v8850_v24  ;;  %v1063_v35 = vmul.f32 %v8227_v29, %v8846_v11  ;;  %v1064_v39 = vmul.f32 %v8227_v29, %v8848_v32  ;;  %v534_v50 = vld [vmem:[#allocation2 + $0x111] sm:$0xff] }
  0xa4   : > { %v959_v46 = vadd.f32 %v927_v9, %v891_v14  ;;  %v1131_v25 = vmul.f32 %v8793_v60, %v8907_v0  ;;  %v1132_v15 = vmul.f32 %v8793_v60, %v8891_v34  ;;  %vm13264_vm11 = vcmask 23552  }
  0xa5   : > { %7506 = vmatprep.mubr.msk.bf16.mxu0 %vm13264_vm11, %v1222_v55  ;;  %v1028_v38 = vadd.f32 %v996_v5, %v960_v52  ;;  %v281_v33 = vadd.s32 256, %v8054_v6  ;;  %v282_v49 = vadd.s32 264, %v8054_v6  ;;  %v741_v58 = vmul.f32 %v8144_v44, %v8717_v3  ;;  %v353_v5 = vld [vmem:[#allocation2 + $0x108] sm:$0xff] }
  0xa6   : > { %v1027_v23 = vadd.f32 %v995_v12, %v959_v46  ;;  %v810_v63 = vmul.f32 %v8203_v17, %v8725_v61  ;;  %v877_v37 = vmul.f32 %v8207_v18, %v8734_v1  ;;  %v878_v26 = vmul.f32 %v8207_v18, %v8723_v42 }
  0xa7   : > { %v1096_v53 = vadd.f32 %v1064_v39, %v1028_v38  ;;  %v317_v7 = vand.u32 15, %v281_v33  ;;  %v318_v43 = vand.u32 15, %v282_v49  ;;  %v773_v51 = vadd.f32 %v741_v58, %v8714_v30  ;;  %v354_v38 = vld [vmem:[#allocation2 + $0x110] sm:$0xff] }
  0xa8   : > { %v1095_v40 = vadd.f32 %v1063_v35, %v1027_v23  ;;  %v842_v3 = vadd.f32 %v810_v63, %v8731_v47  ;;  %v945_v61 = vmul.f32 %v8211_v19, %v8782_v41  ;;  %v1014_v16 = vmul.f32 %v8223_v28, %v426_v31  ;;  %v533_v33 = vld [vmem:[#allocation2 + $0x109] sm:$0xff] }
  0xa9   : > { %v1164_v1 = vadd.f32 %v1132_v15, %v1096_v53  ;;  %vm8936_vm11 = vcmp.ge.s32.totalorder %v317_v7, 1  ;;  %v13265_v9 = vmov 0  ;;  %vm8940_vm12 = vcmp.le.s32.totalorder %v318_v43, 14 }
  0xaa   : > { %v13266_v9 = vsel %vm8936_vm11, 4294967295, %v13265_v9  ;;  %v13268_v42 = vmov 0  ;;  %v841_v14 = vadd.f32 %v8769_v62, %v773_v51  ;;  %v1163_v30 = vadd.f32 %v1131_v25, %v1095_v40 }
  0xab   : > { %13267 = vst [vmem:[#allocation52_spill] sm:$0xff] %v13266_v9  ;;  %v13269_v42 = vsel %vm8940_vm12, 4294967295, %v13268_v42  ;;  %v461_v47 = vsel %vm8936_vm11, %v425_v4, 0.0  ;;  %v570_v52 = vsel %vm8940_vm12, %v534_v50, 0.0  ;;  %v910_v55 = vadd.f32 %v878_v26, %v842_v3  ;;  %v428_v50 = vld [vmem:[#allocation2 + $0x11f] sm:$0xff] }
  0xac   : > { %13270 = vst [vmem:[#allocation53_spill] sm:$0xff] %v13269_v42  ;;  %v1196_v12 = vmax.f32 %v1164_v1, 0.0  ;;  %v811_v35 = vmul.f32 %v8203_v17, %v461_v47  ;;  %v909_v46 = vadd.f32 %v877_v37, %v841_v14  ;;  %v948_v39 = vmul.f32 %v8211_v19, %v570_v52  ;;  %v427_v14 = vld [vmem:[#allocation2 + $0x117] sm:$0xff] }
  0xad   : > { %v1195_v15 = vmax.f32 %v1163_v30, 0.0  ;;  %v978_v62 = vadd.f32 %v8775_v48, %v910_v55  ;;  %v1013_v25 = vmul.f32 %v8223_v28, %v461_v47  ;;  %v1081_v49 = vmul.f32 %v8227_v29, %v353_v5 }
  0xae   : > { %v977_v58 = vadd.f32 %v945_v61, %v909_v46  ;;  %v1082_v23 = vmul.f32 %v8227_v29, %v354_v38  ;;  %v1149_v63 = vmul.f32 %v8793_v60, %v533_v33  ;;  %v1150_v26 = vmul.f32 %v8793_v60, %v570_v52  ;;  %v355_v52 = vld [vmem:[#allocation2 + $0x118] sm:$0xff]  ;;  %v356_v46 = vld [vmem:[#allocation2 + $0x120] sm:$0xff] }
  0xaf   : > { %v1223_v53 = vpack.c.bf16 %v1196_v12, %v1195_v15  ;;  %v1046_v37 = vadd.f32 %v1014_v16, %v978_v62  ;;  %v283_v7 = vadd.s32 272, %v8054_v6  ;;  %v284_v43 = vadd.s32 280, %v8054_v6  ;;  %v536_v16 = vld [vmem:[#allocation2 + $0x121] sm:$0xff]  ;;  %v535_v62 = vld [vmem:[#allocation2 + $0x119] sm:$0xff] }
  0xb0   : > { %v1045_v4 = vadd.f32 %v1013_v25, %v977_v58  ;;  %v743_v48 = vmul.f32 %v8144_v44, %v8782_v41  ;;  %v812_v51 = vmul.f32 %v8203_v17, %v426_v31  ;;  %v879_v40 = vmul.f32 %v8207_v18, %v353_v5 }
  0xb1   : > { %vm13271_vm12 = vcmask 23552   ;;  %v1114_v3 = vadd.f32 %v1082_v23, %v1046_v37  ;;  %v319_v61 = vand.u32 15, %v283_v7  ;;  %v320_v1 = vand.u32 15, %v284_v43 }
  0xb2   : > { %7507 = vmatmul.mubr.msk.bf16.gmra.mxu0 %vm13271_vm12, %v1223_v53  ;;  %v880_v30 = vmul.f32 %v8207_v18, %v354_v38  ;;  %v1113_v47 = vadd.f32 %v1081_v49, %v1045_v4  ;;  %v775_v55 = vadd.f32 %v743_v48, %v8766_v8  ;;  %v844_v12 = vadd.f32 %v812_v51, %v8784_v10  ;;  %v8987_v4 = vld [vmem:[#allocation2 + $0x90] sm:$0xff] }
  0xb3   : > { %v947_v41 = vmul.f32 %v8211_v19, %v533_v33  ;;  %v1182_v31 = vadd.f32 %v1150_v26, %v1114_v3  ;;  %vm8968_vm11 = vcmp.ge.s32.totalorder %v319_v61, 1  ;;  %v13272_v5 = vmov 0  ;;  %v8991_v51 = vld [vmem:[#allocation2 + $0x8f] sm:$0xff] }
  0xb4   : > { %v13273_v5 = vsel %vm8968_vm11, 4294967295, %v13272_v5  ;;  %vm8972_vm12 = vcmp.le.s32.totalorder %v320_v1, 14  ;;  %v13275_v15 = vmov 0  ;;  %v1016_v38 = vmul.f32 %v8223_v28, %v428_v50 }
  0xb5   : > { %13274 = vst [vmem:[#allocation54_spill] sm:$0xff] %v13273_v5  ;;  %v13276_v15 = vsel %vm8972_vm12, 4294967295, %v13275_v15  ;;  %v1181_v25 = vadd.f32 %v1149_v63, %v1113_v47  ;;  %v463_v8 = vsel %vm8968_vm11, %v427_v14, 0.0  ;;  %v572_v10 = vsel %vm8972_vm12, %v536_v16, 0.0  ;;  %v8985_v63 = vld [vmem:[#allocation2 + $0x88] sm:$0xff] }
  0xb6   : > { %13277 = vst [vmem:[#allocation55_spill] sm:$0xff] %v13276_v15  ;;  %v843_v33 = vadd.f32 %v811_v35, %v775_v55  ;;  %v1214_v49 = vmax.f32 %v1182_v31, 0.0  ;;  %v912_v58 = vadd.f32 %v880_v30, %v844_v12  ;;  %v1015_v23 = vmul.f32 %v8223_v28, %v463_v8  ;;  %v409_v30 = vld [vmem:[#allocation2 + $0x87] sm:$0xff] }
  0xb7   : > { %v1083_v26 = vmul.f32 %v8227_v29, %v355_v52  ;;  %v1213_v53 = vmax.f32 %v1181_v25, 0.0  ;;  %v1084_v7 = vmul.f32 %v8227_v29, %v356_v46  ;;  %v1151_v43 = vmul.f32 %v8793_v60, %v535_v62 }
  0xb8   : > { %v911_v37 = vadd.f32 %v879_v40, %v843_v33  ;;  %v980_v50 = vadd.f32 %v948_v39, %v912_v58  ;;  %v1152_v48 = vmul.f32 %v8793_v60, %v572_v10  ;;  %vm12902_vm12 = vcmask 162816  }
  0xb9   : > { %v265_v35 = vadd.s32 128, %v8054_v6  ;;  %v1232_v3 = vpack.c.bf16 %v1214_v49, %v1213_v53  ;;  %v13278_v1 = vmov 0.0   ;;  %v266_v39 = vadd.s32 136, %v8054_v6 }
  0xba   : > { %v979_v61 = vadd.f32 %v947_v41, %v911_v37  ;;  %3825 = vst.msk [vmem:[#allocation2 + $0x118] sm:$0xff] %vm12902_vm12, %v13278_v1  ;;  %3826 = vst.msk [vmem:[#allocation2 + $0x120] sm:$0xff] %vm12902_vm12, %v13278_v1  ;;  %v594_v40 = vmul.f32 %v8108_v21, %v8991_v51  ;;  %v1048_v14 = vadd.f32 %v1016_v38, %v980_v50  ;;  %vm13279_vm11 = vcmask 23552   ;;  %v518_v41 = vld [vmem:[#allocation2 + $0x91] sm:$0xff] }
  0xbb   : > { %3827 = vst.msk [vmem:[#allocation2 + $0x128] sm:$0xff] %vm12902_vm12, %v13278_v1  ;;  %1721 = vst.msk [vmem:[#allocation3] sm:$0xff] %vm12902_vm12, %v13278_v1  ;;  %v301_v16 = vand.u32 15, %v265_v35  ;;  %v661_v47 = vmul.f32 %v8112_v22, %v8985_v63  ;;  %v662_v52 = vmul.f32 %v8112_v22, %v8987_v4  ;;  %7526 = vmatprep.mubr.msk.bf16.mxu1 %vm13279_vm11, %v1232_v3  ;;  %v302_v12 = vand.u32 15, %v266_v39  ;;  %v9045_v3 = vld [vmem:[#allocation2 + $0x89] sm:$0xff] }
  0xbc   : > { %1722 = vst.msk [vmem:[#allocation3 + $0x8] sm:$0xff] %vm12902_vm12, %v13278_v1  ;;  %1723 = vst.msk [vmem:[#allocation3 + $0x50] sm:$0xff] %vm12902_vm12, %v13278_v1  ;;  %v1047_v55 = vadd.f32 %v1015_v23, %v979_v61  ;;  %v725_v31 = vmul.f32 %v8144_v44, %v8837_v13  ;;  %v794_v46 = vmul.f32 %v8203_v17, %v8850_v24  ;;  %v13280_v38 = vmov 0 }
  0xbd   : > { %1724 = vst.msk [vmem:[#allocation3 + $0x58] sm:$0xff] %vm12902_vm12, %v13278_v1  ;;  %v1116_v62 = vadd.f32 %v1084_v7, %v1048_v14  ;;  %vm9019_vm12 = vcmp.ge.s32.totalorder %v301_v16, 1  ;;  %v694_v25 = vadd.f32 %v662_v52, %v594_v40  ;;  %v861_v8 = vmul.f32 %v8207_v18, %v8846_v11  ;;  %v339_v14 = vld [vmem:[#allocation2 + $0x98] sm:$0xff]  ;;  %v340_v16 = vld [vmem:[#allocation2 + $0xa0] sm:$0xff] }
  0xbe   : > { %v13281_v38 = vsel %vm9019_vm12, 4294967295, %v13280_v38  ;;  %v1115_v10 = vadd.f32 %v1083_v26, %v1047_v55  ;;  %v445_v33 = vsel %vm9019_vm12, %v409_v30, 0.0  ;;  %vm9027_vm11 = vcmp.le.s32.totalorder %v302_v12, 14  ;;  %v412_v30 = vld [vmem:[#allocation2 + $0x9f] sm:$0xff] }
  0xbf   : > { %13282 = vst [vmem:[#allocation56_spill] sm:$0xff] %v13281_v38  ;;  %v13283_v49 = vmov 0  ;;  %v757_v13 = vadd.f32 %v725_v31, %v8839_v2  ;;  %v930_v24 = vmul.f32 %v8211_v19, %v8891_v34  ;;  %v1184_v58 = vadd.f32 %v1152_v48, %v1116_v62  ;;  %v13384_v38 = vld [vmem:[#allocation25_spill] sm:$0xff] }
  0xc0   : > { %v13284_v49 = vsel %vm9027_vm11, 4294967295, %v13283_v49  ;;  %v554_v23 = vsel %vm9027_vm11, %v518_v41, 0.0  ;;  %v593_v53 = vmul.f32 %v8108_v21, %v445_v33  ;;  %v1183_v11 = vadd.f32 %v1151_v43, %v1115_v10 }
  0xc1   : > { %13285 = vst [vmem:[#allocation57_spill] sm:$0xff] %v13284_v49  ;;  %v730_v26 = vmul.f32 %v8144_v44, %v554_v23  ;;  %v825_v37 = vadd.f32 %v8899_v56, %v757_v13  ;;  %v826_v7 = vadd.f32 %v794_v46, %v8894_v45  ;;  %v1216_v50 = vmax.f32 %v1184_v58, 0.0 }
  0xc2   : > { %v795_v35 = vmul.f32 %v8203_v17, %v445_v33  ;;  %v862_v2 = vmul.f32 %v8207_v18, %v8848_v32  ;;  %v929_v34 = vmul.f32 %v8211_v19, %v8907_v0  ;;  %v1215_v48 = vmax.f32 %v1183_v11, 0.0  ;;  %v411_v11 = vld [vmem:[#allocation2 + $0x97] sm:$0xff] }
  0xc3   : > { %v9047_v61 = vadd.f32 %v661_v47, %v593_v53  ;;  %v9049_v43 = vadd.f32 %v730_v26, %v694_v25  ;;  %v893_v39 = vadd.f32 %v861_v8, %v825_v37  ;;  %v997_v45 = vmul.f32 %v8223_v28, %v445_v33 }
  0xc4   : > { %v894_v56 = vadd.f32 %v862_v2, %v826_v7  ;;  %v998_v40 = vmul.f32 %v8223_v28, %v8991_v51  ;;  %v1065_v32 = vmul.f32 %v8227_v29, %v8985_v63  ;;  %v1233_v52 = vpack.c.bf16 %v1216_v50, %v1215_v48 }
  0xc5   : > { %v961_v55 = vadd.f32 %v929_v34, %v893_v39  ;;  %v1066_v47 = vmul.f32 %v8227_v29, %v8987_v4  ;;  %v1133_v12 = vmul.f32 %v8793_v60, %v9045_v3  ;;  %v1134_v31 = vmul.f32 %v8793_v60, %v554_v23 }
  0xc6   : > { %v962_v41 = vadd.f32 %v930_v24, %v894_v56  ;;  %v267_v46 = vadd.s32 144, %v8054_v6  ;;  %v268_v62 = vadd.s32 152, %v8054_v6  ;;  %vm13286_vm11 = vcmask 23552   ;;  %v520_v24 = vld [vmem:[#allocation2 + $0xa1] sm:$0xff] }
  0xc7   : > { %7527 = vmatmul.mubr.msk.bf16.gmra.mxu1 %vm13286_vm11, %v1233_v52  ;;  %v1029_v25 = vadd.f32 %v997_v45, %v961_v55  ;;  %v596_v8 = vmul.f32 %v8108_v21, %v412_v30  ;;  %v663_v10 = vmul.f32 %v8112_v22, %v339_v14  ;;  %v664_v33 = vmul.f32 %v8112_v22, %v340_v16 }
  0xc8   : > { %v1030_v13 = vadd.f32 %v998_v40, %v962_v41  ;;  %v303_v58 = vand.u32 15, %v267_v46  ;;  %v304_v53 = vand.u32 15, %v268_v62  ;;  %v727_v26 = vmul.f32 %v8144_v44, %v8907_v0 }
  0xc9   : > { %v1097_v37 = vadd.f32 %v1065_v32, %v1029_v25  ;;  %v696_v7 = vadd.f32 %v664_v33, %v596_v8  ;;  %v796_v50 = vmul.f32 %v8203_v17, %v8991_v51  ;;  %v863_v2 = vmul.f32 %v8207_v18, %v8985_v63  ;;  %v519_v33 = vld [vmem:[#allocation2 + $0x99] sm:$0xff] }
  0xca   : > { %v1098_v34 = vadd.f32 %v1066_v47, %v1030_v13  ;;  %vm9073_vm11 = vcmp.ge.s32.totalorder %v303_v58, 1  ;;  %v13287_v48 = vmov 0  ;;  %vm9077_vm12 = vcmp.le.s32.totalorder %v304_v53, 14 }
  0xcb   : > { %v13288_v48 = vsel %vm9073_vm11, 4294967295, %v13287_v48  ;;  %v13290_v22 = vmov 0  ;;  %v759_v39 = vadd.f32 %v727_v26, %v8903_v54  ;;  %v1165_v0 = vadd.f32 %v1133_v12, %v1097_v37 }
  0xcc   : > { %13289 = vst [vmem:[#allocation58_spill] sm:$0xff] %v13288_v48  ;;  %v13291_v22 = vsel %vm9077_vm12, 4294967295, %v13290_v22  ;;  %v447_v56 = vsel %vm9073_vm11, %v411_v11, 0.0  ;;  %v556_v51 = vsel %vm9077_vm12, %v520_v24, 0.0  ;;  %v828_v63 = vadd.f32 %v796_v50, %v8905_v27  ;;  %v13377_v48 = vld [vmem:[#allocation13_spill] sm:$0xff] }
  0xcd   : > { %13292 = vst [vmem:[#allocation59_spill] sm:$0xff] %v13291_v22  ;;  %v932_v45 = vmul.f32 %v8211_v19, %v554_v23  ;;  %v1166_v40 = vadd.f32 %v1134_v31, %v1098_v34  ;;  %v595_v32 = vmul.f32 %v8108_v21, %v447_v56  ;;  %v732_v52 = vmul.f32 %v8144_v44, %v556_v51 }
  0xce   : > { %v1197_v55 = vmax.f32 %v1165_v0, 0.0  ;;  %v827_v47 = vadd.f32 %v795_v35, %v759_v39  ;;  %v864_v54 = vmul.f32 %v8207_v18, %v8987_v4  ;;  %v931_v12 = vmul.f32 %v8211_v19, %v9045_v3 }
  0xcf   : > { %v1198_v41 = vmax.f32 %v1166_v40, 0.0  ;;  %v695_v46 = vadd.f32 %v663_v10, %v595_v32  ;;  %v764_v62 = vadd.f32 %v732_v52, %v696_v7  ;;  %v797_v27 = vmul.f32 %v8203_v17, %v447_v56  ;;  %v7995_v40 = vld [vmem:[#allocation2 + $0xb0] sm:$0xff] }
  0xd0   : > { %v895_v25 = vadd.f32 %v863_v2, %v827_v47  ;;  %v896_v23 = vadd.f32 %v864_v54, %v828_v63  ;;  %v999_v31 = vmul.f32 %v8223_v28, %v447_v56  ;;  %v1000_v21 = vmul.f32 %v8223_v28, %v412_v30  ;;  %v7993_v56 = vld [vmem:[#allocation2 + $0xaf] sm:$0xff] }
  0xd1   : > { %v1224_v8 = vpack.c.bf16 %v1198_v41, %v1197_v55  ;;  %v934_v35 = vmul.f32 %v8211_v19, %v556_v51  ;;  %v1067_v4 = vmul.f32 %v8227_v29, %v339_v14  ;;  %v1068_v13 = vmul.f32 %v8227_v29, %v340_v16  ;;  %v7994_v63 = vld [vmem:[#allocation2 + $0xa8] sm:$0xff] }
  0xd2   : > { %v963_v58 = vadd.f32 %v931_v12, %v895_v25  ;;  %v964_v53 = vadd.f32 %v932_v45, %v896_v23  ;;  %v1135_v10 = vmul.f32 %v8793_v60, %v519_v33  ;;  %v729_v11 = vmul.f32 %v8144_v44, %v9045_v3 }
  0xd3   : > { %vm13293_vm12 = vcmask 23552   ;;  %v1136_v24 = vmul.f32 %v8793_v60, %v556_v51  ;;  %v798_v26 = vmul.f32 %v8203_v17, %v412_v30  ;;  %v865_v37 = vmul.f32 %v8207_v18, %v339_v14 }
  0xd4   : > { %7510 = vmatprep.mubr.msk.bf16.mxu0 %vm13293_vm12, %v1224_v8  ;;  %v866_v7 = vmul.f32 %v8207_v18, %v340_v16  ;;  %v1031_v50 = vadd.f32 %v999_v31, %v963_v58  ;;  %v1032_v2 = vadd.f32 %v1000_v21, %v964_v53  ;;  %v761_v34 = vadd.f32 %v729_v11, %v9047_v61  ;;  %vm13296_vm11 = vmmov %vm13293_vm12 }
  0xd5   : > { %v933_v39 = vmul.f32 %v8211_v19, %v519_v33  ;;  %v830_v0 = vadd.f32 %v798_v26, %v9049_v43  ;;  %v1001_v3 = vmul.f32 %v8223_v28, %v8402_v36  ;;  %v1002_v51 = vmul.f32 %v7993_v56, %v8223_v28 }
  0xd6   : > { %v1069_v30 = vmul.f32 %v7994_v63, %v8227_v29  ;;  %v1099_v14 = vadd.f32 %v1067_v4, %v1031_v50  ;;  %v1100_v45 = vadd.f32 %v1068_v13, %v1032_v2  ;;  %v829_v16 = vadd.f32 %v797_v27, %v761_v34  ;;  %v7998_v2 = vld [vmem:[#allocation2 + $0xc0] sm:$0xff] }
  0xd7   : > { %v1070_v32 = vmul.f32 %v7995_v40, %v8227_v29  ;;  %v898_v61 = vadd.f32 %v866_v7, %v830_v0  ;;  %v1138_v52 = vmul.f32 %v8793_v60, %v8424_v59  ;;  %v731_v43 = vmul.f32 %v8144_v44, %v519_v33  ;;  %v7996_v33 = vld [vmem:[#allocation2 + $0xa9] sm:$0xff] }
  0xd8   : > { %v799_v55 = vmul.f32 %v8203_v17, %v8402_v36  ;;  %v1167_v47 = vadd.f32 %v1135_v10, %v1099_v14  ;;  %v1168_v54 = vadd.f32 %v1136_v24, %v1100_v45  ;;  %v897_v12 = vadd.f32 %v865_v37, %v829_v16  ;;  %v7997_v37 = vld [vmem:[#allocation2 + $0xbf] sm:$0xff] }
  0xd9   : > { %v800_v41 = vmul.f32 %v7993_v56, %v8203_v17  ;;  %v966_v25 = vadd.f32 %v934_v35, %v898_v61  ;;  %v763_v23 = vadd.f32 %v731_v43, %v695_v46  ;;  %v867_v27 = vmul.f32 %v7994_v63, %v8207_v18 }
  0xda   : > { %v868_v31 = vmul.f32 %v7995_v40, %v8207_v18  ;;  %v1199_v21 = vmax.f32 %v1167_v47, 0.0  ;;  %v1200_v8 = vmax.f32 %v1168_v54, 0.0  ;;  %v965_v4 = vadd.f32 %v933_v39, %v897_v12  ;;  %v13294_v18 = vld [vmem:[#allocation32_spill] sm:$0xff]  ;;  %v7999_v39 = vld [vmem:[#allocation2 + $0xb8] sm:$0xff] }
  0xdb   : > { %v832_v13 = vadd.f32 %v800_v41, %v764_v62  ;;  %v1034_v58 = vadd.f32 %v1002_v51, %v966_v25  ;;  %v831_v44 = vadd.f32 %v799_v55, %v763_v23  ;;  %v935_v36 = vmul.f32 %v7996_v33, %v8211_v19  ;;  %v13295_v51 = vld [vmem:[#allocation35_spill] sm:$0xff] }
  0xdc   : > { %v936_v53 = vmul.f32 %v8211_v19, %v8424_v59  ;;  %v1225_v10 = vpack.c.bf16 %v1200_v8, %v1199_v21  ;;  %v1033_v17 = vadd.f32 %v1001_v3, %v965_v4  ;;  %v1137_v46 = vmul.f32 %v7996_v33, %v8793_v60 }
  0xdd   : > { %v900_v35 = vadd.f32 %v868_v31, %v832_v13  ;;  %v1102_v11 = vadd.f32 %v1070_v32, %v1034_v58  ;;  %v899_v24 = vadd.f32 %v867_v27, %v831_v44  ;;  %v1003_v26 = vmul.f32 %v8223_v28, %v13294_v18 }
  0xde   : > { %v1004_v62 = vmul.f32 %v7997_v37, %v8223_v28  ;;  %7511 = vmatmul.mubr.msk.bf16.gmra.mxu0 %vm13293_vm12, %v1225_v10  ;;  %v1101_v7 = vadd.f32 %v1069_v30, %v1033_v17  ;;  %v1072_v19 = vmul.f32 %v7998_v2, %v8227_v29  ;;  %v1071_v0 = vmul.f32 %v7999_v39, %v8227_v29  ;;  %v8000_v28 = vld [vmem:[#allocation2 + $0xb9] sm:$0xff]  ;;  %v7816_v2 = vld [vmem:[%s12774_s2] sm:$0xfe]  }
  0xdf   : > { %v968_v50 = vadd.f32 %v936_v53, %v900_v35  ;;  %v1170_v59 = vadd.f32 %v1138_v52, %v1102_v11  ;;  %v967_v34 = vadd.f32 %v935_v36, %v899_v24  ;;  %v1140_v63 = vmul.f32 %v8793_v60, %v13295_v51 }
  0xe0   : > { %v1169_v3 = vadd.f32 %v1137_v46, %v1101_v7  ;;  %v1139_v16 = vmul.f32 %v8000_v28, %v8793_v60  ;;  %vm12918_vm15 = vcmask 1046528   ;;  %v2023_v51 = vshll.u32 %v7816_v2, 16 }
  0xe1   : > { %v1036_v56 = vadd.f32 %v1004_v62, %v968_v50  ;;  %v1202_v14 = vmax.f32 %v1170_v59, 0.0  ;;  %v1035_v45 = vadd.f32 %v1003_v26, %v967_v34  ;;  %v7815_v50 = vld [vmem:[%s12774_s2 + $0x8] ss:$0 sps:$4 sm:$0xff]   ;;  %vm13306_vm13 = vcmask 1041408  }
  0xe2   : > { %v1201_v30 = vmax.f32 %v1169_v3, 0.0  ;;  %v2028_v39 = vshrl.u32 %v7815_v50, 16  ;;  %v2020_v3 = vshrl.u32 %v7816_v2, 16  ;;  %vm13307_vm0 = vmmov %vm13306_vm13  ;;  %v13369_v42 = vmov 0 }
  0xe3   : > { %v1104_v40 = vadd.f32 %v1072_v19, %v1036_v56  ;;  %v1103_v32 = vadd.f32 %v1071_v0, %v1035_v45  ;;  %v2031_v0 = vshll.u32 %v7815_v50, 16  ;;  %v1742_v20 = vand.u32 7, %v13384_v38 }
  0xe4   : > { %v1226_v61 = vpack.c.bf16 %v1202_v14, %v1201_v30  ;;  %v2030_v14 = vrot.slane %v2028_v39, 1  ;;  %v2022_v28 = vrot.slane %v2020_v3, 1  ;;  %v13386_v38 = vmov 0 }
  0xe5   : > { %v1172_v43 = vadd.f32 %v1140_v63, %v1104_v40  ;;  %v1171_v52 = vadd.f32 %v1139_v16, %v1103_v32  ;;  %v2033_v45 = vrot.slane %v2031_v0, 2  ;;  %v2025_v16 = vrot.slane %v2023_v51, 2 }
  0xe6   : > { %7514 = vmatprep.mubr.msk.bf16.mxu0 %vm13293_vm12, %v1226_v61  ;;  %vm12917_vm12 = vsmask.f32 6400  ;;  %vm9483_vm8 = vcmp.ge.s32.totalorder %v1742_v20, 1  ;;  %vm13416_vm10 = vcmask 1046528   ;;  %vm13418_vm7 = vcmask 162816  }
  0xe7   : > { %v1204_v55 = vmax.f32 %v1172_v43, 0.0  ;;  %v1203_v29 = vmax.f32 %v1171_v52, 0.0  ;;  %v2034_v40 = vor.u32 %v2033_v45, %v2030_v14  ;;  %v2026_v32 = vor.u32 %v2025_v16, %v2022_v28 }
  0xe9   : > { %v1227_v47 = vpack.c.bf16 %v1204_v55, %v1203_v29  ;;  %7794 = vmatprep.subr.msk.bf16.mxu1 %vm13306_vm13, %v2034_v40  ;;  %v2050_v61 = vsel %vm13307_vm0, %v2034_v40, 0  ;;  %v2035_v43 = vsel %vm12917_vm12, %v2026_v32, %v2034_v40 }
  0xea   : > { %7531 = vmatpush3.bf16.msra.mxu1 %v2050_v61 }
  0xeb   : > { %7515 = vmatmul.mubr.msk.bf16.gmra.mxu0 %vm13296_vm11, %v1227_v47  ;;  %vm13301_vm11 = vcmask 162816   ;;  %7532 = vmatprep.subr.bf16.mxu1 %v2035_v43 }
  0xec   : > { %vm13312_vm0 = vmmov %vm13301_vm11 }
  0xed   : > { %vm13313_vm13 = vmmov %vm13312_vm0 }
  0xee   : > { %7533 = vmatpush3.bf16.msra.mxu1 %v2035_v43  ;;  %vm13315_vm12 = vmmov %vm13312_vm0 }
  0xef   : > { %7542 = vmatprep.subr.bf16.mxu1 %v13278_v1  ;;  %vm13317_vm1 = vmmov %vm13312_vm0 }
  0xf0   : > { %vm13318_vm2 = vmmov %vm13312_vm0 }
 0x105   : > { %v7500_v54 = vpop.f32.mrf.mxu0 }
 0x106   : > { %v9139_v41 = vmax.f32 %v7500_v54, 0.0 }
 0x107   : > { %v1323_v12 = vpop.f32.mrf.mxu0 }
 0x108   : > { %13297 = vst [vmem:[#allocation32_spill] sm:$0xff] %v9139_v41  ;;  %v9141_v23 = vmax.f32 %v1323_v12, 0.0  ;;  %v1519_v31 = vrot.slane %v9139_v41, 1 }
 0x109   : > { %v7501_v25 = vpop.f32.mrf.mxu0 }
 0x10a   : > { %13298 = vst [vmem:[#allocation35_spill] sm:$0xff] %v9141_v23  ;;  %v9143_v60 = vmax.f32 %v7501_v25, 0.0  ;;  %v1516_v4 = vrot.slane %v9141_v23, 1 }
 0x10b   : > { %v1326_v27 = vpop.f32.mrf.mxu0 }
 0x10c   : > { %13299 = vst [vmem:[#allocation60_spill] sm:$0xff] %v9143_v60  ;;  %v1521_v21 = vrot.slane %v9143_v60, 1  ;;  %v9147_v8 = vmax.f32 %v1326_v27, 0.0 }
 0x10e   : > { %13300 = vst [vmem:[#allocation61_spill] sm:$0xff] %v9147_v8  ;;  %v1522_v13 = vsel %vm12918_vm15, %v1519_v31, %v1521_v21  ;;  %v1517_v58 = vrot.slane %v9147_v8, 1 }
 0x10f   : > { %v9154_v33 = vmax.f32 %v9139_v41, %v1522_v13 }
 0x110   : > { %v1518_v44 = vsel %vm12918_vm15, %v1516_v4, %v1517_v58  ;;  %v1520_v12 = vsel %vm12918_vm15, %v1517_v58, %v1519_v31 }
 0x111   : > { %v1613_v36 = vmax.f32 %v9141_v23, %v1518_v44 }
 0x113   : > { %v1645_v53 = vmax.f32 %v1613_v36, %v9154_v33 }
 0x115   : > { %1676 = vst.msk [vmem:[#allocation2] sm:$0xff] %vm13301_vm11, %v1645_v53 }
 0x128   : > { %v7520_v10 = vpop.f32.mrf.mxu1 }
 0x129   : > { %v9159_v17 = vmax.f32 %v7520_v10, 0.0  ;;  %v1614_v10 = vmax.f32 %v9147_v8, %v1520_v12 }
 0x12a   : > { %v1403_v46 = vpop.f32.mrf.mxu1 }
 0x12b   : > { %13302 = vst [vmem:[#allocation62_spill] sm:$0xff] %v9159_v17  ;;  %v9161_v35 = vmax.f32 %v1403_v46, 0.0  ;;  %v1559_v24 = vrot.slane %v9159_v17, 1 }
 0x12c   : > { %v7521_v11 = vpop.f32.mrf.mxu1 }
 0x12d   : > { %13303 = vst [vmem:[#allocation63_spill] sm:$0xff] %v9161_v35  ;;  %v9164_v18 = vmax.f32 %v7521_v11, 0.0  ;;  %v12923_v37 = vrot.slane %v9161_v35, 1 }
 0x12e   : > { %v1406_v26 = vpop.f32.mrf.mxu1 }
 0x12f   : > { %13304 = vst [vmem:[#allocation64_spill] sm:$0xff] %v9164_v18  ;;  %v1561_v62 = vrot.slane %v9164_v18, 1  ;;  %v9168_v7 = vmax.f32 %v1406_v26, 0.0 }
 0x131   : > { %13305 = vst [vmem:[#allocation65_spill] sm:$0xff] %v9168_v7  ;;  %v1562_v19 = vsel %vm12918_vm15, %v1559_v24, %v1561_v62  ;;  %v1557_v59 = vrot.slane %v9168_v7, 1 }
 0x132   : > { %v9183_v34 = vmax.f32 %v9159_v17, %v1562_v19 }
 0x133   : > { %v1558_v56 = vsel %vm12918_vm15, %v12923_v37, %v1557_v59 }
 0x134   : > { %v9189_v63 = vmax.f32 %v9161_v35, %v1558_v56 }
 0x136   : > { %v1665_v30 = vmax.f32 %v9189_v63, %v9183_v34 }
 0x138   : > { %1696 = vst.msk [vmem:[#allocation2 + $0xa0] sm:$0xff] %vm13301_vm11, %v1665_v30  ;;  %vm13314_vm11 = vmmov %vm13312_vm0 }
 0x142   : > { %v7504_v52 = vpop.f32.mrf.mxu0 }
 0x143   : > { %v9198_v29 = vmax.f32 %v7504_v52, 0.0 }
 0x144   : > { %v1339_v55 = vpop.f32.mrf.mxu0 }
 0x145   : > { %13308 = vst [vmem:[#allocation66_spill] sm:$0xff] %v9198_v29  ;;  %v9200_v47 = vmax.f32 %v1339_v55, 0.0  ;;  %v1527_v13 = vrot.slane %v9198_v29, 1 }
 0x146   : > { %v7505_v54 = vpop.f32.mrf.mxu0 }
 0x147   : > { %13309 = vst [vmem:[#allocation67_spill] sm:$0xff] %v9200_v47  ;;  %v1523_v25 = vrot.slane %v9200_v47, 1  ;;  %v9204_v27 = vmax.f32 %v7505_v54, 0.0 }
 0x148   : > { %v1342_v4 = vpop.f32.mrf.mxu0 }
 0x149   : > { %13310 = vst [vmem:[#allocation68_spill] sm:$0xff] %v9204_v27  ;;  %v1524_v44 = vsel %vm12918_vm15, %v1521_v21, %v1523_v25  ;;  %v1529_v36 = vrot.slane %v9204_v27, 1  ;;  %v9209_v53 = vmax.f32 %v1342_v4, 0.0 }
 0x14a   : > { %v1616_v46 = vmax.f32 %v9143_v60, %v1524_v44  ;;  %v9271_v44 = vld [vmem:[#allocation3 + $0x51] sm:$0xff] }
 0x14b   : > { %13311 = vst [vmem:[#allocation69_spill] sm:$0xff] %v9209_v53  ;;  %v1530_v31 = vsel %vm12918_vm15, %v1527_v13, %v1529_v36  ;;  %v1525_v58 = vrot.slane %v9209_v53, 1 }
 0x14c   : > { %v1646_v11 = vmax.f32 %v1614_v10, %v1616_v46  ;;  %v9220_v21 = vmax.f32 %v9198_v29, %v1530_v31 }
 0x14d   : > { %v1526_v26 = vsel %vm12918_vm15, %v1523_v25, %v1525_v58  ;;  %v1528_v50 = vsel %vm12918_vm15, %v1525_v58, %v1527_v13  ;;  %vm13316_vm15 = vmmov %vm13312_vm0 }
 0x14e   : > { %v1617_v2 = vmax.f32 %v9200_v47, %v1526_v26  ;;  %v9224_v19 = vmax.f32 %v9209_v53, %v1528_v50  ;;  %1677 = vst.msk [vmem:[#allocation2 + $0x8] sm:$0xff] %vm13312_vm0, %v1646_v11  ;;  %v13391_v53 = vld [vmem:[#allocation16_spill] sm:$0xff]  ;;  %v13401_v47 = vmov 0 }
 0x150   : > { %v1647_v39 = vmax.f32 %v9154_v33, %v1617_v2  ;;  %v1648_v0 = vmax.f32 %v1616_v46, %v9224_v19  ;;  %v1649_v3 = vmax.f32 %v1617_v2, %v9220_v21 }
 0x152   : > { %1678 = vst.msk [vmem:[#allocation2 + $0x10] sm:$0xff] %vm13313_vm13, %v1647_v39  ;;  %vm13319_vm13 = vcmask 1046528  }
 0x153   : > { %1679 = vst.msk [vmem:[#allocation2 + $0x18] sm:$0xff] %vm13314_vm11, %v1648_v0  ;;  %v1560_v14 = vsel %vm13319_vm13, %v1557_v59, %v1559_v24  ;;  %vm12961_vm11 = vcmask 326656  }
 0x154   : > { %1680 = vst.msk [vmem:[#allocation2 + $0x20] sm:$0xff] %vm13315_vm12, %v1649_v3  ;;  %v9251_v32 = vmax.f32 %v9168_v7, %v1560_v14 }
 0x155   : > { %3824 = vst.msk [vmem:[#allocation2 + $0x10] sm:$0xff] %vm13316_vm15, %v13278_v1  ;;  %v1706_v56 = vld [vmem:[#allocation2] ss:$2 sm:$0xff] }
 0x156   : > { %3823 = vst.msk [vmem:[#allocation2 + $0x8] sm:$0xff] %vm13317_vm1, %v13278_v1  ;;  %vm13323_vm1 = vmmov %vm13319_vm13 }
 0x157   : > { %1725 = vst.msk [vmem:[#allocation3 + $0x10] sm:$0xff] %vm13312_vm0, %v1706_v56  ;;  %vm13326_vm15 = vmmov %vm13323_vm1 }
 0x158   : > { %3822 = vst.msk [vmem:[#allocation2] sm:$0xff] %vm13318_vm2, %v13278_v1  ;;  %vm13325_vm2 = vmmov %vm13323_vm1 }
 0x159   : > { %v7524_v33 = vpop.f32.mrf.mxu1  ;;  %vm13327_vm12 = vmmov %vm13323_vm1  ;;  %2440 = vst.msk [vmem:[#allocation3 + $0x58] sm:$0xff] %vm12961_vm11, %v13278_v1 }
 0x15a   : > { %v9243_v45 = vmax.f32 %v7524_v33, 0.0  ;;  %2196 = vst.msk [vmem:[#allocation4] sm:$0xff] %vm12961_vm11, %v13278_v1  ;;  %2199 = vst.msk [vmem:[#allocation4 + $0x1c] sm:$0xff] %vm12961_vm11, %v13278_v1 }
 0x15b   : > { %v1419_v51 = vpop.f32.mrf.mxu1  ;;  %vm13328_vm13 = vmmov %vm13312_vm0 }
 0x15c   : > { %13320 = vst [vmem:[#allocation70_spill] sm:$0xff] %v9243_v45  ;;  %v9245_v28 = vmax.f32 %v1419_v51, 0.0  ;;  %v1567_v43 = vrot.slane %v9243_v45, 1 }
 0x15d   : > { %v7525_v16 = vpop.f32.mrf.mxu1 }
 0x15e   : > { %13321 = vst [vmem:[#allocation71_spill] sm:$0xff] %v9245_v28  ;;  %v1563_v30 = vrot.slane %v9245_v28, 1  ;;  %v9248_v40 = vmax.f32 %v7525_v16, 0.0  ;;  %v1795_v49 = vld [vmem:[#allocation3 + $0x9] sm:$0xff] }
 0x15f   : > { %v1422_v61 = vpop.f32.mrf.mxu1 }
 0x160   : > { %13322 = vst [vmem:[#allocation72_spill] sm:$0xff] %v9248_v40  ;;  %v1564_v52 = vsel %vm13323_vm1, %v1561_v62, %v1563_v30  ;;  %v1569_v24 = vrot.slane %v9248_v40, 1  ;;  %v9258_v59 = vmax.f32 %v1422_v61, 0.0  ;;  %vm13329_vm1 = vmmov %vm13312_vm0 }
 0x161   : > { %v1636_v55 = vmax.f32 %v9164_v18, %v1564_v52 }
 0x162   : > { %13324 = vst [vmem:[#allocation73_spill] sm:$0xff] %v9258_v59  ;;  %v1570_v54 = vsel %vm13325_vm2, %v1567_v43, %v1569_v24  ;;  %v1565_v12 = vrot.slane %v9258_v59, 1  ;;  %vm13330_vm2 = vmmov %vm13312_vm0 }
 0x163   : > { %v9266_v25 = vmax.f32 %v9243_v45, %v1570_v54  ;;  %v1666_v4 = vmax.f32 %v9251_v32, %v1636_v55 }
 0x164   : > { %v1566_v13 = vsel %vm13326_vm15, %v1563_v30, %v1565_v12  ;;  %v1568_v62 = vsel %vm13327_vm12, %v1565_v12, %v1567_v43  ;;  %vm13331_vm15 = vmmov %vm13312_vm0 }
 0x165   : > { %v1637_v10 = vmax.f32 %v9245_v28, %v1566_v13  ;;  %v9275_v46 = vmax.f32 %v9258_v59, %v1568_v62  ;;  %1697 = vst.msk [vmem:[#allocation2 + $0xa8] sm:$0xff] %vm13312_vm0, %v1666_v4  ;;  %vm13336_vm0 = vmmov %vm13327_vm12 }
 0x167   : > { %v1667_v31 = vmax.f32 %v9183_v34, %v1637_v10  ;;  %v1668_v58 = vmax.f32 %v1636_v55, %v9275_v46  ;;  %v1669_v11 = vmax.f32 %v1637_v10, %v9266_v25 }
 0x169   : > { %1698 = vst.msk [vmem:[#allocation2 + $0xb0] sm:$0xff] %vm13328_vm13, %v1667_v31  ;;  %vm13337_vm13 = vmmov %vm13336_vm0 }
 0x16a   : > { %1699 = vst.msk [vmem:[#allocation2 + $0xb8] sm:$0xff] %vm13329_vm1, %v1668_v58  ;;  %vm13338_vm1 = vmmov %vm13336_vm0 }
 0x16b   : > { %1700 = vst.msk [vmem:[#allocation2 + $0xc0] sm:$0xff] %vm13330_vm2, %v1669_v11 }
 0x16c   : > { %v1716_v26 = vld [vmem:[#allocation2 + $0xa0] ss:$2 sm:$0xff] }
 0x16d   : > { %1730 = vst.msk [vmem:[#allocation3 + $0x38] sm:$0xff] %vm13331_vm15, %v1716_v26  ;;  %vm13339_vm15 = vmmov %vm13330_vm2 }
 0x172   : > { %v7508_v50 = vpop.f32.mrf.mxu0 }
 0x173   : > { %v9291_v39 = vmax.f32 %v7508_v50, 0.0 }
 0x174   : > { %v1355_v2 = vpop.f32.mrf.mxu0 }
 0x175   : > { %13332 = vst [vmem:[#allocation74_spill] sm:$0xff] %v9291_v39  ;;  %v9293_v0 = vmax.f32 %v1355_v2, 0.0  ;;  %v1535_v51 = vrot.slane %v9291_v39, 1 }
 0x176   : > { %v7509_v34 = vpop.f32.mrf.mxu0 }
 0x177   : > { %13333 = vst [vmem:[#allocation75_spill] sm:$0xff] %v9293_v0  ;;  %v1531_v3 = vrot.slane %v9293_v0, 1  ;;  %v9296_v56 = vmax.f32 %v7509_v34, 0.0 }
 0x178   : > { %v1358_v33 = vpop.f32.mrf.mxu0 }
 0x179   : > { %13334 = vst [vmem:[#allocation76_spill] sm:$0xff] %v9296_v56  ;;  %v1532_v14 = vsel %vm13327_vm12, %v1529_v36, %v1531_v3  ;;  %v1537_v16 = vrot.slane %v9296_v56, 1  ;;  %v9303_v30 = vmax.f32 %v1358_v33, 0.0  ;;  %vm13340_vm12 = vmmov %vm13330_vm2  ;;  %v9337_v33 = vrot.slane %v13278_v1, 1 }
 0x17a   : > { %v1620_v61 = vmax.f32 %v9204_v27, %v1532_v14 }
 0x17b   : > { %13335 = vst [vmem:[#allocation77_spill] sm:$0xff] %v9303_v30  ;;  %v1538_v43 = vsel %vm13336_vm0, %v1535_v51, %v1537_v16  ;;  %v1533_v52 = vrot.slane %v9303_v30, 1  ;;  %vm13341_vm0 = vmmov %vm13330_vm2 }
 0x17c   : > { %v1650_v55 = vmax.f32 %v9224_v19, %v1620_v61  ;;  %v9314_v36 = vmax.f32 %v9291_v39, %v1538_v43 }
 0x17d   : > { %v1534_v54 = vsel %vm13337_vm13, %v1531_v3, %v1533_v52  ;;  %v1536_v12 = vsel %vm13338_vm1, %v1533_v52, %v1535_v51  ;;  %vm13343_vm13 = vmmov %vm13341_vm0 }
 0x17e   : > { %v1621_v4 = vmax.f32 %v9293_v0, %v1534_v54  ;;  %v9318_v13 = vmax.f32 %v9303_v30, %v1536_v12  ;;  %1681 = vst.msk [vmem:[#allocation2 + $0x28] sm:$0xff] %vm13330_vm2, %v1650_v55  ;;  %vm13347_vm2 = vmmov %vm13338_vm1  ;;  %v13413_v30 = vld [vmem:[#allocation39_spill] sm:$0xff] }
 0x180   : > { %v1651_v62 = vmax.f32 %v9220_v21, %v1621_v4  ;;  %v1652_v10 = vmax.f32 %v1620_v61, %v9318_v13  ;;  %v1653_v19 = vmax.f32 %v1621_v4, %v9314_v36 }
 0x182   : > { %1682 = vst.msk [vmem:[#allocation2 + $0x30] sm:$0xff] %vm13339_vm15, %v1651_v62  ;;  %vm13348_vm15 = vmmov %vm13338_vm1 }
 0x183   : > { %1683 = vst.msk [vmem:[#allocation2 + $0x38] sm:$0xff] %vm13340_vm12, %v1652_v10  ;;  %vm13349_vm12 = vmmov %vm13338_vm1 }
 0x184   : > { %1684 = vst.msk [vmem:[#allocation2 + $0x40] sm:$0xff] %vm13341_vm0, %v1653_v19  ;;  %vm13350_vm0 = vmmov %vm13338_vm1 }
 0x185   : > { %v1708_v58 = vld [vmem:[#allocation2 + $0x20] ss:$2 sm:$0xff] }
 0x186   : > { %1726 = vst.msk [vmem:[#allocation3 + $0x18] sm:$0xff] %vm13343_vm13, %v1708_v58 }
 0x187   : > { %v7528_v31 = vpop.f32.mrf.mxu1 }
 0x188   : > { %v9327_v11 = vmax.f32 %v7528_v31, 0.0 }
 0x189   : > { %v1435_v26 = vpop.f32.mrf.mxu1 }
 0x18a   : > { %13342 = vst [vmem:[#allocation78_spill] sm:$0xff] %v9327_v11  ;;  %v9330_v50 = vmax.f32 %v1435_v26, 0.0  ;;  %v1575_v2 = vrot.slane %v9327_v11, 1 }
 0x18b   : > { %v7529_v21 = vpop.f32.mrf.mxu1 }
 0x18c   : > { %13344 = vst [vmem:[#allocation79_spill] sm:$0xff] %v9330_v50  ;;  %v1571_v34 = vrot.slane %v9330_v50, 1  ;;  %v9334_v3 = vmax.f32 %v7529_v21, 0.0 }
 0x18d   : > { %v1438_v51 = vpop.f32.mrf.mxu1 }
 0x18e   : > { %13345 = vst [vmem:[#allocation80_spill] sm:$0xff] %v9334_v3  ;;  %v1572_v14 = vsel %vm13338_vm1, %v1569_v24, %v1571_v34  ;;  %v1577_v61 = vrot.slane %v9334_v3, 1  ;;  %v9343_v43 = vmax.f32 %v1438_v51, 0.0  ;;  %vm13351_vm1 = vmmov %vm13343_vm13 }
 0x18f   : > { %v1640_v52 = vmax.f32 %v9248_v40, %v1572_v14  ;;  %v9426_v40 = vld [vmem:[#allocation3 + $0x50] sm:$0xff] }
 0x190   : > { %13346 = vst [vmem:[#allocation81_spill] sm:$0xff] %v9343_v43  ;;  %v1578_v55 = vsel %vm13347_vm2, %v1575_v2, %v1577_v61  ;;  %v1580_v54 = vsel %vm13348_vm15, %v1577_v61, %v9337_v33  ;;  %v1573_v12 = vrot.slane %v9343_v43, 1  ;;  %vm13352_vm2 = vmmov %vm13351_vm1 }
 0x191   : > { %v1643_v4 = vmax.f32 %v9327_v11, %v1578_v55  ;;  %v1644_v62 = vmax.f32 %v9334_v3, %v1580_v54  ;;  %v1670_v10 = vmax.f32 %v9275_v46, %v1640_v52  ;;  %vm13353_vm15 = vmmov %vm13351_vm1  ;;  %v13356_v55 = vmov 0  ;;  %v1765_v54 = vld [vmem:[#allocation3 + $0x7] sm:$0xff]  ;;  %v13373_v11 = vld [vmem:[#allocation6_spill] sm:$0xff] }
 0x192   : > { %v1574_v24 = vsel %vm13349_vm12, %v1571_v34, %v1573_v12  ;;  %v1576_v19 = vsel %vm13350_vm0, %v1573_v12, %v1575_v2  ;;  %vm13354_vm12 = vmmov %vm13351_vm1  ;;  %v1735_v2 = vand.u32 7, %v8054_v6 }
 0x193   : > { %v1641_v31 = vmax.f32 %v9330_v50, %v1574_v24  ;;  %v1642_v58 = vmax.f32 %v9343_v43, %v1576_v19  ;;  %1701 = vst.msk [vmem:[#allocation2 + $0xc8] sm:$0xff] %vm13343_vm13, %v1670_v10  ;;  %vm13355_vm0 = vmmov %vm13351_vm1  ;;  %v13362_v10 = vld [vmem:[#allocation5_spill] sm:$0xff]  ;;  %v13363_v19 = vld [vmem:[#allocation10_spill] sm:$0xff]  ;;  %v1737_v43 = vand.u32 7, %v13373_v11 }
 0x194   : > { %vm9370_vm13 = vcmp.ge.s32.totalorder %v1735_v2, 1  ;;  %v1736_v24 = vand.u32 7, %v13362_v10  ;;  %v13378_v50 = vld [vmem:[#allocation15_spill] sm:$0xff] }
 0x195   : > { %v1671_v26 = vmax.f32 %v9266_v25, %v1641_v31  ;;  %v1672_v21 = vmax.f32 %v1640_v52, %v1642_v58  ;;  %v1673_v51 = vmax.f32 %v1641_v31, %v1643_v4  ;;  %v1674_v14 = vmax.f32 %v1642_v58, %v1644_v62  ;;  %v9368_v25 = vld [vmem:[%s12773_s1 + $0x9] sm:$0xff] }
 0x196   : > { %v13357_v55 = vsel %vm9370_vm13, 4294967295, %v13356_v55  ;;  %v9382_v31 = vrot.slane %v9368_v25, %v13363_v19  ;;  %vm9488_vm5 = vcmp.le.s32.totalorder %v1737_v43, 6 }
 0x197   : > { %1702 = vst.msk [vmem:[#allocation2 + $0xd0] sm:$0xff] %vm13351_vm1, %v1671_v26  ;;  %13358 = vst [vmem:[#allocation82_spill] sm:$0xff] %v13357_v55  ;;  %v13402_v47 = vsel %vm9488_vm5, 4294967295, %v13401_v47 }
 0x198   : > { %1703 = vst.msk [vmem:[#allocation2 + $0xd8] sm:$0xff] %vm13352_vm2, %v1672_v21  ;;  %vm13359_vm1 = vmmov %vm13355_vm0  ;;  %v1775_v21 = vsel %vm9370_vm13, %v1765_v54, 0.0  ;;  %vm13366_vm2 = vcmask 1046528  }
 0x199   : > { %1704 = vst.msk [vmem:[#allocation2 + $0xe0] sm:$0xff] %vm13353_vm15, %v1673_v51  ;;  %v13365_v51 = vld [vmem:[#allocation11_spill] sm:$0xff]  ;;  %vm9402_vm15 = vcmp.ge.s32.totalorder %v1736_v24, 1  ;;  %v1819_v9 = vmul.f32 %v9382_v31, %v1775_v21  ;;  %v9420_v21 = vrot.slane %v9368_v25, %v13377_v48 }
 0x19a   : > { %1705 = vst.msk [vmem:[#allocation2 + $0xe8] sm:$0xff] %vm13354_vm12, %v1674_v14  ;;  %v1718_v46 = vld [vmem:[#allocation2 + $0xc0] ss:$2 sm:$0xff]  ;;  %v9391_v14 = vrot.slane %v9368_v25, %v13365_v51  ;;  %v13370_v42 = vsel %vm9402_vm15, 4294967295, %v13369_v42  ;;  %vm13372_vm12 = vmmov %vm13366_vm2 }
 0x19b   : > { %1731 = vst.msk [vmem:[#allocation3 + $0x40] sm:$0xff] %vm13355_vm0, %v1718_v46  ;;  %vm9414_vm0 = vcmp.le.s32.totalorder %v1735_v2, 6 }
 0x19e   : > { %v7512_v34 = vpop.f32.mrf.mxu0 }
 0x19f   : > { %v9375_v12 = vmax.f32 %v7512_v34, 0.0  ;;  %v1745_v34 = vld [vmem:[#allocation3 + $0x8] sm:$0xff] }
 0x1a0   : > { %v1371_v52 = vpop.f32.mrf.mxu0  ;;  %v1839_v22 = vmul.f32 %v9391_v14, %v1745_v34  ;;  %v13381_v34 = vmov 0 }
 0x1a1   : > { %v1720_v61 = vld [vmem:[#allocation2 + $0xe0] ss:$2 sm:$0xff]  ;;  %13360 = vst [vmem:[#allocation83_spill] sm:$0xff] %v9375_v12  ;;  %v9377_v4 = vmax.f32 %v1371_v52, 0.0 }
 0x1a2   : > { %1732 = vst.msk [vmem:[#allocation3 + $0x48] sm:$0xff] %vm13359_vm1, %v1720_v61  ;;  %v7513_v62 = vpop.f32.mrf.mxu0  ;;  %v1543_v61 = vrot.slane %v9375_v12, 1  ;;  %vm13379_vm1 = vmmov %vm13366_vm2  ;;  %v1847_v17 = vadd.f32 %v1839_v22, %v1819_v9  ;;  %v1772_v60 = vld [vmem:[#allocation3 + $0x3f] sm:$0xff] }
 0x1a3   : > { %13361 = vst [vmem:[#allocation84_spill] sm:$0xff] %v9377_v4  ;;  %v1539_v58 = vrot.slane %v9377_v4, 1  ;;  %v9385_v26 = vmax.f32 %v7513_v62, 0.0  ;;  %v13368_v62 = vld [vmem:[#allocation8_spill] sm:$0xff]  ;;  %v9532_v55 = vsel %vm9483_vm8, %v1772_v60, 0.0 }
 0x1a4   : > { %v1374_v46 = vpop.f32.mrf.mxu0  ;;  %13371 = vst [vmem:[#allocation8_spill] sm:$0xff] %v13370_v42  ;;  %v9528_v23 = vld [vmem:[#allocation3 + $0x40] sm:$0xff] }
 0x1a5   : > { %13364 = vst [vmem:[#allocation5_spill] sm:$0xff] %v9385_v26  ;;  %v1540_v52 = vsel %vm13366_vm2, %v1537_v16, %v1539_v58  ;;  %v12940_v37 = vrot.slane %v9385_v26, 1  ;;  %v9398_v15 = vmax.f32 %v1374_v46, 0.0  ;;  %v1766_v46 = vld [vmem:[#allocation3 + $0xf] sm:$0xff]  ;;  %vm13380_vm2 = vmmov %vm13379_vm1 }
 0x1a6   : > { %v1624_v54 = vmax.f32 %v9296_v56, %v1540_v52  ;;  %v13374_v52 = vmov 0  ;;  %v13409_v56 = vmov 0 }
 0x1a7   : > { %13367 = vst [vmem:[#allocation85_spill] sm:$0xff] %v9398_v15  ;;  %v1546_v3 = vsel %vm13372_vm12, %v1543_v61, %v12940_v37  ;;  %v1541_v16 = vrot.slane %v9398_v15, 1  ;;  %v13375_v52 = vsel %vm9414_vm0, 4294967295, %v13374_v52  ;;  %v9424_v37 = vrot.slane %v9368_v25, %v13378_v50 }
 0x1a8   : > { %v1654_v5 = vmax.f32 %v9318_v13, %v1624_v54  ;;  %13376 = vst [vmem:[#allocation6_spill] sm:$0xff] %v13375_v52  ;;  %vm9434_vm12 = vcmp.le.s32.totalorder %v1736_v24, 6  ;;  %v9442_v57 = vmax.f32 %v9375_v12, %v1546_v3  ;;  %v1746_v24 = vld [vmem:[#allocation3 + $0x10] sm:$0xff] }
 0x1a9   : > { %v9428_v45 = vld [vmem:[#allocation3 + $0x4f] sm:$0xff]  ;;  %v1542_v13 = vsel %vm13379_vm1, %v1539_v58, %v1541_v16  ;;  %v1544_v2 = vsel %vm13380_vm2, %v1541_v16, %v1543_v61  ;;  %v13382_v34 = vsel %vm9434_vm12, 4294967295, %v13381_v34  ;;  %vm13385_vm1 = vcmask 162816  }
 0x1aa   : > { %v9430_v59 = vld [vmem:[#allocation3 + $0x49] sm:$0xff]  ;;  %13383 = vst [vmem:[#allocation86_spill] sm:$0xff] %v13382_v34  ;;  %v1625_v28 = vmax.f32 %v9377_v4, %v1542_v13  ;;  %v9446_v18 = vmax.f32 %v9398_v15, %v1544_v2  ;;  %1685 = vst.msk [vmem:[#allocation2 + $0x48] sm:$0xff] %vm13385_vm1, %v1654_v5  ;;  %v1776_v58 = vsel %vm9402_vm15, %v1766_v46, 0.0  ;;  %v1796_v61 = vld [vmem:[#allocation3 + $0x11] sm:$0xff]  ;;  %vm9451_vm2 = vcmp.ge.s32.totalorder %v1737_v43, 1 }
 0x1ab   : > { %2439 = vst.msk [vmem:[#allocation3 + $0x50] sm:$0xff] %vm12961_vm11, %v13278_v1  ;;  %v7516_v16 = vpop.f32.mrf.mxu0  ;;  %v13387_v38 = vsel %vm9451_vm2, 4294967295, %v13386_v38  ;;  %v13389_v3 = vld [vmem:[#allocation14_spill] sm:$0xff]  ;;  %v1805_v46 = vsel %vm9414_vm0, %v1795_v49, 0.0  ;;  %v9467_v29 = vsel %vm9434_vm12, %v1796_v61, 0.0  ;;  %v1820_v9 = vmul.f32 %v9382_v31, %v1776_v58  ;;  %vm13392_vm11 = vmmov %vm13385_vm1  ;;  %v13400_v4 = vld [vmem:[#allocation7_spill] sm:$0xff] }
 0x1ac   : > { %13388 = vst [vmem:[#allocation25_spill] sm:$0xff] %v13387_v38  ;;  %v9457_v7 = vrot.slane %v9368_v25, %v13389_v3  ;;  %v13390_v13 = vld [vmem:[#allocation38_spill] sm:$0xff]  ;;  %v1655_v12 = vmax.f32 %v9314_v36, %v1625_v28  ;;  %v1656_v5 = vmax.f32 %v1624_v54, %v9446_v18  ;;  %v1657_v0 = vmax.f32 %v1625_v28, %v9442_v57  ;;  %vm13393_vm9 = vmmov %vm13385_vm1  ;;  %v13396_v36 = vld [vmem:[#allocation24_spill] sm:$0xff] }
 0x1ad   : > { %v1387_v27 = vpop.f32.mrf.mxu0  ;;  %v1840_v22 = vmul.f32 %v9391_v14, %v1746_v24  ;;  %v9473_v2 = vrot.slane %v9368_v25, %v13391_v53  ;;  %v9478_v49 = vmax.f32 %v7516_v16, 0.0  ;;  %v13397_v61 = vmov 0  ;;  %13403 = vst [vmem:[#allocation7_spill] sm:$0xff] %v13402_v47 }
 0x1ae   : > { %1686 = vst.msk [vmem:[#allocation2 + $0x50] sm:$0xff] %vm13385_vm1, %v1655_v12  ;;  %v9480_v28 = vmax.f32 %v1387_v27, 0.0  ;;  %v13398_v61 = vsel %vm9483_vm8, 4294967295, %v13397_v61  ;;  %v1859_v12 = vmul.f32 %v9420_v21, %v1805_v46  ;;  %v1860_v54 = vmul.f32 %v9420_v21, %v9467_v29 }
 0x1af   : > { %1687 = vst.msk [vmem:[#allocation2 + $0x58] sm:$0xff] %vm13392_vm11, %v1656_v5  ;;  %13394 = vst [vmem:[#allocation38_spill] sm:$0xff] %v9478_v49  ;;  %v7517_v15 = vpop.f32.mrf.mxu0  ;;  %v1767_v5 = vld [vmem:[#allocation3 + $0x17] sm:$0xff]  ;;  %v13408_v43 = vand.u32 7, %v13390_v13  ;;  %v1848_v8 = vadd.f32 %v1840_v22, %v1820_v9  ;;  %v1879_v39 = vmul.f32 %v9457_v7, %v1776_v58  ;;  %vm13414_vm1 = vcmask 326656   ;;  %v1802_v58 = vld [vmem:[#allocation3 + $0x41] sm:$0xff] }
 0x1b0   : > { %1688 = vst.msk [vmem:[#allocation2 + $0x60] sm:$0xff] %vm13393_vm9, %v1657_v0  ;;  %13395 = vst [vmem:[#allocation87_spill] sm:$0xff] %v9480_v28  ;;  %vm9493_vm9 = vcmp.le.s32.totalorder %v1742_v20, 6  ;;  %v13404_v0 = vmov 0  ;;  %v1547_v27 = vrot.slane %v9480_v28, 1  ;;  %v9498_v16 = vmax.f32 %v7517_v15, 0.0 }
 0x1b1   : > { %13399 = vst [vmem:[#allocation24_spill] sm:$0xff] %v13398_v61  ;;  %v13405_v0 = vsel %vm9493_vm9, 4294967295, %v13404_v0  ;;  %vm9504_vm11 = vcmp.ge.s32.totalorder %v13408_v43, 1  ;;  %v1390_v20 = vpop.f32.mrf.mxu0  ;;  %v1710_v41 = vld [vmem:[#allocation2 + $0x40] ss:$2 sm:$0xff]  ;;  %v1899_v15 = vmul.f32 %v9424_v37, %v1746_v24  ;;  %v1551_v34 = vrot.slane %v9478_v49, 1 }
 0x1b2   : > { %13406 = vst [vmem:[#allocation88_spill] sm:$0xff] %v13405_v0  ;;  %13407 = vst [vmem:[#allocation89_spill] sm:$0xff] %v9498_v16  ;;  %v13410_v56 = vsel %vm9504_vm11, 4294967295, %v13409_v56  ;;  %v9508_v46 = vld [vmem:[#allocation3 + $0x51] sm:$0xff]  ;;  %v13415_v43 = vrot.slane %v9385_v26, 1  ;;  %v9520_v52 = vmax.f32 %v1390_v20, 0.0  ;;  %v1867_v22 = vadd.f32 %v1859_v12, %v1847_v17 }
 0x1b3   : > { %13411 = vst [vmem:[#allocation90_spill] sm:$0xff] %v13410_v56  ;;  %13412 = vst [vmem:[#allocation91_spill] sm:$0xff] %v9508_v46  ;;  %v1553_v46 = vrot.slane %v9498_v16, 1  ;;  %v9526_v9 = vsel %vm9451_vm2, %v1767_v5, 0.0  ;;  %v13419_v20 = vrot.slane %v9161_v35, 1  ;;  %v9544_v12 = vsel %vm9493_vm9, %v1802_v58, 0.0 }
 0x1b4   : > { %3298 = vst.msk [vmem:[#allocation3 + $0x58] sm:$0xff] %vm13414_vm1, %v13278_v1  ;;  %v1548_v42 = vsel %vm13416_vm10, %v13415_v43, %v1547_v27  ;;  %13417 = vst [vmem:[#allocation39_spill] sm:$0xff] %v9520_v52  ;;  %v1549_v53 = vrot.slane %v9520_v52, 1  ;;  %v9557_v58 = vld [vmem:[#allocation3 + $0x18] sm:$0xff] }
 0x1b5   : > { %1727 = vst.msk [vmem:[#allocation3 + $0x20] sm:$0xff] %vm13418_vm7, %v1710_v41  ;;  %v1628_v24 = vmax.f32 %v9385_v26, %v1548_v42  ;;  %v1554_v43 = vsel %vm13416_vm10, %v1551_v34, %v1553_v46  ;;  %vm13420_vm1 = vmmov %vm13416_vm10  ;;  %v1868_v42 = vadd.f32 %v1860_v54, %v1848_v8  ;;  %v1846_v8 = vmul.f32 %v9391_v14, %v9528_v23 }
 0x1b6   : > { %v1556_v41 = vsel %vm13420_vm1, %v1553_v46, %v13419_v20  ;;  %v1631_v26 = vmax.f32 %v9478_v49, %v1554_v43  ;;  %vm13421_vm7 = vmmov %vm13420_vm1  ;;  %v1826_v46 = vmul.f32 %v9382_v31, %v9532_v55 }
 0x1b7   : > { %v1632_v5 = vmax.f32 %v9498_v16, %v1556_v41  ;;  %v1658_v17 = vmax.f32 %v9446_v18, %v1628_v24  ;;  %v1550_v60 = vsel %vm13421_vm7, %v1547_v27, %v1549_v53  ;;  %vm13422_vm10 = vmmov %vm13420_vm1  ;;  %vm13423_vm1 = vcmask 162816   ;;  %v1773_v27 = vld [vmem:[#allocation3 + $0x47] sm:$0xff] }
 0x1b8   : > { %v1552_v61 = vsel %vm13422_vm10, %v1549_v53, %v1551_v34  ;;  %v1663_v54 = vmax.f32 %v1631_v26, %v9189_v63  ;;  %v1629_v18 = vmax.f32 %v9480_v28, %v1550_v60  ;;  %v1821_v53 = vmul.f32 %v9382_v31, %v9526_v9  ;;  %vm13424_vm7 = vmmov %vm13423_vm1  ;;  %v9625_v28 = vld [vmem:[#allocation3 + $0x48] sm:$0xff] }
 0x1b9   : > { %v1664_v43 = vmax.f32 %v1632_v5, %v9251_v32  ;;  %v1630_v20 = vmax.f32 %v9520_v52, %v1552_v61  ;;  %1689 = vst.msk [vmem:[#allocation2 + $0x68] sm:$0xff] %vm13423_vm1, %v1658_v17  ;;  %v1880_v34 = vmul.f32 %v9457_v7, %v9526_v9  ;;  %v1887_v41 = vadd.f32 %v1879_v39, %v1867_v22  ;;  %vm13425_vm10 = vmmov %vm13423_vm1 }
 0x1ba   : > { %v1866_v63 = vmul.f32 %v9420_v21, %v9544_v12  ;;  %1694 = vst.msk [vmem:[#allocation2 + $0x90] sm:$0xff] %vm13424_vm7, %v1663_v54  ;;  %v1659_v32 = vmax.f32 %v9442_v57, %v1629_v18  ;;  %v1661_v17 = vmax.f32 %v1629_v18, %v1631_v26  ;;  %v1841_v39 = vmul.f32 %v9391_v14, %v9557_v58  ;;  %vm13427_vm7 = vmmov %vm13423_vm1  ;;  %v13430_v26 = vld [vmem:[#allocation17_spill] sm:$0xff] }
 0x1bb   : > { %1695 = vst.msk [vmem:[#allocation2 + $0x98] sm:$0xff] %vm13425_vm10, %v1664_v43  ;;  %v1660_v61 = vmax.f32 %v1628_v24, %v1630_v20  ;;  %v1662_v60 = vmax.f32 %v1630_v20, %v1632_v5  ;;  %v1919_v22 = vmul.f32 %v9473_v2, %v9467_v29  ;;  %v9578_v54 = vsel %vm9504_vm11, %v1773_v27, 0.0  ;;  %v13426_v43 = vld [vmem:[#allocation9_spill] sm:$0xff]  ;;  %vm13428_vm10 = vmmov %vm13423_vm1 }
 0x1bc   : > { %v1797_v35 = vld [vmem:[#allocation3 + $0x19] sm:$0xff]  ;;  %v1740_v57 = vand.u32 7, %v13426_v43  ;;  %1690 = vst.msk [vmem:[#allocation2 + $0x70] sm:$0xff] %vm13423_vm1, %v1659_v32  ;;  %vm13429_vm4 = vmmov %vm13423_vm1  ;;  %v9587_v24 = vrot.slane %v9368_v25, %v13430_v26  ;;  %v1854_v29 = vadd.f32 %v1846_v8, %v1826_v46  ;;  %v13431_v5 = vand.u32 7, %v13368_v62 }
 0x1bd   : > { %v9570_v16 = vsel %vm9488_vm5, %v1797_v35, 0.0  ;;  %1691 = vst.msk [vmem:[#allocation2 + $0x78] sm:$0xff] %vm13427_vm7, %v1660_v61  ;;  %v1888_v35 = vadd.f32 %v1880_v34, %v1868_v42  ;;  %v13432_v18 = vmov 0  ;;  %v13435_v20 = vand.u32 7, %v13400_v4  ;;  %v1768_v32 = vld [vmem:[#allocation3 + $0x1f] sm:$0xff] }
 0x1be   : > { %1692 = vst.msk [vmem:[#allocation2 + $0x80] sm:$0xff] %vm13428_vm10, %v1661_v17  ;;  %vm9591_vm14 = vcmp.ge.s32.totalorder %v13431_v5, 1  ;;  %v13436_v27 = vmov 0  ;;  %v1861_v42 = vmul.f32 %v9420_v21, %v9570_v16  ;;  %v1907_v34 = vadd.f32 %v1899_v15, %v1887_v41  ;;  %v13443_v15 = vld [vmem:[#allocation18_spill] sm:$0xff] }
 0x1bf   : > { %1693 = vst.msk [vmem:[#allocation2 + $0x88] sm:$0xff] %vm13429_vm4, %v1662_v60  ;;  %v13433_v18 = vsel %vm9591_vm14, 4294967295, %v13432_v18  ;;  %vm9597_vm1 = vcmp.ge.s32.totalorder %v13435_v20, 1  ;;  %v13439_v61 = vand.u32 7, %v13413_v30  ;;  %v13440_v46 = vmov 0 }
 0x1c0   : > { %13434 = vst [vmem:[#allocation9_spill] sm:$0xff] %v13433_v18  ;;  %v13437_v27 = vsel %vm9597_vm1, 4294967295, %v13436_v27  ;;  %v1900_v8 = vmul.f32 %v9424_v37, %v9557_v58  ;;  %v1920_v17 = vmul.f32 %v9473_v2, %v9570_v16  ;;  %v1874_v60 = vadd.f32 %v1866_v63, %v1854_v29  ;;  %v1712_v5 = vld [vmem:[#allocation2 + $0x60] ss:$2 sm:$0xff] }
 0x1c1   : > { %13438 = vst [vmem:[#allocation92_spill] sm:$0xff] %v13437_v27  ;;  %vm9605_vm4 = vcmp.le.s32.totalorder %v13439_v61, 6  ;;  %v1886_v43 = vmul.f32 %v9457_v7, %v9578_v54  ;;  %v1849_v20 = vadd.f32 %v1841_v39, %v1821_v53  ;;  %v1927_v49 = vadd.f32 %v1919_v22, %v1907_v34  ;;  %1728 = vst.msk [vmem:[#allocation3 + $0x28] sm:$0xff] %vm13428_vm10, %v1712_v5 }
 0x1c2   : > { %v13441_v46 = vsel %vm9605_vm4, 4294967295, %v13440_v46  ;;  %v9617_v41 = vrot.slane %v9368_v25, %v13443_v15  ;;  %v13444_v61 = vand.u32 7, %v13396_v36  ;;  %v13445_v52 = vmov 0 }
 0x1c3   : > { %13442 = vst [vmem:[#allocation93_spill] sm:$0xff] %v13441_v46  ;;  %v1778_v63 = vsel %vm9597_vm1, %v1768_v32, 0.0  ;;  %v1908_v29 = vadd.f32 %v1900_v8, %v1888_v35  ;;  %v13448_v53 = vand.u32 7, %v13390_v13  ;;  %v13449_v39 = vmov 0  ;;  %v9657_v8 = vld [vmem:[#allocation3 + $0x38] sm:$0xff] }
 0x1c4   : > { %vm9621_vm7 = vcmp.le.s32.totalorder %v13444_v61, 6  ;;  %v1814_v25 = vsel %vm9605_vm4, %v9271_v44, 0.0  ;;  %vm9639_vm3 = vcmp.ge.s32.totalorder %v1740_v57, 1  ;;  %v13454_v34 = vand.u32 7, %v13368_v62  ;;  %v1801_v61 = vld [vmem:[#allocation3 + $0x39] sm:$0xff] }
 0x1c5   : > { %v13446_v52 = vsel %vm9621_vm7, 4294967295, %v13445_v52  ;;  %vm9632_vm6 = vcmp.le.s32.totalorder %v13448_v53, 6  ;;  %v13455_v5 = vmov 0  ;;  %v13457_v13 = vand.u32 7, %v13400_v4  ;;  %v9668_v4 = vld [vmem:[%s12773_s1 + $0x11] ss:$0 sm:$0xff] }
 0x1c6   : > { %13447 = vst [vmem:[#allocation94_spill] sm:$0xff] %v13446_v52  ;;  %v13450_v39 = vsel %vm9632_vm6, 4294967295, %v13449_v39  ;;  %vm9645_vm10 = vcmp.le.s32.totalorder %v13454_v34, 6  ;;  %v13458_v35 = vmov 0  ;;  %v1869_v32 = vadd.f32 %v1861_v42, %v1849_v20  ;;  %v1748_v34 = vld [vmem:[#allocation3 + $0x20] sm:$0xff] }
 0x1c7   : > { %13451 = vst [vmem:[#allocation95_spill] sm:$0xff] %v13450_v39  ;;  %v13456_v5 = vsel %vm9645_vm10, 4294967295, %v13455_v5  ;;  %vm9651_vm11 = vcmp.le.s32.totalorder %v13457_v13, 6  ;;  %v1939_v44 = vmul.f32 %v9587_v24, %v9526_v9  ;;  %v13461_v53 = vand.u32 7, %v13413_v30  ;;  %v1714_v47 = vld [vmem:[#allocation2 + $0x80] ss:$2 sm:$0xff] }
 0x1c8   : > { %v13459_v35 = vsel %vm9651_vm11, 4294967295, %v13458_v35  ;;  %v13462_v62 = vmov 0  ;;  %v1928_v13 = vadd.f32 %v1920_v17, %v1908_v29  ;;  %v1894_v42 = vadd.f32 %v1886_v43, %v1874_v60  ;;  %v1769_v52 = vld [vmem:[#allocation3 + $0x27] sm:$0xff] }
 0x1c9   : > { %13460 = vst [vmem:[#allocation96_spill] sm:$0xff] %v13459_v35  ;;  %vm9661_vm8 = vcmp.ge.s32.totalorder %v13461_v53, 1  ;;  %v1906_v9 = vmul.f32 %v9424_v37, %v9625_v28  ;;  %v9674_v20 = vmul.f32 %v9617_v41, %v9426_v40  ;;  %vm9676_vm5 = vcmp.le.s32.totalorder %v1740_v57, 6  ;;  %v1798_v27 = vld [vmem:[#allocation3 + $0x21] sm:$0xff] }
 0x1ca   : > { %v13463_v62 = vsel %vm9661_vm8, 4294967295, %v13462_v62  ;;  %v1881_v53 = vmul.f32 %v9457_v7, %v1778_v63  ;;  %v1947_v56 = vadd.f32 %v1939_v44, %v1927_v49  ;;  %v9684_v17 = vsel %vm9632_vm6, %v9430_v59, 0.0 }
 0x1cb   : > { %13464 = vst [vmem:[#allocation97_spill] sm:$0xff] %v13463_v62  ;;  %v9687_v60 = vmul.f32 %v9668_v4, %v1814_v25  ;;  %v1940_v43 = vmul.f32 %v9587_v24, %v1778_v63  ;;  %v1959_v40 = vmul.f32 %v9617_v41, %v9557_v58  ;;  %vm13467_vm1 = vcmask 162816  }
 0x1cc   : > { %1729 = vst.msk [vmem:[#allocation3 + $0x30] sm:$0xff] %vm13467_vm1, %v1714_v47  ;;  %v13468_v57 = vand.u32 7, %v13396_v36  ;;  %v13469_v49 = vmov 0  ;;  %v9701_v59 = vsel %vm9621_vm7, %v1801_v61, 0.0  ;;  %v9705_v29 = vmul.f32 %v9391_v14, %v9657_v8  ;;  %vm13471_vm6 = vmmov %vm13467_vm1 }
 0x1cd   : > { %v1822_v25 = vmul.f32 %v9382_v31, %v1778_v63  ;;  %v1842_v58 = vmul.f32 %v9391_v14, %v1748_v34  ;;  %v1889_v44 = vadd.f32 %v1881_v53, %v1869_v32  ;;  %v1784_v47 = vsel %vm9661_vm8, %v9428_v45, 0.0 }
 0x1ce   : > { %vm9695_vm2 = vcmp.ge.s32.totalorder %v13468_v57, 1  ;;  %v1948_v36 = vadd.f32 %v1940_v43, %v1928_v13  ;;  %v1979_v57 = vmul.f32 %v9668_v4, %v9570_v16  ;;  %v1914_v39 = vadd.f32 %v1906_v9, %v1894_v42  ;;  %v1749_v9 = vld [vmem:[#allocation3 + $0x28] sm:$0xff] }
 0x1cf   : > { %v13470_v49 = vsel %vm9695_vm2, 4294967295, %v13469_v49  ;;  %v1926_v61 = vmul.f32 %v9473_v2, %v9684_v17  ;;  %v1901_v38 = vmul.f32 %v9424_v37, %v1748_v34  ;;  %v1967_v63 = vadd.f32 %v1959_v40, %v1947_v56 }
 0x1d0   : > { %v1865_v32 = vmul.f32 %v9420_v21, %v9701_v59  ;;  %v9721_v53 = vmul.f32 %v9457_v7, %v9532_v55  ;;  %v1779_v45 = vsel %vm9591_vm14, %v1769_v52, 0.0  ;;  %v1808_v16 = vsel %vm9651_vm11, %v1798_v27, 0.0 }
 0x1d1   : > { %v1960_v13 = vmul.f32 %v9617_v41, %v1748_v34  ;;  %v9729_v42 = vmul.f32 %v9587_v24, %v1784_v47  ;;  %v1850_v56 = vadd.f32 %v1842_v58, %v1822_v25  ;;  %v1862_v43 = vmul.f32 %v9420_v21, %v1808_v16 }
 0x1d2   : > { %v1909_v40 = vadd.f32 %v1901_v38, %v1889_v44  ;;  %v1921_v62 = vmul.f32 %v9473_v2, %v1808_v16  ;;  %v1980_v46 = vmul.f32 %v9668_v4, %v1808_v16  ;;  %v1987_v18 = vadd.f32 %v1979_v57, %v1967_v63 }
 0x1d3   : > { %v1968_v0 = vadd.f32 %v1960_v13, %v1948_v36  ;;  %v1934_v52 = vadd.f32 %v1926_v61, %v1914_v39  ;;  %v1870_v15 = vadd.f32 %v1862_v43, %v1850_v56  ;;  %v1882_v27 = vmul.f32 %v9457_v7, %v1779_v45  ;;  %v1770_v47 = vld [vmem:[#allocation3 + $0x2f] sm:$0xff]  ;;  %v1771_v57 = vld [vmem:[#allocation3 + $0x37] sm:$0xff] }
 0x1d4   : > { %v1929_v35 = vadd.f32 %v1921_v62, %v1909_v40  ;;  %v1941_v34 = vmul.f32 %v9587_v24, %v1779_v45  ;;  %v1799_v26 = vld [vmem:[#allocation3 + $0x29] sm:$0xff]  ;;  %v1902_v25 = vmul.f32 %v9424_v37, %v1749_v9  ;;  %v1780_v38 = vsel %vm9639_vm3, %v1770_v47, 0.0  ;;  %v1800_v44 = vld [vmem:[#allocation3 + $0x31] sm:$0xff] }
 0x1d5   : > { %v1988_v58 = vadd.f32 %v1980_v46, %v1968_v0  ;;  %v1809_v36 = vsel %vm9645_vm10, %v1799_v26, 0.0  ;;  %v1890_v39 = vadd.f32 %v1882_v27, %v1870_v15  ;;  %v1750_v63 = vld [vmem:[#allocation3 + $0x30] sm:$0xff]  ;;  %v1823_v62 = vmul.f32 %v9382_v31, %v1779_v45 }
 0x1d6   : > { %v1949_v61 = vadd.f32 %v1941_v34, %v1929_v35  ;;  %v1843_v16 = vmul.f32 %v9391_v14, %v1749_v9  ;;  %v1995_v13 = vmax.f32 %v1987_v18, 0.0  ;;  %v1810_v0 = vsel %vm9676_vm5, %v1800_v44, 0.0 }
 0x1d7   : > { %v1996_v56 = vmax.f32 %v1988_v58, 0.0  ;;  %v1961_v46 = vmul.f32 %v9617_v41, %v1749_v9  ;;  %v1910_v43 = vadd.f32 %v1902_v25, %v1890_v39  ;;  %v1922_v40 = vmul.f32 %v9473_v2, %v1809_v36 }
 0x1d8   : > { %v1781_v26 = vsel %vm9695_vm2, %v1771_v57, 0.0  ;;  %v1824_v15 = vmul.f32 %v9382_v31, %v1780_v38  ;;  %v1942_v45 = vmul.f32 %v9587_v24, %v1780_v38  ;;  %v1844_v18 = vmul.f32 %v9391_v14, %v1750_v63 }
 0x1d9   : > { %v2006_v35 = vpack.c.bf16 %v1996_v56, %v1995_v13  ;;  %v1825_v27 = vmul.f32 %v9382_v31, %v1781_v26  ;;  %v1930_v34 = vadd.f32 %v1922_v40, %v1910_v43  ;;  %v1969_v47 = vadd.f32 %v1961_v46, %v1949_v61 }
 0x1da   : > { %v1851_v58 = vadd.f32 %v1843_v16, %v1823_v62  ;;  %v1863_v9 = vmul.f32 %v9420_v21, %v1809_v36  ;;  %v1962_v25 = vmul.f32 %v9617_v41, %v1750_v63  ;;  %v1852_v44 = vadd.f32 %v1844_v18, %v1824_v15 }
 0x1db   : > { %7534 = vmatprep.mubr.msk.bf16.mxu1 %vm13467_vm1, %v2006_v35  ;;  %v1853_v57 = vadd.f32 %v9705_v29, %v1825_v27  ;;  %v1864_v39 = vmul.f32 %v9420_v21, %v1810_v0  ;;  %v1950_v13 = vadd.f32 %v1942_v45, %v1930_v34  ;;  %v1981_v56 = vmul.f32 %v9668_v4, %v1809_v36 }
 0x1dc   : > { %v1871_v31 = vadd.f32 %v1863_v9, %v1851_v58  ;;  %v1883_v14 = vmul.f32 %v9457_v7, %v1780_v38  ;;  %v1982_v61 = vmul.f32 %v9668_v4, %v1810_v0  ;;  %v1884_v46 = vmul.f32 %v9457_v7, %v1781_v26 }
 0x1dd   : > { %v1872_v62 = vadd.f32 %v1864_v39, %v1852_v44  ;;  %v1873_v16 = vadd.f32 %v1865_v32, %v1853_v57  ;;  %v1970_v43 = vadd.f32 %v1962_v25, %v1950_v13  ;;  %v1989_v40 = vadd.f32 %v1981_v56, %v1969_v47 }
 0x1de   : > { %v1891_v35 = vadd.f32 %v1883_v14, %v1871_v31  ;;  %v1903_v15 = vmul.f32 %v9424_v37, %v1750_v63  ;;  %v1904_v21 = vmul.f32 %v9424_v37, %v9657_v8  ;;  %v1905_v38 = vmul.f32 %v9424_v37, %v9528_v23 }
 0x1df   : > { %v1892_v29 = vadd.f32 %v1884_v46, %v1872_v62  ;;  %v1893_v36 = vadd.f32 %v9721_v53, %v1873_v16  ;;  %v1990_v45 = vadd.f32 %v1982_v61, %v1970_v43  ;;  %v1923_v32 = vmul.f32 %v9473_v2, %v1810_v0 }
 0x1e0   : > { %v1911_v27 = vadd.f32 %v1903_v15, %v1891_v35  ;;  %v1954_v7 = vadd.f32 %v9729_v42, %v1934_v52  ;;  %v1924_v34 = vmul.f32 %v9473_v2, %v9701_v59  ;;  %v1925_v63 = vmul.f32 %v9473_v2, %v9544_v12 }
 0x1e1   : > { %v1912_v18 = vadd.f32 %v1904_v21, %v1892_v29  ;;  %v1913_v47 = vadd.f32 %v1905_v38, %v1893_v36  ;;  %v1997_v58 = vmax.f32 %v1989_v40, 0.0  ;;  %v1998_v9 = vmax.f32 %v1990_v45, 0.0 }
 0x1e2   : > { %v1931_v53 = vadd.f32 %v1923_v32, %v1911_v27  ;;  %v1943_v25 = vmul.f32 %v9587_v24, %v1781_v26  ;;  %v1944_v44 = vmul.f32 %v9587_v24, %v9532_v55  ;;  %v1945_v42 = vmul.f32 %v9587_v24, %v9578_v54 }
 0x1e3   : > { %v1932_v37 = vadd.f32 %v1924_v34, %v1912_v18  ;;  %v1933_v0 = vadd.f32 %v1925_v63, %v1913_v47  ;;  %v2007_v52 = vpack.c.bf16 %v1998_v9, %v1997_v58  ;;  %v1963_v39 = vmul.f32 %v9617_v41, %v9657_v8 }
 0x1e4   : > { %v1951_v57 = vadd.f32 %v1943_v25, %v1931_v53  ;;  %v1974_v2 = vadd.f32 %v9674_v20, %v1954_v7  ;;  %v1964_v56 = vmul.f32 %v9617_v41, %v9528_v23  ;;  %v1965_v31 = vmul.f32 %v9617_v41, %v9625_v28  ;;  %v7822_v25 = vld [vmem:[%s12774_s2 + $0x8c] sm:$0xff]  }
 0x1e5   : > { %v1952_v13 = vadd.f32 %v1944_v44, %v1932_v37  ;;  %v1953_v26 = vadd.f32 %v1945_v42, %v1933_v0  ;;  %7535 = vmatmul.mubr.msk.bf16.vlgmr.msra.gmra.mxu1 %vm13467_vm1, %v2007_v52  ;;  %v1983_v54 = vmul.f32 %v9668_v4, %v9701_v59  ;;  %v1984_v8 = vmul.f32 %v9668_v4, %v9544_v12  ;;  %v7817_v12 = vld [vmem:[%s12774_s2 + $0x18] sm:$0xff]   ;;  %v7823_v37 = vld [vmem:[%s12774_s2 + $0x94] ss:$0 sps:$4 sm:$0xff]  }
 0x1e6   : > { %v1971_v55 = vadd.f32 %v1963_v39, %v1951_v57  ;;  %v1985_v20 = vmul.f32 %v9668_v4, %v9684_v17  ;;  %v1994_v23 = vadd.f32 %v9687_v60, %v1974_v2  ;;  %v7818_v4 = vld [vmem:[%s12774_s2 + $0x10] sm:$0xff]   ;;  %v7819_v17 = vld [vmem:[%s12774_s2 + $0x8] sm:$0xf8]   ;;  %vm13045_vm8 = vmmov 0  }
 0x1e7   : > { %v1972_v24 = vadd.f32 %v1964_v56, %v1952_v13  ;;  %v1973_v14 = vadd.f32 %v1965_v31, %v1953_v26  ;;  %7590 = vmatprep.mubr.msk.bf16.mxu0 %vm13045_vm8, %v13278_v1  ;;  %v2377_v60 = vshrl.u32 %v7817_v12, 16  ;;  %v2380_v59 = vshll.u32 %v7817_v12, 16  ;;  %v7825_v56 = vld [vmem:[%s12774_s2 + $0x84] sm:$0xff]  }
 0x1e8   : > { %v1991_v61 = vadd.f32 %v1983_v54, %v1971_v55  ;;  %v2002_v43 = vmax.f32 %v1994_v23, 0.0  ;;  %v2368_v15 = vshrl.u32 %v7818_v4, 16  ;;  %v2371_v29 = vshll.u32 %v7818_v4, 16 }
 0x1e9   : > { %v1992_v62 = vadd.f32 %v1984_v8, %v1972_v24  ;;  %v1993_v16 = vadd.f32 %v1985_v20, %v1973_v14  ;;  %v2360_v21 = vshrl.u32 %v7819_v17, 16  ;;  %v2363_v36 = vshll.u32 %v7819_v17, 16  ;;  %v7827_v20 = vld [vmem:[%s12774_s2 + $0x7c] sm:$0xff]  }
 0x1ea   : > { %v1999_v28 = vmax.f32 %v1991_v61, 0.0  ;;  %v2379_v38 = vrot.slane %v2377_v60, 3  ;;  %v2382_v45 = vrot.slane %v2380_v59, 4  ;;  %v2370_v27 = vrot.slane %v2368_v15, 3 }
 0x1eb   : > { %v2000_v41 = vmax.f32 %v1992_v62, 0.0  ;;  %v2001_v46 = vmax.f32 %v1993_v16, 0.0  ;;  %v2373_v32 = vrot.slane %v2371_v29, 4  ;;  %v2362_v34 = vrot.slane %v2360_v21, 3 }
 0x1ec   : > { %v2383_v7 = vor.u32 %v2382_v45, %v2379_v38  ;;  %v2365_v63 = vrot.slane %v2363_v36, 4  ;;  %vm13047_vm7 = vsmask.f32 4352  ;;  %v2826_v44 = vshrl.u32 %v7822_v25, 16 }
 0x1ed   : > { %v2008_v40 = vpack.c.bf16 %v2000_v41, %v1999_v28  ;;  %v2009_v35 = vpack.c.bf16 %v2002_v43, %v2001_v46  ;;  %v2374_v18 = vor.u32 %v2373_v32, %v2370_v27  ;;  %v2829_v0 = vshll.u32 %v7822_v25, 16 }
 0x1ee   : > { %v2366_v9 = vor.u32 %v2365_v63, %v2362_v34  ;;  %v2835_v42 = vshrl.u32 %v7823_v37, 16  ;;  %v2838_v52 = vshll.u32 %v7823_v37, 16  ;;  %v2828_v57 = vrot.slane %v2826_v44, 3 }
 0x1ef   : > { %7538 = vmatprep.mubr.msk.bf16.mxu1 %vm13467_vm1, %v2008_v40  ;;  %vm13048_vm1 = vcmask 1043456   ;;  %v2384_v58 = vsel %vm13047_vm7, %v2374_v18, %v2383_v7  ;;  %v2831_v39 = vrot.slane %v2829_v0, 4  ;;  %v2817_v55 = vshrl.u32 %v7825_v56, 16 }
 0x1f0   : > { %7539 = vmatmul.mubr.msk.bf16.gmra.mxu1 %vm13471_vm6, %v2009_v35  ;;  %vm2197_vm6 = vcmask 322560   ;;  %v2391_v47 = vsel %vm13048_vm1, %v2383_v7, 0  ;;  %v2375_v53 = vsel %vm13047_vm7, %v2366_v9, %v2374_v18  ;;  %v2837_v2 = vrot.slane %v2835_v42, 3 }
 0x1f1   : > { %7548 = vmatprep.mubr.msk.bf16.mxu1 %vm13045_vm8, %v13278_v1  ;;  %2198 = vst.msk [vmem:[#allocation4 + $0x8] sm:$0xf] %vm2197_vm6, %v13278_v1  ;;  %7543 = vmatpush3.bf16.msra.mxu1 %v2391_v47  ;;  %v2840_v13 = vrot.slane %v2838_v52, 4  ;;  %v2832_v26 = vor.u32 %v2831_v39, %v2828_v57  ;;  %v2820_v54 = vshll.u32 %v7825_v56, 16  ;;  %v2819_v8 = vrot.slane %v2817_v55, 3 }
 0x1f2   : > { %7544 = vmatprep.subr.bf16.mxu1 %v13278_v1  ;;  %v2808_v23 = vshrl.u32 %v7827_v20, 16  ;;  %v2811_v62 = vshll.u32 %v7827_v20, 16  ;;  %vm13472_vm6 = vcmask 1046528   ;;  %vm13478_vm1 = vcmask 1046528  }
 0x1f3   : > { %v2841_v31 = vor.u32 %v2840_v13, %v2837_v2  ;;  %v2822_v14 = vrot.slane %v2820_v54, 4  ;;  %vm13473_vm8 = vmmov %vm13472_vm6 }
 0x1f4   : > { %v2810_v28 = vrot.slane %v2808_v23, 3  ;;  %v2813_v41 = vrot.slane %v2811_v62, 4  ;;  %vm13479_vm2 = vmmov %vm13478_vm1 }
 0x1f5   : > { %7545 = vmatpush3.bf16.msra.mxu1 %v2384_v58  ;;  %v2842_v24 = vsel %vm13047_vm7, %v2832_v26, %v2841_v31  ;;  %v2823_v61 = vor.u32 %v2822_v14, %v2819_v8 }
 0x1f6   : > { %7546 = vmatprep.subr.bf16.mxu1 %v13278_v1  ;;  %7581 = vmatpush3.bf16.msra.mxu0 %v2842_v24  ;;  %v9832_v46 = vor.u32 %v2813_v41, %v2810_v28 }
 0x1f7   : > { %7582 = vmatprep.subr.bf16.mxu0 %v13278_v1  ;;  %v2833_v16 = vsel %vm13047_vm7, %v2823_v61, %v2832_v26 }
 0x1f8   : > { %v2824_v43 = vsel %vm13047_vm7, %v9832_v46, %v2823_v61  ;;  %vm13474_vm7 = vmmov %vm13472_vm6 }
 0x1f9   : > { %7547 = vmatpush3.bf16.msra.mxu1 %v2375_v53 }
 0x1fa   : > { %7552 = vmatprep.subr.bf16.mxu1 %v13278_v1  ;;  %7583 = vmatpush3.bf16.msra.mxu0 %v2833_v16 }
 0x1fb   : > { %7584 = vmatprep.subr.bf16.mxu0 %v13278_v1 }
 0x1fe   : > { %7585 = vmatpush3.bf16.msra.mxu0 %v2824_v43 }
 0x1ff   : > { %7586 = vmatprep.subr.bf16.mxu0 %v13278_v1 }
 0x2a5   : > { %v7536_v40 = vpop.f32.mrf.mxu1 }
 0x2a6   : > { %v9837_v12 = vmax.f32 %v7536_v40, 0.0 }
 0x2a7   : > { %v2086_v35 = vpop.f32.mrf.mxu1 }
 0x2a8   : > { %v9839_v17 = vmax.f32 %v2086_v35, 0.0  ;;  %v2136_v15 = vrot.slane %v9837_v12, 1 }
 0x2a9   : > { %v7537_v4 = vpop.f32.mrf.mxu1 }
 0x2aa   : > { %v9841_v60 = vmax.f32 %v7537_v4, 0.0  ;;  %v2133_v36 = vrot.slane %v9839_v17, 1 }
 0x2ab   : > { %v2089_v59 = vpop.f32.mrf.mxu1 }
 0x2ac   : > { %v2138_v29 = vrot.slane %v9841_v60, 1  ;;  %v9845_v21 = vmax.f32 %v2089_v59, 0.0 }
 0x2ae   : > { %v2139_v38 = vsel %vm13472_vm6, %v2136_v15, %v2138_v29  ;;  %v2134_v45 = vrot.slane %v9845_v21, 1 }
 0x2af   : > { %v2159_v63 = vmax.f32 %v9837_v12, %v2139_v38  ;;  %v9900_v38 = vld [vmem:[%s12773_s1 + $0x12] sm:$0xff] }
 0x2b0   : > { %v7540_v27 = vpop.f32.mrf.mxu1  ;;  %v2135_v32 = vsel %vm13473_vm8, %v2133_v36, %v2134_v45  ;;  %v2137_v7 = vsel %vm13474_vm7, %v2134_v45, %v2136_v15  ;;  %vm13475_vm8 = vcmask 326656   ;;  %v2206_v45 = vand.u32 3, %v13362_v10 }
 0x2b1   : > { %v2157_v18 = vmax.f32 %v9839_v17, %v2135_v32  ;;  %v2158_v34 = vmax.f32 %v9845_v21, %v2137_v7  ;;  %v9855_v58 = vmax.f32 %v7540_v27, 0.0  ;;  %vm13476_vm7 = vmmov %vm13475_vm8  ;;  %v2207_v27 = vand.u32 3, %v13373_v11 }
 0x2b2   : > { %v2102_v47 = vpop.f32.mrf.mxu1  ;;  %vm13477_vm6 = vmmov %vm13476_vm7  ;;  %v2232_v10 = vrot.slane %v9900_v38, %v13363_v19  ;;  %v2248_v11 = vrot.slane %v9900_v38, %v13377_v48 }
 0x2b3   : > { %v9857_v9 = vmax.f32 %v2102_v47, 0.0  ;;  %v2165_v53 = vmax.f32 %v2157_v18, %v2158_v34  ;;  %v2166_v25 = vmax.f32 %v2158_v34, %v2159_v63  ;;  %v2144_v52 = vrot.slane %v9855_v58, 1  ;;  %v9918_v18 = vld [vmem:[%s12774_s2 + $0x3c] sm:$0xff]  }
 0x2b4   : > { %v7541_v37 = vpop.f32.mrf.mxu1  ;;  %v2256_v34 = vrot.slane %v9900_v38, %v13389_v3 }
 0x2b5   : > { %v2140_v44 = vrot.slane %v9857_v9, 1  ;;  %v9860_v0 = vmax.f32 %v7541_v37, 0.0  ;;  %2173 = vst.msk [vmem:[#allocation3] sm:$0xff] %vm13475_vm8, %v2165_v53  ;;  %vm13480_vm8 = vmmov %vm13478_vm1 }
 0x2b6   : > { %2174 = vst.msk [vmem:[#allocation3 + $0x8] sm:$0xff] %vm13476_vm7, %v2166_v25  ;;  %v2105_v42 = vpop.f32.mrf.mxu1  ;;  %vm13481_vm7 = vmmov %vm13478_vm1 }
 0x2b7   : > { %2438 = vst.msk [vmem:[#allocation3 + $0x8] sm:$0xff] %vm13477_vm6, %v13278_v1  ;;  %v2141_v57 = vsel %vm13478_vm1, %v2138_v29, %v2140_v44  ;;  %v2146_v39 = vrot.slane %v9860_v0, 1  ;;  %v9869_v2 = vmax.f32 %v2105_v42, 0.0  ;;  %v2205_v29 = vand.u32 3, %v8054_v6 }
 0x2b8   : > { %v2160_v13 = vmax.f32 %v9841_v60, %v2141_v57  ;;  %v2240_v6 = vrot.slane %v9900_v38, %v13365_v51  ;;  %v13504_v57 = vld [vmem:[#allocation16_spill] sm:$0xff]  ;;  %v2524_v42 = vshll.u32 %v9918_v18, 16 }
 0x2b9   : > { %v2147_v56 = vsel %vm13479_vm2, %v2144_v52, %v2146_v39  ;;  %v2148_v26 = vsel %vm13480_vm8, %v2146_v39, %v9337_v33  ;;  %v2142_v31 = vrot.slane %v9869_v2, 1  ;;  %vm13482_vm2 = vmmov %vm13477_vm6  ;;  %v2294_v39 = vrot.slane %v9900_v38, %v13504_v57 }
 0x2ba   : > { %v2167_v55 = vmax.f32 %v2159_v63, %v2160_v13  ;;  %v2163_v54 = vmax.f32 %v9855_v58, %v2147_v56  ;;  %v2164_v24 = vmax.f32 %v9860_v0, %v2148_v26  ;;  %vm13483_vm8 = vmmov %vm13482_vm2  ;;  %v2275_v63 = vrot.slane %v9900_v38, %v13378_v50 }
 0x2bb   : > { %v2143_v8 = vsel %vm13481_vm7, %v2140_v44, %v2142_v31  ;;  %v2145_v14 = vsel %vm13478_vm1, %v2142_v31, %v2144_v52  ;;  %vm13484_vm10 = vmmov %vm13482_vm2 }
 0x2bc   : > { %2175 = vst.msk [vmem:[#allocation3 + $0x10] sm:$0xff] %vm13477_vm6, %v2167_v55  ;;  %v2171_v20 = vmax.f32 %v2163_v54, %v2164_v24  ;;  %v2161_v61 = vmax.f32 %v9857_v9, %v2143_v8  ;;  %v2162_v23 = vmax.f32 %v9869_v2, %v2145_v14  ;;  %v2180_v62 = vld [vmem:[#allocation3] ss:$2 sm:$0xf]  ;;  %vm13485_vm7 = vmmov %vm13482_vm2 }
 0x2bd   : > { %2437 = vst.msk [vmem:[#allocation3] sm:$0xff] %vm13482_vm2, %v13278_v1  ;;  %vm13486_vm1 = vmmov %vm13482_vm2  ;;  %vm13488_vm2 = vcmask 1043456  }
 0x2be   : > { %2179 = vst.msk [vmem:[#allocation3 + $0x30] sm:$0xff] %vm13483_vm8, %v2171_v20  ;;  %v2168_v33 = vmax.f32 %v2160_v13, %v2161_v61  ;;  %v2169_v16 = vmax.f32 %v2161_v61, %v2162_v23  ;;  %v2170_v28 = vmax.f32 %v2162_v23, %v2163_v54  ;;  %vm13487_vm6 = vmmov %vm13486_vm1  ;;  %v13505_v13 = vld [vmem:[#allocation17_spill] sm:$0xff]  ;;  %v2521_v54 = vshrl.u32 %v9918_v18, 16 }
 0x2bf   : > { %vm13489_vm8 = vmmov %vm13486_vm1  ;;  %v9948_v56 = vrot.slane %v9900_v38, %v13505_v13  ;;  %v7824_v18 = vld [vmem:[%s12774_s2 + $0x34] sm:$0xff]  }
 0x2c0   : > { %2177 = vst.msk [vmem:[#allocation3 + $0x20] sm:$0xff] %vm13484_vm10, %v2169_v16  ;;  %vm13490_vm10 = vmmov %vm13488_vm2 }
 0x2c1   : > { %2176 = vst.msk [vmem:[#allocation3 + $0x18] sm:$0xff] %vm13485_vm7, %v2168_v33  ;;  %vm13491_vm7 = vmmov %vm13486_vm1 }
 0x2c2   : > { %2178 = vst.msk [vmem:[#allocation3 + $0x28] sm:$0xff] %vm13486_vm1, %v2170_v28  ;;  %vm9905_vm1 = vcmp.ge.s32.totalorder %v2205_v29, 1 }
 0x2c3   : > { %v2182_v41 = vld [vmem:[#allocation3 + $0x10] ss:$2 sm:$0xf] }
 0x2c4   : > { %v2188_v43 = vrot.slane %v2182_v41, 4  ;;  %v9889_v40 = vld [vmem:[#allocation3 + $0x7] sm:$0xff] }
 0x2c5   : > { %v2186_v35 = vld [vmem:[#allocation3 + $0x30] ss:$2 sm:$0xf]  ;;  %3295 = vst.msk [vmem:[#allocation3] sm:$0xff] %vm13487_vm6, %v13278_v1  ;;  %vm9909_vm6 = vcmp.le.s32.totalorder %v2205_v29, 2 }
 0x2c6   : > { %v2191_v4 = vrot.slane %v2186_v35, 4  ;;  %v2194_v59 = vsel %vm13488_vm2, %v2180_v62, %v2188_v43  ;;  %vm9928_vm2 = vcmp.ge.s32.totalorder %v2206_v45, 1 }
 0x2c7   : > { %v2184_v15 = vld [vmem:[#allocation3 + $0x20] ss:$2 sm:$0xf]  ;;  %2201 = vst.msk [vmem:[#allocation4 + $0xc] sm:$0xff] %vm13489_vm8, %v2194_v59  ;;  %vm9932_vm8 = vcmp.ge.s32.totalorder %v2207_v27, 1 }
 0x2c8   : > { %v2195_v36 = vsel %vm13490_vm10, %v2184_v15, %v2191_v4  ;;  %vm9936_vm10 = vcmp.le.s32.totalorder %v2206_v45, 2 }
 0x2c9   : > { %2202 = vst.msk [vmem:[#allocation4 + $0x14] sm:$0xff] %vm13491_vm7, %v2195_v36  ;;  %vm9940_vm7 = vcmp.le.s32.totalorder %v2207_v27, 2 }
 0x2ce   : > { %v2208_v25 = vld [vmem:[#allocation4 + $0x8] sm:$0xff] }
 0x2cf   : > { %v2214_v37 = vld [vmem:[#allocation4 + $0x7] sm:$0xff]  ;;  %v2241_v55 = vmul.f32 %v2240_v6, %v2208_v25  ;;  %v2276_v62 = vmul.f32 %v2275_v63, %v2208_v25 }
 0x2d0   : > { %v2223_v52 = vld [vmem:[#allocation4 + $0x9] sm:$0xff]  ;;  %v2217_v26 = vsel %vm9905_vm1, %v2214_v37, 0.0  ;;  %v9957_v8 = vld [vmem:[#allocation4 + $0x18] sm:$0xff]  ;;  %vm13506_vm1 = vcmask 1043456  }
 0x2d1   : > { %v2226_v31 = vsel %vm9909_vm6, %v2223_v52, 0.0  ;;  %v9955_v24 = vld [vmem:[#allocation4 + $0x10] sm:$0xff]  ;;  %v2233_v20 = vmul.f32 %v2232_v10, %v2217_v26  ;;  %v2257_v23 = vmul.f32 %v2256_v34, %v2217_v26  ;;  %v2225_v41 = vld [vmem:[#allocation4 + $0x19] sm:$0xff]  ;;  %v2278_v4 = vmul.f32 %v2275_v63, %v9957_v8  ;;  %vm13507_vm6 = vmmov %vm13506_vm1 }
 0x2d2   : > { %v2215_v14 = vld [vmem:[#allocation4 + $0xf] sm:$0xff]  ;;  %v2249_v61 = vmul.f32 %v2248_v11, %v2226_v31  ;;  %v2216_v33 = vld [vmem:[#allocation4 + $0x17] sm:$0xff]  ;;  %v2242_v43 = vmul.f32 %v2240_v6, %v9955_v24  ;;  %v2277_v35 = vmul.f32 %v2275_v63, %v9955_v24  ;;  %v2295_v36 = vmul.f32 %v2294_v39, %v2226_v31 }
 0x2d3   : > { %v2218_v16 = vsel %vm9928_vm2, %v2215_v14, 0.0  ;;  %v2224_v28 = vld [vmem:[#allocation4 + $0x11] sm:$0xff]  ;;  %v2219_v59 = vsel %vm9932_vm8, %v2216_v33, 0.0  ;;  %v2228_v45 = vsel %vm9940_vm7, %v2225_v41, 0.0  ;;  %v2243_v27 = vadd.f32 %v2241_v55, %v2233_v20  ;;  %vm13508_vm2 = vmmov %vm13506_vm1 }
 0x2d4   : > { %v2227_v15 = vsel %vm9936_vm10, %v2224_v28, 0.0  ;;  %v2234_v29 = vmul.f32 %v2232_v10, %v2218_v16  ;;  %v2258_v32 = vmul.f32 %v2256_v34, %v2218_v16  ;;  %v2259_v7 = vmul.f32 %v2256_v34, %v2219_v59  ;;  %v7821_v6 = vld [vmem:[%s12774_s2 + $0x44] ss:$0 sps:$4 sm:$0xff]   ;;  %vm13509_vm8 = vmmov %vm13506_vm1 }
 0x2d5   : > { %v2250_v63 = vmul.f32 %v2248_v11, %v2227_v15  ;;  %v2263_v25 = vrot.slane %v2257_v23, 4  ;;  %v2283_v53 = vrot.slane %v2277_v35, 4  ;;  %v2251_v37 = vadd.f32 %v2249_v61, %v2243_v27  ;;  %v13510_v27 = vld [vmem:[#allocation18_spill] sm:$0xff]  ;;  %vm13511_vm10 = vmmov %vm13506_vm1 }
 0x2d6   : > { %v2244_v47 = vadd.f32 %v2242_v43, %v2234_v29  ;;  %v2264_v52 = vrot.slane %v2258_v32, 4  ;;  %v2266_v44 = vrot.slane %v2259_v7, 4  ;;  %v2285_v26 = vrot.slane %v2278_v4, 4  ;;  %vm13512_vm7 = vmmov %vm13506_vm1 }
 0x2d7   : > { %v2296_v31 = vmul.f32 %v2294_v39, %v2227_v15  ;;  %v2297_v14 = vmul.f32 %v2294_v39, %v2228_v45  ;;  %v2282_v20 = vrot.slane %v2276_v62, 4  ;;  %v2530_v33 = vshrl.u32 %v7821_v6, 16 }
 0x2d8   : > { %v2252_v10 = vadd.f32 %v2250_v63, %v2244_v47  ;;  %v2265_v55 = vsel %vm13506_vm1, %v2263_v25, %v2264_v52  ;;  %v2267_v34 = vsel %vm13507_vm6, %v2264_v52, %v2266_v44  ;;  %v2286_v43 = vsel %vm13509_vm8, %v2283_v53, %v2285_v26 }
 0x2d9   : > { %v2270_v28 = vadd.f32 %v2265_v55, %v2251_v37  ;;  %v2302_v11 = vrot.slane %v2296_v31, 4  ;;  %v2304_v23 = vrot.slane %v2297_v14, 4  ;;  %v2284_v61 = vsel %vm13508_vm2, %v2282_v20, %v2283_v53  ;;  %v7219_v53 = vld [vmem:[%s12773_s1 + $0x1a] ss:$0 sm:$0xff] }
 0x2da   : > { %v2271_v41 = vadd.f32 %v2267_v34, %v2252_v10  ;;  %v2301_v35 = vrot.slane %v2295_v36, 4  ;;  %v2533_v4 = vshll.u32 %v7821_v6, 16  ;;  %v2321_v62 = vrot.slane %v9900_v38, %v13510_v27 }
 0x2db   : > { %v2289_v39 = vadd.f32 %v2284_v61, %v2270_v28  ;;  %v2305_v7 = vsel %vm13512_vm7, %v2302_v11, %v2304_v23  ;;  %v2523_v47 = vrot.slane %v2521_v54, 3  ;;  %v2526_v63 = vrot.slane %v2524_v42, 4 }
 0x2dc   : > { %v2290_v29 = vadd.f32 %v2286_v43, %v2271_v41  ;;  %v2303_v32 = vsel %vm13511_vm10, %v2301_v35, %v2302_v11  ;;  %v2314_v36 = vmul.f32 %v9948_v56, %v2218_v16  ;;  %v2315_v6 = vmul.f32 %v9948_v56, %v2219_v59  ;;  %v7826_v16 = vld [vmem:[%s12774_s2 + $0x2c] sm:$0xff]  }
 0x2dd   : > { %v2308_v25 = vadd.f32 %v2303_v32, %v2289_v39  ;;  %v2532_v52 = vrot.slane %v2530_v33, 3  ;;  %v2535_v44 = vrot.slane %v2533_v4, 4  ;;  %v2512_v26 = vshrl.u32 %v7824_v18, 16  ;;  %v7829_v32 = vld [vmem:[%s12774_s2 + $0x74] sm:$0xff]  }
 0x2de   : > { %v2309_v37 = vadd.f32 %v2305_v7, %v2290_v29  ;;  %v2515_v38 = vshll.u32 %v7824_v18, 16  ;;  %v2322_v14 = vmul.f32 %v2321_v62, %v9955_v24  ;;  %v2323_v54 = vmul.f32 %v2321_v62, %v9957_v8  ;;  %v7828_v62 = vld [vmem:[%s12774_s2 + $0x24] sm:$0xff]  }
 0x2df   : > { %v2316_v10 = vadd.f32 %v2314_v36, %v2308_v25  ;;  %v2330_v59 = vmul.f32 %v7219_v53, %v2227_v15  ;;  %v2331_v55 = vmul.f32 %v7219_v53, %v2228_v45  ;;  %v2527_v34 = vor.u32 %v2526_v63, %v2523_v47 }
 0x2e0   : > { %v2317_v31 = vadd.f32 %v2315_v6, %v2309_v37  ;;  %v2536_v20 = vor.u32 %v2535_v44, %v2532_v52  ;;  %v2514_v33 = vrot.slane %v2512_v26, 3  ;;  %v2517_v28 = vrot.slane %v2515_v38, 4  ;;  %v7830_v6 = vld [vmem:[%s12774_s2 + $0x1c] sm:$0xf8]   ;;  %v7831_v44 = vld [vmem:[%s12774_s2 + $0x6c] sm:$0xf8]  }
 0x2e1   : > { %v2324_v42 = vadd.f32 %v2322_v14, %v2316_v10  ;;  %v2503_v23 = vshrl.u32 %v7826_v16, 16  ;;  %v2506_v61 = vshll.u32 %v7826_v16, 16  ;;  %vm13513_vm1 = vsmask.f32 4352 }
 0x2e2   : > { %v2325_v56 = vadd.f32 %v2323_v54, %v2317_v31  ;;  %v2537_v8 = vsel %vm13513_vm1, %v2527_v34, %v2536_v20  ;;  %v2518_v4 = vor.u32 %v2517_v28, %v2514_v33  ;;  %vm13514_vm6 = vcmask 326656   ;;  %vm13516_vm8 = vmmov %vm13513_vm1 }
 0x2e3   : > { %v2332_v41 = vadd.f32 %v2330_v59, %v2324_v42  ;;  %v2505_v18 = vrot.slane %v2503_v23, 3  ;;  %v2508_v39 = vrot.slane %v2506_v61, 4  ;;  %vm13515_vm2 = vmmov 0   ;;  %vm13517_vm10 = vmmov %vm13513_vm1 }
 0x2e4   : > { %v2333_v11 = vadd.f32 %v2331_v55, %v2325_v56  ;;  %v2528_v15 = vsel %vm13516_vm8, %v2518_v4, %v2527_v34  ;;  %v2494_v7 = vshrl.u32 %v7828_v62, 16  ;;  %v2497_v47 = vshll.u32 %v7828_v62, 16  ;;  %vm13518_vm7 = vmmov %vm13513_vm1 }
 0x2e5   : > { %v2334_v43 = vmax.f32 %v2332_v41, 0.0  ;;  %v2509_v45 = vor.u32 %v2508_v39, %v2505_v18  ;;  %v2799_v63 = vshrl.u32 %v7829_v32, 16  ;;  %v2802_v25 = vshll.u32 %v7829_v32, 16  ;;  %vm13520_vm8 = vmmov %vm13513_vm1 }
 0x2e6   : > { %v2335_v24 = vmax.f32 %v2333_v11, 0.0  ;;  %v2496_v37 = vrot.slane %v2494_v7, 3  ;;  %v2499_v36 = vrot.slane %v2497_v47, 4  ;;  %v2486_v38 = vshrl.u32 %v7830_v6, 16  ;;  %v7833_v11 = vld [vmem:[%s12774_s2 + $0x6c] ss:$0 sps:$4 sm:$0xff]  }
 0x2e7   : > { %v2519_v29 = vsel %vm13517_vm10, %v2509_v45, %v2518_v4  ;;  %v2801_v53 = vrot.slane %v2799_v63, 3  ;;  %v2804_v52 = vrot.slane %v2802_v25, 4  ;;  %v2489_v10 = vshll.u32 %v7830_v6, 16  ;;  %v7836_v63 = vld [vmem:[%s12774_s2 + $0x4c] sm:$0xff]  }
 0x2e8   : > { %v2342_v35 = vpack.c.bf16 %v2335_v24, %v2334_v43  ;;  %v2500_v26 = vor.u32 %v2499_v36, %v2496_v37  ;;  %v2791_v14 = vshrl.u32 %v7831_v44, 16  ;;  %v2794_v54 = vshll.u32 %v7831_v44, 16 }
 0x2e9   : > { %v2805_v31 = vor.u32 %v2804_v52, %v2801_v53  ;;  %v2488_v42 = vrot.slane %v2486_v38, 3  ;;  %v2491_v56 = vrot.slane %v2489_v10, 4  ;;  %v2683_v43 = vshrl.u32 %v7833_v11, 16 }
 0x2ea   : > { %7549 = vmatmul.mubr.msk.bf16.vlgmr.msra.gmra.mxu1 %vm13514_vm6, %v2342_v35  ;;  %v2510_v16 = vsel %vm13518_vm7, %v2500_v26, %v2509_v45  ;;  %v2793_v55 = vrot.slane %v2791_v14, 3  ;;  %v2796_v34 = vrot.slane %v2794_v54, 4  ;;  %vm13519_vm6 = vmmov %vm13513_vm1  ;;  %v2686_v24 = vshll.u32 %v7833_v11, 16  ;;  %v7835_v35 = vld [vmem:[%s12774_s2 + $0x54] sm:$0xff]   ;;  %v7837_v54 = vld [vmem:[%s12774_s2 + $0x44] sm:$0xf8]  }
 0x2eb   : > { %7553 = vmatpush3.bf16.msra.mxu1 %v2537_v8  ;;  %7562 = vmatprep.mubr.msk.bf16.mxu1 %vm13515_vm2, %v13278_v1  ;;  %v2815_v59 = vsel %vm13513_vm1, %v2805_v31, %v9832_v46  ;;  %v2492_v20 = vor.u32 %v2491_v56, %v2488_v42  ;;  %v7832_v46 = vld [vmem:[%s12774_s2 + $0x64] sm:$0xff]   ;;  %v7834_v8 = vld [vmem:[%s12774_s2 + $0x5c] sm:$0xff]   ;;  %v2685_v39 = vrot.slane %v2683_v43, 3  ;;  %v2656_v32 = vshrl.u32 %v7835_v35, 16  ;;  %vm13521_vm7 = vmmov %vm13513_vm1 }
 0x2ec   : > { %7554 = vmatprep.subr.bf16.mxu1 %v13278_v1  ;;  %7587 = vmatpush3.bf16.msra.mxu0 %v2815_v59  ;;  %v2797_v33 = vor.u32 %v2796_v34, %v2793_v55  ;;  %v2674_v23 = vshrl.u32 %v7832_v46, 16  ;;  %v2677_v61 = vshll.u32 %v7832_v46, 16  ;;  %v2665_v45 = vshrl.u32 %v7834_v8, 16  ;;  %v7839_v46 = vld [vmem:[%s12774_s2 + $0xbc] ss:$0 sps:$4 sm:$0xff]  }
 0x2ed   : > { %7588 = vmatprep.subr.bf16.mxu0 %v13278_v1  ;;  %v2501_v28 = vsel %vm13519_vm6, %v2492_v20, %v2500_v26  ;;  %v2659_v7 = vshll.u32 %v7835_v35, 16  ;;  %v2658_v26 = vrot.slane %v2656_v32, 3  ;;  %vm2543_vm10 = vcmask 654336   ;;  %vm13522_vm6 = vmmov %vm13513_vm1 }
 0x2ee   : > { %v2806_v41 = vsel %vm13520_vm8, %v2797_v33, %v2805_v31  ;;  %v2676_v4 = vrot.slane %v2674_v23, 3  ;;  %v2679_v18 = vrot.slane %v2677_v61, 4  ;;  %v2667_v36 = vrot.slane %v2665_v45, 3  ;;  %vm13523_vm8 = vmmov %vm13513_vm1 }
 0x2ef   : > { %7555 = vmatpush3.bf16.msra.mxu1 %v2528_v15  ;;  %v2688_v15 = vrot.slane %v2686_v24, 4  ;;  %v2661_v38 = vrot.slane %v2659_v7, 4  ;;  %v2647_v31 = vshrl.u32 %v7836_v63, 16  ;;  %v2650_v14 = vshll.u32 %v7836_v63, 16  ;;  %v7840_v24 = vld [vmem:[%s12774_s2 + $0xac] sm:$0xff]  }
 0x2f0   : > { %7556 = vmatprep.subr.bf16.mxu1 %v13278_v1  ;;  %7589 = vmatpush3.bf16.msra.mxu0 %v2806_v41  ;;  %v2680_v25 = vor.u32 %v2679_v18, %v2676_v4  ;;  %v2639_v20 = vshrl.u32 %v7837_v54, 16  ;;  %v2642_v33 = vshll.u32 %v7837_v54, 16  ;;  %v7838_v41 = vld [vmem:[%s12774_s2 + $0xb4] sm:$0xff]   ;;  %v2987_v4 = vshrl.u32 %v7839_v46, 16 }
 0x2f1   : > { %v2689_v37 = vor.u32 %v2688_v15, %v2685_v39  ;;  %v2662_v59 = vor.u32 %v2661_v38, %v2658_v26  ;;  %v2649_v55 = vrot.slane %v2647_v31, 3  ;;  %v2652_v34 = vrot.slane %v2650_v14, 4  ;;  %v7842_v26 = vld [vmem:[%s12774_s2 + $0x9c] sm:$0xff]  }
 0x2f2   : > { %v2641_v61 = vrot.slane %v2639_v20, 3  ;;  %v2644_v43 = vrot.slane %v2642_v33, 4  ;;  %v2981_v35 = vshll.u32 %v7838_v41, 16  ;;  %v2990_v18 = vshll.u32 %v7839_v46, 16 }
 0x2f3   : > { %7557 = vmatpush3.bf16.msra.mxu1 %v2519_v29  ;;  %v2668_v29 = vshll.u32 %v7834_v8, 16  ;;  %v2690_v42 = vsel %vm13521_vm7, %v2680_v25, %v2689_v37  ;;  %v2653_v23 = vor.u32 %v2652_v34, %v2649_v55  ;;  %v2978_v8 = vshrl.u32 %v7838_v41, 16  ;;  %vm13524_vm7 = vmmov %vm13513_vm1 }
 0x2f4   : > { %7558 = vmatprep.subr.bf16.mxu1 %v13278_v1  ;;  %v2645_v15 = vor.u32 %v2644_v43, %v2641_v61  ;;  %v2969_v45 = vshrl.u32 %v7840_v24, 16  ;;  %v2983_v7 = vrot.slane %v2981_v35, 4  ;;  %v2992_v63 = vrot.slane %v2990_v18, 4  ;;  %v7845_v35 = vld [vmem:[%s12774_s2 + $0xd8] sm:$0xff]  }
 0x2f5   : > { %v2670_v6 = vrot.slane %v2668_v29, 4  ;;  %v2663_v39 = vsel %vm13523_vm8, %v2653_v23, %v2662_v59  ;;  %v2972_v29 = vshll.u32 %v7840_v24, 16  ;;  %v2980_v32 = vrot.slane %v2978_v8, 3  ;;  %vm13526_vm8 = vmmov %vm13513_vm1  ;;  %v7844_v8 = vld [vmem:[%s12774_s2 + $0xe0] sm:$0xff]  }
 0x2f6   : > { %v2951_v54 = vshrl.u32 %v7842_v26, 16  ;;  %v3600_v18 = vshrl.u32 %v7844_v8, 16 }
 0x2f7   : > { %7559 = vmatpush3.bf16.msra.mxu1 %v2510_v16  ;;  %v2671_v56 = vor.u32 %v2670_v6, %v2667_v36  ;;  %v2974_v37 = vrot.slane %v2972_v29, 4 }
 0x2f8   : > { %7560 = vmatprep.subr.bf16.mxu1 %v13278_v1  ;;  %v2953_v34 = vrot.slane %v2951_v54, 3 }
 0x2f9   : > { %v2672_v11 = vsel %vm13522_vm6, %v2662_v59, %v2671_v56  ;;  %vm13525_vm6 = vmmov %vm13513_vm1 }
 0x2fb   : > { %7561 = vmatpush3.bf16.msra.mxu1 %v2501_v28  ;;  %v2681_v28 = vsel %vm13513_vm1, %v2671_v56, %v2680_v25  ;;  %v2971_v25 = vrot.slane %v2969_v45, 3  ;;  %v7843_v56 = vld [vmem:[%s12774_s2 + $0x94] sm:$0xf8]   ;;  %v3594_v45 = vshll.u32 %v7845_v35, 16 }
 0x2fc   : > { %7566 = vmatprep.subr.bf16.mxu1 %v13278_v1  ;;  %v2943_v33 = vshrl.u32 %v7843_v56, 16 }
 0x2fd   : > { %v2975_v38 = vor.u32 %v2974_v37, %v2971_v25 }
 0x3aa   : > { %v2427_v62 = vpop.f32.mrf.mxu1 }
 0x3ab   : > { %v2434_v52 = vmax.f32 %v2427_v62, 0.0  ;;  %v7841_v62 = vld [vmem:[%s12774_s2 + $0xa4] sm:$0xff]  }
 0x3ac   : > { %v7550_v47 = vpop.f32.mrf.mxu1  ;;  %v2960_v36 = vshrl.u32 %v7841_v62, 16  ;;  %v2963_v6 = vshll.u32 %v7841_v62, 16 }
 0x3ad   : > { %v2989_v47 = vrot.slane %v2987_v4, 3  ;;  %v7846_v4 = vld [vmem:[%s12774_s2 + $0xd0] sm:$0xf8]  }
 0x3ae   : > { %v2430_v53 = vpop.f32.mrf.mxu1  ;;  %v2965_v31 = vrot.slane %v2963_v6, 4  ;;  %v3583_v29 = vshrl.u32 %v7846_v4, 16  ;;  %v3586_v62 = vshll.u32 %v7846_v4, 16 }
 0x3af   : > { %v2435_v44 = vmax.f32 %v2430_v53, 0.0  ;;  %v2654_v53 = vsel %vm13524_vm7, %v2645_v15, %v2653_v23  ;;  %vm13527_vm7 = vmmov %vm13513_vm1  ;;  %v3591_v15 = vshrl.u32 %v7845_v35, 16 }
 0x3b0   : > { %v7551_v10 = vpop.f32.mrf.mxu1  ;;  %v3588_v25 = vrot.slane %v3586_v62, 4 }
 0x3b1   : > { %v10042_v16 = vpack.c.bf16 %v2435_v44, %v2434_v52  ;;  %v2984_v52 = vor.u32 %v2983_v7, %v2980_v32  ;;  %v2993_v44 = vor.u32 %v2992_v63, %v2989_v47  ;;  %v2962_v10 = vrot.slane %v2960_v36, 3 }
 0x3b2   : > { %v3602_v32 = vrot.slane %v3600_v18, 3  ;;  %v3593_v7 = vrot.slane %v3591_v15, 3  ;;  %v3596_v47 = vrot.slane %v3594_v45, 4  ;;  %v3585_v63 = vrot.slane %v3583_v29, 3  ;;  %v3055_v29 = vld [vmem:[%s12773_s1 + $0x1b] sm:$0xff] }
 0x3b3   : > { %7563 = vmatmul.mubr.msk.bf16.vlgmr.msra.gmra.mxu1 %vm2543_vm10, %v10042_v16  ;;  %7591 = vmatmul.mubr.msk.bf16.vlgmr.msra.gmra.mxu0 %vm2543_vm10, %v10042_v16  ;;  %v2994_v14 = vsel %vm13513_vm1, %v2984_v52, %v2993_v44  ;;  %v2985_v59 = vsel %vm13525_vm6, %v2975_v38, %v2984_v52  ;;  %v2966_v55 = vor.u32 %v2965_v31, %v2962_v10 }
 0x3b4   : > { %7567 = vmatpush3.bf16.msra.mxu1 %v2690_v42  ;;  %7576 = vmatprep.mubr.msk.bf16.mxu1 %vm13515_vm2, %v13278_v1  ;;  %v2954_v42 = vshll.u32 %v7842_v26, 16  ;;  %v3597_v36 = vor.u32 %v3596_v47, %v3593_v7  ;;  %v3589_v6 = vor.u32 %v3588_v25, %v3585_v63  ;;  %v7847_v26 = vld [vmem:[%s12774_s2 + $0xcc] sm:$0xff]   ;;  %v7848_v7 = vld [vmem:[%s12774_s2 + $0xc4] sm:$0xff]   ;;  %v10131_v47 = vrot.slane %v3055_v29, %v13363_v19 }
 0x3b5   : > { %7568 = vmatprep.subr.bf16.mxu1 %v13278_v1  ;;  %v2976_v41 = vsel %vm13526_vm8, %v2966_v55, %v2975_v38  ;;  %v3723_v38 = vshrl.u32 %v7847_v26, 16  ;;  %v3726_v10 = vshll.u32 %v7847_v26, 16  ;;  %v3077_v25 = vsel %vm9370_vm13, %v9889_v40, 0.0 }
 0x3b6   : > { %v2956_v20 = vrot.slane %v2954_v42, 4  ;;  %v10116_v42 = vld [vmem:[%s12773_s1 + $0x3f] ss:$0 sm:$0xff]  ;;  %13534 = vst [vmem:[#allocation98_spill] sm:$0xff] %v10131_v47  ;;  %v3717_v26 = vshll.u32 %v7848_v7, 16 }
 0x3b7   : > { %v3725_v31 = vrot.slane %v3723_v38, 3  ;;  %v3111_v38 = vmul.f32 %v10131_v47, %v3077_v25 }
 0x3b8   : > { %7569 = vmatpush3.bf16.msra.mxu1 %v2681_v28  ;;  %v2946_v28 = vshll.u32 %v7843_v56, 16  ;;  %v2957_v46 = vor.u32 %v2956_v20, %v2953_v34 }
 0x3b9   : > { %7570 = vmatprep.subr.bf16.mxu1 %v13278_v1 }
 0x3ba   : > { %v2948_v23 = vrot.slane %v2946_v28, 4  ;;  %v2967_v61 = vsel %vm13527_vm7, %v2957_v46, %v2966_v55 }
 0x3bc   : > { %7571 = vmatpush3.bf16.msra.mxu1 %v2672_v11  ;;  %v2945_v11 = vrot.slane %v2943_v33, 3 }
 0x3bd   : > { %7572 = vmatprep.subr.bf16.mxu1 %v13278_v1 }
 0x3be   : > { %v2949_v43 = vor.u32 %v2948_v23, %v2945_v11 }
 0x3c0   : > { %7573 = vmatpush3.bf16.msra.mxu1 %v2663_v39  ;;  %v3603_v39 = vshll.u32 %v7844_v8, 16 }
 0x3c1   : > { %7574 = vmatprep.subr.bf16.mxu1 %v13278_v1 }
 0x3c4   : > { %7575 = vmatpush3.bf16.msra.mxu1 %v2654_v53 }
 0x3c5   : > { %7594 = vmatprep.subr.bf16.mxu1 %v13278_v1 }
 0x3c7   : > { %7577 = vmatmul.mubr.msk.bf16.vlgmr.msra.gmra.mxu1 %vm2543_vm10, %v10042_v16 }
 0x3c8   : > { %7595 = vmatpush3.bf16.msra.mxu1 %v2994_v14  ;;  %7604 = vmatprep.mubr.msk.bf16.mxu1 %vm13515_vm2, %v13278_v1  ;;  %vm13528_vm2 = vmmov %vm13513_vm1  ;;  %v3728_v14 = vrot.slane %v3726_v10, 4  ;;  %v10147_v10 = vrot.slane %v3055_v29, %v13377_v48 }
 0x3c9   : > { %7596 = vmatprep.subr.bf16.mxu1 %v13278_v1  ;;  %v2958_v24 = vsel %vm13528_vm2, %v2949_v43, %v2957_v46  ;;  %vm13531_vm6 = vmmov %vm13528_vm2 }
 0x3ca   : > { %vm13532_vm8 = vmmov %vm13528_vm2  ;;  %v10109_v54 = vor.u32 %v3728_v14, %v3725_v31  ;;  %vm13537_vm2 = vcmask 326656   ;;  %13538 = vst [vmem:[#allocation99_spill] sm:$0xff] %v10147_v10 }
 0x3cb   : > { %v3598_v44 = vsel %vm13532_vm8, %v3589_v6, %v3597_v36  ;;  %v3057_v6 = vld [vmem:[#allocation3 + $0x8] sm:$0xff] }
 0x3cc   : > { %7597 = vmatpush3.bf16.msra.mxu1 %v2985_v59 }
 0x3cd   : > { %7598 = vmatprep.subr.bf16.mxu1 %v13278_v1 }
 0x3d0   : > { %7599 = vmatpush3.bf16.msra.mxu1 %v2976_v41 }
 0x3d1   : > { %7600 = vmatprep.subr.bf16.mxu1 %v13278_v1 }
 0x3d4   : > { %7601 = vmatpush3.bf16.msra.mxu1 %v2967_v61 }
 0x3d5   : > { %7602 = vmatprep.subr.bf16.mxu1 %v13278_v1 }
 0x3d8   : > { %7603 = vmatpush3.bf16.msra.mxu1 %v2958_v24 }
 0x3db   : > { %7605 = vmatmul.mubr.msk.bf16.vlgmr.msra.gmra.mxu1 %vm2543_vm10, %v10042_v16  ;;  %v3605_v16 = vrot.slane %v3603_v39, 4  ;;  %vm13529_vm10 = vcmask 1043456  }
 0x3dc   : > { %vm13530_vm1 = vmmov %vm13529_vm10 }
 0x3dd   : > { %v3606_v37 = vor.u32 %v3605_v16, %v3602_v32  ;;  %vm13533_vm7 = vmmov %vm13530_vm1 }
 0x3df   : > { %7795 = vmatprep.subr.msk.bf16.mxu0 %vm13529_vm10, %v3606_v37  ;;  %v3623_v53 = vsel %vm13530_vm1, %v3606_v37, 0  ;;  %v3607_v52 = vsel %vm13531_vm6, %v3597_v36, %v3606_v37  ;;  %v10137_v37 = vrot.slane %v3055_v29, %v13365_v51  ;;  %v7849_v36 = vld [vmem:[%s12774_s2 + $0xbc] sm:$0xf8]   ;;  %vm13545_vm10 = vmmov %vm13530_vm1 }
 0x3e0   : > { %7609 = vmatpush3.bf16.msra.mxu0 %v3623_v53  ;;  %v3706_v31 = vshrl.u32 %v7849_v36, 16  ;;  %v3709_v14 = vshll.u32 %v7849_v36, 16  ;;  %vm13546_vm1 = vmmov %vm13531_vm6 }
 0x3e1   : > { %7610 = vmatprep.subr.bf16.mxu0 %v3607_v52  ;;  %13536 = vst [vmem:[#allocation82_spill] sm:$0xff] %v10137_v37  ;;  %v3131_v40 = vmul.f32 %v10137_v37, %v3057_v6  ;;  %vm13548_vm6 = vmmov %vm13546_vm1 }
 0x3e4   : > { %7611 = vmatpush3.bf16.msra.mxu0 %v3607_v52 }
 0x3e5   : > { %7612 = vmatprep.subr.bf16.mxu0 %v3598_v44 }
 0x3e8   : > { %7613 = vmatpush3.bf16.msra.mxu0 %v3598_v44  ;;  %v3714_v44 = vshrl.u32 %v7848_v7, 16 }
 0x3e9   : > { %7796 = vmatprep.subr.msk.bf16.mxu0 %vm13533_vm7, %v10109_v54 }
 0x473   : > { %v2581_v56 = vpop.f32.mrf.mxu1  ;;  %v2882_v59 = vpop.f32.mrf.mxu0 }
 0x474   : > { %v2582_v55 = vadd.f32 %v10116_v42, %v2581_v56  ;;  %v2883_v34 = vadd.f32 %v10116_v42, %v2882_v59 }
 0x475   : > { %v7564_v20 = vpop.f32.mrf.mxu1  ;;  %v7592_v33 = vpop.f32.mrf.mxu0 }
 0x476   : > { %2588 = vst [vmem:[#allocation3 + $0x10] ss:$2 sm:$0xf] %v2582_v55  ;;  %v2590_v28 = vrot.slane %v2582_v55, 4  ;;  %v2892_v41 = vrot.slane %v2883_v34, 4  ;;  %v10152_v55 = vrot.slane %v3055_v29, %v13389_v3  ;;  %v3716_v20 = vrot.slane %v3714_v44, 3 }
 0x477   : > { %2890 = vst [vmem:[#allocation3 + $0x18] ss:$2 sm:$0xf] %v2883_v34  ;;  %v2584_v46 = vpop.f32.mrf.mxu1  ;;  %v2885_v11 = vpop.f32.mrf.mxu0  ;;  %v3307_v34 = vld [vmem:[%s12773_s1 + $0x24] sm:$0xff]  ;;  %v3719_v33 = vrot.slane %v3717_v26, 4 }
 0x478   : > { %2592 = vst [vmem:[#allocation3 + $0x20] ss:$2 sm:$0xf] %v2590_v28  ;;  %2895 = vst [vmem:[#allocation3 + $0x28] ss:$2 sm:$0xf] %v2892_v41  ;;  %v2585_v23 = vadd.f32 %v10116_v42, %v2584_v46  ;;  %v2886_v61 = vadd.f32 %v10116_v42, %v2885_v11  ;;  %v3139_v46 = vadd.f32 %v3131_v40, %v3111_v38 }
 0x479   : > { %v7565_v43 = vpop.f32.mrf.mxu1  ;;  %v7593_v24 = vpop.f32.mrf.mxu0  ;;  %13540 = vst [vmem:[#allocation6_spill] sm:$0xff] %v10152_v55  ;;  %v10183_v25 = vrot.slane %v3307_v34, %v13504_v57  ;;  %v10186_v36 = vrot.slane %v3307_v34, %v13505_v13  ;;  %v10192_v38 = vrot.slane %v3055_v29, %v13504_v57 }
 0x47a   : > { %2593 = vst [vmem:[#allocation3 + $0x30] ss:$2 sm:$0xf] %v2585_v23  ;;  %v2595_v8 = vrot.slane %v2585_v23, 4  ;;  %v2899_v35 = vrot.slane %v2886_v61, 4  ;;  %v3708_v23 = vrot.slane %v3706_v31, 3  ;;  %v10161_v43 = vrot.slane %v3055_v29, %v13378_v50 }
 0x47b   : > { %2897 = vst [vmem:[#allocation3 + $0x38] ss:$2 sm:$0xf] %v2886_v61  ;;  %v3711_v61 = vrot.slane %v3709_v14, 4  ;;  %13543 = vst [vmem:[#allocation100_spill] sm:$0xff] %v10192_v38 }
 0x47c   : > { %2598 = vst [vmem:[#allocation3 + $0x40] ss:$2 sm:$0xf] %v2595_v8  ;;  %2902 = vst [vmem:[#allocation3 + $0x48] ss:$2 sm:$0xf] %v2899_v35  ;;  %v10164_v8 = vrot.slane %v3307_v34, %v13363_v19  ;;  %v10167_v35 = vrot.slane %v3307_v34, %v13365_v51 }
 0x47d   : > { %v3087_v53 = vld [vmem:[#allocation3 + $0x9] sm:$0xff]  ;;  %13542 = vst [vmem:[#allocation8_spill] sm:$0xff] %v10161_v43 }
 0x47e   : > { %v3097_v59 = vsel %vm9414_vm0, %v3087_v53, 0.0  ;;  %v3712_v53 = vor.u32 %v3711_v61, %v3708_v23 }
 0x47f   : > { %v3151_v11 = vmul.f32 %v10147_v10, %v3097_v59 }
 0x481   : > { %v3159_v6 = vadd.f32 %v3151_v11, %v3139_v46  ;;  %v3066_v46 = vld [vmem:[#allocation3 + $0x50] sm:$0xff] }
 0x487   : > { %v2730_v4 = vpop.f32.mrf.mxu1 }
 0x488   : > { %v2731_v18 = vadd.f32 %v10116_v42, %v2730_v4  ;;  %v10170_v4 = vrot.slane %v3307_v34, %v13377_v48 }
 0x489   : > { %v7578_v39 = vpop.f32.mrf.mxu1 }
 0x48a   : > { %2738 = vst [vmem:[#allocation3 + $0x11] ss:$2 sm:$0xf] %v2731_v18  ;;  %v2740_v15 = vrot.slane %v2731_v18, 4 }
 0x48b   : > { %v2733_v45 = vpop.f32.mrf.mxu1 }
 0x48c   : > { %2743 = vst [vmem:[#allocation3 + $0x21] ss:$2 sm:$0xf] %v2740_v15  ;;  %v2734_v62 = vadd.f32 %v10116_v42, %v2733_v45  ;;  %v10174_v15 = vrot.slane %v3307_v34, %v13389_v3  ;;  %v10177_v45 = vrot.slane %v3307_v34, %v13378_v50 }
 0x48d   : > { %v7579_v32 = vpop.f32.mrf.mxu1 }
 0x48e   : > { %2745 = vst [vmem:[#allocation3 + $0x31] ss:$2 sm:$0xf] %v2734_v62  ;;  %v2747_v16 = vrot.slane %v2734_v62, 4  ;;  %v10180_v62 = vrot.slane %v3307_v34, %v13510_v27  ;;  %v3720_v32 = vor.u32 %v3719_v33, %v3716_v20  ;;  %v10197_v34 = vrot.slane %v3055_v29, %v13505_v13 }
 0x48f   : > { %v10200_v33 = vrot.slane %v3055_v29, %v13510_v27 }
 0x490   : > { %2750 = vst [vmem:[#allocation3 + $0x41] ss:$2 sm:$0xf] %v2747_v16 }
 0x491   : > { %v3068_v52 = vld [vmem:[#allocation3 + $0xf] sm:$0xff] }
 0x492   : > { %3296 = vst.msk [vmem:[#allocation3 + $0x8] sm:$0xff] %vm13537_vm2, %v13278_v1  ;;  %v3078_v41 = vsel %vm9402_vm15, %v3068_v52, 0.0  ;;  %v3058_v24 = vld [vmem:[#allocation3 + $0x10] sm:$0xff] }
 0x493   : > { %v3171_v18 = vmul.f32 %v10152_v55, %v3078_v41  ;;  %v3088_v39 = vld [vmem:[#allocation3 + $0x11] sm:$0xff]  ;;  %v3112_v44 = vmul.f32 %v10131_v47, %v3078_v41  ;;  %v3132_v26 = vmul.f32 %v10137_v37, %v3058_v24  ;;  %v3090_v40 = vld [vmem:[#allocation3 + $0x21] sm:$0xff]  ;;  %v3191_v29 = vmul.f32 %v10161_v43, %v3058_v24 }
 0x494   : > { %v3098_v59 = vsel %vm9434_vm12, %v3088_v39, 0.0  ;;  %v3060_v39 = vld [vmem:[#allocation3 + $0x20] sm:$0xff]  ;;  %v3100_v24 = vsel %vm9651_vm11, %v3090_v40, 0.0 }
 0x495   : > { %v3179_v20 = vadd.f32 %v3171_v18, %v3159_v6  ;;  %v3092_v11 = vld [vmem:[#allocation3 + $0x31] sm:$0xff]  ;;  %v10210_v18 = vsel %vm13546_vm1, %v3720_v32, %v10109_v54  ;;  %v3134_v40 = vmul.f32 %v10137_v37, %v3060_v39  ;;  %vm13574_vm1 = vmmov %vm13537_vm2 }
 0x496   : > { %13547 = vst [vmem:[#allocation86_spill] sm:$0xff] %v10210_v18  ;;  %v10231_v50 = vld [vmem:[#allocation3 + $0x30] sm:$0xff] }
 0x497   : > { %13555 = vst [vmem:[#allocation96_spill] sm:$0xff] %v10231_v50  ;;  %v3199_v3 = vadd.f32 %v3191_v29, %v3179_v20  ;;  %v10249_v20 = vmul.f32 %v10200_v33, %v3060_v39  ;;  %v10264_v29 = vmul.f32 %v10137_v37, %v10231_v50  ;;  %v10315_v18 = vld [vmem:[#allocation3 + $0x40] sm:$0xff] }
 0x498   : > { %13581 = vst [vmem:[#allocation113_spill] sm:$0xff] %v10315_v18 }
 0x499   : > { %v3319_v7 = vld [vmem:[#allocation3 + $0x7] sm:$0xff]  ;;  %13559 = vst [vmem:[#allocation107_spill] sm:$0xff] %v10249_v20  ;;  %13563 = vst [vmem:[#allocation111_spill] sm:$0xff] %v10264_v29 }
 0x49a   : > { %v3309_v23 = vld [vmem:[#allocation3 + $0x8] sm:$0xff]  ;;  %v3329_v61 = vsel %vm9370_vm13, %v3319_v7, 0.0  ;;  %v10220_v7 = vmul.f32 %v10200_v33, %v3066_v46  ;;  %vm13567_vm13 = vmmov %vm13537_vm2 }
 0x49b   : > { %v3034_v16 = vpop.f32.mrf.mxu1  ;;  %v3363_v46 = vmul.f32 %v10164_v8, %v3329_v61  ;;  %v10246_v61 = vmul.f32 %v10192_v38, %v3100_v24 }
 0x49c   : > { %v3035_v52 = vadd.f32 %v10116_v42, %v3034_v16  ;;  %v10206_v16 = vsel %vm13545_vm10, %v10109_v54, 0  ;;  %13552 = vst [vmem:[#allocation102_spill] sm:$0xff] %v10220_v7  ;;  %v10226_v54 = vld [vmem:[%s12773_s1 + $0x23] ss:$0 sm:$0xff] }
 0x49d   : > { %v7606_v31 = vpop.f32.mrf.mxu1  ;;  %13553 = vst [vmem:[#allocation103_spill] sm:$0xff] %v10226_v54  ;;  %13558 = vst [vmem:[#allocation106_spill] sm:$0xff] %v10246_v61 }
 0x49e   : > { %3042 = vst [vmem:[#allocation3 + $0x19] ss:$2 sm:$0xf] %v3035_v52  ;;  %v3044_v41 = vrot.slane %v3035_v52, 4  ;;  %v10214_v31 = vsel %vm13548_vm6, %v3712_v53, %v3720_v32  ;;  %v3140_v32 = vadd.f32 %v3132_v26, %v3112_v44  ;;  %v3152_v53 = vmul.f32 %v10147_v10, %v3098_v59  ;;  %vm13577_vm6 = vmmov %vm13574_vm1 }
 0x49f   : > { %v3037_v6 = vpop.f32.mrf.mxu1  ;;  %13549 = vst [vmem:[#allocation101_spill] sm:$0xff] %v10214_v31  ;;  %v10241_v44 = vmul.f32 %v10161_v43, %v3060_v39  ;;  %v3211_v26 = vmul.f32 %v10192_v38, %v3098_v59 }
 0x4a0   : > { %3047 = vst [vmem:[#allocation3 + $0x29] ss:$2 sm:$0xf] %v3044_v41  ;;  %v3038_v13 = vadd.f32 %v10116_v42, %v3037_v6  ;;  %v3383_v41 = vmul.f32 %v10167_v35, %v3309_v23  ;;  %v10237_v42 = vsel %vm9676_vm5, %v3092_v11, 0.0  ;;  %v3094_v6 = vld [vmem:[#allocation3 + $0x41] sm:$0xff]  ;;  %v10252_v11 = vmul.f32 %v10226_v54, %v3100_v24 }
 0x4a1   : > { %v7607_v63 = vpop.f32.mrf.mxu1  ;;  %13556 = vst [vmem:[#allocation104_spill] sm:$0xff] %v10237_v42  ;;  %13557 = vst [vmem:[#allocation105_spill] sm:$0xff] %v10241_v44  ;;  %v10256_v23 = vmul.f32 %v10200_v33, %v10231_v50  ;;  %v10260_v59 = vmul.f32 %v10226_v54, %v10237_v42  ;;  %v13568_v50 = vld [vmem:[#allocation25_spill] sm:$0xff] }
 0x4a2   : > { %3049 = vst [vmem:[#allocation3 + $0x39] ss:$2 sm:$0xf] %v3038_v13  ;;  %v3051_v48 = vrot.slane %v3038_v13, 4  ;;  %v3154_v63 = vmul.f32 %v10147_v10, %v3100_v24  ;;  %13560 = vst [vmem:[#allocation108_spill] sm:$0xff] %v10252_v11  ;;  %v3160_v13 = vadd.f32 %v3152_v53, %v3140_v32  ;;  %v10266_v7 = vadd.f32 %v3383_v41, %v3363_v46 }
 0x4a3   : > { %13561 = vst [vmem:[#allocation109_spill] sm:$0xff] %v10256_v23  ;;  %13562 = vst [vmem:[#allocation110_spill] sm:$0xff] %v10260_v59  ;;  %v3219_v24 = vadd.f32 %v3211_v26, %v3199_v3  ;;  %v10270_v32 = vsel %vm9493_vm9, %v3094_v6, 0.0  ;;  %v10274_v53 = vmul.f32 %v10147_v10, %v10237_v42  ;;  %vm13569_vm8 = vnez %v13568_v50  ;;  %v13570_v59 = vld [vmem:[#allocation92_spill] sm:$0xff]  ;;  %v13572_v42 = vld [vmem:[#allocation7_spill] sm:$0xff] }
 0x4a4   : > { %3054 = vst [vmem:[#allocation3 + $0x49] ss:$2 sm:$0xf] %v3051_v48  ;;  %13565 = vst [vmem:[#allocation88_spill] sm:$0xff] %v10270_v32  ;;  %vm13571_vm7 = vnez %v13570_v59  ;;  %vm13573_vm10 = vnez %v13572_v42 }
 0x4a5   : > { %v3059_v19 = vld [vmem:[#allocation3 + $0x18] sm:$0xff]  ;;  %13566 = vst [vmem:[#allocation112_spill] sm:$0xff] %v10274_v53 }
 0x4a6   : > { %v3069_v39 = vld [vmem:[#allocation3 + $0x17] sm:$0xff]  ;;  %v3070_v51 = vld [vmem:[#allocation3 + $0x1f] sm:$0xff]  ;;  %v3133_v3 = vmul.f32 %v10137_v37, %v3059_v19  ;;  %v3192_v41 = vmul.f32 %v10161_v43, %v3059_v19 }
 0x4a7   : > { %v3089_v52 = vld [vmem:[#allocation3 + $0x19] sm:$0xff]  ;;  %3299 = vst.msk [vmem:[#allocation3 + $0x10] sm:$0xff] %vm13567_vm13, %v9839_v17  ;;  %v3079_v29 = vsel %vm13569_vm8, %v3069_v39, 0.0  ;;  %v3080_v46 = vsel %vm13571_vm7, %v3070_v51, 0.0  ;;  %v10284_v6 = vld [vmem:[#allocation3 + $0x28] sm:$0xff]  ;;  %vm13583_vm13 = vmmov %vm13574_vm1 }
 0x4a8   : > { %v3071_v26 = vld [vmem:[#allocation3 + $0x27] sm:$0xff]  ;;  %v3072_v32 = vld [vmem:[#allocation3 + $0x2f] sm:$0xff]  ;;  %3300 = vst.msk [vmem:[#allocation3 + $0x18] sm:$0xff] %vm13537_vm2, %v9845_v21  ;;  %v3099_v17 = vsel %vm13573_vm10, %v3089_v52, 0.0  ;;  %v3113_v53 = vmul.f32 %v10131_v47, %v3079_v29  ;;  %v3114_v39 = vmul.f32 %v10131_v47, %v3080_v46  ;;  %v3172_v51 = vmul.f32 %v10152_v55, %v3079_v29  ;;  %vm13587_vm2 = vmmov %vm13574_vm1 }
 0x4a9   : > { %v3091_v23 = vld [vmem:[#allocation3 + $0x29] sm:$0xff]  ;;  %3301 = vst.msk [vmem:[#allocation3 + $0x20] sm:$0xff] %vm13574_vm1, %v9837_v12  ;;  %v10297_v11 = vsel %vm9591_vm14, %v3071_v26, 0.0  ;;  %v3153_v20 = vmul.f32 %v10147_v10, %v3099_v17  ;;  %v3173_v21 = vmul.f32 %v10152_v55, %v3080_v46  ;;  %v10303_v52 = vmul.f32 %v10161_v43, %v10284_v6  ;;  %v10307_v47 = vld [vmem:[#allocation3 + $0x38] sm:$0xff] }
 0x4aa   : > { %13576 = vst [vmem:[#allocation25_spill] sm:$0xff] %v10297_v11  ;;  %3302 = vst.msk [vmem:[#allocation3 + $0x28] sm:$0xff] %vm13577_vm6, %v9841_v60  ;;  %v10309_v61 = vld [vmem:[#allocation3 + $0x37] sm:$0xff]  ;;  %v10311_v12 = vld [vmem:[#allocation3 + $0x3f] sm:$0xff]  ;;  %v3141_v31 = vadd.f32 %v3133_v3, %v3113_v53  ;;  %v3142_v26 = vadd.f32 %v3134_v40, %v3114_v39  ;;  %v3174_v10 = vmul.f32 %v10152_v55, %v10297_v11  ;;  %vm13589_vm6 = vnez %v13456_v5 }
 0x4ab   : > { %13578 = vst [vmem:[#allocation92_spill] sm:$0xff] %v10307_v47  ;;  %13579 = vst [vmem:[#allocation7_spill] sm:$0xff] %v10309_v61  ;;  %v3180_v44 = vadd.f32 %v3172_v51, %v3160_v13  ;;  %v10317_v27 = vld [vmem:[#allocation3 + $0x39] sm:$0xff]  ;;  %v3212_v60 = vmul.f32 %v10192_v38, %v3099_v17  ;;  %v3231_v43 = vmul.f32 %v10197_v34, %v3079_v29  ;;  %v10330_v53 = vld [vmem:[#allocation3 + $0x48] sm:$0xff] }
 0x4ac   : > { %13580 = vst [vmem:[#allocation9_spill] sm:$0xff] %v10311_v12  ;;  %13582 = vst [vmem:[#allocation114_spill] sm:$0xff] %v10317_v27  ;;  %v10324_v47 = vmul.f32 %v10197_v34, %v3080_v46  ;;  %v10328_v40 = vmul.f32 %v10197_v34, %v10297_v11  ;;  %v10332_v13 = vld [vmem:[#allocation3 + $0x47] sm:$0xff]  ;;  %v10334_v3 = vld [vmem:[#allocation3 + $0x4f] sm:$0xff]  ;;  %v3162_v39 = vadd.f32 %v3154_v63, %v3142_v26 }
 0x4ad   : > { %3303 = vst.msk [vmem:[#allocation3 + $0x30] sm:$0xff] %vm13583_vm13, %v9857_v9  ;;  %13584 = vst [vmem:[#allocation115_spill] sm:$0xff] %v10330_v53  ;;  %v3161_v9 = vadd.f32 %v3153_v20, %v3141_v31  ;;  %v3200_v51 = vadd.f32 %v3192_v41, %v3180_v44  ;;  %v10339_v29 = vmul.f32 %v10200_v33, %v3059_v19  ;;  %v10341_v46 = vld [vmem:[#allocation3 + $0x49] sm:$0xff] }
 0x4ae   : > { %13585 = vst [vmem:[#allocation116_spill] sm:$0xff] %v10332_v13  ;;  %13586 = vst [vmem:[#allocation117_spill] sm:$0xff] %v10334_v3  ;;  %v10345_v55 = vadd.f32 %v3231_v43, %v3219_v24  ;;  %v10348_v53 = vmul.f32 %v10226_v54, %v3099_v17  ;;  %v10352_v3 = vsel %vm9639_vm3, %v3072_v32, 0.0  ;;  %v3310_v19 = vld [vmem:[#allocation3 + $0x10] sm:$0xff]  ;;  %v10364_v44 = vadd.f32 %v3174_v10, %v3162_v39 }
 0x4af   : > { %3304 = vst.msk [vmem:[#allocation3 + $0x38] sm:$0xff] %vm13587_vm2, %v9869_v2  ;;  %13588 = vst [vmem:[#allocation118_spill] sm:$0xff] %v10341_v46  ;;  %v10356_v2 = vsel %vm13589_vm6, %v3091_v23, 0.0  ;;  %v3339_v43 = vld [vmem:[#allocation3 + $0x9] sm:$0xff]  ;;  %v10362_v31 = vadd.f32 %v3173_v21, %v3161_v9  ;;  %v10366_v63 = vadd.f32 %v3212_v60, %v3200_v51  ;;  %v3311_v23 = vld [vmem:[#allocation3 + $0x18] sm:$0xff]  ;;  %v3384_v17 = vmul.f32 %v10167_v35, %v3310_v19 }
 0x4b0   : > { %3305 = vst.msk [vmem:[#allocation3 + $0x40] sm:$0xff] %vm13574_vm1, %v9855_v58  ;;  %13590 = vst [vmem:[#allocation119_spill] sm:$0xff] %v10356_v2  ;;  %v3320_v58 = vld [vmem:[#allocation3 + $0xf] sm:$0xff]  ;;  %v10370_v20 = vmul.f32 %v10192_v38, %v10356_v2  ;;  %v3321_v24 = vld [vmem:[#allocation3 + $0x17] sm:$0xff]  ;;  %v3443_v10 = vmul.f32 %v10177_v45, %v3310_v19  ;;  %v3385_v51 = vmul.f32 %v10167_v35, %v3311_v23 }
 0x4b1   : > { %vm13591_vm13 = vmmov %vm13574_vm1  ;;  %v3330_v32 = vsel %vm9402_vm15, %v3320_v58, 0.0  ;;  %v3340_v41 = vld [vmem:[#allocation3 + $0x11] sm:$0xff]  ;;  %v3312_v21 = vld [vmem:[#allocation3 + $0x20] sm:$0xff]  ;;  %v3331_v60 = vsel %vm13569_vm8, %v3321_v24, 0.0 }
 0x4b2   : > { %3297 = vst.msk [vmem:[#allocation3 + $0x50] sm:$0xff] %vm13591_vm13, %v13278_v1  ;;  %vm13592_vm2 = vmmov %vm13574_vm1  ;;  %v3322_v26 = vld [vmem:[#allocation3 + $0x1f] sm:$0xff]  ;;  %v3350_v39 = vsel %vm9434_vm12, %v3340_v41, 0.0  ;;  %v3364_v28 = vmul.f32 %v10164_v8, %v3330_v32  ;;  %v3323_v58 = vld [vmem:[#allocation3 + $0x27] sm:$0xff]  ;;  %v3365_v1 = vmul.f32 %v10164_v8, %v3331_v60  ;;  %v3386_v50 = vmul.f32 %v10167_v35, %v3312_v21 }
 0x4b3   : > { %3306 = vst.msk [vmem:[#allocation3 + $0x48] sm:$0xff] %vm13592_vm2, %v9860_v0  ;;  %v3349_v0 = vsel %vm9414_vm0, %v3339_v43, 0.0  ;;  %v3341_v9 = vld [vmem:[#allocation3 + $0x19] sm:$0xff]  ;;  %v3332_v56 = vsel %vm13571_vm7, %v3322_v26, 0.0  ;;  %v3342_v43 = vld [vmem:[#allocation3 + $0x21] sm:$0xff]  ;;  %v10392_v14 = vsel %vm9591_vm14, %v3323_v58, 0.0  ;;  %v3404_v42 = vmul.f32 %v10170_v4, %v3350_v39  ;;  %vm13598_vm15 = vmmov %vm13574_vm1 }
 0x4b4   : > { %v3351_v19 = vsel %vm13573_vm10, %v3341_v9, 0.0  ;;  %v3352_v24 = vsel %vm9651_vm11, %v3342_v43, 0.0  ;;  %v3366_v41 = vmul.f32 %v10164_v8, %v3332_v56  ;;  %v3392_v46 = vadd.f32 %v3384_v17, %v3364_v28  ;;  %v3313_v54 = vld [vmem:[#allocation3 + $0x28] sm:$0xff]  ;;  %vm13599_vm0 = vmmov %vm13574_vm1 }
 0x4b5   : > { %v3393_v59 = vadd.f32 %v3385_v51, %v3365_v1  ;;  %v3403_v26 = vmul.f32 %v10170_v4, %v3349_v0  ;;  %v3405_v9 = vmul.f32 %v10170_v4, %v3351_v19  ;;  %v3406_v38 = vmul.f32 %v10170_v4, %v3352_v24  ;;  %v3343_v2 = vld [vmem:[#allocation3 + $0x29] sm:$0xff]  ;;  %vm13615_vm8 = vmmov %vm13599_vm0 }
 0x4b6   : > { %v3394_v13 = vadd.f32 %v3386_v50, %v3366_v41  ;;  %v3423_v37 = vmul.f32 %v10174_v15, %v3330_v32  ;;  %v3424_v58 = vmul.f32 %v10174_v15, %v3331_v60  ;;  %v3412_v43 = vadd.f32 %v3404_v42, %v3392_v46  ;;  %v10412_v32 = vld [vmem:[%s12773_s1 + $0x2c] ss:$0 sm:$0xff]  ;;  %v3324_v42 = vld [vmem:[#allocation3 + $0x2f] sm:$0xff]  ;;  %vm13628_vm7 = vmmov %vm13599_vm0 }
 0x4b7   : > { %v3411_v57 = vadd.f32 %v3403_v26, %v10266_v7  ;;  %v3413_v27 = vadd.f32 %v3405_v9, %v3393_v59  ;;  %v3425_v17 = vmul.f32 %v10174_v15, %v3332_v56  ;;  %v3426_v0 = vmul.f32 %v10174_v15, %v10392_v14  ;;  %vm13630_vm10 = vmmov %vm13599_vm0 }
 0x4b8   : > { %v3414_v1 = vadd.f32 %v3406_v38, %v3394_v13  ;;  %v3444_v28 = vmul.f32 %v10177_v45, %v3311_v23  ;;  %v3445_v51 = vmul.f32 %v10177_v45, %v3312_v21  ;;  %v3432_v41 = vadd.f32 %v3424_v58, %v3412_v43  ;;  %v10423_v43 = vld [vmem:[#allocation3 + $0x30] sm:$0xff]  ;;  %vm13640_vm1 = vmmov %vm13599_vm0 }
 0x4b9   : > { %v3431_v50 = vadd.f32 %v3423_v37, %v3411_v57  ;;  %v3433_v7 = vadd.f32 %v3425_v17, %v3413_v27  ;;  %v3463_v46 = vmul.f32 %v10183_v25, %v3350_v39  ;;  %v3464_v38 = vmul.f32 %v10183_v25, %v3351_v19  ;;  %v3344_v37 = vld [vmem:[#allocation3 + $0x31] sm:$0xff]  ;;  %vm13646_vm13 = vmmov %vm13599_vm0 }
 0x4ba   : > { %v3434_v59 = vadd.f32 %v3426_v0, %v3414_v1  ;;  %v3465_v13 = vmul.f32 %v10183_v25, %v3352_v24  ;;  %v3483_v26 = vmul.f32 %v10186_v36, %v3331_v60  ;;  %v3452_v11 = vadd.f32 %v3444_v28, %v3432_v41  ;;  %v3325_v28 = vld [vmem:[#allocation3 + $0x37] sm:$0xff] }
 0x4bb   : > { %v3451_v9 = vadd.f32 %v3443_v10, %v3431_v50  ;;  %v3453_v12 = vadd.f32 %v3445_v51, %v3433_v7  ;;  %v3484_v61 = vmul.f32 %v10186_v36, %v3332_v56  ;;  %v3503_v27 = vmul.f32 %v10180_v62, %v3311_v23  ;;  %v3326_v7 = vld [vmem:[#allocation3 + $0x3f] sm:$0xff] }
 0x4bc   : > { %v3504_v39 = vmul.f32 %v10180_v62, %v3312_v21  ;;  %v3523_v58 = vmul.f32 %v10412_v32, %v3351_v19  ;;  %v3524_v57 = vmul.f32 %v10412_v32, %v3352_v24  ;;  %v3472_v17 = vadd.f32 %v3464_v38, %v3452_v11 }
 0x4bd   : > { %v3471_v60 = vadd.f32 %v3463_v46, %v3451_v9  ;;  %v3473_v10 = vadd.f32 %v3465_v13, %v3453_v12  ;;  %v3334_v1 = vsel %vm9639_vm3, %v3324_v42, 0.0  ;;  %v3353_v56 = vsel %vm13589_vm6, %v3343_v2, 0.0  ;;  %v3345_v46 = vld [vmem:[#allocation3 + $0x39] sm:$0xff]  ;;  %v3346_v9 = vld [vmem:[#allocation3 + $0x41] sm:$0xff]  ;;  %vm13645_vm6 = vmmov %vm13599_vm0 }
 0x4be   : > { %v10431_v23 = vsel %vm9676_vm5, %v3344_v37, 0.0  ;;  %v3368_v21 = vmul.f32 %v10164_v8, %v3334_v1  ;;  %v3387_v19 = vmul.f32 %v10167_v35, %v3313_v54  ;;  %v3492_v0 = vadd.f32 %v3484_v61, %v3472_v17 }
 0x4bf   : > { %v3491_v24 = vadd.f32 %v3483_v26, %v3471_v60  ;;  %v3388_v11 = vmul.f32 %v10167_v35, %v10423_v43  ;;  %v3407_v12 = vmul.f32 %v10170_v4, %v3353_v56  ;;  %v3408_v22 = vmul.f32 %v10170_v4, %v10431_v23 }
 0x4c0   : > { %v3446_v5 = vmul.f32 %v10177_v45, %v3313_v54  ;;  %v3466_v30 = vmul.f32 %v10183_v25, %v3353_v56  ;;  %v3485_v2 = vmul.f32 %v10186_v36, %v10392_v14  ;;  %v3512_v50 = vadd.f32 %v3504_v39, %v3492_v0  ;;  %v3316_v0 = vld [vmem:[#allocation3 + $0x40] sm:$0xff] }
 0x4c1   : > { %v3511_v51 = vadd.f32 %v3503_v27, %v3491_v24  ;;  %v3486_v61 = vmul.f32 %v10186_v36, %v3334_v1  ;;  %v3505_v41 = vmul.f32 %v10180_v62, %v3313_v54  ;;  %v3506_v26 = vmul.f32 %v10180_v62, %v10423_v43  ;;  %v3315_v24 = vld [vmem:[#allocation3 + $0x38] sm:$0xff] }
 0x4c2   : > { %v3454_v38 = vadd.f32 %v3446_v5, %v3434_v59  ;;  %v3493_v13 = vadd.f32 %v3485_v2, %v3473_v10  ;;  %v3525_v42 = vmul.f32 %v10412_v32, %v3353_v56  ;;  %v3532_v60 = vadd.f32 %v3524_v57, %v3512_v50  ;;  %v13594_v59 = vld [vmem:[#allocation24_spill] sm:$0xff]  ;;  %v13596_v5 = vld [vmem:[#allocation94_spill] sm:$0xff] }
 0x4c3   : > { %v3531_v37 = vadd.f32 %v3523_v58, %v3511_v51  ;;  %v3526_v27 = vmul.f32 %v10412_v32, %v10431_v23  ;;  %vm13593_vm3 = vnez %v13470_v49  ;;  %vm13595_vm5 = vnez %v13594_v59 }
 0x4c4   : > { %v3335_v39 = vsel %vm13593_vm3, %v3325_v28, 0.0  ;;  %v3474_v17 = vadd.f32 %v3466_v30, %v3454_v38  ;;  %v3513_v54 = vadd.f32 %v3505_v41, %v3493_v13  ;;  %v3336_v10 = vsel %vm13595_vm5, %v3326_v7, 0.0 }
 0x4c5   : > { %vm13597_vm14 = vnez %v13596_v5  ;;  %v3539_v56 = vmax.f32 %v3531_v37, 0.0  ;;  %v3540_v18 = vmax.f32 %v3532_v60, 0.0  ;;  %v3356_v58 = vsel %vm9493_vm9, %v3346_v9, 0.0 }
 0x4c6   : > { %v3355_v2 = vsel %vm13597_vm14, %v3345_v46, 0.0  ;;  %v3367_v57 = vmul.f32 %v10164_v8, %v10392_v14  ;;  %v3494_v51 = vadd.f32 %v3486_v61, %v3474_v17  ;;  %v3533_v28 = vadd.f32 %v3525_v42, %v3513_v54 }
 0x4c7   : > { %v3369_v30 = vmul.f32 %v10164_v8, %v3335_v39  ;;  %v3370_v50 = vmul.f32 %v10164_v8, %v3336_v10  ;;  %v3563_v41 = vpack.c.bf16 %v3540_v18, %v3539_v56  ;;  %v3389_v7 = vmul.f32 %v10167_v35, %v3315_v24 }
 0x4c8   : > { %v3390_v38 = vmul.f32 %v10167_v35, %v3316_v0  ;;  %v3395_v46 = vadd.f32 %v3387_v19, %v3367_v57  ;;  %v3514_v13 = vadd.f32 %v3506_v26, %v3494_v51  ;;  %v3541_v37 = vmax.f32 %v3533_v28, 0.0 }
 0x4c9   : > { %v3396_v60 = vadd.f32 %v3388_v11, %v3368_v21  ;;  %v3409_v48 = vmul.f32 %v10170_v4, %v3355_v2  ;;  %7614 = vmatprep.mubr.msk.bf16.mxu0 %vm13598_vm15, %v3563_v41  ;;  %v3397_v14 = vadd.f32 %v3389_v7, %v3369_v30  ;;  %v3410_v42 = vmul.f32 %v10170_v4, %v3356_v58  ;;  %v3328_v41 = vld [vmem:[#allocation3 + $0x4f] sm:$0xff] }
 0x4ca   : > { %v3398_v61 = vadd.f32 %v3390_v38, %v3370_v50  ;;  %v3415_v9 = vadd.f32 %v3407_v12, %v3395_v46  ;;  %v3534_v17 = vadd.f32 %v3526_v27, %v3514_v13  ;;  %v3427_v18 = vmul.f32 %v10174_v15, %v3334_v1  ;;  %v3327_v27 = vld [vmem:[#allocation3 + $0x47] sm:$0xff]  ;;  %v3348_v38 = vld [vmem:[#allocation3 + $0x51] sm:$0xff] }
 0x4cb   : > { %v3416_v8 = vadd.f32 %v3408_v22, %v3396_v60  ;;  %v3428_v54 = vmul.f32 %v10174_v15, %v3335_v39  ;;  %v3417_v35 = vadd.f32 %v3409_v48, %v3397_v14  ;;  %v3429_v26 = vmul.f32 %v10174_v15, %v3336_v10  ;;  %v3347_v7 = vld [vmem:[#allocation3 + $0x49] sm:$0xff] }
 0x4cc   : > { %v3418_v19 = vadd.f32 %v3410_v42, %v3398_v61  ;;  %v3447_v21 = vmul.f32 %v10177_v45, %v10423_v43  ;;  %v3542_v11 = vmax.f32 %v3534_v17, 0.0  ;;  %v3435_v56 = vadd.f32 %v3427_v18, %v3415_v9  ;;  %v3317_v48 = vld [vmem:[#allocation3 + $0x48] sm:$0xff]  ;;  %v13600_v42 = vld [vmem:[#allocation90_spill] sm:$0xff]  ;;  %v7850_v17 = vld [vmem:[%s12774_s2 + $0xec] sm:$0x3f]  }
 0x4cd   : > { %v3436_v57 = vadd.f32 %v3428_v54, %v3416_v8  ;;  %v3448_v51 = vmul.f32 %v10177_v45, %v3315_v24  ;;  %v3449_v4 = vmul.f32 %v10177_v45, %v3316_v0  ;;  %v3467_v12 = vmul.f32 %v10183_v25, %v10431_v23  ;;  %v13602_v9 = vld [vmem:[#allocation97_spill] sm:$0xff] }
 0x4ce   : > { %v3468_v1 = vmul.f32 %v10183_v25, %v3355_v2  ;;  %v3469_v22 = vmul.f32 %v10183_v25, %v3356_v58  ;;  %v3564_v28 = vpack.c.bf16 %v3542_v11, %v3541_v37  ;;  %v3455_v30 = vadd.f32 %v3447_v21, %v3435_v56  ;;  %v13607_v21 = vld [vmem:[#allocation86_spill] sm:$0xff] }
 0x4cf   : > { %v3456_v50 = vadd.f32 %v3448_v51, %v3436_v57  ;;  %v3487_v43 = vmul.f32 %v10186_v36, %v3335_v39  ;;  %v3488_v46 = vmul.f32 %v10186_v36, %v3336_v10  ;;  %v3507_v13 = vmul.f32 %v10180_v62, %v3315_v24  ;;  %v13604_v24 = vld [vmem:[#allocation95_spill] sm:$0xff] }
 0x4d0   : > { %v3508_v60 = vmul.f32 %v10180_v62, %v3316_v0  ;;  %v3527_v23 = vmul.f32 %v10412_v32, %v3355_v2  ;;  %7615 = vmatmul.mubr.msk.bf16.vlgmr.msra.gmra.mxu0 %vm13599_vm0, %v3564_v28  ;;  %v3475_v14 = vadd.f32 %v3467_v12, %v3455_v30  ;;  %v3528_v61 = vmul.f32 %v10412_v32, %v3356_v58  ;;  %v3318_v58 = vld [vmem:[#allocation3 + $0x50] sm:$0xff] }
 0x4d1   : > { %v3476_v37 = vadd.f32 %v3468_v1, %v3456_v50  ;;  %vm13601_vm12 = vnez %v13600_v42  ;;  %7623 = vmatpush3.bf16.msra.mxu0 %v10206_v16  ;;  %vm13603_vm9 = vnez %v13602_v9  ;;  %vm13605_vm11 = vnez %v13604_v24 }
 0x4d2   : > { %v3337_v39 = vsel %vm13601_vm12, %v3327_v27, 0.0  ;;  %v3338_v10 = vsel %vm13603_vm9, %v3328_v41, 0.0  ;;  %v3357_v0 = vsel %vm13605_vm11, %v3347_v7, 0.0  ;;  %v3358_v2 = vsel %vm9605_vm4, %v3348_v38, 0.0  ;;  %7624 = vmatprep.subr.bf16.mxu0 %v13607_v21  ;;  %v13609_v41 = vld [vmem:[#allocation101_spill] sm:$0xff] }
 0x4d3   : > { %v3430_v8 = vmul.f32 %v10174_v15, %v3337_v39  ;;  %v3495_v18 = vadd.f32 %v3487_v43, %v3475_v14  ;;  %v3496_v54 = vadd.f32 %v3488_v46, %v3476_v37  ;;  %v3437_v11 = vadd.f32 %v3429_v26, %v3417_v35  ;;  %v13608_v43 = vld [vmem:[#allocation105_spill] sm:$0xff] }
 0x4d4   : > { %v3450_v56 = vmul.f32 %v10177_v45, %v3317_v48  ;;  %v3470_v57 = vmul.f32 %v10183_v25, %v3357_v0  ;;  %v3489_v51 = vmul.f32 %v10186_v36, %v3337_v39  ;;  %v3490_v12 = vmul.f32 %v10186_v36, %v3338_v10  ;;  %v13613_v10 = vld [vmem:[#allocation113_spill] sm:$0xff] }
 0x4d5   : > { %v3438_v16 = vadd.f32 %v3430_v8, %v3418_v19  ;;  %v3515_v1 = vadd.f32 %v3507_v13, %v3495_v18  ;;  %v3516_v27 = vadd.f32 %v3508_v60, %v3496_v54  ;;  %v3457_v28 = vadd.f32 %v3449_v4, %v3437_v11  ;;  %7625 = vmatpush3.bf16.msra.mxu0 %v13607_v21  ;;  %v13610_v60 = vld [vmem:[#allocation106_spill] sm:$0xff]  ;;  %v13616_v8 = vld [vmem:[#allocation119_spill] sm:$0xff] }
 0x4d6   : > { %v3509_v15 = vmul.f32 %v10180_v62, %v3317_v48  ;;  %v3510_v50 = vmul.f32 %v10180_v62, %v3318_v58  ;;  %v3529_v35 = vmul.f32 %v10412_v32, %v3357_v0  ;;  %v3530_v45 = vmul.f32 %v10412_v32, %v3358_v2  ;;  %7626 = vmatprep.subr.bf16.mxu0 %v13609_v41  ;;  %v13611_v48 = vld [vmem:[#allocation107_spill] sm:$0xff]  ;;  %v13614_v0 = vld [vmem:[#allocation82_spill] sm:$0xff] }
 0x4d7   : > { %v3458_v30 = vadd.f32 %v3450_v56, %v3438_v16  ;;  %v3535_v19 = vadd.f32 %v3527_v23, %v3515_v1  ;;  %v3536_v25 = vadd.f32 %v3528_v61, %v3516_v27  ;;  %v3477_v26 = vadd.f32 %v3469_v22, %v3457_v28  ;;  %v13617_v18 = vld [vmem:[#allocation103_spill] sm:$0xff]  ;;  %v13619_v16 = vld [vmem:[#allocation9_spill] sm:$0xff] }
 0x4d8   : > { %v3201_v36 = vadd.f32 %v13608_v43, %v10362_v31  ;;  %v3202_v7 = vadd.f32 %v10303_v52, %v10364_v44  ;;  %v3240_v38 = vadd.f32 %v10324_v47, %v10366_v63  ;;  %v3259_v62 = vadd.f32 %v10339_v29, %v10345_v55  ;;  %v13612_v63 = vld [vmem:[#allocation108_spill] sm:$0xff]  ;;  %v13620_v1 = vld [vmem:[#allocation109_spill] sm:$0xff] }
 0x4d9   : > { %v3478_v4 = vadd.f32 %v3470_v57, %v3458_v30  ;;  %v3543_v46 = vmax.f32 %v3535_v19, 0.0  ;;  %v3544_v32 = vmax.f32 %v3536_v25, 0.0  ;;  %v3497_v13 = vadd.f32 %v3489_v51, %v3477_v26  ;;  %7627 = vmatpush3.bf16.msra.mxu0 %v13609_v41  ;;  %v13621_v28 = vld [vmem:[#allocation25_spill] sm:$0xff]  ;;  %v13623_v19 = vld [vmem:[#allocation114_spill] sm:$0xff] }
 0x4da   : > { %v3221_v22 = vadd.f32 %v13610_v60, %v3201_v36  ;;  %v3260_v31 = vadd.f32 %v13611_v48, %v3240_v38  ;;  %v3279_v14 = vadd.f32 %v10348_v53, %v3259_v62  ;;  %v3222_v52 = vadd.f32 %v10370_v20, %v3202_v7  ;;  %v13624_v25 = vld [vmem:[#allocation110_spill] sm:$0xff]  ;;  %v13625_v7 = vld [vmem:[#allocation92_spill] sm:$0xff]  ;;  %v13626_v62 = vld [vmem:[#allocation111_spill] sm:$0xff] }
 0x4db   : > { %v3498_v23 = vadd.f32 %v3490_v12, %v3478_v4  ;;  %v3565_v44 = vpack.c.bf16 %v3544_v32, %v3543_v46  ;;  %v3517_v37 = vadd.f32 %v3509_v15, %v3497_v13  ;;  %v3234_v55 = vmul.f32 %v10197_v34, %v10352_v3  ;;  %v13622_v15 = vld [vmem:[#allocation98_spill] sm:$0xff]  ;;  %v13627_v60 = vld [vmem:[#allocation99_spill] sm:$0xff] }
 0x4dc   : > { %v3241_v47 = vadd.f32 %v10328_v40, %v3221_v22  ;;  %v3280_v61 = vadd.f32 %v13612_v63, %v3260_v31  ;;  %v3253_v39 = vmul.f32 %v10200_v33, %v10284_v6  ;;  %v3138_v53 = vmul.f32 %v13614_v0, %v13613_v10  ;;  %v13618_v40 = vld [vmem:[#allocation7_spill] sm:$0xff] }
 0x4dd   : > { %v3518_v29 = vadd.f32 %v3510_v50, %v3498_v23  ;;  %7618 = vmatprep.mubr.msk.bf16.mxu0 %vm13615_vm8, %v3565_v44  ;;  %v3537_v2 = vadd.f32 %v3529_v35, %v3517_v37  ;;  %v3242_v20 = vadd.f32 %v3234_v55, %v3222_v52  ;;  %v3273_v54 = vmul.f32 %v13617_v18, %v13616_v8  ;;  %v13631_v52 = vld [vmem:[#allocation88_spill] sm:$0xff] }
 0x4de   : > { %v3083_v21 = vsel %vm13593_vm3, %v13618_v40, 0.0  ;;  %v3288_v11 = vmax.f32 %v3280_v61, 0.0  ;;  %v3261_v56 = vadd.f32 %v3253_v39, %v3241_v47  ;;  %v3084_v57 = vsel %vm13595_vm5, %v13619_v16, 0.0  ;;  %v13632_v47 = vld [vmem:[#allocation6_spill] sm:$0xff]  ;;  %v13633_v61 = vld [vmem:[#allocation96_spill] sm:$0xff] }
 0x4df   : > { %v3538_v58 = vadd.f32 %v3530_v45, %v3518_v29  ;;  %v3545_v51 = vmax.f32 %v3537_v2, 0.0  ;;  %v3287_v12 = vmax.f32 %v3279_v14, 0.0  ;;  %v3262_v27 = vadd.f32 %v13620_v1, %v3242_v20  ;;  %v13634_v39 = vld [vmem:[#allocation8_spill] sm:$0xff] }
 0x4e0   : > { %v3115_v30 = vmul.f32 %v13622_v15, %v13621_v28  ;;  %v3281_v35 = vadd.f32 %v3273_v54, %v3261_v56  ;;  %v3103_v49 = vsel %vm13597_vm14, %v13623_v19, 0.0  ;;  %v3116_v45 = vmul.f32 %v13622_v15, %v10352_v3  ;;  %v13636_v2 = vld [vmem:[#allocation100_spill] sm:$0xff] }
 0x4e1   : > { %v3546_v50 = vmax.f32 %v3538_v58, 0.0  ;;  %v3282_v26 = vadd.f32 %v13624_v25, %v3262_v27  ;;  %v3117_v59 = vmul.f32 %v13622_v15, %v3083_v21  ;;  %v3118_v43 = vmul.f32 %v13622_v15, %v3084_v57  ;;  %v13637_v16 = vld [vmem:[#allocation116_spill] sm:$0xff] }
 0x4e2   : > { %v3135_v36 = vmul.f32 %v13614_v0, %v10284_v6  ;;  %v3553_v4 = vpack.c.bf16 %v3288_v11, %v3287_v12  ;;  %v3137_v38 = vmul.f32 %v13614_v0, %v13625_v7  ;;  %v3144_v5 = vadd.f32 %v13626_v62, %v3116_v45  ;;  %v13629_v6 = vld [vmem:[#allocation112_spill] sm:$0xff] }
 0x4e3   : > { %v3566_v41 = vpack.c.bf16 %v3546_v50, %v3545_v51  ;;  %v3289_v46 = vmax.f32 %v3281_v35, 0.0  ;;  %v3146_v13 = vadd.f32 %v3138_v53, %v3118_v43  ;;  %v3155_v22 = vmul.f32 %v13627_v60, %v13616_v8  ;;  %v13635_v53 = vld [vmem:[#allocation104_spill] sm:$0xff]  ;;  %v13638_v35 = vld [vmem:[#allocation118_spill] sm:$0xff] }
 0x4e4   : > { %v3143_v32 = vadd.f32 %v3135_v36, %v3115_v30  ;;  %v3290_v23 = vmax.f32 %v3282_v26, 0.0  ;;  %v3145_v48 = vadd.f32 %v3137_v38, %v3117_v59  ;;  %v3157_v31 = vmul.f32 %v13627_v60, %v3103_v49  ;;  %v13639_v59 = vld [vmem:[#allocation115_spill] sm:$0xff] }
 0x4e5   : > { %7619 = vmatmul.mubr.msk.bf16.gmra.mxu0 %vm13628_vm7, %v3566_v41  ;;  %v3164_v14 = vadd.f32 %v13629_v6, %v3144_v5  ;;  %v3158_v44 = vmul.f32 %v13627_v60, %v13631_v52  ;;  %v3175_v55 = vmul.f32 %v13632_v47, %v10352_v3  ;;  %v3176_v29 = vmul.f32 %v13632_v47, %v3083_v21 }
 0x4e6   : > { %7628 = vmatprep.mubr.msk.bf16.mxu0 %vm13630_vm10, %v3553_v4  ;;  %v3163_v37 = vadd.f32 %v3155_v22, %v3143_v32  ;;  %v3165_v63 = vadd.f32 %v3157_v31, %v3145_v48  ;;  %v3195_v0 = vmul.f32 %v13634_v39, %v13633_v61  ;;  %v3215_v20 = vmul.f32 %v13636_v2, %v13635_v53 }
 0x4e7   : > { %v3217_v8 = vmul.f32 %v13636_v2, %v13631_v52  ;;  %v3166_v54 = vadd.f32 %v3158_v44, %v3146_v13  ;;  %v3184_v58 = vadd.f32 %v3176_v29, %v3164_v14  ;;  %v3196_v11 = vmul.f32 %v13634_v39, %v13625_v7 }
 0x4e8   : > { %v3183_v40 = vadd.f32 %v3175_v55, %v3163_v37  ;;  %v3554_v56 = vpack.c.bf16 %v3290_v23, %v3289_v46  ;;  %v3177_v3 = vmul.f32 %v13632_v47, %v3084_v57  ;;  %v3085_v51 = vsel %vm13601_vm12, %v13637_v16, 0.0 }
 0x4e9   : > { %v3197_v12 = vmul.f32 %v13634_v39, %v13613_v10  ;;  %v3204_v27 = vadd.f32 %v3196_v11, %v3184_v58  ;;  %v3216_v28 = vmul.f32 %v13636_v2, %v3103_v49  ;;  %v3178_v15 = vmul.f32 %v13632_v47, %v3085_v51 }
 0x4ea   : > { %v3203_v1 = vadd.f32 %v3195_v0, %v3183_v40  ;;  %v3235_v30 = vmul.f32 %v10197_v34, %v3083_v21  ;;  %v3236_v50 = vmul.f32 %v10197_v34, %v3084_v57  ;;  %v3105_v19 = vsel %vm13605_vm11, %v13638_v35, 0.0  ;;  %v13641_v57 = vld [vmem:[#allocation117_spill] sm:$0xff] }
 0x4eb   : > { %v3185_v45 = vadd.f32 %v3177_v3, %v3165_v63  ;;  %v3224_v25 = vadd.f32 %v3216_v28, %v3204_v27  ;;  %v3186_v26 = vadd.f32 %v3178_v15, %v3166_v54  ;;  %v3198_v43 = vmul.f32 %v13634_v39, %v13639_v59  ;;  %v13644_v63 = vld [vmem:[#allocation102_spill] sm:$0xff] }
 0x4ec   : > { %v3223_v42 = vadd.f32 %v3215_v20, %v3203_v1  ;;  %v3255_v36 = vmul.f32 %v10200_v33, %v13625_v7  ;;  %v3256_v21 = vmul.f32 %v10200_v33, %v13613_v10  ;;  %v3086_v24 = vsel %vm13603_vm9, %v13641_v57, 0.0  ;;  %v7852_v1 = vld [vmem:[%s12774_s2 + $0xe4] sm:$0xf8]  }
 0x4ed   : > { %7629 = vmatmul.mubr.msk.bf16.vlgmr.msra.gmra.mxu0 %vm13640_vm1, %v3554_v56  ;;  %v3205_v41 = vadd.f32 %v3197_v12, %v3185_v45  ;;  %v3244_v38 = vadd.f32 %v3236_v50, %v3224_v25  ;;  %v3206_v62 = vadd.f32 %v3198_v43, %v3186_v26  ;;  %v3218_v5 = vmul.f32 %v13636_v2, %v3105_v19 }
 0x4ee   : > { %v3243_v4 = vadd.f32 %v3235_v30, %v3223_v42  ;;  %v3275_v46 = vmul.f32 %v13617_v18, %v3103_v49  ;;  %v3276_v32 = vmul.f32 %v13617_v18, %v13631_v52  ;;  %v3237_v7 = vmul.f32 %v10197_v34, %v3085_v51  ;;  %v13642_v49 = vld [vmem:[#allocation91_spill] sm:$0xff]  ;;  %v7853_v30 = vld [vmem:[%s12774_s2 + $0xf8] sm:$0xf8]  }
 0x4ef   : > { %v3225_v13 = vadd.f32 %v3217_v8, %v3205_v41  ;;  %v3264_v10 = vadd.f32 %v3256_v21, %v3244_v38  ;;  %v3226_v22 = vadd.f32 %v3218_v5, %v3206_v62  ;;  %v3238_v9 = vmul.f32 %v10197_v34, %v3086_v24  ;;  %v7851_v8 = vld [vmem:[%s12774_s2 + $0x100] sm:$0x3f]  }
 0x4f0   : > { %v3263_v60 = vadd.f32 %v3255_v36, %v3243_v4  ;;  %v3257_v48 = vmul.f32 %v10200_v33, %v13639_v59  ;;  %v13643_v44 = vsel %vm9605_vm4, %v13642_v49, 0.0  ;;  %v3277_v47 = vmul.f32 %v13617_v18, %v3105_v19  ;;  %v7854_v59 = vld [vmem:[%s12774_s2 + $0xf8] ss:$0 sps:$4 sm:$0xff]  }
 0x4f1   : > { %v3245_v23 = vadd.f32 %v3237_v7, %v3225_v13  ;;  %v3284_v6 = vadd.f32 %v3276_v32, %v3264_v10  ;;  %v3246_v14 = vadd.f32 %v3238_v9, %v3226_v22  ;;  %v3278_v52 = vmul.f32 %v13617_v18, %v13643_v44  ;;  %v7855_v10 = vld [vmem:[%s12774_s2 + $0xf0] sm:$0xfe]  }
 0x4f2   : > { %v3283_v31 = vadd.f32 %v3275_v46, %v3263_v60  ;;  %v3859_v20 = vshrl.u32 %v7850_v17, 16  ;;  %v3862_v18 = vshll.u32 %v7850_v17, 16  ;;  %v4100_v58 = vshrl.u32 %v7851_v8, 16 }
 0x4f3   : > { %v3265_v37 = vadd.f32 %v3257_v48, %v3245_v23  ;;  %v3292_v29 = vmax.f32 %v3284_v6, 0.0  ;;  %v3266_v34 = vadd.f32 %v13644_v63, %v3246_v14  ;;  %v4103_v11 = vshll.u32 %v7851_v8, 16  ;;  %v7856_v14 = vld [vmem:[%s12774_s2 + $0x10c] ss:$0 sps:$4 sm:$0xff]  }
 0x4f4   : > { %v3291_v55 = vmax.f32 %v3283_v31, 0.0  ;;  %v3861_v54 = vrot.slane %v3859_v20, 3  ;;  %v3864_v40 = vrot.slane %v3862_v18, 4  ;;  %v4102_v3 = vrot.slane %v4100_v58, 3 }
 0x4f5   : > { %v3285_v61 = vadd.f32 %v3277_v47, %v3265_v37  ;;  %v3286_v0 = vadd.f32 %v3278_v52, %v3266_v34  ;;  %v4105_v16 = vrot.slane %v4103_v11, 4  ;;  %vm13647_vm4 = vcmask 1041408  }
 0x4f6   : > { %v3555_v39 = vpack.c.bf16 %v3292_v29, %v3291_v55  ;;  %v3865_v56 = vor.u32 %v3864_v40, %v3861_v54  ;;  %vm13648_vm2 = vmmov %vm13647_vm4  ;;  %v3851_v28 = vshrl.u32 %v7852_v1, 16  ;;  %v3854_v15 = vshll.u32 %v7852_v1, 16 }
 0x4f7   : > { %v3293_v33 = vmax.f32 %v3285_v61, 0.0  ;;  %v3294_v53 = vmax.f32 %v3286_v0, 0.0  ;;  %v4106_v12 = vor.u32 %v4105_v16, %v4102_v3  ;;  %vm13649_vm3 = vmmov %vm13648_vm2  ;;  %v4092_v19 = vshrl.u32 %v7853_v30, 16 }
 0x4f8   : > { %7632 = vmatprep.mubr.msk.bf16.mxu0 %vm13645_vm6, %v3555_v39  ;;  %7797 = vmatprep.subr.msk.bf16.mxu1 %vm13647_vm4, %v3865_v56  ;;  %v3881_v51 = vsel %vm13648_vm2, %v3865_v56, 0  ;;  %vm13650_vm5 = vmmov %vm13648_vm2  ;;  %v3853_v50 = vrot.slane %v3851_v28, 3  ;;  %v3856_v35 = vrot.slane %v3854_v15, 4  ;;  %v4095_v45 = vshll.u32 %v7853_v30, 16 }
 0x4f9   : > { %v3556_v2 = vpack.c.bf16 %v3294_v53, %v3293_v33  ;;  %7637 = vmatpush3.bf16.msra.mxu1 %v3881_v51  ;;  %7799 = vmatprep.subr.msk.bf16.mxu0 %vm13649_vm3, %v4106_v12  ;;  %v4110_v27 = vsel %vm13650_vm5, %v4106_v12, 0  ;;  %v4094_v25 = vrot.slane %v4092_v19, 3  ;;  %vm13651_vm14 = vsmask.f32 4352  ;;  %vm13653_vm0 = vmmov %vm13648_vm2  ;;  %v7857_v51 = vld [vmem:[%s12774_s2 + $0x104] sm:$0xfe]  }
 0x4fa   : > { %7661 = vmatpush3.bf16.msra.mxu0 %v4110_v27  ;;  %v3857_v42 = vor.u32 %v3856_v35, %v3853_v50  ;;  %v4097_v26 = vrot.slane %v4095_v45, 4  ;;  %v3984_v21 = vshrl.u32 %v7854_v59, 16  ;;  %v3987_v57 = vshll.u32 %v7854_v59, 16  ;;  %vm13652_vm15 = vmmov %vm13651_vm14 }
 0x4fb   : > { %7633 = vmatmul.mubr.msk.bf16.gmra.mxu0 %vm13646_vm13, %v3556_v2  ;;  %v3976_v23 = vshrl.u32 %v7855_v10, 16  ;;  %v3979_v48 = vshll.u32 %v7855_v10, 16  ;;  %v4213_v34 = vshrl.u32 %v7856_v14, 16  ;;  %v4216_v61 = vshll.u32 %v7856_v14, 16  ;;  %vm13654_vm12 = vmmov %vm13653_vm0 }
 0x4fc   : > { %v3866_v43 = vsel %vm13651_vm14, %v3857_v42, %v3865_v56  ;;  %v4098_v36 = vor.u32 %v4097_v26, %v4094_v25  ;;  %v3986_v41 = vrot.slane %v3984_v21, 1  ;;  %v3989_v4 = vrot.slane %v3987_v57, 2  ;;  %vm13660_vm1 = vmmov %vm13653_vm0  ;;  %v10667_v21 = vld [vmem:[%s12773_s1 + $0x2d] sm:$0xff] }
 0x4fd   : > { %7638 = vmatprep.subr.bf16.mxu1 %v3866_v43  ;;  %v3978_v52 = vrot.slane %v3976_v23, 1  ;;  %v3981_v37 = vrot.slane %v3979_v48, 2  ;;  %v4215_v18 = vrot.slane %v4213_v34, 1  ;;  %v4218_v8 = vrot.slane %v4216_v61, 2  ;;  %vm13666_vm5 = vmmov %vm13653_vm0  ;;  %v7858_v57 = vld [vmem:[%s12774_s2 + $0x114] sm:$0x3f]  }
 0x4fe   : > { %7639 = vmatpush3.bf16.msra.mxu1 %v3866_v43  ;;  %v4107_v24 = vsel %vm13652_vm15, %v4098_v36, %v4106_v12  ;;  %v3990_v38 = vor.u32 %v3989_v4, %v3986_v41  ;;  %vm13655_vm9 = vcmask 162816   ;;  %vm13657_vm8 = vsmask.f32 6400  ;;  %v10675_v41 = vld [vmem:[#allocation2 + $0xf] sm:$0xff]  ;;  %v13682_v23 = vld [vmem:[#allocation10_spill] sm:$0xff] }
 0x4ff   : > { %7662 = vmatprep.subr.bf16.mxu0 %v4107_v24  ;;  %v3982_v33 = vor.u32 %v3981_v37, %v3978_v52  ;;  %vm13656_vm11 = vmmov %vm13655_vm9  ;;  %v4219_v58 = vor.u32 %v4218_v8, %v4215_v18  ;;  %v4205_v50 = vshrl.u32 %v7857_v51, 16  ;;  %v4208_v35 = vshll.u32 %v7857_v51, 16  ;;  %v4308_v4 = vld [vmem:[#allocation2 + $0x8] sm:$0xff] }
 0x500   : > { %7663 = vmatpush3.bf16.msra.mxu0 %v4107_v24  ;;  %7798 = vmatprep.subr.msk.bf16.mxu1 %vm13653_vm0, %v3990_v38  ;;  %v3994_v20 = vsel %vm13654_vm12, %v3990_v38, 0  ;;  %vm13658_vm7 = vmmov %vm13655_vm9  ;;  %v7859_v24 = vld [vmem:[%s12774_s2 + $0x120] ss:$0 sps:$4 sm:$0xff]   ;;  %v13677_v10 = vmov 0.0   ;;  %v10691_v48 = vrot.slane %v10667_v21, %v13682_v23  ;;  %v7860_v34 = vld [vmem:[%s12774_s2 + $0x10c] sm:$0xf8]  }
 0x501   : > { %v3991_v54 = vsel %vm13657_vm8, %v3982_v33, %v3990_v38  ;;  %vm13659_vm10 = vmmov %vm13658_vm7  ;;  %v4207_v25 = vrot.slane %v4205_v50, 1  ;;  %v4210_v26 = vrot.slane %v4208_v35, 2  ;;  %v4223_v43 = vsel %vm13666_vm5, %v4219_v58, 0  ;;  %v4344_v38 = vld [vmem:[#allocation2 + $0x7] sm:$0xff] }
 0x502   : > { %vm13661_vm6 = vmmov %vm13658_vm7  ;;  %13683 = vst [vmem:[#allocation94_spill] sm:$0xff] %v10691_v48  ;;  %v6284_v61 = vshrl.u32 %v7860_v34, 16 }
 0x503   : > { %vm13662_vm13 = vmmov %vm13661_vm6  ;;  %v4211_v59 = vor.u32 %v4210_v26, %v4207_v25 }
 0x504   : > { %vm13663_vm4 = vmmov %vm13661_vm6  ;;  %v6286_v33 = vrot.slane %v6284_v61, 3 }
 0x505   : > { %vm13664_vm2 = vmmov %vm13663_vm4 }
 0x506   : > { %vm13665_vm3 = vmmov %vm13664_vm2 }
 0x507   : > { %vm13667_vm14 = vmmov %vm13657_vm8 }
 0x508   : > { %v4220_v36 = vsel %vm13667_vm14, %v4211_v59, %v4219_v58  ;;  %vm13668_vm15 = vmmov %vm13664_vm2 }
 0x509   : > { %vm13669_vm0 = vmmov %vm13664_vm2 }
 0x50a   : > { %vm13670_vm12 = vmmov %vm13669_vm0 }
 0x50b   : > { %vm13673_vm8 = vmmov %vm13669_vm0 }
 0x590   : > { %v7616_v62 = vpop.f32.mrf.mxu0 }
 0x592   : > { %v3659_v5 = vpop.f32.mrf.mxu0 }
 0x594   : > { %v7617_v46 = vpop.f32.mrf.mxu0 }
 0x596   : > { %v3662_v32 = vpop.f32.mrf.mxu0 }
 0x5a5   : > { %v7620_v13 = vpop.f32.mrf.mxu0 }
 0x5a7   : > { %v3675_v7 = vpop.f32.mrf.mxu0 }
 0x5a9   : > { %v7621_v60 = vpop.f32.mrf.mxu0 }
 0x5ab   : > { %v3678_v22 = vpop.f32.mrf.mxu0 }
 0x5ad   : > { %v7630_v9 = vpop.f32.mrf.mxu0 }
 0x5ae   : > { %v3791_v47 = vadd.f32 %v7630_v9, %v7616_v62  ;;  %v10677_v62 = vld [vmem:[#allocation2 + $0x9] sm:$0xff] }
 0x5af   : > { %v3782_v31 = vpop.f32.mrf.mxu0 }
 0x5b0   : > { %v3783_v49 = vadd.f32 %v3782_v31, %v3659_v5  ;;  %v3815_v53 = vmax.f32 %v3791_v47, 0.0  ;;  %v13675_v5 = vld [vmem:[#allocation11_spill] sm:$0xff] }
 0x5b1   : > { %v7631_v6 = vpop.f32.mrf.mxu0 }
 0x5b2   : > { %v3794_v44 = vadd.f32 %v7631_v6, %v7617_v46  ;;  %v3813_v39 = vmax.f32 %v3783_v49, 0.0  ;;  %v10681_v46 = vrot.slane %v10667_v21, %v13675_v5 }
 0x5b3   : > { %v3785_v55 = vpop.f32.mrf.mxu0 }
 0x5b4   : > { %v3786_v29 = vadd.f32 %v3785_v55, %v3662_v32  ;;  %v3816_v63 = vmax.f32 %v3794_v44, 0.0  ;;  %13676 = vst [vmem:[#allocation24_spill] sm:$0xff] %v10681_v46  ;;  %v6292_v32 = vshrl.u32 %v7858_v57, 16  ;;  %v4560_v31 = vmul.f32 %v10681_v46, %v4308_v4 }
 0x5b6   : > { %v3814_v0 = vmax.f32 %v3786_v29, 0.0  ;;  %v3829_v17 = vpack.c.bf16 %v3816_v63, %v3815_v53  ;;  %v6294_v6 = vrot.slane %v6292_v32, 3 }
 0x5b8   : > { %v3828_v2 = vpack.c.bf16 %v3814_v0, %v3813_v39  ;;  %v6287_v39 = vshll.u32 %v7860_v34, 16  ;;  %v7861_v0 = vld [vmem:[%s12774_s2 + $0x118] sm:$0xfe]  }
 0x5ba   : > { %7640 = vmatprep.mubr.msk.bf16.mxu1 %vm13655_vm9, %v3828_v2  ;;  %7664 = vmatprep.mubr.msk.bf16.mxu0 %vm13656_vm11, %v3828_v2  ;;  %vm13671_vm9 = vmmov %vm13669_vm0  ;;  %v6289_v53 = vrot.slane %v6287_v39, 4  ;;  %v13689_v39 = vld [vmem:[#allocation13_spill] sm:$0xff] }
 0x5bb   : > { %7641 = vmatmul.mubr.msk.bf16.vlgmr.msra.gmra.mxu1 %vm13658_vm7, %v3829_v17  ;;  %7665 = vmatmul.mubr.msk.bf16.vlgmr.msra.gmra.mxu0 %vm13659_vm10, %v3829_v17  ;;  %v7634_v40 = vpop.f32.mrf.mxu0  ;;  %vm13672_vm11 = vmmov %vm13669_vm0 }
 0x5bc   : > { %7649 = vmatpush3.bf16.msra.mxu1 %v3994_v20  ;;  %v3807_v12 = vadd.f32 %v7634_v40, %v7620_v13  ;;  %vm13674_vm7 = vmmov %vm13669_vm0  ;;  %v6295_v13 = vshll.u32 %v7858_v57, 16  ;;  %v6290_v20 = vor.u32 %v6289_v53, %v6286_v33 }
 0x5bd   : > { %7650 = vmatprep.subr.bf16.mxu1 %v3991_v54  ;;  %v3798_v11 = vpop.f32.mrf.mxu0  ;;  %vm13678_vm10 = vmmov %vm13669_vm0 }
 0x5be   : > { %v3799_v3 = vadd.f32 %v3798_v11, %v3675_v7  ;;  %v3819_v19 = vmax.f32 %v3807_v12, 0.0  ;;  %v6052_v7 = vshrl.u32 %v7859_v24, 16  ;;  %5132 = vst.msk [vmem:[#allocation2] sm:$0xff] %vm13678_vm10, %v13677_v10  ;;  %v6297_v14 = vrot.slane %v6295_v13, 4  ;;  %v10712_v11 = vld [vmem:[%s12773_s1 + $0x40] ss:$0 sm:$0xff] }
 0x5bf   : > { %v7635_v56 = vpop.f32.mrf.mxu0 }
 0x5c0   : > { %7651 = vmatpush3.bf16.msra.mxu1 %v3991_v54  ;;  %v3810_v16 = vadd.f32 %v7635_v56, %v7621_v60  ;;  %v3817_v15 = vmax.f32 %v3799_v3, 0.0  ;;  %v6055_v60 = vshll.u32 %v7859_v24, 16  ;;  %v6054_v49 = vrot.slane %v6052_v7, 1 }
 0x5c1   : > { %7800 = vmatprep.subr.msk.bf16.mxu1 %vm13660_vm1, %v4219_v58  ;;  %v3801_v1 = vpop.f32.mrf.mxu0  ;;  %vm13679_vm1 = vmmov %vm13669_vm0  ;;  %v6298_v37 = vor.u32 %v6297_v14, %v6294_v6 }
 0x5c2   : > { %v3802_v27 = vadd.f32 %v3801_v1, %v3678_v22  ;;  %v3820_v28 = vmax.f32 %v3810_v16, 0.0  ;;  %5133 = vst.msk [vmem:[#allocation2 + $0x8] sm:$0xff] %vm13679_vm1, %v13677_v10  ;;  %v13680_v22 = vld [vmem:[#allocation12_spill] sm:$0xff]  ;;  %v6057_v44 = vrot.slane %v6055_v60, 2  ;;  %vm13736_vm10 = vmmov %vm13679_vm1 }
 0x5c4   : > { %v3818_v30 = vmax.f32 %v3802_v27, 0.0  ;;  %v3831_v42 = vpack.c.bf16 %v3820_v28, %v3819_v19  ;;  %v6058_v47 = vor.u32 %v6057_v44, %v6054_v49  ;;  %v4309_v49 = vld [vmem:[#allocation2 + $0x10] sm:$0xff] }
 0x5c5   : > { %v5170_v44 = vld [vmem:[%s12773_s1 + $0x36] sm:$0xff]  ;;  %v4561_v61 = vmul.f32 %v10681_v46, %v4309_v49  ;;  %v13708_v49 = vld [vmem:[#allocation43_spill] sm:$0xff] }
 0x5c6   : > { %v3830_v45 = vpack.c.bf16 %v3818_v30, %v3817_v15  ;;  %v10742_v33 = vrot.slane %v5170_v44, %v13682_v23  ;;  %v10745_v53 = vrot.slane %v5170_v44, %v13675_v5 }
 0x5c8   : > { %7644 = vmatprep.mubr.msk.bf16.mxu1 %vm13661_vm6, %v3830_v45  ;;  %7668 = vmatprep.mubr.msk.bf16.mxu0 %vm13662_vm13, %v3830_v45  ;;  %vm13681_vm6 = vnez %v13680_v22  ;;  %vm13684_vm13 = vmmov %vm13666_vm5 }
 0x5c9   : > { %7645 = vmatmul.mubr.msk.bf16.gmra.mxu1 %vm13663_vm4, %v3831_v42  ;;  %7669 = vmatmul.mubr.msk.bf16.gmra.mxu0 %vm13664_vm2, %v3831_v42  ;;  %v4380_v9 = vsel %vm13681_vm6, %v4344_v38, 0.0  ;;  %vm13685_vm4 = vmmov %vm13666_vm5  ;;  %vm13688_vm5 = vsmask.f32 4352 }
 0x5ca   : > { %7652 = vmatprep.mubr.msk.bf16.mxu1 %vm13665_vm3, %v3828_v2  ;;  %v4492_v52 = vmul.f32 %v10691_v48, %v4380_v9  ;;  %v6350_v29 = vsel %vm13685_vm4, %v6298_v37, 0  ;;  %vm13686_vm2 = vmmov %vm13685_vm4  ;;  %v6299_v54 = vsel %vm13688_vm5, %v6290_v20, %v6298_v37 }
 0x5cb   : > { %7801 = vmatprep.subr.msk.bf16.mxu0 %vm13686_vm2, %v6058_v47  ;;  %vm13687_vm3 = vmmov %vm13686_vm2 }
 0x5cc   : > { %v10695_v55 = vadd.f32 %v4560_v31, %v4492_v52  ;;  %v6110_v63 = vsel %vm13687_vm3, %v6058_v47, 0  ;;  %vm13752_vm2 = vmmov %vm13679_vm1 }
 0x5cd   : > { %7685 = vmatpush3.bf16.msra.mxu0 %v6110_v63  ;;  %v4493_v63 = vmul.f32 %v10691_v48, %v10675_v41  ;;  %vm13756_vm3 = vmmov %vm13679_vm1 }
 0x5ce   : > { %vm13758_vm5 = vmmov %vm13679_vm1 }
 0x5cf   : > { %v4593_v5 = vadd.f32 %v4561_v61, %v4493_v63 }
 0x5d1   : > { %7653 = vmatmul.mubr.msk.bf16.vlgmr.msra.gmra.mxu1 %vm13668_vm15, %v3829_v17 }
 0x5d2   : > { %7673 = vmatpush3.bf16.msra.mxu1 %v4223_v43  ;;  %7656 = vmatprep.mubr.msk.bf16.mxu1 %vm13669_vm0, %v3830_v45  ;;  %vm13709_vm0 = vnez %v13708_v49 }
 0x5d3   : > { %7674 = vmatprep.subr.bf16.mxu1 %v4220_v36 }
 0x5d6   : > { %7675 = vmatpush3.bf16.msra.mxu1 %v4220_v36 }
 0x5d7   : > { %7802 = vmatprep.subr.msk.bf16.mxu1 %vm13684_vm13, %v6298_v37  ;;  %v5208_v37 = vld [vmem:[#allocation2 + $0x7] sm:$0xff]  ;;  %vm13747_vm13 = vmmov %vm13679_vm1 }
 0x5d8   : > { %v5244_v41 = vsel %vm13681_vm6, %v5208_v37, 0.0 }
 0x5d9   : > { %7657 = vmatmul.mubr.msk.bf16.gmra.mxu1 %vm13670_vm12, %v3831_v42 }
 0x5da   : > { %7676 = vmatprep.mubr.msk.bf16.mxu1 %vm13671_vm9, %v3828_v2  ;;  %v6044_v2 = vshrl.u32 %v7861_v0, 16  ;;  %vm13715_vm9 = vmmov %vm13679_vm1 }
 0x5dc   : > { %v6046_v18 = vrot.slane %v6044_v2, 1 }
 0x5e1   : > { %7677 = vmatmul.mubr.msk.bf16.vlgmr.msra.gmra.mxu1 %vm13672_vm11, %v3829_v17  ;;  %v6047_v17 = vshll.u32 %v7861_v0, 16  ;;  %v10739_v0 = vrot.slane %v10667_v21, %v13689_v39 }
 0x5e2   : > { %7680 = vmatprep.mubr.msk.bf16.mxu1 %vm13673_vm8, %v3830_v45  ;;  %7721 = vmatpush3.bf16.msra.mxu1 %v6350_v29  ;;  %vm13719_vm8 = vmmov %vm13679_vm1 }
 0x5e3   : > { %v6049_v8 = vrot.slane %v6047_v17, 2  ;;  %7722 = vmatprep.subr.bf16.mxu1 %v6299_v54  ;;  %13690 = vst [vmem:[#allocation90_spill] sm:$0xff] %v10739_v0  ;;  %v5172_v17 = vld [vmem:[#allocation2 + $0x8] sm:$0xff] }
 0x5e5   : > { %v6050_v40 = vor.u32 %v6049_v8, %v6046_v18  ;;  %v13691_v18 = vld [vmem:[#allocation21_spill] sm:$0xff] }
 0x5e6   : > { %7723 = vmatpush3.bf16.msra.mxu1 %v6299_v54  ;;  %vm13692_vm15 = vnez %v13691_v18  ;;  %v4628_v54 = vmul.f32 %v10739_v0, %v10677_v62 }
 0x5e7   : > { %v6059_v58 = vsel %vm13667_vm14, %v6050_v40, %v6058_v47  ;;  %vm13760_vm14 = vmmov %vm13679_vm1 }
 0x5e8   : > { %7686 = vmatprep.subr.bf16.mxu0 %v6059_v58 }
 0x5e9   : > { %7681 = vmatmul.mubr.msk.bf16.gmra.mxu1 %vm13674_vm7, %v3831_v42  ;;  %7687 = vmatpush3.bf16.msra.mxu0 %v6059_v58  ;;  %v5356_v58 = vmul.f32 %v10742_v33, %v5244_v41 }
 0x67b   : > { %v7642_v56 = vpop.f32.mrf.mxu1  ;;  %v7666_v3 = vpop.f32.mrf.mxu0 }
 0x67c   : > { %v3926_v16 = vadd.f32 %v7642_v56, %v10712_v11  ;;  %v4155_v51 = vadd.f32 %v7666_v3, %v10712_v11  ;;  %v5424_v56 = vmul.f32 %v10745_v53, %v5172_v17 }
 0x67d   : > { %v3917_v12 = vpop.f32.mrf.mxu1  ;;  %v4146_v1 = vpop.f32.mrf.mxu0 }
 0x67e   : > { %3953 = vst [vmem:[#allocation2 + $0x58] ss:$2 sm:$0xff] %v3926_v16  ;;  %4182 = vst [vmem:[#allocation2 + $0x68] ss:$2 sm:$0xff] %v4155_v51  ;;  %v3918_v27 = vadd.f32 %v10712_v11, %v3917_v12  ;;  %v4147_v28 = vadd.f32 %v10712_v11, %v4146_v1  ;;  %v13693_v16 = vld [vmem:[#allocation14_spill] sm:$0xff]  ;;  %v13694_v12 = vld [vmem:[#allocation15_spill] sm:$0xff] }
 0x67f   : > { %v7643_v15 = vpop.f32.mrf.mxu1  ;;  %v7667_v30 = vpop.f32.mrf.mxu0  ;;  %v10761_v51 = vrot.slane %v10667_v21, %v13693_v16  ;;  %v10765_v62 = vrot.slane %v10667_v21, %v13694_v12 }
 0x680   : > { %3949 = vst [vmem:[#allocation2 + $0x18] ss:$2 sm:$0xff] %v3918_v27  ;;  %4178 = vst [vmem:[#allocation2 + $0x28] ss:$2 sm:$0xff] %v4147_v28  ;;  %v3929_v50 = vadd.f32 %v7643_v15, %v10712_v11  ;;  %v4158_v35 = vadd.f32 %v7667_v30, %v10712_v11  ;;  %v4660_v27 = vadd.f32 %v4628_v54, %v10695_v55  ;;  %v13696_v28 = vld [vmem:[#allocation16_spill] sm:$0xff]  ;;  %v13697_v30 = vld [vmem:[#allocation17_spill] sm:$0xff] }
 0x681   : > { %v3920_v19 = vpop.f32.mrf.mxu1  ;;  %v4149_v45 = vpop.f32.mrf.mxu0  ;;  %13695 = vst [vmem:[#allocation97_spill] sm:$0xff] %v10765_v62  ;;  %v10770_v15 = vrot.slane %v10667_v21, %v13696_v28  ;;  %v10785_v55 = vrot.slane %v5170_v44, %v13693_v16 }
 0x682   : > { %3955 = vst [vmem:[#allocation2 + $0x78] ss:$2 sm:$0xff] %v3929_v50  ;;  %4184 = vst [vmem:[#allocation2 + $0x88] ss:$2 sm:$0xff] %v4158_v35  ;;  %v3921_v42 = vadd.f32 %v10712_v11, %v3920_v19  ;;  %v4150_v25 = vadd.f32 %v10712_v11, %v4149_v45  ;;  %v10774_v50 = vrot.slane %v10667_v21, %v13697_v30  ;;  %v13699_v35 = vld [vmem:[#allocation18_spill] sm:$0xff] }
 0x683   : > { %v10778_v19 = vrot.slane %v10667_v21, %v13699_v35  ;;  %v10796_v21 = vrot.slane %v5170_v44, %v13697_v30 }
 0x684   : > { %3951 = vst [vmem:[#allocation2 + $0x38] ss:$2 sm:$0xff] %v3921_v42  ;;  %4180 = vst [vmem:[#allocation2 + $0x48] ss:$2 sm:$0xff] %v4150_v25  ;;  %v10782_v42 = vrot.slane %v5170_v44, %v13689_v39  ;;  %v10788_v25 = vrot.slane %v5170_v44, %v13694_v12 }
 0x685   : > { %13698 = vst [vmem:[#allocation95_spill] sm:$0xff] %v10774_v50  ;;  %13700 = vst [vmem:[#allocation93_spill] sm:$0xff] %v10778_v19 }
 0x686   : > { %13702 = vst [vmem:[#allocation105_spill] sm:$0xff] %v10796_v21 }
 0x687   : > { %v4417_v29 = vld [vmem:[#allocation2 + $0x11] sm:$0xff] }
 0x688   : > { %v4453_v8 = vsel %vm13692_vm15, %v4417_v29, 0.0 }
 0x689   : > { %v7646_v26 = vpop.f32.mrf.mxu1  ;;  %v7670_v59 = vpop.f32.mrf.mxu0  ;;  %v4629_v3 = vmul.f32 %v10739_v0, %v4453_v8  ;;  %v13716_v8 = vld [vmem:[#allocation22_spill] sm:$0xff] }
 0x68a   : > { %v3942_v43 = vadd.f32 %v7646_v26, %v10712_v11  ;;  %v4171_v36 = vadd.f32 %v7670_v59, %v10712_v11  ;;  %v10790_v59 = vadd.f32 %v5424_v56, %v5356_v58  ;;  %vm13717_vm11 = vnez %v13716_v8 }
 0x68b   : > { %v3933_v57 = vpop.f32.mrf.mxu1  ;;  %v4162_v24 = vpop.f32.mrf.mxu0 }
 0x68c   : > { %3961 = vst [vmem:[#allocation2 + $0xd8] ss:$2 sm:$0xff] %v3942_v43  ;;  %4190 = vst [vmem:[#allocation2 + $0xe8] ss:$2 sm:$0xff] %v4171_v36  ;;  %v3934_v4 = vadd.f32 %v10712_v11, %v3933_v57  ;;  %v4163_v38 = vadd.f32 %v10712_v11, %v4162_v24  ;;  %v10793_v43 = vrot.slane %v5170_v44, %v13696_v28 }
 0x68d   : > { %v7647_v32 = vpop.f32.mrf.mxu1  ;;  %v7671_v13 = vpop.f32.mrf.mxu0  ;;  %v10799_v36 = vrot.slane %v5170_v44, %v13699_v35 }
 0x68e   : > { %3957 = vst [vmem:[#allocation2 + $0x98] ss:$2 sm:$0xff] %v3934_v4  ;;  %4186 = vst [vmem:[#allocation2 + $0xa8] ss:$2 sm:$0xff] %v4163_v38  ;;  %v3945_v7 = vadd.f32 %v7647_v32, %v10712_v11  ;;  %v4174_v60 = vadd.f32 %v7671_v13, %v10712_v11  ;;  %v4661_v32 = vadd.f32 %v4629_v3, %v4593_v5  ;;  %v13718_v5 = vld [vmem:[#allocation35_spill] sm:$0xff] }
 0x68f   : > { %v3936_v9 = vpop.f32.mrf.mxu1  ;;  %v4165_v31 = vpop.f32.mrf.mxu0  ;;  %13701 = vst [vmem:[#allocation86_spill] sm:$0xff] %v10793_v43  ;;  %13703 = vst [vmem:[#allocation101_spill] sm:$0xff] %v10799_v36  ;;  %v13766_v43 = vld [vmem:[#allocation85_spill] sm:$0xff] }
 0x690   : > { %3963 = vst [vmem:[#allocation2 + $0xf8] ss:$2 sm:$0xff] %v3945_v7  ;;  %4192 = vst [vmem:[#allocation2 + $0x108] ss:$2 sm:$0xff] %v4174_v60  ;;  %v3937_v6 = vadd.f32 %v10712_v11, %v3936_v9  ;;  %v4166_v14 = vadd.f32 %v10712_v11, %v4165_v31 }
 0x691   : > { %v7654_v52 = vpop.f32.mrf.mxu1 }
 0x692   : > { %3959 = vst [vmem:[#allocation2 + $0xb8] ss:$2 sm:$0xff] %v3937_v6  ;;  %4188 = vst [vmem:[#allocation2 + $0xc8] ss:$2 sm:$0xff] %v4166_v14  ;;  %v4039_v47 = vadd.f32 %v7654_v52, %v10712_v11 }
 0x693   : > { %v4030_v34 = vpop.f32.mrf.mxu1 }
 0x694   : > { %4066 = vst [vmem:[#allocation2 + $0x59] ss:$2 sm:$0xff] %v4039_v47  ;;  %v4031_v2 = vadd.f32 %v10712_v11, %v4030_v34  ;;  %v13713_v34 = vld [vmem:[#allocation19_spill] sm:$0xff] }
 0x695   : > { %v7655_v20 = vpop.f32.mrf.mxu1  ;;  %vm13714_vm12 = vnez %v13713_v34 }
 0x696   : > { %4062 = vst [vmem:[#allocation2 + $0x19] ss:$2 sm:$0xff] %v4031_v2  ;;  %v4042_v23 = vadd.f32 %v7655_v20, %v10712_v11 }
 0x697   : > { %v4033_v40 = vpop.f32.mrf.mxu1 }
 0x698   : > { %4068 = vst [vmem:[#allocation2 + $0x79] ss:$2 sm:$0xff] %v4042_v23  ;;  %v4034_v22 = vadd.f32 %v10712_v11, %v4033_v40 }
 0x699   : > { %v7658_v1 = vpop.f32.mrf.mxu1 }
 0x69a   : > { %4064 = vst [vmem:[#allocation2 + $0x39] ss:$2 sm:$0xff] %v4034_v22  ;;  %v4055_v45 = vadd.f32 %v7658_v1, %v10712_v11 }
 0x69b   : > { %v4046_v26 = vpop.f32.mrf.mxu1  ;;  %v10801_v57 = vld [vmem:[#allocation2 + $0x58] sm:$0xff]  ;;  %v10803_v24 = vld [vmem:[#allocation2 + $0x60] sm:$0xff] }
 0x69c   : > { %13704 = vst [vmem:[#allocation106_spill] sm:$0xff] %v10801_v57  ;;  %13705 = vst [vmem:[#allocation107_spill] sm:$0xff] %v10803_v24  ;;  %v10805_v4 = vld [vmem:[#allocation2 + $0x5f] sm:$0xff]  ;;  %v4047_v38 = vadd.f32 %v10712_v11, %v4046_v26  ;;  %v10814_v60 = vmul.f32 %v10681_v46, %v10801_v57  ;;  %v10822_v52 = vmul.f32 %v10681_v46, %v10803_v24 }
 0x69d   : > { %13706 = vst [vmem:[#allocation108_spill] sm:$0xff] %v10805_v4  ;;  %4074 = vst [vmem:[#allocation2 + $0xd9] ss:$2 sm:$0xff] %v4055_v45  ;;  %v4427_v13 = vld [vmem:[#allocation2 + $0x61] sm:$0xff]  ;;  %v10810_v7 = vmul.f32 %v10691_v48, %v10805_v4  ;;  %v7659_v9 = vpop.f32.mrf.mxu1  ;;  %v4310_v31 = vld [vmem:[#allocation2 + $0x18] sm:$0xff]  ;;  %v10826_v37 = vmul.f32 %v10774_v50, %v10805_v4  ;;  %v10830_v47 = vmul.f32 %v10778_v19, %v10801_v57 }
 0x69e   : > { %13707 = vst [vmem:[#allocation113_spill] sm:$0xff] %v10814_v60  ;;  %v4311_v6 = vld [vmem:[#allocation2 + $0x20] sm:$0xff]  ;;  %v4346_v14 = vld [vmem:[#allocation2 + $0x17] sm:$0xff]  ;;  %v10818_v44 = vsel %vm13709_vm0, %v4427_v13, 0.0  ;;  %4070 = vst [vmem:[#allocation2 + $0x99] ss:$2 sm:$0xff] %v4047_v38  ;;  %v4058_v29 = vadd.f32 %v7659_v9, %v10712_v11  ;;  %v4562_v17 = vmul.f32 %v10681_v46, %v4310_v31  ;;  %v10847_v58 = vmul.f32 %v10778_v19, %v10803_v24 }
 0x69f   : > { %13710 = vst [vmem:[#allocation82_spill] sm:$0xff] %v10818_v44  ;;  %13711 = vst [vmem:[#allocation119_spill] sm:$0xff] %v10826_v37  ;;  %v4347_v63 = vld [vmem:[#allocation2 + $0x1f] sm:$0xff]  ;;  %v4382_v61 = vsel %vm13714_vm12, %v4346_v14, 0.0  ;;  %v4563_v41 = vmul.f32 %v10681_v46, %v4311_v6  ;;  %v4049_v20 = vpop.f32.mrf.mxu1  ;;  %v4764_v45 = vmul.f32 %v10765_v62, %v4310_v31  ;;  %v4765_v14 = vmul.f32 %v10765_v62, %v4311_v6  ;;  %v13755_v44 = vld [vmem:[#allocation60_spill] sm:$0xff] }
 0x6a0   : > { %13712 = vst [vmem:[#allocation103_spill] sm:$0xff] %v10830_v47  ;;  %v4418_v39 = vld [vmem:[#allocation2 + $0x19] sm:$0xff]  ;;  %v4419_v2 = vld [vmem:[#allocation2 + $0x21] sm:$0xff]  ;;  %5134 = vst.msk [vmem:[#allocation2 + $0x10] sm:$0xff] %vm13715_vm9, %v13677_v10  ;;  %v4494_v23 = vmul.f32 %v10691_v48, %v4382_v61  ;;  %v4495_v40 = vmul.f32 %v10691_v48, %v4347_v63  ;;  %v4050_v56 = vadd.f32 %v10712_v11, %v4049_v20 }
 0x6a1   : > { %v4455_v54 = vsel %vm13717_vm11, %v4419_v2, 0.0  ;;  %5138 = vst.msk [vmem:[#allocation2 + $0x18] sm:$0xff] %vm13719_vm8, %v13718_v5  ;;  %13720 = vst [vmem:[#allocation7_spill] sm:$0xff] %v10847_v58  ;;  %v4696_v3 = vmul.f32 %v10761_v51, %v4382_v61  ;;  %v4697_v16 = vmul.f32 %v10761_v51, %v4347_v63  ;;  %v7678_v12 = vpop.f32.mrf.mxu1  ;;  %v10853_v1 = vld [vmem:[#allocation2 + $0x3f] sm:$0xff]  ;;  %v4630_v35 = vmul.f32 %v10739_v0, %v4418_v39 }
 0x6a2   : > { %4076 = vst [vmem:[#allocation2 + $0xf9] ss:$2 sm:$0xff] %v4058_v29  ;;  %v4631_v22 = vmul.f32 %v10739_v0, %v4455_v54  ;;  %v4594_v28 = vadd.f32 %v4562_v17, %v4494_v23  ;;  %v4595_v30 = vadd.f32 %v4563_v41, %v4495_v40  ;;  %v10857_v26 = vld [vmem:[#allocation2 + $0x38] sm:$0xff]  ;;  %4072 = vst [vmem:[#allocation2 + $0xb9] ss:$2 sm:$0xff] %v4050_v56  ;;  %v10861_v29 = vld [vmem:[#allocation2 + $0x40] sm:$0xff] }
 0x6a3   : > { %v4268_v38 = vadd.f32 %v7678_v12, %v10712_v11  ;;  %v4728_v13 = vadd.f32 %v4696_v3, %v4660_v27  ;;  %v4729_v9 = vadd.f32 %v4697_v16, %v4661_v32  ;;  %v10863_v63 = vld [vmem:[#allocation2 + $0x39] sm:$0xff]  ;;  %v4423_v61 = vld [vmem:[#allocation2 + $0x41] sm:$0xff]  ;;  %v4259_v2 = vpop.f32.mrf.mxu1  ;;  %v4832_v31 = vmul.f32 %v10770_v15, %v4418_v39  ;;  %v10875_v32 = vld [vmem:[%s12773_s1 + $0x35] ss:$0 sm:$0xff] }
 0x6a4   : > { %v10865_v17 = vadd.f32 %v4630_v35, %v4594_v28  ;;  %v10867_v41 = vadd.f32 %v4631_v22, %v4595_v30  ;;  %v4833_v20 = vmul.f32 %v10770_v15, %v4455_v54  ;;  %v4260_v27 = vadd.f32 %v10712_v11, %v4259_v2  ;;  %13721 = vst [vmem:[#allocation9_spill] sm:$0xff] %v10875_v32  ;;  %v13722_v40 = vld [vmem:[#allocation27_spill] sm:$0xff]  ;;  %vm13769_vm9 = vmmov %vm13679_vm1 }
 0x6a5   : > { %4295 = vst [vmem:[#allocation2 + $0x69] ss:$2 sm:$0xff] %v4268_v38  ;;  %v4796_v6 = vadd.f32 %v4764_v45, %v4728_v13  ;;  %v4797_v23 = vadd.f32 %v4765_v14, %v4729_v9  ;;  %vm13723_vm7 = vnez %v13722_v40  ;;  %v7679_v56 = vpop.f32.mrf.mxu1  ;;  %v10883_v39 = vmul.f32 %v10774_v50, %v10853_v1  ;;  %v11017_v60 = vld [vmem:[#allocation2 + $0x81] sm:$0xff]  ;;  %vm13771_vm8 = vmmov %vm13679_vm1 }
 0x6a6   : > { %v10879_v5 = vsel %vm13723_vm7, %v4423_v61, 0.0  ;;  %v10887_v54 = vmul.f32 %v10778_v19, %v10857_v26  ;;  %v10891_v22 = vmul.f32 %v10778_v19, %v10861_v29  ;;  %v10895_v3 = vmul.f32 %v10875_v32, %v10863_v63  ;;  %4291 = vst [vmem:[#allocation2 + $0x29] ss:$2 sm:$0xff] %v4260_v27  ;;  %13754 = vst [vmem:[#allocation91_spill] sm:$0xff] %v11017_v60 }
 0x6a7   : > { %v5173_v16 = vld [vmem:[#allocation2 + $0x10] sm:$0xff]  ;;  %v4271_v30 = vadd.f32 %v7679_v56, %v10712_v11  ;;  %v10898_v35 = vadd.f32 %v4832_v31, %v4796_v6  ;;  %v10900_v45 = vadd.f32 %v4833_v20, %v4797_v23  ;;  %v10904_v38 = vmul.f32 %v10875_v32, %v10879_v5  ;;  %v4262_v61 = vpop.f32.mrf.mxu1 }
 0x6a8   : > { %v5209_v12 = vld [vmem:[#allocation2 + $0xf] sm:$0xff]  ;;  %v5174_v13 = vld [vmem:[#allocation2 + $0x18] sm:$0xff]  ;;  %v10908_v2 = vmul.f32 %v10761_v51, %v10853_v1  ;;  %v10912_v27 = vmul.f32 %v10765_v62, %v10857_v26  ;;  %v10916_v31 = vmul.f32 %v10765_v62, %v10861_v29  ;;  %v10920_v20 = vmul.f32 %v10770_v15, %v10863_v63 }
 0x6a9   : > { %v5280_v28 = vld [vmem:[#allocation2 + $0x9] sm:$0xff]  ;;  %v5210_v9 = vld [vmem:[#allocation2 + $0x17] sm:$0xff]  ;;  %4297 = vst [vmem:[#allocation2 + $0x89] ss:$2 sm:$0xff] %v4271_v30  ;;  %v4263_v6 = vadd.f32 %v10712_v11, %v4262_v61  ;;  %v5357_v10 = vmul.f32 %v10742_v33, %v5209_v12  ;;  %v7682_v49 = vpop.f32.mrf.mxu1  ;;  %v5425_v47 = vmul.f32 %v10745_v53, %v5173_v16  ;;  %v5426_v58 = vmul.f32 %v10745_v53, %v5174_v13 }
 0x6aa   : > { %v5281_v14 = vld [vmem:[#allocation2 + $0x11] sm:$0xff]  ;;  %v5246_v23 = vsel %vm13714_vm12, %v5210_v9, 0.0  ;;  %v5492_v24 = vmul.f32 %v10782_v42, %v5280_v28  ;;  %v4284_v30 = vadd.f32 %v7682_v49, %v10712_v11  ;;  %v10935_v34 = vmul.f32 %v10770_v15, %v10879_v5  ;;  %v10939_v9 = vld [vmem:[#allocation2 + $0x59] sm:$0xff]  ;;  %vm13767_vm12 = vmmov %vm13679_vm1 }
 0x6ab   : > { %v5317_v56 = vsel %vm13692_vm15, %v5281_v14, 0.0  ;;  %v5358_v40 = vmul.f32 %v10742_v33, %v5246_v23  ;;  %4293 = vst [vmem:[#allocation2 + $0x49] ss:$2 sm:$0xff] %v4263_v6  ;;  %v5560_v12 = vmul.f32 %v10785_v55, %v5246_v23  ;;  %13724 = vst [vmem:[#allocation109_spill] sm:$0xff] %v10939_v9  ;;  %v4275_v14 = vpop.f32.mrf.mxu1  ;;  %v5457_v61 = vadd.f32 %v5425_v47, %v5357_v10  ;;  %v13751_v9 = vld [vmem:[#allocation32_spill] sm:$0xff] }
 0x6ac   : > { %v5493_v18 = vmul.f32 %v10782_v42, %v5317_v56  ;;  %v5524_v57 = vadd.f32 %v5492_v24, %v10790_v59  ;;  %v10945_v28 = vmul.f32 %v10788_v25, %v5174_v13  ;;  %v10947_v49 = vld [vmem:[#allocation2 + $0x68] sm:$0xff]  ;;  %v10949_v6 = vld [vmem:[#allocation2 + $0x70] sm:$0xff]  ;;  %4303 = vst [vmem:[#allocation2 + $0xe9] ss:$2 sm:$0xff] %v4284_v30  ;;  %v4276_v23 = vadd.f32 %v10712_v11, %v4275_v14  ;;  %vm13762_vm15 = vmmov %vm13679_vm1 }
 0x6ad   : > { %v10941_v16 = vadd.f32 %v5426_v58, %v5358_v40  ;;  %13726 = vst [vmem:[#allocation98_spill] sm:$0xff] %v10947_v49  ;;  %13727 = vst [vmem:[#allocation114_spill] sm:$0xff] %v10949_v6  ;;  %v10951_v37 = vld [vmem:[#allocation2 + $0x67] sm:$0xff]  ;;  %v10956_v56 = vmul.f32 %v10691_v48, %v10853_v1  ;;  %v10960_v10 = vmul.f32 %v10681_v46, %v10857_v26  ;;  %v10966_v24 = vld [vmem:[#allocation2 + $0x6f] sm:$0xff]  ;;  %v7683_v13 = vpop.f32.mrf.mxu1 }
 0x6ae   : > { %13725 = vst [vmem:[#allocation25_spill] sm:$0xff] %v10945_v28  ;;  %13728 = vst [vmem:[#allocation110_spill] sm:$0xff] %v10951_v37  ;;  %v10964_v59 = vmul.f32 %v10681_v46, %v10861_v29  ;;  %v10968_v47 = vld [vmem:[#allocation2 + $0x69] sm:$0xff]  ;;  %v10970_v58 = vld [vmem:[#allocation2 + $0x71] sm:$0xff]  ;;  %v10976_v26 = vadd.f32 %v5493_v18, %v5457_v61  ;;  %v10978_v4 = vadd.f32 %v5560_v12, %v5524_v57 }
 0x6af   : > { %13729 = vst [vmem:[#allocation92_spill] sm:$0xff] %v10956_v56  ;;  %13730 = vst [vmem:[#allocation111_spill] sm:$0xff] %v10960_v10  ;;  %v13735_v40 = vld [vmem:[#allocation77_spill] sm:$0xff]  ;;  %v4312_v1 = vld [vmem:[#allocation2 + $0x28] sm:$0xff]  ;;  %v10982_v29 = vadd.f32 %v10822_v52, %v10810_v7  ;;  %v4287_v57 = vadd.f32 %v7683_v13, %v10712_v11 }
 0x6b0   : > { %13731 = vst [vmem:[#allocation99_spill] sm:$0xff] %v10964_v59  ;;  %13732 = vst [vmem:[#allocation112_spill] sm:$0xff] %v10966_v24  ;;  %v10974_v30 = vld [vmem:[#allocation2 + $0x30] sm:$0xff]  ;;  %v4348_v14 = vld [vmem:[#allocation2 + $0x27] sm:$0xff]  ;;  %v4564_v61 = vmul.f32 %v10681_v46, %v4312_v1  ;;  %v4766_v10 = vmul.f32 %v10765_v62, %v4312_v1 }
 0x6b1   : > { %13733 = vst [vmem:[#allocation88_spill] sm:$0xff] %v10968_v47  ;;  %13734 = vst [vmem:[#allocation6_spill] sm:$0xff] %v10970_v58  ;;  %v10986_v47 = vmul.f32 %v10739_v0, %v10863_v63  ;;  %v13740_v6 = vld [vmem:[#allocation74_spill] sm:$0xff]  ;;  %v4349_v18 = vld [vmem:[#allocation2 + $0x2f] sm:$0xff] }
 0x6b2   : > { %5147 = vst.msk [vmem:[#allocation2 + $0x60] sm:$0xff] %vm13736_vm10, %v13735_v40  ;;  %13737 = vst [vmem:[#allocation96_spill] sm:$0xff] %v10978_v4  ;;  %v10990_v40 = vld [vmem:[#allocation2 + $0x78] sm:$0xff]  ;;  %v13744_v12 = vld [vmem:[#allocation20_spill] sm:$0xff]  ;;  %v4969_v4 = vmul.f32 %v10778_v19, %v10974_v30 }
 0x6b3   : > { %13738 = vst [vmem:[#allocation8_spill] sm:$0xff] %v10982_v29  ;;  %13739 = vst [vmem:[#allocation104_spill] sm:$0xff] %v10986_v47  ;;  %v10992_v49 = vld [vmem:[#allocation2 + $0x7f] sm:$0xff]  ;;  %vm13745_vm6 = vnez %v13744_v12  ;;  %v10999_v52 = vld [vmem:[#allocation2 + $0x29] sm:$0xff] }
 0x6b4   : > { %5148 = vst.msk [vmem:[#allocation2 + $0x68] sm:$0xff] %vm13679_vm1, %v13740_v6  ;;  %13741 = vst [vmem:[#allocation100_spill] sm:$0xff] %v10990_v40  ;;  %v10994_v24 = vld [vmem:[#allocation2 + $0x79] sm:$0xff]  ;;  %v4384_v7 = vsel %vm13745_vm6, %v4348_v14, 0.0  ;;  %v4421_v63 = vld [vmem:[#allocation2 + $0x31] sm:$0xff]  ;;  %v4565_v6 = vmul.f32 %v10681_v46, %v10974_v30  ;;  %v4497_v14 = vmul.f32 %v10691_v48, %v4349_v18 }
 0x6b5   : > { %13742 = vst [vmem:[#allocation116_spill] sm:$0xff] %v10992_v49  ;;  %13743 = vst [vmem:[#allocation118_spill] sm:$0xff] %v10994_v24  ;;  %v13746_v40 = vld [vmem:[#allocation61_spill] sm:$0xff]  ;;  %v11006_v49 = vld [vmem:[#allocation2 + $0x80] sm:$0xff]  ;;  %v4496_v58 = vmul.f32 %v10691_v48, %v4384_v7  ;;  %v4698_v37 = vmul.f32 %v10761_v51, %v4384_v7 }
 0x6b6   : > { %4299 = vst [vmem:[#allocation2 + $0xa9] ss:$2 sm:$0xff] %v4276_v23  ;;  %5139 = vst.msk [vmem:[#allocation2 + $0x20] sm:$0xff] %vm13747_vm13, %v13746_v40  ;;  %v4278_v23 = vpop.f32.mrf.mxu1  ;;  %v13749_v24 = vld [vmem:[#allocation23_spill] sm:$0xff]  ;;  %v4350_v47 = vld [vmem:[#allocation2 + $0x37] sm:$0xff]  ;;  %v4597_v56 = vadd.f32 %v4565_v6, %v4497_v14 }
 0x6b7   : > { %13748 = vst [vmem:[#allocation115_spill] sm:$0xff] %v11006_v49  ;;  %vm13750_vm4 = vnez %v13749_v24  ;;  %5140 = vst.msk [vmem:[#allocation2 + $0x28] sm:$0xff] %vm13752_vm2, %v13751_v9  ;;  %v11015_v29 = vld [vmem:[#allocation2 + $0x77] sm:$0xff]  ;;  %v4279_v40 = vadd.f32 %v10712_v11, %v4278_v23  ;;  %v13757_v59 = vld [vmem:[#allocation67_spill] sm:$0xff]  ;;  %v4596_v60 = vadd.f32 %v4564_v61, %v4496_v58  ;;  %v4730_v36 = vadd.f32 %v4698_v37, %v10865_v17 }
 0x6b8   : > { %v4457_v13 = vsel %vm13750_vm4, %v4421_v63, 0.0  ;;  %13753 = vst [vmem:[#allocation117_spill] sm:$0xff] %v11015_v29  ;;  %4305 = vst [vmem:[#allocation2 + $0x109] ss:$2 sm:$0xff] %v4287_v57  ;;  %v4699_v63 = vmul.f32 %v10761_v51, %v4349_v18  ;;  %v13759_v9 = vld [vmem:[#allocation76_spill] sm:$0xff]  ;;  %v11031_v57 = vld [vmem:[#allocation2 + $0x88] sm:$0xff]  ;;  %v4834_v58 = vmul.f32 %v10770_v15, %v10999_v52  ;;  %v4900_v37 = vmul.f32 %v10774_v50, %v4384_v7 }
 0x6b9   : > { %v4633_v49 = vmul.f32 %v10739_v0, %v4457_v13  ;;  %5141 = vst.msk [vmem:[#allocation2 + $0x30] sm:$0xff] %vm13756_vm3, %v13755_v44  ;;  %v13761_v29 = vld [vmem:[#allocation84_spill] sm:$0xff]  ;;  %13763 = vst [vmem:[#allocation102_spill] sm:$0xff] %v11031_v57  ;;  %v11033_v11 = vld [vmem:[#allocation2 + $0x87] sm:$0xff]  ;;  %v4767_v44 = vmul.f32 %v10765_v62, %v10974_v30  ;;  %v4835_v61 = vmul.f32 %v10770_v15, %v4457_v13 }
 0x6ba   : > { %5142 = vst.msk [vmem:[#allocation2 + $0x38] sm:$0xff] %vm13758_vm5, %v13757_v59  ;;  %13764 = vst [vmem:[#allocation11_spill] sm:$0xff] %v11033_v11  ;;  %v11035_v23 = vld [vmem:[#allocation2 + $0x8f] sm:$0xff]  ;;  %v13768_v57 = vld [vmem:[#allocation69_spill] sm:$0xff]  ;;  %v4932_v28 = vadd.f32 %v4900_v37, %v10898_v35 }
 0x6bb   : > { %5149 = vst.msk [vmem:[#allocation2 + $0x70] sm:$0xff] %vm13760_vm14, %v13759_v9  ;;  %13765 = vst [vmem:[#allocation12_spill] sm:$0xff] %v11035_v23  ;;  %v11040_v59 = vld [vmem:[#allocation2 + $0x48] sm:$0xff]  ;;  %v11042_v21 = vld [vmem:[#allocation2 + $0x50] sm:$0xff]  ;;  %v4665_v23 = vadd.f32 %v4633_v49, %v4597_v56 }
 0x6bc   : > { %5150 = vst.msk [vmem:[#allocation2 + $0x78] sm:$0xff] %vm13762_vm15, %v13761_v29  ;;  %v4352_v9 = vld [vmem:[#allocation2 + $0x47] sm:$0xff]  ;;  %4301 = vst [vmem:[#allocation2 + $0xc9] ss:$2 sm:$0xff] %v4279_v40  ;;  %v4731_v29 = vadd.f32 %v4699_v63, %v10867_v41  ;;  %v11051_v17 = vld [vmem:[#allocation2 + $0x4f] sm:$0xff]  ;;  %v4901_v40 = vmul.f32 %v10774_v50, %v4349_v18  ;;  %v4968_v41 = vmul.f32 %v10778_v19, %v4312_v1 }
 0x6bd   : > { %5151 = vst.msk [vmem:[#allocation2 + $0x80] sm:$0xff] %vm13767_vm12, %v13766_v43  ;;  %v11053_v6 = vld [vmem:[#allocation2 + $0x49] sm:$0xff]  ;;  %v4425_v14 = vld [vmem:[#allocation2 + $0x51] sm:$0xff]  ;;  %v4798_v43 = vadd.f32 %v4766_v10, %v4730_v36  ;;  %v13770_v63 = vld [vmem:[#allocation66_spill] sm:$0xff]  ;;  %v5036_v36 = vmul.f32 %v10875_v32, %v10999_v52  ;;  %v5037_v18 = vmul.f32 %v10875_v32, %v4457_v13  ;;  %v4501_v13 = vmul.f32 %v10691_v48, %v11051_v17 }
 0x6be   : > { %5143 = vst.msk [vmem:[#allocation2 + $0x40] sm:$0xff] %vm13769_vm9, %v13768_v57  ;;  %v11061_v11 = vld [vmem:[#allocation2 + $0x57] sm:$0xff]  ;;  %v11063_v7 = vld [vmem:[#allocation2 + $0x89] sm:$0xff]  ;;  %v4799_v62 = vadd.f32 %v4767_v44, %v4731_v29  ;;  %vm13774_vm10 = vmmov %vm13679_vm1  ;;  %v4933_v1 = vadd.f32 %v4901_v40, %v10900_v45  ;;  %v5000_v29 = vadd.f32 %v4968_v41, %v4932_v28  ;;  %v4568_v28 = vmul.f32 %v10681_v46, %v11040_v59 }
 0x6bf   : > { %5144 = vst.msk [vmem:[#allocation2 + $0x48] sm:$0xff] %vm13771_vm8, %v13770_v63  ;;  %13772 = vst [vmem:[#allocation10_spill] sm:$0xff] %v11063_v7  ;;  %v13773_v49 = vld [vmem:[#allocation68_spill] sm:$0xff]  ;;  %v13775_v56 = vld [vmem:[#allocation75_spill] sm:$0xff]  ;;  %v4866_v30 = vadd.f32 %v4834_v58, %v4798_v43 }
 0x6c0   : > { %5145 = vst.msk [vmem:[#allocation2 + $0x50] sm:$0xff] %vm13774_vm10, %v13773_v49  ;;  %v13776_v10 = vld [vmem:[#allocation83_spill] sm:$0xff]  ;;  %vm13777_vm13 = vmmov %vm13679_vm1  ;;  %v13778_v35 = vld [vmem:[#allocation26_spill] sm:$0xff]  ;;  %v4867_v44 = vadd.f32 %v4835_v61, %v4799_v62  ;;  %v5068_v58 = vadd.f32 %v5036_v36, %v5000_v29 }
 0x6c1   : > { %5146 = vst.msk [vmem:[#allocation2 + $0x58] sm:$0xff] %vm13679_vm1, %v13775_v56  ;;  %vm13779_vm2 = vnez %v13778_v35  ;;  %v13780_v63 = vld [vmem:[#allocation40_spill] sm:$0xff]  ;;  %v5001_v56 = vadd.f32 %v4969_v4, %v4933_v1  ;;  %v13782_v7 = vld [vmem:[#allocation41_spill] sm:$0xff]  ;;  %v4632_v4 = vmul.f32 %v10739_v0, %v10999_v52  ;;  %vm13791_vm14 = vmmov %vm13679_vm1 }
 0x6c2   : > { %5152 = vst.msk [vmem:[#allocation2 + $0x88] sm:$0xff] %vm13777_vm13, %v13776_v10  ;;  %v11080_v57 = vsel %vm13779_vm2, %v4350_v47, 0.0  ;;  %vm13781_vm3 = vnez %v13780_v63  ;;  %vm13783_vm5 = vnez %v13782_v7  ;;  %v4935_v47 = vadd.f32 %v10883_v39, %v4867_v44  ;;  %vm13795_vm15 = vmmov %vm13679_vm1  ;;  %v13814_v35 = vld [vmem:[#allocation63_spill] sm:$0xff] }
 0x6c3   : > { %v4902_v37 = vmul.f32 %v10774_v50, %v11080_v57  ;;  %v4388_v49 = vsel %vm13781_vm3, %v4352_v9, 0.0  ;;  %v4461_v10 = vsel %vm13783_vm5, %v4425_v14, 0.0  ;;  %v5069_v61 = vadd.f32 %v5037_v18, %v5001_v56  ;;  %vm13797_vm12 = vmmov %vm13679_vm1 }
 0x6c4   : > { %v4500_v45 = vmul.f32 %v10691_v48, %v4388_v49  ;;  %v4569_v9 = vmul.f32 %v10681_v46, %v11042_v21  ;;  %v4637_v14 = vmul.f32 %v10739_v0, %v4461_v10  ;;  %v5100_v43 = vmax.f32 %v5068_v58, 0.0  ;;  %vm13802_vm9 = vmmov %vm13679_vm1 }
 0x6c5   : > { %v4934_v62 = vadd.f32 %v4902_v37, %v4866_v30  ;;  %v5003_v41 = vadd.f32 %v10891_v22, %v4935_v47  ;;  %v11103_v39 = vmul.f32 %v10739_v0, %v10879_v5  ;;  %v5101_v36 = vmax.f32 %v5069_v61, 0.0  ;;  %v11121_v47 = vld [vmem:[#allocation2 + $0x91] sm:$0xff]  ;;  %v11135_v61 = vld [vmem:[#allocation2 + $0x28] sm:$0xff]  ;;  %vm13803_vm8 = vmmov %vm13679_vm1 }
 0x6c6   : > { %v4601_v1 = vadd.f32 %v4569_v9, %v4501_v13  ;;  %v4664_v18 = vadd.f32 %v4632_v4, %v4596_v60  ;;  %v4700_v30 = vmul.f32 %v10761_v51, %v11080_v57  ;;  %v11109_v29 = vadd.f32 %v4568_v28, %v4500_v45  ;;  %v11117_v13 = vld [vmem:[#allocation2 + $0x1f] sm:$0xff]  ;;  %v11119_v60 = vld [vmem:[#allocation2 + $0x90] sm:$0xff]  ;;  %13785 = vst [vmem:[#allocation21_spill] sm:$0xff] %v11121_v47  ;;  %v5212_v9 = vld [vmem:[#allocation2 + $0x27] sm:$0xff] }
 0x6c7   : > { %v5002_v40 = vadd.f32 %v10887_v54, %v4934_v62  ;;  %v5071_v52 = vadd.f32 %v10904_v38, %v5003_v41  ;;  %v4733_v54 = vadd.f32 %v10908_v2, %v4665_v23  ;;  %v6000_v37 = vpack.c.bf16 %v5101_v36, %v5100_v43  ;;  %13784 = vst [vmem:[#allocation13_spill] sm:$0xff] %v11119_v60  ;;  %v11125_v38 = vld [vmem:[#allocation2 + $0x9f] sm:$0xff]  ;;  %vm13819_vm10 = vmmov %vm13679_vm1 }
 0x6c8   : > { %v11112_v22 = vadd.f32 %v4637_v14, %v4601_v1  ;;  %v11115_v5 = vmul.f32 %v10761_v51, %v4388_v49  ;;  %v4732_v56 = vadd.f32 %v4700_v30, %v4664_v18  ;;  %13787 = vst [vmem:[#allocation15_spill] sm:$0xff] %v11125_v38  ;;  %v11127_v45 = vld [vmem:[#allocation2 + $0x99] sm:$0xff]  ;;  %v11131_v62 = vmul.f32 %v10770_v15, %v4461_v10  ;;  %v5283_v4 = vld [vmem:[#allocation2 + $0x21] sm:$0xff]  ;;  %v5285_v1 = vld [vmem:[#allocation2 + $0x31] sm:$0xff] }
 0x6c9   : > { %v5070_v44 = vadd.f32 %v10895_v3, %v5002_v40  ;;  %v11123_v3 = vld [vmem:[#allocation2 + $0x98] sm:$0xff]  ;;  %13788 = vst [vmem:[#allocation16_spill] sm:$0xff] %v11127_v45  ;;  %v5103_v23 = vmax.f32 %v5071_v52, 0.0  ;;  %v4801_v58 = vadd.f32 %v10916_v31, %v4733_v54  ;;  %v11133_v28 = vld [vmem:[#allocation2 + $0x20] sm:$0xff]  ;;  %7724 = vmatprep.mubr.msk.bf16.mxu1 %vm13791_vm14, %v6000_v37  ;;  %v4904_v41 = vmul.f32 %v10774_v50, %v4388_v49  ;;  %v11150_v30 = vld [vmem:[#allocation2 + $0xa8] sm:$0xff] }
 0x6ca   : > { %13786 = vst [vmem:[#allocation14_spill] sm:$0xff] %v11123_v3  ;;  %v11137_v14 = vld [vmem:[#allocation2 + $0xa0] sm:$0xff]  ;;  %v4800_v40 = vadd.f32 %v10912_v27, %v4732_v56  ;;  %v4905_v31 = vmul.f32 %v10774_v50, %v11051_v17  ;;  %v4972_v36 = vmul.f32 %v10778_v19, %v11040_v59  ;;  %v11148_v18 = vld [vmem:[#allocation2 + $0x97] sm:$0xff]  ;;  %13793 = vst [vmem:[#allocation22_spill] sm:$0xff] %v11150_v30 }
 0x6cb   : > { %v5102_v2 = vmax.f32 %v5070_v44, 0.0  ;;  %13789 = vst [vmem:[#allocation17_spill] sm:$0xff] %v11137_v14  ;;  %v11139_v43 = vld [vmem:[#allocation2 + $0xa1] sm:$0xff]  ;;  %13792 = vst [vmem:[#allocation19_spill] sm:$0xff] %v11148_v18  ;;  %v4869_v52 = vadd.f32 %v10935_v34, %v4801_v58  ;;  %v4973_v54 = vmul.f32 %v10778_v19, %v11042_v21  ;;  %v5040_v27 = vmul.f32 %v10875_v32, %v11053_v6  ;;  %v11157_v49 = vld [vmem:[#allocation2 + $0x2f] sm:$0xff] }
 0x6cc   : > { %13790 = vst [vmem:[#allocation18_spill] sm:$0xff] %v11139_v43  ;;  %v13794_v37 = vld [vmem:[#allocation5_spill] sm:$0xff]  ;;  %v13796_v56 = vld [vmem:[#allocation87_spill] sm:$0xff]  ;;  %v4868_v34 = vadd.f32 %v10920_v20, %v4800_v40  ;;  %v11173_v58 = vsel %vm13745_vm6, %v5212_v9, 0.0  ;;  %v5359_v12 = vmul.f32 %v10742_v33, %v11117_v13  ;;  %v13804_v9 = vld [vmem:[#allocation38_spill] sm:$0xff]  ;;  %v5427_v24 = vmul.f32 %v10745_v53, %v11133_v28 }
 0x6cd   : > { %v6001_v44 = vpack.c.bf16 %v5103_v23, %v5102_v2  ;;  %5153 = vst.msk [vmem:[#allocation2 + $0x90] sm:$0xff] %vm13795_vm15, %v13794_v37  ;;  %v11163_v45 = vld [vmem:[#allocation2 + $0xa7] sm:$0xff]  ;;  %v11165_v30 = vld [vmem:[#allocation2 + $0xaf] sm:$0xff]  ;;  %v5041_v2 = vmul.f32 %v10875_v32, %v4461_v10  ;;  %v5282_v3 = vld [vmem:[#allocation2 + $0x19] sm:$0xff]  ;;  %v5319_v37 = vsel %vm13717_vm11, %v5283_v4, 0.0  ;;  %v4937_v20 = vadd.f32 %v4905_v31, %v4869_v52 }
 0x6ce   : > { %5154 = vst.msk [vmem:[#allocation2 + $0x98] sm:$0xff] %vm13797_vm12, %v13796_v56  ;;  %13798 = vst [vmem:[#allocation35_spill] sm:$0xff] %v11163_v45  ;;  %v11169_v23 = vld [vmem:[#allocation2 + $0x30] sm:$0xff]  ;;  %v13801_v56 = vld [vmem:[#allocation39_spill] sm:$0xff]  ;;  %v11184_v10 = vsel %vm13750_vm4, %v5285_v1, 0.0  ;;  %v5360_v8 = vmul.f32 %v10742_v33, %v11173_v58  ;;  %v4936_v4 = vadd.f32 %v4904_v41, %v4868_v34  ;;  %v5361_v31 = vmul.f32 %v10742_v33, %v11157_v49 }
 0x6cf   : > { %13799 = vst [vmem:[#allocation77_spill] sm:$0xff] %v11165_v30  ;;  %v11177_v14 = vld [vmem:[#allocation2 + $0xa9] sm:$0xff]  ;;  %5155 = vst.msk [vmem:[#allocation2 + $0xa0] sm:$0xff] %vm13802_vm9, %v13801_v56  ;;  %7725 = vmatmul.mubr.msk.bf16.vlgmr.msra.gmra.mxu1 %vm13803_vm8, %v6001_v44  ;;  %v5214_v40 = vld [vmem:[#allocation2 + $0x37] sm:$0xff]  ;;  %v5428_v1 = vmul.f32 %v10745_v53, %v11135_v61  ;;  %v5005_v56 = vadd.f32 %v4973_v54, %v4937_v20  ;;  %v5494_v41 = vmul.f32 %v10782_v42, %v5282_v3 }
 0x6d0   : > { %13800 = vst [vmem:[#allocation74_spill] sm:$0xff] %v11177_v14  ;;  %vm13805_vm11 = vmmov %vm13679_vm1  ;;  %v11192_v14 = vld [vmem:[#allocation2 + $0x29] sm:$0xff]  ;;  %v11202_v52 = vld [vmem:[#allocation2 + $0xb1] sm:$0xff]  ;;  %v5495_v34 = vmul.f32 %v10782_v42, %v5319_v37  ;;  %v5004_v45 = vadd.f32 %v4972_v36, %v4936_v4  ;;  %v11212_v38 = vsel %vm13779_vm2, %v5214_v40, 0.0  ;;  %v5459_v43 = vadd.f32 %v5427_v24, %v5359_v12 }
 0x6d1   : > { %5156 = vst.msk [vmem:[#allocation2 + $0xa8] sm:$0xff] %vm13805_vm11, %v13804_v9  ;;  %v11200_v44 = vld [vmem:[#allocation2 + $0xb0] sm:$0xff]  ;;  %13807 = vst [vmem:[#allocation61_spill] sm:$0xff] %v11202_v52  ;;  %v5429_v9 = vmul.f32 %v10745_v53, %v11169_v23  ;;  %v11208_v30 = vld [vmem:[#allocation2 + $0xb8] sm:$0xff]  ;;  %v5460_v18 = vadd.f32 %v5428_v1, %v5360_v8  ;;  %v5073_v20 = vadd.f32 %v5041_v2, %v5005_v56 }
 0x6d2   : > { %13806 = vst [vmem:[#allocation20_spill] sm:$0xff] %v11200_v44  ;;  %13808 = vst [vmem:[#allocation23_spill] sm:$0xff] %v11208_v30  ;;  %v11214_v44 = vld [vmem:[#allocation2 + $0xb7] sm:$0xff]  ;;  %v11216_v52 = vld [vmem:[#allocation2 + $0xbf] sm:$0xff]  ;;  %v5496_v47 = vmul.f32 %v10782_v42, %v11192_v14  ;;  %v5526_v30 = vadd.f32 %v5494_v41, %v10941_v16  ;;  %v5072_v40 = vadd.f32 %v5040_v27, %v5004_v45 }
 0x6d3   : > { %13809 = vst [vmem:[#allocation32_spill] sm:$0xff] %v11214_v44  ;;  %13810 = vst [vmem:[#allocation60_spill] sm:$0xff] %v11216_v52  ;;  %v11218_v54 = vld [vmem:[#allocation2 + $0xb9] sm:$0xff]  ;;  %v5461_v60 = vadd.f32 %v5429_v9, %v5361_v31  ;;  %v5497_v12 = vmul.f32 %v10782_v42, %v11184_v10  ;;  %v5527_v8 = vadd.f32 %v5495_v34, %v5459_v43  ;;  %v5105_v4 = vmax.f32 %v5073_v20, 0.0  ;;  %v13855_v44 = vld [vmem:[#allocation119_spill] sm:$0xff] }
 0x6d4   : > { %13811 = vst [vmem:[#allocation67_spill] sm:$0xff] %v11218_v54  ;;  %v13812_v36 = vld [vmem:[#allocation89_spill] sm:$0xff]  ;;  %vm13813_vm6 = vmmov %vm13679_vm1  ;;  %v5561_v2 = vmul.f32 %v10785_v55, %v11117_v13  ;;  %v11231_v31 = vadd.f32 %v5496_v47, %v5460_v18  ;;  %v5562_v16 = vmul.f32 %v10785_v55, %v11173_v58  ;;  %v5563_v24 = vmul.f32 %v10785_v55, %v11157_v49  ;;  %v13816_v18 = vld [vmem:[#allocation96_spill] sm:$0xff] }
 0x6d5   : > { %5157 = vst.msk [vmem:[#allocation2 + $0xb0] sm:$0xff] %vm13813_vm6, %v13812_v36  ;;  %vm13815_vm4 = vmmov %vm13679_vm1  ;;  %v5104_v1 = vmax.f32 %v5072_v40, 0.0  ;;  %v5629_v45 = vmul.f32 %v10788_v25, %v11133_v28  ;;  %v5630_v43 = vmul.f32 %v10788_v25, %v11135_v61  ;;  %v5631_v47 = vmul.f32 %v10788_v25, %v11169_v23  ;;  %v13817_v9 = vld [vmem:[#allocation25_spill] sm:$0xff]  ;;  %v13818_v36 = vld [vmem:[#allocation86_spill] sm:$0xff] }
 0x6d6   : > { %5158 = vst.msk [vmem:[#allocation2 + $0xb8] sm:$0xff] %vm13815_vm4, %v13814_v35  ;;  %v5593_v56 = vadd.f32 %v5561_v2, %v10976_v26  ;;  %v5594_v27 = vadd.f32 %v5562_v16, %v5526_v30  ;;  %v5595_v13 = vadd.f32 %v5563_v24, %v5527_v8  ;;  %v5660_v41 = vadd.f32 %v13817_v9, %v13816_v18  ;;  %v11253_v8 = vld [vmem:[#allocation2 + $0x3f] sm:$0xff]  ;;  %vm13847_vm14 = vmmov %vm13815_vm4 }
 0x6d7   : > { %v6002_v34 = vpack.c.bf16 %v5105_v4, %v5104_v1  ;;  %v5696_v35 = vmul.f32 %v13818_v36, %v5282_v3  ;;  %v5697_v26 = vmul.f32 %v13818_v36, %v5319_v37  ;;  %v5698_v28 = vmul.f32 %v13818_v36, %v11192_v14  ;;  %v13820_v4 = vld [vmem:[#allocation105_spill] sm:$0xff]  ;;  %vm13848_vm15 = vmmov %vm13815_vm4  ;;  %v13851_v54 = vld [vmem:[#allocation62_spill] sm:$0xff] }
 0x6d8   : > { %v5661_v20 = vadd.f32 %v5629_v45, %v5593_v56  ;;  %v5662_v40 = vadd.f32 %v5630_v43, %v5594_v27  ;;  %v5663_v2 = vadd.f32 %v5631_v47, %v5595_v13  ;;  %v5699_v30 = vmul.f32 %v13818_v36, %v11184_v10  ;;  %v11266_v27 = vld [vmem:[%s12773_s1 + $0x3e] ss:$0 sm:$0xff]  ;;  %vm13852_vm12 = vmmov %vm13815_vm4 }
 0x6d9   : > { %7728 = vmatprep.mubr.msk.bf16.mxu1 %vm13819_vm10, %v6002_v34  ;;  %v5728_v16 = vadd.f32 %v5696_v35, %v5660_v41  ;;  %v5764_v1 = vmul.f32 %v13820_v4, %v11173_v58  ;;  %v5765_v3 = vmul.f32 %v13820_v4, %v11157_v49  ;;  %v11259_v37 = vadd.f32 %v5497_v12, %v5461_v60  ;;  %v13821_v18 = vld [vmem:[#allocation101_spill] sm:$0xff]  ;;  %v13822_v35 = vld [vmem:[#allocation42_spill] sm:$0xff] }
 0x6da   : > { %v5729_v24 = vadd.f32 %v5697_v26, %v5661_v20  ;;  %v5730_v56 = vadd.f32 %v5698_v28, %v5662_v40  ;;  %v5731_v45 = vadd.f32 %v5699_v30, %v5663_v2  ;;  %v5766_v43 = vmul.f32 %v13820_v4, %v11212_v38  ;;  %v13824_v40 = vld [vmem:[#allocation92_spill] sm:$0xff]  ;;  %v13825_v2 = vld [vmem:[#allocation99_spill] sm:$0xff]  ;;  %v13826_v30 = vld [vmem:[#allocation82_spill] sm:$0xff] }
 0x6db   : > { %v5796_v13 = vadd.f32 %v5764_v1, %v5728_v16  ;;  %v5832_v58 = vmul.f32 %v13821_v18, %v11135_v61  ;;  %v5833_v49 = vmul.f32 %v13821_v18, %v11169_v23  ;;  %v5767_v60 = vmul.f32 %v13820_v4, %v11253_v8 }
 0x6dc   : > { %v5797_v47 = vadd.f32 %v5765_v3, %v5729_v24  ;;  %v11274_v12 = vadd.f32 %v5766_v43, %v5730_v56  ;;  %v5900_v9 = vmul.f32 %v11266_v27, %v11192_v14  ;;  %v5901_v41 = vmul.f32 %v11266_v27, %v11184_v10  ;;  %v13827_v3 = vld [vmem:[#allocation111_spill] sm:$0xff]  ;;  %v13828_v56 = vld [vmem:[#allocation113_spill] sm:$0xff] }
 0x6dd   : > { %v5864_v34 = vadd.f32 %v5832_v58, %v5796_v13  ;;  %vm13823_vm1 = vnez %v13822_v35  ;;  %v4498_v23 = vmul.f32 %v10691_v48, %v11080_v57  ;;  %v4599_v28 = vadd.f32 %v13825_v2, %v13824_v40  ;;  %v13829_v13 = vld [vmem:[#allocation8_spill] sm:$0xff]  ;;  %v11400_v35 = vld [vmem:[#allocation2 + $0x48] sm:$0xff] }
 0x6de   : > { %v5865_v20 = vadd.f32 %v5833_v49, %v5797_v47  ;;  %v4390_v61 = vsel %vm13823_vm1, %v11061_v11, 0.0  ;;  %v4639_v14 = vmul.f32 %v10739_v0, %v13826_v30  ;;  %v4703_v10 = vmul.f32 %v10761_v51, %v11051_v17  ;;  %v13830_v2 = vld [vmem:[#allocation104_spill] sm:$0xff] }
 0x6df   : > { %v4502_v26 = vmul.f32 %v10691_v48, %v4390_v61  ;;  %v11292_v16 = vadd.f32 %v5767_v60, %v5731_v45  ;;  %v5932_v24 = vadd.f32 %v5900_v9, %v5864_v34  ;;  %v4598_v11 = vadd.f32 %v13827_v3, %v4498_v23  ;;  %v13831_v45 = vld [vmem:[#allocation97_spill] sm:$0xff]  ;;  %v13837_v3 = vld [vmem:[#allocation110_spill] sm:$0xff] }
 0x6e0   : > { %v5933_v1 = vadd.f32 %v5901_v41, %v5865_v20  ;;  %v4667_v57 = vadd.f32 %v11103_v39, %v4599_v28  ;;  %v11300_v47 = vadd.f32 %v4639_v14, %v13829_v13  ;;  %v4704_v58 = vmul.f32 %v10761_v51, %v4390_v61  ;;  %v11312_v20 = vld [vmem:[#allocation2 + $0xc0] sm:$0xff]  ;;  %v13833_v14 = vld [vmem:[#allocation109_spill] sm:$0xff] }
 0x6e1   : > { %v11296_v43 = vadd.f32 %v13828_v56, %v4502_v26  ;;  %v5964_v49 = vmax.f32 %v5932_v24, 0.0  ;;  %v4666_v17 = vadd.f32 %v13830_v2, %v4598_v11  ;;  %v4770_v60 = vmul.f32 %v13831_v45, %v11040_v59  ;;  %13832 = vst [vmem:[#allocation76_spill] sm:$0xff] %v11312_v20  ;;  %v11320_v24 = vld [vmem:[#allocation2 + $0xc8] sm:$0xff]  ;;  %v13838_v11 = vld [vmem:[#allocation48_spill] sm:$0xff]  ;;  %v13841_v13 = vld [vmem:[#allocation49_spill] sm:$0xff] }
 0x6e2   : > { %v5965_v40 = vmax.f32 %v5933_v1, 0.0  ;;  %v4735_v9 = vadd.f32 %v4703_v10, %v4667_v57  ;;  %v4771_v41 = vmul.f32 %v13831_v45, %v11042_v21  ;;  %v4838_v34 = vmul.f32 %v10770_v15, %v11053_v6  ;;  %v11318_v10 = vld [vmem:[#allocation2 + $0xc1] sm:$0xff]  ;;  %13835 = vst [vmem:[#allocation85_spill] sm:$0xff] %v11320_v24  ;;  %v11336_v2 = vld [vmem:[#allocation2 + $0xc9] sm:$0xff] }
 0x6e3   : > { %v4841_v39 = vmul.f32 %v10770_v15, %v13826_v30  ;;  %v4734_v26 = vadd.f32 %v11115_v5, %v4666_v17  ;;  %v4906_v28 = vmul.f32 %v10774_v50, %v4390_v61  ;;  %v5042_v59 = vmul.f32 %v10875_v32, %v13833_v14  ;;  %13834 = vst [vmem:[#allocation84_spill] sm:$0xff] %v11318_v10  ;;  %v11322_v21 = vld [vmem:[#allocation2 + $0xc7] sm:$0xff]  ;;  %v13843_v61 = vld [vmem:[#allocation112_spill] sm:$0xff]  ;;  %v13846_v17 = vld [vmem:[#allocation65_spill] sm:$0xff] }
 0x6e4   : > { %v6019_v23 = vpack.c.bf16 %v5965_v40, %v5964_v49  ;;  %13836 = vst [vmem:[#allocation69_spill] sm:$0xff] %v11322_v21  ;;  %v4803_v1 = vadd.f32 %v4771_v41, %v4735_v9  ;;  %vm13839_vm13 = vnez %v13838_v11  ;;  %v13840_v57 = vld [vmem:[#allocation6_spill] sm:$0xff]  ;;  %vm13842_vm2 = vnez %v13841_v13  ;;  %v11334_v40 = vld [vmem:[#allocation2 + $0xcf] sm:$0xff]  ;;  %13845 = vst [vmem:[#allocation68_spill] sm:$0xff] %v11336_v2 }
 0x6e5   : > { %v4392_v56 = vsel %vm13839_vm13, %v13837_v3, 0.0  ;;  %v11330_v5 = vsel %vm13842_vm2, %v13840_v57, 0.0  ;;  %v4505_v49 = vmul.f32 %v10691_v48, %v13843_v61  ;;  %13844 = vst [vmem:[#allocation66_spill] sm:$0xff] %v11334_v40  ;;  %5159 = vst.msk [vmem:[#allocation2 + $0xc0] sm:$0xff] %vm13847_vm14, %v13846_v17  ;;  %v4802_v9 = vadd.f32 %v4770_v60, %v4734_v26  ;;  %v13849_v3 = vld [vmem:[#allocation98_spill] sm:$0xff]  ;;  %v13853_v60 = vld [vmem:[#allocation108_spill] sm:$0xff] }
 0x6e6   : > { %7688 = vmatprep.mubr.msk.bf16.mxu0 %vm13848_vm15, %v6019_v23  ;;  %v4504_v41 = vmul.f32 %v10691_v48, %v4392_v56  ;;  %v4572_v24 = vmul.f32 %v10681_v46, %v13849_v3  ;;  %v13850_v57 = vld [vmem:[#allocation114_spill] sm:$0xff]  ;;  %5160 = vst.msk [vmem:[#allocation2 + $0xc8] sm:$0xff] %vm13852_vm12, %v13851_v54  ;;  %v4871_v40 = vadd.f32 %v11131_v62, %v4803_v1 }
 0x6e7   : > { %v4573_v21 = vmul.f32 %v10681_v46, %v13850_v57  ;;  %v4636_v2 = vmul.f32 %v10739_v0, %v11053_v6  ;;  %v4641_v23 = vmul.f32 %v10739_v0, %v11330_v5  ;;  %v4705_v26 = vmul.f32 %v10761_v51, %v13853_v60  ;;  %v13857_v60 = vld [vmem:[#allocation106_spill] sm:$0xff] }
 0x6e8   : > { %v4870_v17 = vadd.f32 %v4838_v34, %v4802_v9  ;;  %v5043_v20 = vmul.f32 %v10875_v32, %v13826_v30  ;;  %v11357_v52 = vadd.f32 %v4572_v24, %v4504_v41  ;;  %v4939_v54 = vadd.f32 %v13855_v44, %v4871_v40  ;;  %v13858_v9 = vld [vmem:[#allocation107_spill] sm:$0xff] }
 0x6e9   : > { %v4605_v10 = vadd.f32 %v4573_v21, %v4505_v49  ;;  %v4668_v62 = vadd.f32 %v4636_v2, %v11109_v29  ;;  %v11362_v1 = vmul.f32 %v10761_v51, %v4392_v56  ;;  %v4737_v6 = vadd.f32 %v4705_v26, %v11112_v22  ;;  %v13859_v24 = vld [vmem:[#allocation7_spill] sm:$0xff]  ;;  %v11382_v26 = vld [vmem:[#allocation2 + $0x40] sm:$0xff] }
 0x6ea   : > { %13854 = vst [vmem:[#allocation75_spill] sm:$0xff] %v11357_v52  ;;  %v4938_v13 = vadd.f32 %v4906_v28, %v4870_v17  ;;  %v4772_v34 = vmul.f32 %v13831_v45, %v13857_v60  ;;  %v4773_v30 = vmul.f32 %v13831_v45, %v13858_v9  ;;  %v5007_v21 = vadd.f32 %v13859_v24, %v4939_v54  ;;  %v5287_v40 = vld [vmem:[#allocation2 + $0x41] sm:$0xff] }
 0x6eb   : > { %v11365_v11 = vadd.f32 %v4641_v23, %v4605_v10  ;;  %v4736_v49 = vadd.f32 %v4704_v58, %v4668_v62  ;;  %v4840_v29 = vmul.f32 %v10770_v15, %v13833_v14  ;;  %v4908_v44 = vmul.f32 %v10774_v50, %v4392_v56  ;;  %v13860_v2 = vld [vmem:[#allocation103_spill] sm:$0xff]  ;;  %v11380_v23 = vld [vmem:[#allocation2 + $0x38] sm:$0xff]  ;;  %v13861_v56 = vld [vmem:[#allocation88_spill] sm:$0xff] }
 0x6ec   : > { %v5006_v22 = vadd.f32 %v13860_v2, %v4938_v13  ;;  %v4805_v28 = vadd.f32 %v4773_v30, %v4737_v6  ;;  %v4909_v10 = vmul.f32 %v10774_v50, %v13843_v61  ;;  %v4976_v41 = vmul.f32 %v10778_v19, %v13849_v3  ;;  %v11388_v13 = vld [vmem:[#allocation2 + $0x39] sm:$0xff]  ;;  %v5216_v2 = vld [vmem:[#allocation2 + $0x47] sm:$0xff]  ;;  %v5217_v30 = vld [vmem:[#allocation2 + $0x4f] sm:$0xff] }
 0x6ed   : > { %13856 = vst [vmem:[#allocation83_spill] sm:$0xff] %v11365_v11  ;;  %v5075_v58 = vadd.f32 %v5043_v20, %v5007_v21  ;;  %v4804_v17 = vadd.f32 %v4772_v34, %v4736_v49  ;;  %v4977_v54 = vmul.f32 %v10778_v19, %v13850_v57  ;;  %v5044_v62 = vmul.f32 %v10875_v32, %v13861_v56 }
 0x6ee   : > { %v5074_v6 = vadd.f32 %v5042_v59, %v5006_v22  ;;  %v4873_v60 = vadd.f32 %v4841_v39, %v4805_v28  ;;  %v5045_v9 = vmul.f32 %v10875_v32, %v11330_v5  ;;  %v11394_v24 = vsel %vm13723_vm7, %v5287_v40, 0.0  ;;  %v5289_v59 = vld [vmem:[#allocation2 + $0x51] sm:$0xff]  ;;  %vm13870_vm7 = vmmov %vm13815_vm4 }
 0x6ef   : > { %v5107_v20 = vmax.f32 %v5075_v58, 0.0  ;;  %v4872_v34 = vadd.f32 %v4840_v29, %v4804_v17  ;;  %v5834_v21 = vmul.f32 %v13821_v18, %v11380_v23  ;;  %v5835_v49 = vmul.f32 %v13821_v18, %v11382_v26  ;;  %v11406_v58 = vld [vmem:[#allocation2 + $0xd0] sm:$0xff] }
 0x6f0   : > { %v5106_v39 = vmax.f32 %v5074_v6, 0.0  ;;  %v4941_v22 = vadd.f32 %v4909_v10, %v4873_v60  ;;  %v5902_v28 = vmul.f32 %v11266_v27, %v11388_v13  ;;  %v5903_v40 = vmul.f32 %v11266_v27, %v11394_v24  ;;  %13863 = vst [vmem:[#allocation26_spill] sm:$0xff] %v11406_v58  ;;  %v11408_v29 = vld [vmem:[#allocation2 + $0xd1] sm:$0xff]  ;;  %v5288_v6 = vld [vmem:[#allocation2 + $0x49] sm:$0xff] }
 0x6f1   : > { %13864 = vst [vmem:[#allocation40_spill] sm:$0xff] %v11408_v29  ;;  %v4940_v17 = vadd.f32 %v4908_v44, %v4872_v34  ;;  %v5866_v11 = vadd.f32 %v5834_v21, %v11274_v12  ;;  %v5867_v52 = vadd.f32 %v5835_v49, %v11292_v16  ;;  %v5181_v32 = vld [vmem:[#allocation2 + $0x50] sm:$0xff]  ;;  %v5252_v10 = vsel %vm13781_vm3, %v5216_v2, 0.0  ;;  %v11414_v60 = vld [vmem:[#allocation2 + $0xd8] sm:$0xff]  ;;  %vm13872_vm3 = vmmov %vm13815_vm4 }
 0x6f2   : > { %13865 = vst [vmem:[#allocation41_spill] sm:$0xff] %v11414_v60  ;;  %v6003_v19 = vpack.c.bf16 %v5107_v20, %v5106_v39  ;;  %v5009_v50 = vadd.f32 %v4977_v54, %v4941_v22  ;;  %v5325_v56 = vsel %vm13783_vm5, %v5289_v59, 0.0  ;;  %v5364_v58 = vmul.f32 %v10742_v33, %v5252_v10  ;;  %v11419_v29 = vld [vmem:[#allocation2 + $0xd7] sm:$0xff]  ;;  %v11421_v44 = vld [vmem:[#allocation2 + $0xdf] sm:$0xff]  ;;  %v13871_v54 = vld [vmem:[#allocation71_spill] sm:$0xff] }
 0x6f3   : > { %13866 = vst [vmem:[#allocation5_spill] sm:$0xff] %v11419_v29  ;;  %13867 = vst [vmem:[#allocation87_spill] sm:$0xff] %v11421_v44  ;;  %v11423_v12 = vld [vmem:[#allocation2 + $0xd9] sm:$0xff]  ;;  %v5008_v16 = vadd.f32 %v4976_v41, %v4940_v17  ;;  %v5934_v34 = vadd.f32 %v5902_v28, %v5866_v11  ;;  %v5935_v63 = vadd.f32 %v5903_v40, %v5867_v52  ;;  %v13869_v21 = vld [vmem:[#allocation64_spill] sm:$0xff] }
 0x6f4   : > { %13868 = vst [vmem:[#allocation39_spill] sm:$0xff] %v11423_v12  ;;  %v5365_v2 = vmul.f32 %v10742_v33, %v5217_v30  ;;  %5161 = vst.msk [vmem:[#allocation2 + $0xd0] sm:$0xff] %vm13870_vm7, %v13869_v21  ;;  %v5077_v7 = vadd.f32 %v5045_v9, %v5009_v50  ;;  %v5432_v20 = vmul.f32 %v10745_v53, %v11400_v35 }
 0x6f5   : > { %5162 = vst.msk [vmem:[#allocation2 + $0xd8] sm:$0xff] %vm13872_vm3, %v13871_v54  ;;  %vm13873_vm5 = vmmov %vm13872_vm3  ;;  %v5433_v49 = vmul.f32 %v10745_v53, %v5181_v32  ;;  %v5500_v41 = vmul.f32 %v10782_v42, %v5288_v6  ;;  %v5076_v11 = vadd.f32 %v5044_v62, %v5008_v16  ;;  %v5966_v52 = vmax.f32 %v5934_v34, 0.0 }
 0x6f6   : > { %7729 = vmatmul.mubr.msk.bf16.gmra.mxu1 %vm13873_vm5, %v6003_v19  ;;  %v5967_v59 = vmax.f32 %v5935_v63, 0.0  ;;  %v5501_v39 = vmul.f32 %v10782_v42, %v5325_v56  ;;  %v5109_v22 = vmax.f32 %v5077_v7, 0.0  ;;  %v5464_v28 = vadd.f32 %v5432_v20, %v5364_v58  ;;  %vm13875_vm9 = vmmov %vm13872_vm3 }
 0x6f7   : > { %v5465_v40 = vadd.f32 %v5433_v49, %v5365_v2  ;;  %v5564_v17 = vmul.f32 %v10785_v55, %v11212_v38  ;;  %v11440_v50 = vmul.f32 %v10770_v15, %v11330_v5  ;;  %v5108_v19 = vmax.f32 %v5076_v11, 0.0  ;;  %vm13876_vm8 = vmmov %vm13872_vm3 }
 0x6f8   : > { %v6020_v9 = vpack.c.bf16 %v5967_v59, %v5966_v52  ;;  %v5565_v21 = vmul.f32 %v10785_v55, %v11253_v8  ;;  %v11444_v62 = vadd.f32 %v5500_v41, %v5464_v28  ;;  %v11449_v34 = vmul.f32 %v10785_v55, %v5252_v10  ;;  %vm13900_vm14 = vmmov %vm13872_vm3 }
 0x6f9   : > { %v11446_v16 = vadd.f32 %v5501_v39, %v5465_v40  ;;  %v5596_v58 = vadd.f32 %v5564_v17, %v11231_v31  ;;  %v6004_v63 = vpack.c.bf16 %v5109_v22, %v5108_v19  ;;  %v5632_v2 = vmul.f32 %v10788_v25, %v11380_v23  ;;  %vm13913_vm15 = vmmov %vm13872_vm3 }
 0x6fa   : > { %7689 = vmatmul.mubr.msk.bf16.vlgmr.msra.gmra.mxu0 %vm13875_vm9, %v6020_v9  ;;  %v5597_v5 = vadd.f32 %v5565_v21, %v11259_v37  ;;  %v5633_v54 = vmul.f32 %v10788_v25, %v11382_v26  ;;  %v11459_v7 = vmul.f32 %v10785_v55, %v5217_v30  ;;  %v11463_v20 = vmul.f32 %v10788_v25, %v11400_v35  ;;  %vm13916_vm12 = vmmov %vm13872_vm3 }
 0x6fb   : > { %13874 = vst [vmem:[#allocation38_spill] sm:$0xff] %v11446_v16  ;;  %v11466_v31 = vmul.f32 %v10788_v25, %v5181_v32  ;;  %v5700_v49 = vmul.f32 %v13818_v36, %v11388_v13  ;;  %7732 = vmatprep.mubr.msk.bf16.mxu1 %vm13876_vm8, %v6004_v63  ;;  %v5664_v37 = vadd.f32 %v5632_v2, %v5596_v58  ;;  %v13877_v58 = vld [vmem:[#allocation117_spill] sm:$0xff]  ;;  %v13878_v63 = vld [vmem:[#allocation50_spill] sm:$0xff]  ;;  %v13880_v2 = vld [vmem:[#allocation91_spill] sm:$0xff] }
 0x6fc   : > { %v5665_v41 = vadd.f32 %v5633_v54, %v5597_v5  ;;  %v5701_v11 = vmul.f32 %v13818_v36, %v11394_v24  ;;  %v11474_v52 = vmul.f32 %v13818_v36, %v5288_v6  ;;  %v11477_v59 = vmul.f32 %v13818_v36, %v5325_v56  ;;  %v13881_v54 = vld [vmem:[#allocation51_spill] sm:$0xff] }
 0x6fd   : > { %v5768_v39 = vmul.f32 %v13820_v4, %v5252_v10  ;;  %v5769_v22 = vmul.f32 %v13820_v4, %v5217_v30  ;;  %v5836_v28 = vmul.f32 %v13821_v18, %v11400_v35  ;;  %v5732_v40 = vadd.f32 %v5700_v49, %v5664_v37  ;;  %v13883_v30 = vld [vmem:[#allocation116_spill] sm:$0xff] }
 0x6fe   : > { %v5733_v17 = vadd.f32 %v5701_v11, %v5665_v41  ;;  %v5837_v19 = vmul.f32 %v13821_v18, %v5181_v32  ;;  %v5904_v9 = vmul.f32 %v11266_v27, %v5288_v6  ;;  %v5905_v21 = vmul.f32 %v11266_v27, %v5325_v56  ;;  %v13884_v32 = vld [vmem:[#allocation115_spill] sm:$0xff]  ;;  %v13885_v41 = vld [vmem:[#allocation100_spill] sm:$0xff] }
 0x6ff   : > { %vm13879_vm11 = vnez %v13878_v63  ;;  %vm13882_vm6 = vnez %v13881_v54  ;;  %v4507_v12 = vmul.f32 %v10691_v48, %v13883_v30  ;;  %v5800_v35 = vadd.f32 %v5768_v39, %v5732_v40 }
 0x700   : > { %v4394_v5 = vsel %vm13879_vm11, %v13877_v58, 0.0  ;;  %v4467_v10 = vsel %vm13882_vm6, %v13880_v2, 0.0  ;;  %v5801_v49 = vadd.f32 %v5769_v22, %v5733_v17  ;;  %v4575_v6 = vmul.f32 %v10681_v46, %v13884_v32 }
 0x701   : > { %v4506_v37 = vmul.f32 %v10691_v48, %v4394_v5  ;;  %v4574_v56 = vmul.f32 %v10681_v46, %v13885_v41  ;;  %v4638_v11 = vmul.f32 %v10739_v0, %v13833_v14  ;;  %v4643_v58 = vmul.f32 %v10739_v0, %v4467_v10 }
 0x702   : > { %v4707_v2 = vmul.f32 %v10761_v51, %v13843_v61  ;;  %v5868_v60 = vadd.f32 %v5836_v28, %v5800_v35  ;;  %v5869_v44 = vadd.f32 %v5837_v19, %v5801_v49  ;;  %v4607_v39 = vadd.f32 %v4575_v6, %v4507_v12  ;;  %v13888_v19 = vld [vmem:[#allocation88_spill] sm:$0xff] }
 0x703   : > { %v4708_v22 = vmul.f32 %v10761_v51, %v4394_v5  ;;  %v11505_v40 = vadd.f32 %v4574_v56, %v4506_v37  ;;  %v4670_v17 = vadd.f32 %v4638_v11, %v11296_v43  ;;  %v4775_v54 = vmul.f32 %v13831_v45, %v13850_v57  ;;  %v13889_v37 = vld [vmem:[#allocation95_spill] sm:$0xff] }
 0x704   : > { %v4739_v29 = vadd.f32 %v4707_v2, %v11300_v47  ;;  %v5936_v14 = vadd.f32 %v5904_v9, %v5868_v60  ;;  %v5937_v63 = vadd.f32 %v5905_v21, %v5869_v44  ;;  %v11511_v16 = vadd.f32 %v4643_v58, %v4607_v39  ;;  %v13891_v21 = vld [vmem:[#allocation118_spill] sm:$0xff]  ;;  %v13893_v11 = vld [vmem:[#allocation11_spill] sm:$0xff]  ;;  %v13896_v58 = vld [vmem:[#allocation21_spill] sm:$0xff] }
 0x705   : > { %13886 = vst [vmem:[#allocation89_spill] sm:$0xff] %v11505_v40  ;;  %v4774_v61 = vmul.f32 %v13831_v45, %v13849_v3  ;;  %v4738_v12 = vadd.f32 %v11362_v1, %v4670_v17  ;;  %v4842_v35 = vmul.f32 %v10770_v15, %v13888_v19  ;;  %v4845_v43 = vmul.f32 %v10770_v15, %v4467_v10  ;;  %v13890_v3 = vld [vmem:[#allocation93_spill] sm:$0xff]  ;;  %v13905_v40 = vld [vmem:[#allocation75_spill] sm:$0xff] }
 0x706   : > { %13887 = vst [vmem:[#allocation63_spill] sm:$0xff] %v11511_v16  ;;  %v4807_v28 = vadd.f32 %v4775_v54, %v4739_v29  ;;  %v5968_v49 = vmax.f32 %v5936_v14, 0.0  ;;  %v5969_v47 = vmax.f32 %v5937_v63, 0.0  ;;  %v4910_v6 = vmul.f32 %v13889_v37, %v4394_v5  ;;  %v13892_v54 = vld [vmem:[#allocation9_spill] sm:$0xff]  ;;  %v13894_v63 = vld [vmem:[#allocation56_spill] sm:$0xff] }
 0x707   : > { %v4911_v57 = vmul.f32 %v13889_v37, %v13883_v30  ;;  %v4806_v60 = vadd.f32 %v4774_v61, %v4738_v12  ;;  %v4978_v9 = vmul.f32 %v13890_v3, %v13885_v41  ;;  %v4979_v1 = vmul.f32 %v13890_v3, %v13884_v32  ;;  %v13897_v2 = vld [vmem:[#allocation57_spill] sm:$0xff]  ;;  %v13899_v61 = vld [vmem:[#allocation12_spill] sm:$0xff] }
 0x708   : > { %v4875_v44 = vadd.f32 %v11440_v50, %v4807_v28  ;;  %v6021_v29 = vpack.c.bf16 %v5969_v47, %v5968_v49  ;;  %v5046_v56 = vmul.f32 %v13892_v54, %v13891_v21  ;;  %vm13895_vm4 = vnez %v13894_v63  ;;  %v13901_v28 = vld [vmem:[#allocation102_spill] sm:$0xff]  ;;  %v13902_v47 = vld [vmem:[#allocation13_spill] sm:$0xff] }
 0x709   : > { %v4396_v5 = vsel %vm13895_vm4, %v13893_v11, 0.0  ;;  %vm13898_vm10 = vnez %v13897_v2  ;;  %v4874_v50 = vadd.f32 %v4842_v35, %v4806_v60  ;;  %v4509_v12 = vmul.f32 %v10691_v48, %v13899_v61 }
 0x70a   : > { %v11535_v39 = vsel %vm13898_vm10, %v13896_v58, 0.0  ;;  %v4943_v17 = vadd.f32 %v4911_v57, %v4875_v44  ;;  %v4508_v14 = vmul.f32 %v10691_v48, %v4396_v5  ;;  %7692 = vmatprep.mubr.msk.bf16.mxu0 %vm13900_vm14, %v6021_v29  ;;  %v4576_v49 = vmul.f32 %v10681_v46, %v13901_v28  ;;  %v11552_v29 = vld [vmem:[#allocation2 + $0xe0] sm:$0xff] }
 0x70b   : > { %v4577_v11 = vmul.f32 %v10681_v46, %v13902_v47  ;;  %v4640_v2 = vmul.f32 %v10739_v0, %v13888_v19  ;;  %v4645_v35 = vmul.f32 %v10739_v0, %v11535_v39  ;;  %v4942_v57 = vadd.f32 %v4910_v6, %v4874_v50  ;;  %13903 = vst [vmem:[#allocation96_spill] sm:$0xff] %v11552_v29  ;;  %v11560_v19 = vld [vmem:[#allocation2 + $0xe1] sm:$0xff] }
 0x70c   : > { %v5011_v60 = vadd.f32 %v4979_v1, %v4943_v17  ;;  %v5047_v44 = vmul.f32 %v13892_v54, %v4467_v10  ;;  %v4709_v58 = vmul.f32 %v10761_v51, %v13883_v30  ;;  %v11554_v63 = vadd.f32 %v4576_v49, %v4508_v14  ;;  %13906 = vst [vmem:[#allocation86_spill] sm:$0xff] %v11560_v19  ;;  %v11562_v0 = vld [vmem:[#allocation2 + $0xe8] sm:$0xff]  ;;  %v5290_v19 = vld [vmem:[#allocation2 + $0x59] sm:$0xff] }
 0x70d   : > { %v4609_v16 = vadd.f32 %v4577_v11, %v4509_v12  ;;  %v4672_v46 = vadd.f32 %v4640_v2, %v13905_v40  ;;  %v11558_v48 = vmul.f32 %v10761_v51, %v4396_v5  ;;  %13907 = vst [vmem:[#allocation105_spill] sm:$0xff] %v11562_v0  ;;  %v11564_v6 = vld [vmem:[#allocation2 + $0xe7] sm:$0xff]  ;;  %v5010_v10 = vadd.f32 %v4978_v9, %v4942_v57  ;;  %v11569_v17 = vld [vmem:[#allocation2 + $0xef] sm:$0xff]  ;;  %v13912_v40 = vld [vmem:[#allocation73_spill] sm:$0xff] }
 0x70e   : > { %13904 = vst [vmem:[#allocation25_spill] sm:$0xff] %v11554_v63  ;;  %13908 = vst [vmem:[#allocation101_spill] sm:$0xff] %v11564_v6  ;;  %v5079_v1 = vadd.f32 %v5047_v44, %v5011_v60  ;;  %v13909_v54 = vld [vmem:[#allocation83_spill] sm:$0xff]  ;;  %v4777_v50 = vmul.f32 %v13831_v45, %v13884_v32  ;;  %v4776_v49 = vmul.f32 %v13831_v45, %v13885_v41  ;;  %v13915_v11 = vld [vmem:[#allocation70_spill] sm:$0xff] }
 0x70f   : > { %v4741_v30 = vadd.f32 %v4709_v58, %v13909_v54  ;;  %13910 = vst [vmem:[#allocation92_spill] sm:$0xff] %v11569_v17  ;;  %v11571_v14 = vld [vmem:[#allocation2 + $0xe9] sm:$0xff]  ;;  %5163 = vst.msk [vmem:[#allocation2 + $0xe0] sm:$0xff] %vm13913_vm15, %v13912_v40  ;;  %v11575_v2 = vadd.f32 %v4645_v35, %v4609_v16  ;;  %v4740_v12 = vadd.f32 %v4708_v22, %v4672_v46  ;;  %v5218_v58 = vld [vmem:[#allocation2 + $0x57] sm:$0xff] }
 0x710   : > { %13911 = vst [vmem:[#allocation99_spill] sm:$0xff] %v11571_v14  ;;  %v4844_v9 = vmul.f32 %v10770_v15, %v13891_v21  ;;  %5164 = vst.msk [vmem:[#allocation2 + $0xe8] sm:$0xff] %vm13916_vm12, %v13915_v11  ;;  %v5078_v32 = vadd.f32 %v5046_v56, %v5010_v10  ;;  %v5111_v57 = vmax.f32 %v5079_v1, 0.0  ;;  %v4912_v44 = vmul.f32 %v13889_v37, %v4396_v5  ;;  %v5291_v54 = vld [vmem:[#allocation2 + $0x61] sm:$0xff]  ;;  %v11593_v56 = vld [vmem:[%s12773_s1 + $0x35] ss:$0 sm:$0xff] }
 0x711   : > { %13914 = vst [vmem:[#allocation82_spill] sm:$0xff] %v11575_v2  ;;  %v4809_v60 = vadd.f32 %v4777_v50, %v4741_v30  ;;  %v4808_v40 = vadd.f32 %v4776_v49, %v4740_v12  ;;  %v4913_v46 = vmul.f32 %v13889_v37, %v13899_v61  ;;  %v4980_v16 = vmul.f32 %v13890_v3, %v13901_v28  ;;  %v13917_v5 = vld [vmem:[#allocation10_spill] sm:$0xff]  ;;  %v5182_v49 = vld [vmem:[#allocation2 + $0x58] sm:$0xff]  ;;  %v11609_v0 = vld [vmem:[#allocation2 + $0xf0] sm:$0xff] }
 0x712   : > { %v4981_v41 = vmul.f32 %v13890_v3, %v13902_v47  ;;  %v5110_v22 = vmax.f32 %v5078_v32, 0.0  ;;  %v5048_v10 = vmul.f32 %v11593_v56, %v13917_v5  ;;  %v5049_v1 = vmul.f32 %v11593_v56, %v11535_v39  ;;  %v11599_v30 = vld [vmem:[#allocation2 + $0x60] sm:$0xff]  ;;  %13920 = vst [vmem:[#allocation111_spill] sm:$0xff] %v11609_v0  ;;  %v11611_v17 = vld [vmem:[#allocation2 + $0xf1] sm:$0xff] }
 0x713   : > { %v4877_v35 = vadd.f32 %v4845_v43, %v4809_v60  ;;  %v5219_v50 = vld [vmem:[#allocation2 + $0x5f] sm:$0xff]  ;;  %v4876_v12 = vadd.f32 %v4844_v9, %v4808_v40  ;;  %v5254_v32 = vsel %vm13823_vm1, %v5218_v58, 0.0  ;;  %v11605_v60 = vsel %vm13709_vm0, %v5291_v54, 0.0  ;;  %13921 = vst [vmem:[#allocation113_spill] sm:$0xff] %v11611_v17  ;;  %v11623_v0 = vld [vmem:[#allocation2 + $0xf7] sm:$0xff]  ;;  %vm13926_vm0 = vmmov %vm13872_vm3 }
 0x714   : > { %v5362_v14 = vmul.f32 %v10742_v33, %v11212_v38  ;;  %v6005_v6 = vpack.c.bf16 %v5111_v57, %v5110_v22  ;;  %v5363_v9 = vmul.f32 %v10742_v33, %v11253_v8  ;;  %v5366_v40 = vmul.f32 %v10742_v33, %v5254_v32  ;;  %v11616_v58 = vld [vmem:[#allocation2 + $0xf8] sm:$0xff]  ;;  %13923 = vst [vmem:[#allocation104_spill] sm:$0xff] %v11623_v0  ;;  %vm13928_vm1 = vmmov %vm13926_vm0 }
 0x715   : > { %v4945_v29 = vadd.f32 %v4913_v46, %v4877_v35  ;;  %13922 = vst [vmem:[#allocation8_spill] sm:$0xff] %v11616_v58  ;;  %v4944_v11 = vadd.f32 %v4912_v44, %v4876_v12  ;;  %v5367_v54 = vmul.f32 %v10742_v33, %v5219_v50  ;;  %v5430_v38 = vmul.f32 %v10745_v53, %v11380_v23  ;;  %v11625_v57 = vld [vmem:[#allocation2 + $0xff] sm:$0xff]  ;;  %v13927_v35 = vld [vmem:[#allocation72_spill] sm:$0xff]  ;;  %vm13930_vm7 = vmmov %vm13926_vm0 }
 0x716   : > { %v5431_v43 = vmul.f32 %v10745_v53, %v11382_v26  ;;  %13924 = vst [vmem:[#allocation97_spill] sm:$0xff] %v11625_v57  ;;  %v11627_v46 = vld [vmem:[#allocation2 + $0xf9] sm:$0xff]  ;;  %7733 = vmatmul.mubr.msk.bf16.gmra.mxu1 %vm13926_vm0, %v6005_v6  ;;  %v5434_v22 = vmul.f32 %v10745_v53, %v5182_v49  ;;  %v5435_v44 = vmul.f32 %v10745_v53, %v11599_v30  ;;  %5165 = vst.msk [vmem:[#allocation2 + $0xf0] sm:$0xff] %vm13928_vm1, %v13927_v35  ;;  %v13929_v26 = vld [vmem:[#allocation79_spill] sm:$0xff] }
 0x717   : > { %13925 = vst [vmem:[#allocation109_spill] sm:$0xff] %v11627_v46  ;;  %v5013_v8 = vadd.f32 %v4981_v41, %v4945_v29  ;;  %v5498_v23 = vmul.f32 %v10782_v42, %v11388_v13  ;;  %5166 = vst.msk [vmem:[#allocation2 + $0xf8] sm:$0xff] %vm13930_vm7, %v13929_v26  ;;  %v5012_v12 = vadd.f32 %v4980_v16, %v4944_v11 }
 0x718   : > { %v5462_v58 = vadd.f32 %v5430_v38, %v5362_v14  ;;  %v5463_v46 = vadd.f32 %v5431_v43, %v5363_v9  ;;  %v5499_v29 = vmul.f32 %v10782_v42, %v11394_v24  ;;  %v5466_v41 = vadd.f32 %v5434_v22, %v5366_v40  ;;  %vm13931_vm3 = vmmov %vm13926_vm0 }
 0x719   : > { %v5081_v6 = vadd.f32 %v5049_v1, %v5013_v8  ;;  %v5467_v57 = vadd.f32 %v5435_v44, %v5367_v54  ;;  %v5502_v0 = vmul.f32 %v10782_v42, %v5290_v19  ;;  %v11644_v13 = vmul.f32 %v10770_v15, %v11535_v39  ;;  %vm13943_vm5 = vmmov %vm13926_vm0 }
 0x71a   : > { %v5080_v17 = vadd.f32 %v5048_v10, %v5012_v12  ;;  %v5530_v35 = vadd.f32 %v5498_v23, %v5462_v58  ;;  %v5531_v2 = vadd.f32 %v5499_v29, %v5463_v46  ;;  %v5503_v14 = vmul.f32 %v10782_v42, %v11605_v60  ;;  %v5184_v46 = vld [vmem:[#allocation2 + $0x68] sm:$0xff]  ;;  %vm13961_vm14 = vmmov %vm13926_vm0 }
 0x71b   : > { %v5113_v63 = vmax.f32 %v5081_v6, 0.0  ;;  %v11648_v16 = vadd.f32 %v5502_v0, %v5466_v41  ;;  %v5568_v24 = vmul.f32 %v10785_v55, %v5254_v32  ;;  %v5569_v9 = vmul.f32 %v10785_v55, %v5219_v50  ;;  %v5220_v0 = vld [vmem:[#allocation2 + $0x67] sm:$0xff]  ;;  %vm13970_vm15 = vmmov %vm13926_vm0 }
 0x71c   : > { %v5112_v1 = vmax.f32 %v5080_v17, 0.0  ;;  %v5598_v40 = vadd.f32 %v11449_v34, %v5530_v35  ;;  %v5599_v11 = vadd.f32 %v11459_v7, %v5531_v2  ;;  %v11654_v39 = vadd.f32 %v5503_v14, %v5467_v57  ;;  %v5221_v7 = vld [vmem:[#allocation2 + $0x6f] sm:$0xff]  ;;  %vm13973_vm12 = vmmov %vm13926_vm0 }
 0x71d   : > { %v5636_v10 = vmul.f32 %v10788_v25, %v5182_v49  ;;  %v5637_v58 = vmul.f32 %v10788_v25, %v11599_v30  ;;  %v5704_v54 = vmul.f32 %v13818_v36, %v5290_v19  ;;  %v5705_v34 = vmul.f32 %v13818_v36, %v11605_v60  ;;  %v5293_v2 = vld [vmem:[#allocation2 + $0x71] sm:$0xff]  ;;  %vm13992_vm1 = vmmov %vm13926_vm0 }
 0x71e   : > { %v6006_v38 = vpack.c.bf16 %v5113_v63, %v5112_v1  ;;  %v5666_v43 = vadd.f32 %v11463_v20, %v5598_v40  ;;  %v5667_v17 = vadd.f32 %v11466_v31, %v5599_v11  ;;  %v5770_v57 = vmul.f32 %v13820_v4, %v5254_v32  ;;  %v5185_v63 = vld [vmem:[#allocation2 + $0x70] sm:$0xff] }
 0x71f   : > { %v5771_v8 = vmul.f32 %v13820_v4, %v5219_v50  ;;  %v5838_v22 = vmul.f32 %v13821_v18, %v5182_v49  ;;  %v5839_v44 = vmul.f32 %v13821_v18, %v11599_v30  ;;  %v5906_v23 = vmul.f32 %v11266_v27, %v5290_v19  ;;  %v5292_v32 = vld [vmem:[#allocation2 + $0x69] sm:$0xff] }
 0x720   : > { %7736 = vmatprep.mubr.msk.bf16.mxu1 %vm13931_vm3, %v6006_v38  ;;  %v5734_v20 = vadd.f32 %v11474_v52, %v5666_v43  ;;  %v5735_v31 = vadd.f32 %v11477_v59, %v5667_v17  ;;  %v5256_v12 = vsel %vm13839_vm13, %v5220_v0, 0.0  ;;  %v5329_v50 = vsel %vm13842_vm2, %v5293_v2, 0.0 }
 0x721   : > { %v5368_v49 = vmul.f32 %v10742_v33, %v5256_v12  ;;  %v5369_v30 = vmul.f32 %v10742_v33, %v5221_v7  ;;  %v5436_v6 = vmul.f32 %v10745_v53, %v5184_v46  ;;  %v5907_v52 = vmul.f32 %v11266_v27, %v11605_v60  ;;  %v13934_v60 = vld [vmem:[#allocation38_spill] sm:$0xff] }
 0x722   : > { %v5802_v41 = vadd.f32 %v5770_v57, %v5734_v20  ;;  %v5803_v35 = vadd.f32 %v5771_v8, %v5735_v31  ;;  %v5437_v59 = vmul.f32 %v10745_v53, %v5185_v63  ;;  %v5504_v14 = vmul.f32 %v10782_v42, %v5292_v32 }
 0x723   : > { %v5468_v19 = vadd.f32 %v5436_v6, %v5368_v49  ;;  %v5505_v1 = vmul.f32 %v10782_v42, %v5329_v50  ;;  %v11686_v40 = vmul.f32 %v10785_v55, %v5256_v12  ;;  %v5600_v43 = vadd.f32 %v5568_v24, %v11444_v62 }
 0x724   : > { %v5870_v11 = vadd.f32 %v5838_v22, %v5802_v41  ;;  %v5871_v0 = vadd.f32 %v5839_v44, %v5803_v35  ;;  %v5469_v38 = vadd.f32 %v5437_v59, %v5369_v30  ;;  %v11692_v2 = vmul.f32 %v10785_v55, %v5221_v7 }
 0x725   : > { %v11689_v17 = vadd.f32 %v5504_v14, %v5468_v19  ;;  %v5601_v57 = vadd.f32 %v5569_v9, %v13934_v60  ;;  %v11696_v8 = vmul.f32 %v10788_v25, %v5184_v46  ;;  %v11699_v26 = vmul.f32 %v10788_v25, %v5185_v63  ;;  %v13935_v19 = vld [vmem:[#allocation19_spill] sm:$0xff]  ;;  %v13936_v14 = vld [vmem:[#allocation58_spill] sm:$0xff]  ;;  %v13945_v60 = vld [vmem:[#allocation24_spill] sm:$0xff] }
 0x726   : > { %v5938_v20 = vadd.f32 %v5906_v23, %v5870_v11  ;;  %v5939_v31 = vadd.f32 %v5907_v52, %v5871_v0  ;;  %v5668_v22 = vadd.f32 %v5636_v10, %v5600_v43  ;;  %v11701_v44 = vadd.f32 %v5505_v1, %v5469_v38  ;;  %v13938_v0 = vld [vmem:[#allocation18_spill] sm:$0xff] }
 0x727   : > { %v5669_v29 = vadd.f32 %v5637_v58, %v5601_v57  ;;  %v11704_v62 = vmul.f32 %v13818_v36, %v5292_v32  ;;  %v11707_v24 = vmul.f32 %v13818_v36, %v5329_v50  ;;  %v5772_v6 = vmul.f32 %v13820_v4, %v5256_v12 }
 0x728   : > { %v5970_v49 = vmax.f32 %v5938_v20, 0.0  ;;  %v5971_v9 = vmax.f32 %v5939_v31, 0.0  ;;  %v5736_v30 = vadd.f32 %v5704_v54, %v5668_v22  ;;  %v5773_v41 = vmul.f32 %v13820_v4, %v5221_v7  ;;  %v13939_v54 = vld [vmem:[#allocation59_spill] sm:$0xff]  ;;  %v13946_v20 = vld [vmem:[#allocation90_spill] sm:$0xff] }
 0x729   : > { %v5737_v23 = vadd.f32 %v5705_v34, %v5669_v29  ;;  %v5840_v35 = vmul.f32 %v13821_v18, %v5184_v46  ;;  %v5841_v10 = vmul.f32 %v13821_v18, %v5185_v63  ;;  %v5908_v59 = vmul.f32 %v11266_v27, %v5292_v32  ;;  %v13941_v34 = vld [vmem:[#allocation94_spill] sm:$0xff]  ;;  %v13942_v7 = vld [vmem:[#allocation15_spill] sm:$0xff]  ;;  %v13944_v32 = vld [vmem:[#allocation17_spill] sm:$0xff] }
 0x72a   : > { %v6022_v52 = vpack.c.bf16 %v5971_v9, %v5970_v49  ;;  %v5804_v58 = vadd.f32 %v5772_v6, %v5736_v30  ;;  %vm13937_vm13 = vnez %v13936_v14  ;;  %vm13940_vm2 = vnez %v13939_v54  ;;  %v13947_v29 = vld [vmem:[#allocation14_spill] sm:$0xff]  ;;  %v13974_v14 = vld [vmem:[#allocation25_spill] sm:$0xff] }
 0x72b   : > { %v4398_v1 = vsel %vm13937_vm13, %v13935_v19, 0.0  ;;  %v5805_v11 = vadd.f32 %v5773_v41, %v5737_v23  ;;  %v4471_v12 = vsel %vm13940_vm2, %v13938_v0, 0.0  ;;  %v4511_v46 = vmul.f32 %v13941_v34, %v13942_v7  ;;  %v13948_v41 = vld [vmem:[#allocation89_spill] sm:$0xff]  ;;  %v13950_v19 = vld [vmem:[#allocation63_spill] sm:$0xff] }
 0x72c   : > { %v4510_v38 = vmul.f32 %v13941_v34, %v4398_v1  ;;  %7693 = vmatmul.mubr.msk.bf16.gmra.mxu0 %vm13943_vm5, %v6022_v52  ;;  %v5872_v63 = vadd.f32 %v5840_v35, %v5804_v58  ;;  %v5909_v43 = vmul.f32 %v11266_v27, %v5329_v50  ;;  %v4579_v57 = vmul.f32 %v13945_v60, %v13944_v32  ;;  %vm14003_vm5 = vmmov %vm13926_vm0 }
 0x72d   : > { %v4642_v31 = vmul.f32 %v13946_v20, %v13891_v21  ;;  %v5873_v22 = vadd.f32 %v5841_v10, %v5805_v11  ;;  %v4578_v49 = vmul.f32 %v13945_v60, %v13947_v29  ;;  %v4647_v9 = vmul.f32 %v13946_v20, %v4471_v12 }
 0x72e   : > { %v4711_v30 = vmul.f32 %v10761_v51, %v13899_v61  ;;  %v5940_v6 = vadd.f32 %v5908_v59, %v5872_v63  ;;  %v4611_v23 = vadd.f32 %v4579_v57, %v4511_v46  ;;  %v4712_v50 = vmul.f32 %v10761_v51, %v4398_v1 }
 0x72f   : > { %v4674_v35 = vadd.f32 %v4642_v31, %v13948_v41  ;;  %v5941_v52 = vadd.f32 %v5909_v43, %v5873_v22  ;;  %v11736_v58 = vadd.f32 %v4578_v49, %v4510_v38  ;;  %v4779_v10 = vmul.f32 %v13831_v45, %v13902_v47  ;;  %v13952_v49 = vld [vmem:[#allocation16_spill] sm:$0xff]  ;;  %v13957_v41 = vld [vmem:[#allocation29_spill] sm:$0xff] }
 0x730   : > { %v4743_v21 = vadd.f32 %v4711_v30, %v13950_v19  ;;  %v5972_v11 = vmax.f32 %v5940_v6, 0.0  ;;  %v11741_v0 = vadd.f32 %v4647_v9, %v4611_v23  ;;  %v4778_v61 = vmul.f32 %v13831_v45, %v13901_v28  ;;  %v13953_v6 = vld [vmem:[#allocation35_spill] sm:$0xff]  ;;  %v13956_v23 = vld [vmem:[#allocation61_spill] sm:$0xff] }
 0x731   : > { %13949 = vst [vmem:[#allocation110_spill] sm:$0xff] %v11736_v58  ;;  %v4742_v54 = vadd.f32 %v11558_v48, %v4674_v35  ;;  %v5973_v59 = vmax.f32 %v5941_v52, 0.0  ;;  %v4846_v63 = vmul.f32 %v10770_v15, %v13917_v5  ;;  %v4849_v38 = vmul.f32 %v10770_v15, %v4471_v12  ;;  %v13959_v52 = vld [vmem:[#allocation77_spill] sm:$0xff] }
 0x732   : > { %13951 = vst [vmem:[#allocation6_spill] sm:$0xff] %v11741_v0  ;;  %v4811_v46 = vadd.f32 %v4779_v10, %v4743_v21  ;;  %v4914_v57 = vmul.f32 %v13889_v37, %v4398_v1  ;;  %v4915_v47 = vmul.f32 %v13889_v37, %v13942_v7  ;;  %v4982_v31 = vmul.f32 %v13890_v3, %v13947_v29 }
 0x733   : > { %v4810_v43 = vadd.f32 %v4778_v61, %v4742_v54  ;;  %v6023_v48 = vpack.c.bf16 %v5973_v59, %v5972_v11  ;;  %v4983_v28 = vmul.f32 %v13890_v3, %v13944_v32  ;;  %v5050_v9 = vmul.f32 %v11593_v56, %v13952_v49  ;;  %v13954_v54 = vld [vmem:[#allocation28_spill] sm:$0xff]  ;;  %v13962_v11 = vld [vmem:[#allocation22_spill] sm:$0xff] }
 0x734   : > { %v4879_v22 = vadd.f32 %v11644_v13, %v4811_v46  ;;  %vm13955_vm9 = vnez %v13954_v54  ;;  %vm13958_vm8 = vnez %v13957_v41  ;;  %v4513_v19 = vmul.f32 %v13941_v34, %v13959_v52  ;;  %v11769_v13 = vld [vmem:[#allocation2 + $0x100] sm:$0xff]  ;;  %v13963_v59 = vld [vmem:[#allocation20_spill] sm:$0xff]  ;;  %v13969_v54 = vld [vmem:[#allocation81_spill] sm:$0xff] }
 0x735   : > { %v4878_v30 = vadd.f32 %v4846_v63, %v4810_v43  ;;  %v4400_v1 = vsel %vm13955_vm9, %v13953_v6, 0.0  ;;  %v11765_v35 = vsel %vm13958_vm8, %v13956_v23, 0.0  ;;  %13960 = vst [vmem:[#allocation112_spill] sm:$0xff] %v11769_v13  ;;  %7696 = vmatprep.mubr.msk.bf16.mxu0 %vm13961_vm14, %v6023_v48  ;;  %v4580_v61 = vmul.f32 %v13945_v60, %v13962_v11  ;;  %v11777_v63 = vld [vmem:[#allocation2 + $0x101] sm:$0xff]  ;;  %v11791_v41 = vld [vmem:[#allocation2 + $0x109] sm:$0xff] }
 0x736   : > { %v4947_v21 = vadd.f32 %v4915_v47, %v4879_v22  ;;  %v4512_v10 = vmul.f32 %v13941_v34, %v4400_v1  ;;  %v4581_v46 = vmul.f32 %v13945_v60, %v13963_v59  ;;  %13964 = vst [vmem:[#allocation65_spill] sm:$0xff] %v11777_v63  ;;  %v11779_v43 = vld [vmem:[#allocation2 + $0x108] sm:$0xff]  ;;  %v4644_v13 = vmul.f32 %v13946_v20, %v13917_v5  ;;  %v13972_v5 = vld [vmem:[#allocation78_spill] sm:$0xff] }
 0x737   : > { %13965 = vst [vmem:[#allocation98_spill] sm:$0xff] %v11779_v43  ;;  %v11781_v6 = vld [vmem:[#allocation2 + $0x107] sm:$0xff]  ;;  %v4946_v23 = vadd.f32 %v4914_v57, %v4878_v30  ;;  %v4649_v47 = vmul.f32 %v13946_v20, %v11765_v35  ;;  %v4713_v48 = vmul.f32 %v10761_v51, %v13942_v7  ;;  %v11789_v22 = vld [vmem:[#allocation2 + $0x10f] sm:$0xff]  ;;  %13968 = vst [vmem:[#allocation108_spill] sm:$0xff] %v11791_v41 }
 0x738   : > { %13966 = vst [vmem:[#allocation114_spill] sm:$0xff] %v11781_v6  ;;  %13967 = vst [vmem:[#allocation62_spill] sm:$0xff] %v11789_v22  ;;  %v5015_v43 = vadd.f32 %v4983_v28, %v4947_v21  ;;  %v5051_v6 = vmul.f32 %v11593_v56, %v4471_v12  ;;  %v11796_v57 = vadd.f32 %v4580_v61, %v4512_v10  ;;  %v13975_v22 = vld [vmem:[#allocation82_spill] sm:$0xff] }
 0x739   : > { %5167 = vst.msk [vmem:[#allocation2 + $0x100] sm:$0xff] %vm13970_vm15, %v13969_v54  ;;  %v4613_v30 = vadd.f32 %v4581_v46, %v4513_v19  ;;  %v5014_v63 = vadd.f32 %v4982_v31, %v4946_v23  ;;  %v4676_v0 = vadd.f32 %v4644_v13, %v13974_v14  ;;  %v11802_v7 = vmul.f32 %v10761_v51, %v4400_v1  ;;  %v5222_v13 = vld [vmem:[#allocation2 + $0x77] sm:$0xff]  ;;  %v5295_v21 = vld [vmem:[#allocation2 + $0x81] sm:$0xff] }
 0x73a   : > { %13971 = vst [vmem:[#allocation119_spill] sm:$0xff] %v11796_v57  ;;  %5168 = vst.msk [vmem:[#allocation2 + $0x108] sm:$0xff] %vm13973_vm12, %v13972_v5  ;;  %v4745_v41 = vadd.f32 %v4713_v48, %v13975_v22  ;;  %v5083_v58 = vadd.f32 %v5051_v6, %v5015_v43  ;;  %v4780_v12 = vmul.f32 %v13831_v45, %v13947_v29  ;;  %v5223_v43 = vld [vmem:[#allocation2 + $0x7f] sm:$0xff]  ;;  %v5258_v48 = vsel %vm13879_vm11, %v5222_v13, 0.0  ;;  %v11837_v57 = vld [vmem:[#allocation2 + $0x110] sm:$0xff] }
 0x73b   : > { %v11805_v20 = vadd.f32 %v4649_v47, %v4613_v30  ;;  %v4781_v28 = vmul.f32 %v13831_v45, %v13944_v32  ;;  %v5082_v54 = vadd.f32 %v5050_v9, %v5014_v63  ;;  %v4744_v19 = vadd.f32 %v4712_v50, %v4676_v0  ;;  %v5186_v63 = vld [vmem:[#allocation2 + $0x78] sm:$0xff]  ;;  %v5187_v6 = vld [vmem:[#allocation2 + $0x80] sm:$0xff]  ;;  %13980 = vst [vmem:[#allocation107_spill] sm:$0xff] %v11837_v57  ;;  %vm13982_vm11 = vmmov %vm13926_vm0 }
 0x73c   : > { %v4848_v31 = vmul.f32 %v10770_v15, %v13952_v49  ;;  %v11815_v14 = vmul.f32 %v10770_v15, %v11765_v35  ;;  %v5115_v10 = vmax.f32 %v5083_v58, 0.0  ;;  %v4916_v46 = vmul.f32 %v13889_v37, %v4400_v1  ;;  %v5294_v23 = vld [vmem:[#allocation2 + $0x79] sm:$0xff]  ;;  %v11839_v13 = vld [vmem:[#allocation2 + $0x111] sm:$0xff]  ;;  %vm14020_vm12 = vmmov %vm13926_vm0 }
 0x73d   : > { %13976 = vst [vmem:[#allocation106_spill] sm:$0xff] %v11805_v20  ;;  %v4813_v61 = vadd.f32 %v4781_v28, %v4745_v41  ;;  %v4917_v29 = vmul.f32 %v13889_v37, %v13959_v52  ;;  %v5114_v32 = vmax.f32 %v5082_v54, 0.0  ;;  %v4812_v9 = vadd.f32 %v4780_v12, %v4744_v19  ;;  %v13977_v58 = vld [vmem:[#allocation74_spill] sm:$0xff]  ;;  %13981 = vst [vmem:[#allocation7_spill] sm:$0xff] %v11839_v13  ;;  %v11849_v22 = vld [vmem:[#allocation2 + $0x117] sm:$0xff] }
 0x73e   : > { %v4984_v50 = vmul.f32 %v13890_v3, %v13962_v11  ;;  %v4985_v0 = vmul.f32 %v13890_v3, %v13963_v59  ;;  %v5052_v41 = vmul.f32 %v11593_v56, %v13977_v58  ;;  %v11830_v30 = vsel %vm13882_vm6, %v5295_v21, 0.0  ;;  %13983 = vst [vmem:[#allocation103_spill] sm:$0xff] %v11849_v22  ;;  %v11857_v13 = vld [vmem:[#allocation2 + $0x11f] sm:$0xff]  ;;  %vm13987_vm6 = vmmov %vm13926_vm0 }
 0x73f   : > { %v4881_v47 = vadd.f32 %v4849_v38, %v4813_v61  ;;  %v6007_v5 = vpack.c.bf16 %v5115_v10, %v5114_v32  ;;  %v4880_v12 = vadd.f32 %v4848_v31, %v4812_v9  ;;  %v5370_v28 = vmul.f32 %v10742_v33, %v5258_v48  ;;  %13985 = vst [vmem:[#allocation64_spill] sm:$0xff] %v11857_v13 }
 0x740   : > { %v5371_v54 = vmul.f32 %v10742_v33, %v5223_v43  ;;  %v5438_v20 = vmul.f32 %v10745_v53, %v5186_v63  ;;  %v5439_v38 = vmul.f32 %v10745_v53, %v5187_v6  ;;  %v5506_v61 = vmul.f32 %v10782_v42, %v5294_v23 }
 0x741   : > { %v4949_v19 = vadd.f32 %v4917_v29, %v4881_v47  ;;  %7737 = vmatmul.mubr.msk.bf16.gmra.mxu1 %vm13982_vm11, %v6007_v5  ;;  %v4948_v21 = vadd.f32 %v4916_v46, %v4880_v12  ;;  %v5053_v31 = vmul.f32 %v11593_v56, %v11765_v35  ;;  %v5507_v10 = vmul.f32 %v10782_v42, %v11830_v30  ;;  %v11855_v12 = vld [vmem:[#allocation2 + $0x118] sm:$0xff]  ;;  %vm14031_vm11 = vmmov %vm13926_vm0 }
 0x742   : > { %v5572_v29 = vmul.f32 %v10785_v55, %v5258_v48  ;;  %v5470_v9 = vadd.f32 %v5438_v20, %v5370_v28  ;;  %v5471_v47 = vadd.f32 %v5439_v38, %v5371_v54  ;;  %v5602_v1 = vadd.f32 %v11686_v40, %v11648_v16  ;;  %13984 = vst [vmem:[#allocation27_spill] sm:$0xff] %v11855_v12  ;;  %v11869_v38 = vld [vmem:[#allocation2 + $0x119] sm:$0xff] }
 0x743   : > { %v5017_v32 = vadd.f32 %v4985_v0, %v4949_v19  ;;  %v5016_v57 = vadd.f32 %v4984_v50, %v4948_v21  ;;  %v5573_v5 = vmul.f32 %v10785_v55, %v5223_v43  ;;  %v5603_v46 = vadd.f32 %v11692_v2, %v11654_v39  ;;  %v13986_v0 = vld [vmem:[#allocation80_spill] sm:$0xff]  ;;  %v5224_v19 = vld [vmem:[#allocation2 + $0x87] sm:$0xff]  ;;  %13988 = vst [vmem:[#allocation71_spill] sm:$0xff] %v11869_v38 }
 0x744   : > { %v5640_v35 = vmul.f32 %v10788_v25, %v5186_v63  ;;  %5169 = vst.msk [vmem:[#allocation2 + $0x110] sm:$0xff] %vm13987_vm6, %v13986_v0  ;;  %v11861_v28 = vadd.f32 %v5506_v61, %v5470_v9  ;;  %v5641_v16 = vmul.f32 %v10788_v25, %v5187_v6  ;;  %v5670_v40 = vadd.f32 %v11696_v8, %v5602_v1  ;;  %v5297_v9 = vld [vmem:[#allocation2 + $0x91] sm:$0xff]  ;;  %v5296_v38 = vld [vmem:[#allocation2 + $0x89] sm:$0xff] }
 0x745   : > { %v5085_v20 = vadd.f32 %v5053_v31, %v5017_v32  ;;  %v5084_v50 = vadd.f32 %v5052_v41, %v5016_v57  ;;  %v11865_v54 = vadd.f32 %v5507_v10, %v5471_v47  ;;  %v5671_v39 = vadd.f32 %v11699_v26, %v5603_v46  ;;  %v5188_v47 = vld [vmem:[#allocation2 + $0x88] sm:$0xff]  ;;  %v5189_v1 = vld [vmem:[#allocation2 + $0x90] sm:$0xff] }
 0x746   : > { %v5708_v2 = vmul.f32 %v13818_v36, %v5294_v23  ;;  %v5709_v31 = vmul.f32 %v13818_v36, %v11830_v30  ;;  %v5738_v61 = vadd.f32 %v11704_v62, %v5670_v40  ;;  %v5774_v32 = vmul.f32 %v13820_v4, %v5258_v48  ;;  %v5225_v46 = vld [vmem:[#allocation2 + $0x8f] sm:$0xff] }
 0x747   : > { %v5117_v21 = vmax.f32 %v5085_v20, 0.0  ;;  %v13989_v8 = vmov 0.0   ;;  %v5116_v57 = vmax.f32 %v5084_v50, 0.0  ;;  %v5739_v26 = vadd.f32 %v11707_v24, %v5671_v39 }
 0x748   : > { %5135 = vst.msk [vmem:[#allocation2 + $0x118] sm:$0xff] %vm13926_vm0, %v13989_v8  ;;  %v5775_v41 = vmul.f32 %v13820_v4, %v5223_v43  ;;  %v5842_v10 = vmul.f32 %v13821_v18, %v5186_v63  ;;  %v5806_v0 = vadd.f32 %v5774_v32, %v5738_v61  ;;  %v5843_v20 = vmul.f32 %v13821_v18, %v5187_v6 }
 0x749   : > { %v5910_v62 = vmul.f32 %v11266_v27, %v5294_v23  ;;  %v5260_v40 = vsel %vm13895_vm4, %v5224_v19, 0.0  ;;  %v6008_v12 = vpack.c.bf16 %v5117_v21, %v5116_v57  ;;  %v5333_v24 = vsel %vm13898_vm10, %v5297_v9, 0.0  ;;  %v11894_v23 = vld [vmem:[%s12773_s1 + $0x3e] ss:$0 sm:$0xff]  ;;  %vm13995_vm4 = vmmov %vm13926_vm0 }
 0x74a   : > { %v5807_v50 = vadd.f32 %v5775_v41, %v5739_v26  ;;  %v5372_v43 = vmul.f32 %v10742_v33, %v5260_v40  ;;  %v5874_v63 = vadd.f32 %v5842_v10, %v5806_v0  ;;  %v5373_v39 = vmul.f32 %v10742_v33, %v5225_v46  ;;  %vm13996_vm10 = vmmov %vm13926_vm0 }
 0x74b   : > { %v5440_v61 = vmul.f32 %v10745_v53, %v5188_v47  ;;  %v5441_v6 = vmul.f32 %v10745_v53, %v5189_v1  ;;  %7740 = vmatprep.mubr.msk.bf16.mxu1 %vm13992_vm1, %v6008_v12  ;;  %v5911_v13 = vmul.f32 %v11894_v23, %v11830_v30  ;;  %v5508_v19 = vmul.f32 %v10782_v42, %v5296_v38 }
 0x74c   : > { %v5875_v27 = vadd.f32 %v5843_v20, %v5807_v50  ;;  %v5509_v21 = vmul.f32 %v10782_v42, %v5333_v24  ;;  %v5942_v32 = vadd.f32 %v5910_v62, %v5874_v63  ;;  %v11901_v26 = vmul.f32 %v10785_v55, %v5260_v40  ;;  %v11915_v50 = vld [vmem:[#allocation2 + $0x120] sm:$0xff] }
 0x74d   : > { %v5472_v9 = vadd.f32 %v5440_v61, %v5372_v43  ;;  %v5473_v57 = vadd.f32 %v5441_v6, %v5373_v39  ;;  %v11904_v41 = vmul.f32 %v10785_v55, %v5225_v46  ;;  %v5604_v10 = vadd.f32 %v5572_v29, %v11689_v17  ;;  %13993 = vst [vmem:[#allocation117_spill] sm:$0xff] %v11915_v50  ;;  %v11917_v43 = vld [vmem:[#allocation2 + $0x121] sm:$0xff] }
 0x74e   : > { %v5943_v12 = vadd.f32 %v5911_v13, %v5875_v27  ;;  %v5605_v0 = vadd.f32 %v5573_v5, %v11701_v44  ;;  %v5974_v20 = vmax.f32 %v5942_v32, 0.0  ;;  %v11913_v62 = vmul.f32 %v10788_v25, %v5188_v47  ;;  %13994 = vst [vmem:[#allocation91_spill] sm:$0xff] %v11917_v43  ;;  %5136 = vst.msk [vmem:[#allocation2 + $0x120] sm:$0xff] %vm13995_vm4, %v13989_v8  ;;  %v13998_v32 = vld [vmem:[#allocation30_spill] sm:$0xff] }
 0x74f   : > { %v11908_v30 = vadd.f32 %v5508_v19, %v5472_v9  ;;  %v11910_v48 = vadd.f32 %v5509_v21, %v5473_v57  ;;  %v11920_v39 = vmul.f32 %v10788_v25, %v5189_v1  ;;  %v5672_v61 = vadd.f32 %v5640_v35, %v5604_v10  ;;  %5137 = vst.msk [vmem:[#allocation2 + $0x128] sm:$0xff] %vm13996_vm10, %v13989_v8  ;;  %v13997_v8 = vld [vmem:[#allocation32_spill] sm:$0xff]  ;;  %vm14068_vm4 = vmmov %vm13992_vm1 }
 0x750   : > { %v5975_v63 = vmax.f32 %v5943_v12, 0.0  ;;  %v5673_v17 = vadd.f32 %v5641_v16, %v5605_v0  ;;  %v11927_v44 = vmul.f32 %v13818_v36, %v5296_v38  ;;  %v11930_v29 = vmul.f32 %v13818_v36, %v5333_v24  ;;  %v14000_v57 = vld [vmem:[#allocation84_spill] sm:$0xff]  ;;  %v14001_v12 = vld [vmem:[#allocation33_spill] sm:$0xff]  ;;  %vm14071_vm10 = vmmov %vm13992_vm1 }
 0x751   : > { %v5776_v5 = vmul.f32 %v13820_v4, %v5260_v40  ;;  %v5777_v6 = vmul.f32 %v13820_v4, %v5225_v46  ;;  %v5740_v13 = vadd.f32 %v5708_v2, %v5672_v61  ;;  %v5844_v16 = vmul.f32 %v13821_v18, %v5188_v47  ;;  %v14006_v0 = vld [vmem:[#allocation76_spill] sm:$0xff] }
 0x752   : > { %v6024_v27 = vpack.c.bf16 %v5975_v63, %v5974_v20  ;;  %v5741_v35 = vadd.f32 %v5709_v31, %v5673_v17  ;;  %v5845_v19 = vmul.f32 %v13821_v18, %v5189_v1  ;;  %v5912_v21 = vmul.f32 %v11894_v23, %v5296_v38  ;;  %v14004_v31 = vld [vmem:[#allocation60_spill] sm:$0xff]  ;;  %v14005_v1 = vld [vmem:[#allocation23_spill] sm:$0xff]  ;;  %v14007_v63 = vld [vmem:[#allocation90_spill] sm:$0xff] }
 0x753   : > { %vm13999_vm7 = vnez %v13998_v32  ;;  %vm14002_vm3 = vnez %v14001_v12  ;;  %v5808_v46 = vadd.f32 %v5776_v5, %v5740_v13  ;;  %v4515_v47 = vmul.f32 %v13941_v34, %v14004_v31  ;;  %v14010_v32 = vld [vmem:[#allocation6_spill] sm:$0xff] }
 0x754   : > { %v4402_v9 = vsel %vm13999_vm7, %v13997_v8, 0.0  ;;  %v4475_v10 = vsel %vm14002_vm3, %v14000_v57, 0.0  ;;  %7697 = vmatmul.mubr.msk.bf16.gmra.mxu0 %vm14003_vm5, %v6024_v27  ;;  %v5809_v40 = vadd.f32 %v5777_v6, %v5741_v35  ;;  %v4582_v38 = vmul.f32 %v13945_v60, %v14005_v1  ;;  %v14009_v57 = vld [vmem:[#allocation110_spill] sm:$0xff]  ;;  %vm14078_vm5 = vmmov %vm13992_vm1 }
 0x755   : > { %v4514_v2 = vmul.f32 %v13941_v34, %v4402_v9  ;;  %v4583_v20 = vmul.f32 %v13945_v60, %v14006_v0  ;;  %v4646_v61 = vmul.f32 %v14007_v63, %v13952_v49  ;;  %v4651_v17 = vmul.f32 %v14007_v63, %v4475_v10 }
 0x756   : > { %v5876_v8 = vadd.f32 %v5844_v16, %v5808_v46  ;;  %v5877_v27 = vadd.f32 %v5845_v19, %v5809_v40  ;;  %v5913_v5 = vmul.f32 %v11894_v23, %v5333_v24  ;;  %v4715_v6 = vmul.f32 %v10761_v51, %v13959_v52 }
 0x757   : > { %v11957_v13 = vadd.f32 %v4582_v38, %v4514_v2  ;;  %v4615_v35 = vadd.f32 %v4583_v20, %v4515_v47  ;;  %v4678_v50 = vadd.f32 %v4646_v61, %v14009_v57  ;;  %v4716_v43 = vmul.f32 %v10761_v51, %v4402_v9 }
 0x758   : > { %v5944_v22 = vadd.f32 %v5912_v21, %v5876_v8  ;;  %v5945_v12 = vadd.f32 %v5913_v5, %v5877_v27  ;;  %v4747_v49 = vadd.f32 %v4715_v6, %v14010_v32  ;;  %v4783_v16 = vmul.f32 %v13831_v45, %v13963_v59  ;;  %v14014_v8 = vld [vmem:[#allocation31_spill] sm:$0xff]  ;;  %v14016_v27 = vld [vmem:[#allocation40_spill] sm:$0xff]  ;;  %v14017_v5 = vld [vmem:[#allocation34_spill] sm:$0xff] }
 0x759   : > { %14008 = vst [vmem:[#allocation116_spill] sm:$0xff] %v11957_v13  ;;  %v11964_v19 = vadd.f32 %v4651_v17, %v4615_v35  ;;  %v4746_v24 = vadd.f32 %v11802_v7, %v4678_v50  ;;  %v4782_v52 = vmul.f32 %v13831_v45, %v13962_v11  ;;  %v4850_v46 = vmul.f32 %v10770_v15, %v13977_v58  ;;  %v14013_v17 = vld [vmem:[#allocation69_spill] sm:$0xff]  ;;  %v14019_v35 = vld [vmem:[#allocation66_spill] sm:$0xff] }
 0x75a   : > { %v5976_v40 = vmax.f32 %v5944_v22, 0.0  ;;  %v5977_v2 = vmax.f32 %v5945_v12, 0.0  ;;  %v4815_v47 = vadd.f32 %v4783_v16, %v4747_v49  ;;  %v4853_v21 = vmul.f32 %v10770_v15, %v4475_v10  ;;  %v14012_v22 = vld [vmem:[#allocation67_spill] sm:$0xff]  ;;  %v14021_v16 = vld [vmem:[#allocation85_spill] sm:$0xff] }
 0x75b   : > { %14011 = vst [vmem:[#allocation115_spill] sm:$0xff] %v11964_v19  ;;  %v4814_v38 = vadd.f32 %v4782_v52, %v4746_v24  ;;  %v4918_v32 = vmul.f32 %v13889_v37, %v4402_v9  ;;  %v4919_v59 = vmul.f32 %v13889_v37, %v14004_v31  ;;  %v4986_v7 = vmul.f32 %v13890_v3, %v14005_v1  ;;  %v14022_v52 = vld [vmem:[#allocation26_spill] sm:$0xff] }
 0x75c   : > { %v6025_v50 = vpack.c.bf16 %v5977_v2, %v5976_v40  ;;  %v4883_v11 = vadd.f32 %v11815_v14, %v4815_v47  ;;  %v4987_v20 = vmul.f32 %v13890_v3, %v14006_v0  ;;  %v5054_v12 = vmul.f32 %v11593_v56, %v14012_v22 }
 0x75d   : > { %v4882_v61 = vadd.f32 %v4850_v46, %v4814_v38  ;;  %vm14015_vm14 = vnez %v14014_v8  ;;  %vm14018_vm15 = vnez %v14017_v5  ;;  %v4517_v57 = vmul.f32 %v13941_v34, %v14019_v35  ;;  %v14024_v5 = vld [vmem:[#allocation119_spill] sm:$0xff] }
 0x75e   : > { %v4404_v9 = vsel %vm14015_vm14, %v14013_v17, 0.0  ;;  %v4477_v6 = vsel %vm14018_vm15, %v14016_v27, 0.0  ;;  %7700 = vmatprep.mubr.msk.bf16.mxu0 %vm14020_vm12, %v6025_v50  ;;  %v4951_v14 = vadd.f32 %v4919_v59, %v4883_v11  ;;  %v4584_v24 = vmul.f32 %v13945_v60, %v14021_v16 }
 0x75f   : > { %v4516_v49 = vmul.f32 %v13941_v34, %v4404_v9  ;;  %v4585_v46 = vmul.f32 %v13945_v60, %v14022_v52  ;;  %v4950_v40 = vadd.f32 %v4918_v32, %v4882_v61  ;;  %v4648_v2 = vmul.f32 %v14007_v63, %v13977_v58  ;;  %v14025_v32 = vld [vmem:[#allocation106_spill] sm:$0xff] }
 0x760   : > { %v4653_v47 = vmul.f32 %v14007_v63, %v4477_v6  ;;  %v4717_v38 = vmul.f32 %v10761_v51, %v14004_v31  ;;  %v5019_v17 = vadd.f32 %v4987_v20, %v4951_v14  ;;  %v5055_v59 = vmul.f32 %v11593_v56, %v4475_v10 }
 0x761   : > { %v12002_v50 = vadd.f32 %v4584_v24, %v4516_v49  ;;  %v4617_v11 = vadd.f32 %v4585_v46, %v4517_v57  ;;  %v5018_v27 = vadd.f32 %v4986_v7, %v4950_v40  ;;  %v4680_v8 = vadd.f32 %v4648_v2, %v14024_v5  ;;  %v5226_v57 = vld [vmem:[#allocation2 + $0x97] sm:$0xff]  ;;  %v5299_v49 = vld [vmem:[#allocation2 + $0xa1] sm:$0xff] }
 0x762   : > { %v12006_v19 = vmul.f32 %v10761_v51, %v4404_v9  ;;  %v4749_v61 = vadd.f32 %v4717_v38, %v14025_v32  ;;  %v5087_v58 = vadd.f32 %v5055_v59, %v5019_v17  ;;  %v4784_v31 = vmul.f32 %v13831_v45, %v14005_v1  ;;  %v5227_v2 = vld [vmem:[#allocation2 + $0x9f] sm:$0xff] }
 0x763   : > { %14023 = vst [vmem:[#allocation100_spill] sm:$0xff] %v12002_v50  ;;  %v12009_v13 = vadd.f32 %v4653_v47, %v4617_v11  ;;  %v4785_v10 = vmul.f32 %v13831_v45, %v14006_v0  ;;  %v5086_v20 = vadd.f32 %v5054_v12, %v5018_v27  ;;  %v4748_v14 = vadd.f32 %v4716_v43, %v4680_v8  ;;  %v5190_v8 = vld [vmem:[#allocation2 + $0x98] sm:$0xff]  ;;  %v5191_v38 = vld [vmem:[#allocation2 + $0xa0] sm:$0xff]  ;;  %v14028_v11 = vld [vmem:[#allocation68_spill] sm:$0xff] }
 0x764   : > { %v4852_v7 = vmul.f32 %v10770_v15, %v14012_v22  ;;  %v12018_v5 = vmul.f32 %v10770_v15, %v4477_v6  ;;  %v5119_v24 = vmax.f32 %v5087_v58, 0.0  ;;  %v4920_v40 = vmul.f32 %v13889_v37, %v4404_v9  ;;  %v5298_v17 = vld [vmem:[#allocation2 + $0x99] sm:$0xff] }
 0x765   : > { %14026 = vst [vmem:[#allocation88_spill] sm:$0xff] %v12009_v13  ;;  %v4817_v46 = vadd.f32 %v4785_v10, %v4749_v61  ;;  %v4921_v1 = vmul.f32 %v13889_v37, %v14019_v35  ;;  %v5118_v47 = vmax.f32 %v5086_v20, 0.0  ;;  %v4816_v0 = vadd.f32 %v4784_v31, %v4748_v14 }
 0x766   : > { %14027 = vst [vmem:[#allocation95_spill] sm:$0xff] %v12018_v5  ;;  %v4988_v43 = vmul.f32 %v13890_v3, %v14021_v16  ;;  %v4989_v12 = vmul.f32 %v13890_v3, %v14022_v52  ;;  %v5056_v27 = vmul.f32 %v11593_v56, %v14028_v11  ;;  %v5262_v32 = vsel %vm13937_vm13, %v5226_v57, 0.0  ;;  %vm14034_vm13 = vmmov %vm13926_vm0 }
 0x767   : > { %v4885_v59 = vadd.f32 %v4853_v21, %v4817_v46  ;;  %v5335_v58 = vsel %vm13940_vm2, %v5299_v49, 0.0  ;;  %v6009_v31 = vpack.c.bf16 %v5119_v24, %v5118_v47  ;;  %v4884_v10 = vadd.f32 %v4852_v7, %v4816_v0 }
 0x768   : > { %v5374_v20 = vmul.f32 %v10742_v33, %v5262_v32  ;;  %v5375_v14 = vmul.f32 %v10742_v33, %v5227_v2  ;;  %v5442_v50 = vmul.f32 %v10745_v53, %v5190_v8  ;;  %v5443_v21 = vmul.f32 %v10745_v53, %v5191_v38 }
 0x769   : > { %v4953_v13 = vadd.f32 %v4921_v1, %v4885_v59  ;;  %v5510_v46 = vmul.f32 %v10782_v42, %v5298_v17  ;;  %7741 = vmatmul.mubr.msk.bf16.gmra.mxu1 %vm14031_vm11, %v6009_v31  ;;  %v4952_v9 = vadd.f32 %v4920_v40, %v4884_v10  ;;  %v5057_v57 = vmul.f32 %v11593_v56, %v4477_v6  ;;  %vm14103_vm11 = vmmov %vm13992_vm1 }
 0x76a   : > { %v5511_v49 = vmul.f32 %v10782_v42, %v5335_v58  ;;  %v5576_v7 = vmul.f32 %v10785_v55, %v5262_v32  ;;  %v5474_v47 = vadd.f32 %v5442_v50, %v5374_v20  ;;  %v5475_v0 = vadd.f32 %v5443_v21, %v5375_v14  ;;  %v5301_v14 = vld [vmem:[#allocation2 + $0xb1] sm:$0xff] }
 0x76b   : > { %v5021_v24 = vadd.f32 %v4989_v12, %v4953_v13  ;;  %v5606_v1 = vadd.f32 %v11901_v26, %v11861_v28  ;;  %v5020_v59 = vadd.f32 %v4988_v43, %v4952_v9  ;;  %v5577_v61 = vmul.f32 %v10785_v55, %v5227_v2  ;;  %v5228_v43 = vld [vmem:[#allocation2 + $0xa7] sm:$0xff] }
 0x76c   : > { %v5607_v5 = vadd.f32 %v11904_v41, %v11865_v54  ;;  %v5644_v40 = vmul.f32 %v10788_v25, %v5190_v8  ;;  %v12048_v56 = vadd.f32 %v5510_v46, %v5474_v47  ;;  %v5645_v6 = vmul.f32 %v10788_v25, %v5191_v38  ;;  %v5192_v9 = vld [vmem:[#allocation2 + $0xa8] sm:$0xff] }
 0x76d   : > { %v5089_v31 = vadd.f32 %v5057_v57, %v5021_v24  ;;  %v5674_v13 = vadd.f32 %v11913_v62, %v5606_v1  ;;  %v5088_v50 = vadd.f32 %v5056_v27, %v5020_v59  ;;  %v12052_v12 = vadd.f32 %v5511_v49, %v5475_v0 }
 0x76e   : > { %v5675_v28 = vadd.f32 %v11920_v39, %v5607_v5  ;;  %v5712_v26 = vmul.f32 %v13818_v36, %v5298_v17  ;;  %v5713_v54 = vmul.f32 %v13818_v36, %v5335_v58  ;;  %v5778_v20 = vmul.f32 %v13820_v4, %v5262_v32  ;;  %v5193_v39 = vld [vmem:[#allocation2 + $0xb0] sm:$0xff] }
 0x76f   : > { %v5121_v10 = vmax.f32 %v5089_v31, 0.0  ;;  %v5742_v41 = vadd.f32 %v11927_v44, %v5674_v13  ;;  %v5120_v21 = vmax.f32 %v5088_v50, 0.0  ;;  %v5779_v62 = vmul.f32 %v13820_v4, %v5227_v2  ;;  %v5229_v5 = vld [vmem:[#allocation2 + $0xaf] sm:$0xff] }
 0x770   : > { %v5743_v46 = vadd.f32 %v11930_v29, %v5675_v28  ;;  %v5846_v27 = vmul.f32 %v13821_v18, %v5190_v8  ;;  %v5847_v49 = vmul.f32 %v13821_v18, %v5191_v38  ;;  %v5914_v24 = vmul.f32 %v11894_v23, %v5298_v17  ;;  %v5300_v32 = vld [vmem:[#allocation2 + $0xa9] sm:$0xff] }
 0x771   : > { %v5810_v57 = vadd.f32 %v5778_v20, %v5742_v41  ;;  %v5264_v44 = vsel %vm13955_vm9, %v5228_v43, 0.0  ;;  %v6010_v0 = vpack.c.bf16 %v5121_v10, %v5120_v21  ;;  %v5337_v29 = vsel %vm13958_vm8, %v5301_v14, 0.0  ;;  %vm14041_vm8 = vmmov %vm13926_vm0 }
 0x772   : > { %v5811_v1 = vadd.f32 %v5779_v62, %v5743_v46  ;;  %v5376_v2 = vmul.f32 %v10742_v33, %v5264_v44  ;;  %v5377_v31 = vmul.f32 %v10742_v33, %v5229_v5  ;;  %v5444_v13 = vmul.f32 %v10745_v53, %v5192_v9 }
 0x773   : > { %v5878_v8 = vadd.f32 %v5846_v27, %v5810_v57  ;;  %v5445_v38 = vmul.f32 %v10745_v53, %v5193_v39  ;;  %7744 = vmatprep.mubr.msk.bf16.mxu1 %vm14034_vm13, %v6010_v0  ;;  %v5915_v50 = vmul.f32 %v11894_v23, %v5335_v58  ;;  %v5512_v28 = vmul.f32 %v10782_v42, %v5300_v32  ;;  %vm14106_vm13 = vmmov %vm13992_vm1 }
 0x774   : > { %v5879_v17 = vadd.f32 %v5847_v49, %v5811_v1  ;;  %v5513_v43 = vmul.f32 %v10782_v42, %v5337_v29  ;;  %v5476_v41 = vadd.f32 %v5444_v13, %v5376_v2  ;;  %v12077_v14 = vmul.f32 %v10785_v55, %v5264_v44 }
 0x775   : > { %v5946_v10 = vadd.f32 %v5914_v24, %v5878_v8  ;;  %v5477_v20 = vadd.f32 %v5445_v38, %v5377_v31  ;;  %v12080_v46 = vmul.f32 %v10785_v55, %v5229_v5  ;;  %v5608_v62 = vadd.f32 %v5576_v7, %v11908_v30 }
 0x776   : > { %v5947_v21 = vadd.f32 %v5915_v50, %v5879_v17  ;;  %v5609_v27 = vadd.f32 %v5577_v61, %v11910_v48  ;;  %v12084_v58 = vadd.f32 %v5512_v28, %v5476_v41  ;;  %v12089_v24 = vmul.f32 %v10788_v25, %v5192_v9  ;;  %v14036_v17 = vld [vmem:[#allocation36_spill] sm:$0xff]  ;;  %v14038_v28 = vld [vmem:[#allocation86_spill] sm:$0xff] }
 0x777   : > { %v5978_v57 = vmax.f32 %v5946_v10, 0.0  ;;  %v12086_v49 = vadd.f32 %v5513_v43, %v5477_v20  ;;  %v12092_v0 = vmul.f32 %v10788_v25, %v5193_v39  ;;  %v5676_v1 = vadd.f32 %v5644_v40, %v5608_v62  ;;  %v14039_v43 = vld [vmem:[#allocation37_spill] sm:$0xff]  ;;  %v14044_v41 = vld [vmem:[#allocation96_spill] sm:$0xff] }
 0x778   : > { %v5979_v47 = vmax.f32 %v5947_v21, 0.0  ;;  %v5677_v59 = vadd.f32 %v5645_v6, %v5609_v27  ;;  %v12095_v2 = vmul.f32 %v13818_v36, %v5300_v32  ;;  %v12098_v30 = vmul.f32 %v13818_v36, %v5337_v29  ;;  %v14035_v6 = vld [vmem:[#allocation5_spill] sm:$0xff] }
 0x779   : > { %v5780_v48 = vmul.f32 %v13820_v4, %v5264_v44  ;;  %v5781_v7 = vmul.f32 %v13820_v4, %v5229_v5  ;;  %v5744_v8 = vadd.f32 %v5712_v26, %v5676_v1  ;;  %v5848_v13 = vmul.f32 %v13821_v18, %v5192_v9 }
 0x77a   : > { %v6026_v61 = vpack.c.bf16 %v5979_v47, %v5978_v57  ;;  %v5745_v31 = vadd.f32 %v5713_v54, %v5677_v59  ;;  %v5849_v38 = vmul.f32 %v13821_v18, %v5193_v39  ;;  %v5916_v40 = vmul.f32 %v11894_v23, %v5300_v32  ;;  %v14042_v54 = vld [vmem:[#allocation87_spill] sm:$0xff]  ;;  %v14043_v39 = vld [vmem:[#allocation41_spill] sm:$0xff] }
 0x77b   : > { %vm14037_vm2 = vnez %v14036_v17  ;;  %vm14040_vm9 = vnez %v14039_v43  ;;  %v5812_v5 = vadd.f32 %v5780_v48, %v5744_v8  ;;  %v4519_v9 = vmul.f32 %v13941_v34, %v14042_v54  ;;  %v14061_v43 = vld [vmem:[#allocation100_spill] sm:$0xff] }
 0x77c   : > { %v4406_v50 = vsel %vm14037_vm2, %v14035_v6, 0.0  ;;  %v4479_v10 = vsel %vm14040_vm9, %v14038_v28, 0.0  ;;  %7701 = vmatmul.mubr.msk.bf16.gmra.mxu0 %vm14041_vm8, %v6026_v61  ;;  %v5813_v44 = vadd.f32 %v5781_v7, %v5745_v31  ;;  %v4586_v32 = vmul.f32 %v13945_v60, %v14043_v39  ;;  %v14046_v7 = vld [vmem:[#allocation116_spill] sm:$0xff]  ;;  %v14047_v28 = vld [vmem:[#allocation115_spill] sm:$0xff] }
 0x77d   : > { %v4518_v26 = vmul.f32 %v13941_v34, %v4406_v50  ;;  %v4587_v20 = vmul.f32 %v13945_v60, %v14044_v41  ;;  %v4650_v21 = vmul.f32 %v14007_v63, %v14012_v22  ;;  %v4655_v62 = vmul.f32 %v14007_v63, %v4479_v10 }
 0x77e   : > { %v5880_v27 = vadd.f32 %v5848_v13, %v5812_v5  ;;  %v5881_v57 = vadd.f32 %v5849_v38, %v5813_v44  ;;  %v5917_v47 = vmul.f32 %v11894_v23, %v5337_v29  ;;  %v4719_v1 = vmul.f32 %v10761_v51, %v14019_v35 }
 0x77f   : > { %v12125_v59 = vadd.f32 %v4586_v32, %v4518_v26  ;;  %v4619_v48 = vadd.f32 %v4587_v20, %v4519_v9  ;;  %v4682_v61 = vadd.f32 %v4650_v21, %v14046_v7  ;;  %v4720_v8 = vmul.f32 %v10761_v51, %v4406_v50  ;;  %v14052_v7 = vld [vmem:[#allocation44_spill] sm:$0xff] }
 0x780   : > { %v5948_v31 = vadd.f32 %v5916_v40, %v5880_v27  ;;  %v5949_v6 = vadd.f32 %v5917_v47, %v5881_v57  ;;  %v4751_v22 = vadd.f32 %v4719_v1, %v14047_v28  ;;  %v4787_v13 = vmul.f32 %v13831_v45, %v14022_v52  ;;  %v12151_v57 = vld [vmem:[%s12773_s1 + $0x35] ss:$0 sm:$0xff]  ;;  %v14050_v47 = vld [vmem:[#allocation39_spill] sm:$0xff] }
 0x781   : > { %14045 = vst [vmem:[#allocation93_spill] sm:$0xff] %v12125_v59  ;;  %v12132_v38 = vadd.f32 %v4655_v62, %v4619_v48  ;;  %v4750_v29 = vadd.f32 %v12006_v19, %v4682_v61  ;;  %v4786_v35 = vmul.f32 %v13831_v45, %v14021_v16  ;;  %v4854_v5 = vmul.f32 %v10770_v15, %v14028_v11  ;;  %v14049_v62 = vld [vmem:[#allocation95_spill] sm:$0xff]  ;;  %v14051_v48 = vld [vmem:[#allocation101_spill] sm:$0xff] }
 0x782   : > { %v5980_v44 = vmax.f32 %v5948_v31, 0.0  ;;  %v5981_v26 = vmax.f32 %v5949_v6, 0.0  ;;  %v4819_v9 = vadd.f32 %v4787_v13, %v4751_v22  ;;  %v4857_v40 = vmul.f32 %v10770_v15, %v4479_v10  ;;  %v14054_v31 = vld [vmem:[#allocation113_spill] sm:$0xff]  ;;  %v14057_v22 = vld [vmem:[#allocation92_spill] sm:$0xff] }
 0x783   : > { %14048 = vst [vmem:[#allocation118_spill] sm:$0xff] %v12132_v38  ;;  %v4818_v32 = vadd.f32 %v4786_v35, %v4750_v29  ;;  %v4922_v20 = vmul.f32 %v13889_v37, %v4406_v50  ;;  %v4923_v52 = vmul.f32 %v13889_v37, %v14042_v54  ;;  %v4990_v19 = vmul.f32 %v13890_v3, %v14043_v39  ;;  %v14055_v6 = vld [vmem:[#allocation45_spill] sm:$0xff] }
 0x784   : > { %v6027_v21 = vpack.c.bf16 %v5981_v26, %v5980_v44  ;;  %v4887_v16 = vadd.f32 %v14049_v62, %v4819_v9  ;;  %v4991_v27 = vmul.f32 %v13890_v3, %v14044_v41  ;;  %v5058_v50 = vmul.f32 %v12151_v57, %v14050_v47  ;;  %v14058_v44 = vld [vmem:[#allocation105_spill] sm:$0xff] }
 0x785   : > { %v4886_v1 = vadd.f32 %v4854_v5, %v4818_v32  ;;  %vm14053_vm6 = vnez %v14052_v7  ;;  %vm14056_vm0 = vnez %v14055_v6  ;;  %v4521_v13 = vmul.f32 %v13941_v34, %v14057_v22  ;;  %v14059_v5 = vld [vmem:[#allocation111_spill] sm:$0xff] }
 0x786   : > { %v4408_v61 = vsel %vm14053_vm6, %v14051_v48, 0.0  ;;  %v4481_v28 = vsel %vm14056_vm0, %v14054_v31, 0.0  ;;  %7704 = vmatprep.mubr.msk.bf16.mxu0 %vm13992_vm1, %v6027_v21  ;;  %v4955_v29 = vadd.f32 %v4923_v52, %v4887_v16  ;;  %v4588_v26 = vmul.f32 %v13945_v60, %v14058_v44 }
 0x787   : > { %v4520_v35 = vmul.f32 %v13941_v34, %v4408_v61  ;;  %v4589_v9 = vmul.f32 %v13945_v60, %v14059_v5  ;;  %v4954_v32 = vadd.f32 %v4922_v20, %v4886_v1  ;;  %v4652_v62 = vmul.f32 %v14007_v63, %v14028_v11  ;;  %v14062_v20 = vld [vmem:[#allocation88_spill] sm:$0xff] }
 0x788   : > { %v4657_v48 = vmul.f32 %v14007_v63, %v4481_v28  ;;  %v4721_v31 = vmul.f32 %v10761_v51, %v14042_v54  ;;  %v5023_v6 = vadd.f32 %v4991_v27, %v4955_v29  ;;  %v5059_v52 = vmul.f32 %v12151_v57, %v4479_v10 }
 0x789   : > { %v12175_v21 = vadd.f32 %v4588_v26, %v4520_v35  ;;  %v4621_v16 = vadd.f32 %v4589_v9, %v4521_v13  ;;  %v5022_v7 = vadd.f32 %v4990_v19, %v4954_v32  ;;  %v4684_v17 = vadd.f32 %v4652_v62, %v14061_v43  ;;  %v5230_v13 = vld [vmem:[#allocation2 + $0xb7] sm:$0xff]  ;;  %v5303_v35 = vld [vmem:[#allocation2 + $0xc1] sm:$0xff] }
 0x78a   : > { %v12179_v38 = vmul.f32 %v10761_v51, %v4408_v61  ;;  %v4753_v1 = vadd.f32 %v4721_v31, %v14062_v20  ;;  %v5091_v11 = vadd.f32 %v5059_v52, %v5023_v6  ;;  %v4788_v54 = vmul.f32 %v13831_v45, %v14043_v39  ;;  %v5231_v32 = vld [vmem:[#allocation2 + $0xbf] sm:$0xff]  ;;  %v14065_v52 = vld [vmem:[#allocation99_spill] sm:$0xff] }
 0x78b   : > { %14060 = vst [vmem:[#allocation9_spill] sm:$0xff] %v12175_v21  ;;  %v12182_v59 = vadd.f32 %v4657_v48, %v4621_v16  ;;  %v4789_v10 = vmul.f32 %v13831_v45, %v14044_v41  ;;  %v5090_v27 = vadd.f32 %v5058_v50, %v5022_v7  ;;  %v4752_v29 = vadd.f32 %v4720_v8, %v4684_v17  ;;  %v5194_v50 = vld [vmem:[#allocation2 + $0xb8] sm:$0xff]  ;;  %v5195_v7 = vld [vmem:[#allocation2 + $0xc0] sm:$0xff] }
 0x78c   : > { %v4856_v19 = vmul.f32 %v10770_v15, %v14050_v47  ;;  %v12191_v43 = vmul.f32 %v10770_v15, %v4481_v28  ;;  %v5123_v26 = vmax.f32 %v5091_v11, 0.0  ;;  %v4924_v9 = vmul.f32 %v13889_v37, %v4408_v61  ;;  %v5302_v48 = vld [vmem:[#allocation2 + $0xb9] sm:$0xff] }
 0x78d   : > { %14063 = vst [vmem:[#allocation11_spill] sm:$0xff] %v12182_v59  ;;  %v4821_v6 = vadd.f32 %v4789_v10, %v4753_v1  ;;  %v4925_v39 = vmul.f32 %v13889_v37, %v14057_v22  ;;  %v5122_v62 = vmax.f32 %v5090_v27, 0.0  ;;  %v4820_v41 = vadd.f32 %v4788_v54, %v4752_v29 }
 0x78e   : > { %14064 = vst [vmem:[#allocation21_spill] sm:$0xff] %v12191_v43  ;;  %v4992_v17 = vmul.f32 %v13890_v3, %v14058_v44  ;;  %v4993_v8 = vmul.f32 %v13890_v3, %v14059_v5  ;;  %v5060_v16 = vmul.f32 %v12151_v57, %v14065_v52  ;;  %v5266_v20 = vsel %vm13999_vm7, %v5230_v13, 0.0 }
 0x78f   : > { %v4889_v31 = vadd.f32 %v4857_v40, %v4821_v6  ;;  %v5339_v11 = vsel %vm14002_vm3, %v5303_v35, 0.0  ;;  %v6011_v54 = vpack.c.bf16 %v5123_v26, %v5122_v62  ;;  %v4888_v10 = vadd.f32 %v4856_v19, %v4820_v41 }
 0x790   : > { %v5378_v27 = vmul.f32 %v10742_v33, %v5266_v20  ;;  %v5379_v29 = vmul.f32 %v10742_v33, %v5231_v32  ;;  %v5446_v21 = vmul.f32 %v10745_v53, %v5194_v50  ;;  %v5447_v40 = vmul.f32 %v10745_v53, %v5195_v7 }
 0x791   : > { %v4957_v59 = vadd.f32 %v4925_v39, %v4889_v31  ;;  %v5514_v6 = vmul.f32 %v10782_v42, %v5302_v48  ;;  %7745 = vmatmul.mubr.msk.bf16.gmra.mxu1 %vm14068_vm4, %v6011_v54  ;;  %v4956_v61 = vadd.f32 %v4924_v9, %v4888_v10  ;;  %v5061_v13 = vmul.f32 %v12151_v57, %v4481_v28 }
 0x792   : > { %v5515_v35 = vmul.f32 %v10782_v42, %v5339_v11  ;;  %v5580_v19 = vmul.f32 %v10785_v55, %v5266_v20  ;;  %v5478_v62 = vadd.f32 %v5446_v21, %v5378_v27  ;;  %v5479_v41 = vadd.f32 %v5447_v40, %v5379_v29  ;;  %v5305_v40 = vld [vmem:[#allocation2 + $0xd1] sm:$0xff] }
 0x793   : > { %v5025_v26 = vadd.f32 %v4993_v8, %v4957_v59  ;;  %v5610_v39 = vadd.f32 %v12077_v14, %v12048_v56  ;;  %v5024_v31 = vadd.f32 %v4992_v17, %v4956_v61  ;;  %v5581_v1 = vmul.f32 %v10785_v55, %v5231_v32  ;;  %v5232_v17 = vld [vmem:[#allocation2 + $0xc7] sm:$0xff] }
 0x794   : > { %v5611_v43 = vadd.f32 %v12080_v46, %v12052_v12  ;;  %v5648_v9 = vmul.f32 %v10788_v25, %v5194_v50  ;;  %v12221_v28 = vadd.f32 %v5514_v6, %v5478_v62  ;;  %v5649_v10 = vmul.f32 %v10788_v25, %v5195_v7 }
 0x795   : > { %v5093_v54 = vadd.f32 %v5061_v13, %v5025_v26  ;;  %v5678_v59 = vadd.f32 %v12089_v24, %v5610_v39  ;;  %v5092_v21 = vadd.f32 %v5060_v16, %v5024_v31  ;;  %v12225_v8 = vadd.f32 %v5515_v35, %v5479_v41  ;;  %v5196_v13 = vld [vmem:[#allocation2 + $0xc8] sm:$0xff] }
 0x796   : > { %v5679_v56 = vadd.f32 %v12092_v0, %v5611_v43  ;;  %v5716_v14 = vmul.f32 %v13818_v36, %v5302_v48  ;;  %v5717_v12 = vmul.f32 %v13818_v36, %v5339_v11  ;;  %v5782_v29 = vmul.f32 %v13820_v4, %v5266_v20  ;;  %v5197_v0 = vld [vmem:[#allocation2 + $0xd0] sm:$0xff] }
 0x797   : > { %v5125_v27 = vmax.f32 %v5093_v54, 0.0  ;;  %v5746_v46 = vadd.f32 %v12095_v2, %v5678_v59  ;;  %v5124_v6 = vmax.f32 %v5092_v21, 0.0  ;;  %v5783_v24 = vmul.f32 %v13820_v4, %v5231_v32  ;;  %v5233_v43 = vld [vmem:[#allocation2 + $0xcf] sm:$0xff] }
 0x798   : > { %v5747_v61 = vadd.f32 %v12098_v30, %v5679_v56  ;;  %v5850_v16 = vmul.f32 %v13821_v18, %v5194_v50  ;;  %v5851_v26 = vmul.f32 %v13821_v18, %v5195_v7  ;;  %v5918_v62 = vmul.f32 %v11894_v23, %v5302_v48  ;;  %v5304_v20 = vld [vmem:[#allocation2 + $0xc9] sm:$0xff] }
 0x799   : > { %v5814_v35 = vadd.f32 %v5782_v29, %v5746_v46  ;;  %v5268_v2 = vsel %vm14015_vm14, %v5232_v17, 0.0  ;;  %v6012_v39 = vpack.c.bf16 %v5125_v27, %v5124_v6  ;;  %v5341_v30 = vsel %vm14018_vm15, %v5305_v40, 0.0  ;;  %vm14089_vm15 = vmmov %vm13992_vm1 }
 0x79a   : > { %v5815_v31 = vadd.f32 %v5783_v24, %v5747_v61  ;;  %v5380_v32 = vmul.f32 %v10742_v33, %v5268_v2  ;;  %v5381_v59 = vmul.f32 %v10742_v33, %v5233_v43  ;;  %v5448_v21 = vmul.f32 %v10745_v53, %v5196_v13 }
 0x79b   : > { %v5882_v50 = vadd.f32 %v5850_v16, %v5814_v35  ;;  %v5449_v7 = vmul.f32 %v10745_v53, %v5197_v0  ;;  %7748 = vmatprep.mubr.msk.bf16.mxu1 %vm14071_vm10, %v6012_v39  ;;  %v5919_v56 = vmul.f32 %v11894_v23, %v5339_v11  ;;  %v5516_v17 = vmul.f32 %v10782_v42, %v5304_v20 }
 0x79c   : > { %v5883_v48 = vadd.f32 %v5851_v26, %v5815_v31  ;;  %v5517_v27 = vmul.f32 %v10782_v42, %v5341_v30  ;;  %v5480_v29 = vadd.f32 %v5448_v21, %v5380_v32  ;;  %v12250_v6 = vmul.f32 %v10785_v55, %v5268_v2 }
 0x79d   : > { %v5950_v46 = vadd.f32 %v5918_v62, %v5882_v50  ;;  %v5481_v40 = vadd.f32 %v5449_v7, %v5381_v59  ;;  %v12253_v24 = vmul.f32 %v10785_v55, %v5233_v43  ;;  %v5612_v16 = vadd.f32 %v5580_v19, %v12084_v58 }
 0x79e   : > { %v5951_v61 = vadd.f32 %v5919_v56, %v5883_v48  ;;  %v5613_v35 = vadd.f32 %v5581_v1, %v12086_v49  ;;  %v12257_v11 = vadd.f32 %v5516_v17, %v5480_v29  ;;  %v12262_v62 = vmul.f32 %v10788_v25, %v5196_v13  ;;  %v14073_v56 = vld [vmem:[#allocation46_spill] sm:$0xff] }
 0x79f   : > { %v5982_v26 = vmax.f32 %v5950_v46, 0.0  ;;  %v12259_v41 = vadd.f32 %v5517_v27, %v5481_v40  ;;  %v12265_v31 = vmul.f32 %v10788_v25, %v5197_v0  ;;  %v5680_v54 = vadd.f32 %v5648_v9, %v5612_v16  ;;  %v14075_v27 = vld [vmem:[#allocation65_spill] sm:$0xff]  ;;  %v14076_v46 = vld [vmem:[#allocation47_spill] sm:$0xff]  ;;  %v14081_v40 = vld [vmem:[#allocation112_spill] sm:$0xff] }
 0x7a0   : > { %v5983_v39 = vmax.f32 %v5951_v61, 0.0  ;;  %v5681_v32 = vadd.f32 %v5649_v10, %v5613_v35  ;;  %v12268_v50 = vmul.f32 %v13818_v36, %v5304_v20  ;;  %v12271_v58 = vmul.f32 %v13818_v36, %v5341_v30  ;;  %v14072_v10 = vld [vmem:[#allocation104_spill] sm:$0xff] }
 0x7a1   : > { %v5784_v49 = vmul.f32 %v13820_v4, %v5268_v2  ;;  %v5785_v19 = vmul.f32 %v13820_v4, %v5233_v43  ;;  %v5748_v59 = vadd.f32 %v5716_v14, %v5680_v54  ;;  %v5852_v7 = vmul.f32 %v13821_v18, %v5196_v13 }
 0x7a2   : > { %v6028_v1 = vpack.c.bf16 %v5983_v39, %v5982_v26  ;;  %v5749_v21 = vadd.f32 %v5717_v12, %v5681_v32  ;;  %v5853_v48 = vmul.f32 %v13821_v18, %v5197_v0  ;;  %v5920_v9 = vmul.f32 %v11894_v23, %v5304_v20  ;;  %v14079_v12 = vld [vmem:[#allocation97_spill] sm:$0xff]  ;;  %v14080_v0 = vld [vmem:[#allocation8_spill] sm:$0xff] }
 0x7a3   : > { %vm14074_vm7 = vnez %v14073_v56  ;;  %vm14077_vm3 = vnez %v14076_v46  ;;  %v5816_v43 = vadd.f32 %v5784_v49, %v5748_v59  ;;  %v4523_v13 = vmul.f32 %v13941_v34, %v14079_v12 }
 0x7a4   : > { %v4410_v17 = vsel %vm14074_vm7, %v14072_v10, 0.0  ;;  %v4483_v29 = vsel %vm14077_vm3, %v14075_v27, 0.0  ;;  %7705 = vmatmul.mubr.msk.bf16.gmra.mxu0 %vm14078_vm5, %v6028_v1  ;;  %v5817_v2 = vadd.f32 %v5785_v19, %v5749_v21  ;;  %v4590_v20 = vmul.f32 %v13945_v60, %v14080_v0  ;;  %v14082_v19 = vld [vmem:[#allocation93_spill] sm:$0xff]  ;;  %v14083_v10 = vld [vmem:[#allocation118_spill] sm:$0xff] }
 0x7a5   : > { %v4522_v14 = vmul.f32 %v13941_v34, %v4410_v17  ;;  %v4591_v61 = vmul.f32 %v13945_v60, %v14081_v40  ;;  %v4654_v16 = vmul.f32 %v14007_v63, %v14050_v47  ;;  %v4659_v35 = vmul.f32 %v14007_v63, %v4483_v29 }
 0x7a6   : > { %v5884_v26 = vadd.f32 %v5852_v7, %v5816_v43  ;;  %v5885_v39 = vadd.f32 %v5853_v48, %v5817_v2  ;;  %v5921_v54 = vmul.f32 %v11894_v23, %v5341_v30  ;;  %v4723_v32 = vmul.f32 %v10761_v51, %v14057_v22 }
 0x7a7   : > { %v12298_v49 = vadd.f32 %v4590_v20, %v4522_v14  ;;  %v4623_v34 = vadd.f32 %v4591_v61, %v4523_v13  ;;  %v4686_v1 = vadd.f32 %v4654_v16, %v14082_v19  ;;  %v4724_v59 = vmul.f32 %v10761_v51, %v4410_v17  ;;  %v14084_v16 = vld [vmem:[#allocation21_spill] sm:$0xff] }
 0x7a8   : > { %v5952_v60 = vadd.f32 %v5920_v9, %v5884_v26  ;;  %v5953_v21 = vadd.f32 %v5921_v54, %v5885_v39  ;;  %v4755_v47 = vadd.f32 %v4723_v32, %v14083_v10  ;;  %v4791_v7 = vmul.f32 %v13831_v45, %v14059_v5  ;;  %v14085_v26 = vld [vmem:[#allocation109_spill] sm:$0xff] }
 0x7a9   : > { %v12305_v48 = vadd.f32 %v4659_v35, %v4623_v34  ;;  %v4754_v30 = vadd.f32 %v12179_v38, %v4686_v1  ;;  %v4790_v22 = vmul.f32 %v13831_v45, %v14058_v44  ;;  %v4858_v27 = vmul.f32 %v10770_v15, %v14065_v52  ;;  %v14086_v34 = vld [vmem:[#allocation114_spill] sm:$0xff]  ;;  %v14091_v10 = vld [vmem:[#allocation53_spill] sm:$0xff] }
 0x7aa   : > { %v5984_v43 = vmax.f32 %v5952_v60, 0.0  ;;  %v5985_v2 = vmax.f32 %v5953_v21, 0.0  ;;  %v4823_v14 = vadd.f32 %v4791_v7, %v4755_v47  ;;  %v4861_v9 = vmul.f32 %v10770_v15, %v4483_v29  ;;  %v14090_v21 = vld [vmem:[#allocation7_spill] sm:$0xff] }
 0x7ab   : > { %v4822_v13 = vadd.f32 %v4790_v22, %v4754_v30  ;;  %v4926_v20 = vmul.f32 %v13889_v37, %v4410_v17  ;;  %v4927_v5 = vmul.f32 %v13889_v37, %v14079_v12  ;;  %v4994_v38 = vmul.f32 %v13890_v3, %v14080_v0  ;;  %v14087_v17 = vld [vmem:[#allocation52_spill] sm:$0xff]  ;;  %v14093_v22 = vld [vmem:[#allocation9_spill] sm:$0xff] }
 0x7ac   : > { %v6029_v61 = vpack.c.bf16 %v5985_v2, %v5984_v43  ;;  %v4891_v44 = vadd.f32 %v14084_v16, %v4823_v14  ;;  %v4995_v35 = vmul.f32 %v13890_v3, %v14081_v40  ;;  %v5062_v39 = vmul.f32 %v12151_v57, %v14085_v26  ;;  %v14094_v14 = vld [vmem:[#allocation11_spill] sm:$0xff] }
 0x7ad   : > { %v4890_v54 = vadd.f32 %v4858_v27, %v4822_v13  ;;  %v5063_v32 = vmul.f32 %v12151_v57, %v4483_v29  ;;  %vm14088_vm14 = vnez %v14087_v17  ;;  %v4656_v1 = vmul.f32 %v14007_v63, %v14065_v52  ;;  %v5306_v17 = vld [vmem:[#allocation2 + $0xd9] sm:$0xff] }
 0x7ae   : > { %v4412_v19 = vsel %vm14088_vm14, %v14086_v34, 0.0  ;;  %7708 = vmatprep.mubr.msk.bf16.mxu0 %vm14089_vm15, %v6029_v61  ;;  %v4959_v60 = vadd.f32 %v4927_v5, %v4891_v44  ;;  %vm14092_vm12 = vnez %v14091_v10  ;;  %v4725_v7 = vmul.f32 %v10761_v51, %v14079_v12  ;;  %v14095_v5 = vld [vmem:[#allocation98_spill] sm:$0xff]  ;;  %v14097_v12 = vld [vmem:[#allocation107_spill] sm:$0xff] }
 0x7af   : > { %v4485_v47 = vsel %vm14092_vm12, %v14090_v21, 0.0  ;;  %v12336_v30 = vmul.f32 %v10761_v51, %v4412_v19  ;;  %v4958_v29 = vadd.f32 %v4926_v20, %v4890_v54  ;;  %v4688_v27 = vadd.f32 %v4656_v1, %v14093_v22 }
 0x7b0   : > { %v4792_v43 = vmul.f32 %v13831_v45, %v14080_v0  ;;  %v4793_v52 = vmul.f32 %v13831_v45, %v14081_v40  ;;  %v5027_v2 = vadd.f32 %v4995_v35, %v4959_v60  ;;  %v4757_v13 = vadd.f32 %v4725_v7, %v14094_v14  ;;  %v5234_v40 = vld [vmem:[#allocation2 + $0xd7] sm:$0xff]  ;;  %v14099_v60 = vld [vmem:[#allocation62_spill] sm:$0xff] }
 0x7b1   : > { %v12346_v61 = vmul.f32 %v13831_v45, %v14095_v5  ;;  %v12350_v16 = vmul.f32 %v13831_v45, %v14097_v12  ;;  %v5026_v20 = vadd.f32 %v4994_v38, %v4958_v29  ;;  %v4756_v44 = vadd.f32 %v4724_v59, %v4688_v27  ;;  %v5307_v7 = vld [vmem:[#allocation2 + $0xe1] sm:$0xff]  ;;  %v5198_v29 = vld [vmem:[#allocation2 + $0xd8] sm:$0xff] }
 0x7b2   : > { %v4860_v54 = vmul.f32 %v10770_v15, %v14085_v26  ;;  %v12355_v0 = vmul.f32 %v10770_v15, %v4485_v47  ;;  %v5095_v35 = vadd.f32 %v5063_v32, %v5027_v2  ;;  %v4825_v34 = vadd.f32 %v4793_v52, %v4757_v13  ;;  %v5199_v27 = vld [vmem:[#allocation2 + $0xe0] sm:$0xff]  ;;  %v14100_v52 = vld [vmem:[#allocation108_spill] sm:$0xff] }
 0x7b3   : > { %14096 = vst [vmem:[#allocation12_spill] sm:$0xff] %v12346_v61  ;;  %v4928_v1 = vmul.f32 %v13889_v37, %v4412_v19  ;;  %v4929_v21 = vmul.f32 %v13889_v37, %v14099_v60  ;;  %v5094_v22 = vadd.f32 %v5062_v39, %v5026_v20  ;;  %v4824_v45 = vadd.f32 %v4792_v43, %v4756_v44  ;;  %v5235_v14 = vld [vmem:[#allocation2 + $0xdf] sm:$0xff] }
 0x7b4   : > { %14098 = vst [vmem:[#allocation102_spill] sm:$0xff] %v12355_v0  ;;  %v4996_v59 = vmul.f32 %v13890_v3, %v14095_v5  ;;  %v4997_v38 = vmul.f32 %v13890_v3, %v14097_v12  ;;  %v5127_v10 = vmax.f32 %v5095_v35, 0.0  ;;  %v4893_v32 = vadd.f32 %v4861_v9, %v4825_v34 }
 0x7b5   : > { %v5064_v19 = vmul.f32 %v12151_v57, %v14100_v52  ;;  %v5270_v13 = vsel %vm14037_vm2, %v5234_v40, 0.0  ;;  %v5126_v39 = vmax.f32 %v5094_v22, 0.0  ;;  %v4892_v43 = vadd.f32 %v4860_v54, %v4824_v45  ;;  %vm14107_vm2 = vmmov %vm13992_vm1 }
 0x7b6   : > { %v5343_v5 = vsel %vm14040_vm9, %v5307_v7, 0.0  ;;  %v5382_v44 = vmul.f32 %v10742_v33, %v5270_v13  ;;  %v4961_v12 = vadd.f32 %v4929_v21, %v4893_v32  ;;  %v5383_v0 = vmul.f32 %v10742_v33, %v5235_v14 }
 0x7b7   : > { %v5450_v35 = vmul.f32 %v10745_v53, %v5198_v29  ;;  %v5451_v9 = vmul.f32 %v10745_v53, %v5199_v27  ;;  %v6013_v34 = vpack.c.bf16 %v5127_v10, %v5126_v39  ;;  %v4960_v61 = vadd.f32 %v4928_v1, %v4892_v43 }
 0x7b8   : > { %v5065_v2 = vmul.f32 %v12151_v57, %v4485_v47  ;;  %v5518_v40 = vmul.f32 %v10782_v42, %v5306_v17  ;;  %v5029_v22 = vadd.f32 %v4997_v38, %v4961_v12  ;;  %v5519_v7 = vmul.f32 %v10782_v42, %v5343_v5 }
 0x7b9   : > { %v5482_v54 = vadd.f32 %v5450_v35, %v5382_v44  ;;  %v5483_v45 = vadd.f32 %v5451_v9, %v5383_v0  ;;  %7749 = vmatmul.mubr.msk.bf16.gmra.mxu1 %vm14103_vm11, %v6013_v34  ;;  %v5028_v21 = vadd.f32 %v4996_v59, %v4960_v61  ;;  %v5584_v32 = vmul.f32 %v10785_v55, %v5270_v13  ;;  %v5200_v34 = vld [vmem:[#allocation2 + $0xe8] sm:$0xff] }
 0x7ba   : > { %v5614_v20 = vadd.f32 %v12250_v6, %v12221_v28  ;;  %v5615_v10 = vadd.f32 %v12253_v24, %v12225_v8  ;;  %v5097_v1 = vadd.f32 %v5065_v2, %v5029_v22  ;;  %v5585_v0 = vmul.f32 %v10785_v55, %v5235_v14  ;;  %v5236_v24 = vld [vmem:[#allocation2 + $0xe7] sm:$0xff]  ;;  %v5237_v2 = vld [vmem:[#allocation2 + $0xef] sm:$0xff] }
 0x7bb   : > { %v12383_v47 = vadd.f32 %v5518_v40, %v5482_v54  ;;  %v12385_v39 = vadd.f32 %v5519_v7, %v5483_v45  ;;  %v5096_v38 = vadd.f32 %v5064_v19, %v5028_v21  ;;  %v5652_v43 = vmul.f32 %v10788_v25, %v5198_v29 }
 0x7bc   : > { %v5682_v61 = vadd.f32 %v12262_v62, %v5614_v20  ;;  %v5683_v59 = vadd.f32 %v12265_v31, %v5615_v10  ;;  %v5129_v44 = vmax.f32 %v5097_v1, 0.0  ;;  %v5653_v28 = vmul.f32 %v10788_v25, %v5199_v27  ;;  %v5309_v62 = vld [vmem:[#allocation2 + $0xf1] sm:$0xff]  ;;  %v5308_v20 = vld [vmem:[#allocation2 + $0xe9] sm:$0xff] }
 0x7bd   : > { %v5720_v6 = vmul.f32 %v13818_v36, %v5306_v17  ;;  %v5786_v8 = vmul.f32 %v13820_v4, %v5270_v13  ;;  %v5128_v12 = vmax.f32 %v5096_v38, 0.0  ;;  %v5787_v19 = vmul.f32 %v13820_v4, %v5235_v14  ;;  %v5201_v13 = vld [vmem:[#allocation2 + $0xf0] sm:$0xff] }
 0x7be   : > { %v5750_v35 = vadd.f32 %v12268_v50, %v5682_v61  ;;  %v5751_v9 = vadd.f32 %v12271_v58, %v5683_v59  ;;  %v5721_v31 = vmul.f32 %v13818_v36, %v5343_v5  ;;  %v5854_v40 = vmul.f32 %v13821_v18, %v5198_v29 }
 0x7bf   : > { %v5855_v22 = vmul.f32 %v13821_v18, %v5199_v27  ;;  %v5922_v54 = vmul.f32 %v11894_v23, %v5306_v17  ;;  %v6014_v45 = vpack.c.bf16 %v5129_v44, %v5128_v12  ;;  %v5272_v58 = vsel %vm14053_vm6, %v5236_v24, 0.0  ;;  %v12412_v27 = vld [vmem:[%s12773_s1 + $0x3e] ss:$0 sm:$0xff]  ;;  %vm14120_vm6 = vmmov %vm13992_vm1 }
 0x7c0   : > { %v5818_v7 = vadd.f32 %v5786_v8, %v5750_v35  ;;  %v5819_v21 = vadd.f32 %v5787_v19, %v5751_v9  ;;  %v5345_v10 = vsel %vm14056_vm0, %v5309_v62, 0.0  ;;  %v5384_v1 = vmul.f32 %v10742_v33, %v5272_v58  ;;  %vm14123_vm0 = vmmov %vm13992_vm1 }
 0x7c1   : > { %v5385_v38 = vmul.f32 %v10742_v33, %v5237_v2  ;;  %v5452_v29 = vmul.f32 %v10745_v53, %v5200_v34  ;;  %7752 = vmatprep.mubr.msk.bf16.mxu1 %vm14106_vm13, %v6014_v45  ;;  %v5923_v61 = vmul.f32 %v12412_v27, %v5343_v5  ;;  %v5453_v59 = vmul.f32 %v10745_v53, %v5201_v13  ;;  %vm14124_vm1 = vmmov %vm14123_vm0 }
 0x7c2   : > { %v5886_v23 = vadd.f32 %v5854_v40, %v5818_v7  ;;  %v5887_v17 = vadd.f32 %v5855_v22, %v5819_v21  ;;  %v5520_v8 = vmul.f32 %v10782_v42, %v5308_v20  ;;  %v5521_v24 = vmul.f32 %v10782_v42, %v5345_v10  ;;  %vm14125_vm4 = vmmov %vm14123_vm0 }
 0x7c3   : > { %v5484_v44 = vadd.f32 %v5452_v29, %v5384_v1  ;;  %v12419_v12 = vmul.f32 %v10785_v55, %v5272_v58  ;;  %v5485_v19 = vadd.f32 %v5453_v59, %v5385_v38  ;;  %v5616_v62 = vadd.f32 %v5584_v32, %v12257_v11  ;;  %vm14129_vm5 = vmmov %vm14123_vm0 }
 0x7c4   : > { %v5954_v35 = vadd.f32 %v5922_v54, %v5886_v23  ;;  %v5955_v9 = vadd.f32 %v5923_v61, %v5887_v17  ;;  %v12425_v22 = vmul.f32 %v10785_v55, %v5237_v2  ;;  %v5617_v5 = vadd.f32 %v5585_v0, %v12259_v41  ;;  %vm14131_vm15 = vmmov %vm14123_vm0 }
 0x7c5   : > { %v12422_v40 = vadd.f32 %v5520_v8, %v5484_v44  ;;  %v12429_v45 = vmul.f32 %v10788_v25, %v5200_v34  ;;  %v12432_v50 = vmul.f32 %v10788_v25, %v5201_v13  ;;  %v5684_v54 = vadd.f32 %v5652_v43, %v5616_v62  ;;  %v14108_v44 = vld [vmem:[#allocation103_spill] sm:$0xff]  ;;  %v14109_v8 = vld [vmem:[#allocation54_spill] sm:$0xff]  ;;  %v14114_v62 = vld [vmem:[#allocation64_spill] sm:$0xff] }
 0x7c6   : > { %v5986_v7 = vmax.f32 %v5954_v35, 0.0  ;;  %v5987_v21 = vmax.f32 %v5955_v9, 0.0  ;;  %v12434_v14 = vadd.f32 %v5521_v24, %v5485_v19  ;;  %v5685_v1 = vadd.f32 %v5653_v28, %v5617_v5  ;;  %v14112_v24 = vld [vmem:[#allocation55_spill] sm:$0xff]  ;;  %v5238_v35 = vld [vmem:[#allocation2 + $0xf7] sm:$0xff]  ;;  %vm14133_vm11 = vmmov %vm14123_vm0 }
 0x7c7   : > { %v12437_v11 = vmul.f32 %v13818_v36, %v5308_v20  ;;  %v12440_v32 = vmul.f32 %v13818_v36, %v5345_v10  ;;  %v5752_v41 = vadd.f32 %v5720_v6, %v5684_v54  ;;  %v5788_v0 = vmul.f32 %v13820_v4, %v5272_v58  ;;  %vm14134_vm13 = vmmov %vm14123_vm0 }
 0x7c8   : > { %v6030_v38 = vpack.c.bf16 %v5987_v21, %v5986_v7  ;;  %v5789_v29 = vmul.f32 %v13820_v4, %v5237_v2  ;;  %v5753_v23 = vadd.f32 %v5721_v31, %v5685_v1  ;;  %v5856_v17 = vmul.f32 %v13821_v18, %v5200_v34  ;;  %v14111_v31 = vld [vmem:[#allocation91_spill] sm:$0xff] }
 0x7c9   : > { %v5857_v43 = vmul.f32 %v13821_v18, %v5201_v13  ;;  %v5924_v61 = vmul.f32 %v12412_v27, %v5308_v20  ;;  %v5820_v28 = vadd.f32 %v5788_v0, %v5752_v41  ;;  %v5925_v59 = vmul.f32 %v12412_v27, %v5345_v10  ;;  %v14115_v21 = vld [vmem:[#allocation27_spill] sm:$0xff]  ;;  %v5203_v0 = vld [vmem:[#allocation2 + $0x100] sm:$0xff] }
 0x7ca   : > { %7709 = vmatmul.mubr.msk.bf16.gmra.mxu0 %vm14107_vm2, %v6030_v38  ;;  %vm14110_vm9 = vnez %v14109_v8  ;;  %v4658_v58 = vmul.f32 %v14007_v63, %v14085_v26  ;;  %v5821_v2 = vadd.f32 %v5789_v29, %v5753_v23  ;;  %vm14113_vm8 = vnez %v14112_v24  ;;  %v5311_v26 = vld [vmem:[#allocation2 + $0x101] sm:$0xff]  ;;  %v5310_v29 = vld [vmem:[#allocation2 + $0xf9] sm:$0xff]  ;;  %vm14135_vm2 = vmmov %vm14123_vm0 }
 0x7cb   : > { %v4414_v6 = vsel %vm14110_vm9, %v14108_v44, 0.0  ;;  %v4487_v34 = vsel %vm14113_vm8, %v14111_v31, 0.0  ;;  %v4727_v13 = vmul.f32 %v10761_v51, %v14099_v60  ;;  %v4862_v20 = vmul.f32 %v10770_v15, %v14100_v52  ;;  %v14116_v51 = vld [vmem:[#allocation117_spill] sm:$0xff]  ;;  %v14117_v38 = vld [vmem:[#allocation71_spill] sm:$0xff] }
 0x7cc   : > { %v5888_v10 = vadd.f32 %v5856_v17, %v5820_v28  ;;  %v4690_v9 = vadd.f32 %v4658_v58, %v12298_v49  ;;  %v4930_v19 = vmul.f32 %v13889_v37, %v4414_v6  ;;  %v4931_v63 = vmul.f32 %v13889_v37, %v14114_v62  ;;  %v5202_v15 = vld [vmem:[#allocation2 + $0xf8] sm:$0xff]  ;;  %v14119_v58 = vld [vmem:[#allocation102_spill] sm:$0xff] }
 0x7cd   : > { %v5889_v5 = vadd.f32 %v5857_v43, %v5821_v2  ;;  %v4759_v7 = vadd.f32 %v4727_v13, %v12305_v48  ;;  %v4998_v54 = vmul.f32 %v13890_v3, %v14115_v21  ;;  %v4999_v60 = vmul.f32 %v13890_v3, %v14116_v51  ;;  %v5239_v52 = vld [vmem:[#allocation2 + $0xff] sm:$0xff]  ;;  %v5240_v51 = vld [vmem:[#allocation2 + $0x107] sm:$0xff] }
 0x7ce   : > { %v5956_v1 = vadd.f32 %v5924_v61, %v5888_v10  ;;  %v4758_v49 = vadd.f32 %v12336_v30, %v4690_v9  ;;  %v5066_v41 = vmul.f32 %v12151_v57, %v14117_v38  ;;  %v5274_v37 = vsel %vm14074_vm7, %v5238_v35, 0.0  ;;  %v14118_v61 = vld [vmem:[#allocation12_spill] sm:$0xff] }
 0x7cf   : > { %v5957_v48 = vadd.f32 %v5925_v59, %v5889_v5  ;;  %v4827_v23 = vadd.f32 %v12350_v16, %v4759_v7  ;;  %v5347_v17 = vsel %vm14077_vm3, %v5311_v26, 0.0  ;;  %v5386_v3 = vmul.f32 %v10742_v33, %v5274_v37  ;;  %v5313_v38 = vld [vmem:[#allocation2 + $0x111] sm:$0xff] }
 0x7d0   : > { %v5988_v43 = vmax.f32 %v5956_v1, 0.0  ;;  %v4826_v28 = vadd.f32 %v14118_v61, %v4758_v49  ;;  %v5387_v30 = vmul.f32 %v10742_v33, %v5239_v52  ;;  %v5454_v44 = vmul.f32 %v10745_v53, %v5202_v15 }
 0x7d1   : > { %v5989_v6 = vmax.f32 %v5957_v48, 0.0  ;;  %v4895_v56 = vadd.f32 %v14119_v58, %v4827_v23  ;;  %v5455_v2 = vmul.f32 %v10745_v53, %v5203_v0  ;;  %v5522_v59 = vmul.f32 %v10782_v42, %v5310_v29 }
 0x7d2   : > { %v4894_v16 = vadd.f32 %v4862_v20, %v4826_v28  ;;  %v5067_v46 = vmul.f32 %v12151_v57, %v4487_v34  ;;  %v5486_v31 = vadd.f32 %v5454_v44, %v5386_v3  ;;  %v5523_v13 = vmul.f32 %v10782_v42, %v5347_v17  ;;  %v5205_v28 = vld [vmem:[#allocation2 + $0x110] sm:$0xff] }
 0x7d3   : > { %v6031_v35 = vpack.c.bf16 %v5989_v6, %v5988_v43  ;;  %v4963_v10 = vadd.f32 %v4931_v63, %v4895_v56  ;;  %v5487_v9 = vadd.f32 %v5455_v2, %v5387_v30  ;;  %v5588_v33 = vmul.f32 %v10785_v55, %v5274_v37 }
 0x7d4   : > { %v4962_v62 = vadd.f32 %v4930_v19, %v4894_v16  ;;  %v5589_v26 = vmul.f32 %v10785_v55, %v5239_v52  ;;  %v5618_v5 = vadd.f32 %v12419_v12, %v12383_v47  ;;  %v5619_v53 = vadd.f32 %v12425_v22, %v12385_v39 }
 0x7d5   : > { %7712 = vmatprep.mubr.msk.bf16.mxu0 %vm14120_vm6, %v6031_v35  ;;  %v5031_v57 = vadd.f32 %v4999_v60, %v4963_v10  ;;  %v12494_v34 = vadd.f32 %v5522_v59, %v5486_v31  ;;  %v12496_v42 = vadd.f32 %v5523_v13, %v5487_v9  ;;  %v5656_v20 = vmul.f32 %v10788_v25, %v5202_v15  ;;  %v12524_v13 = vpop.f32.mrf.mxu0  ;;  %vm14138_vm6 = vmmov %vm14123_vm0 }
 0x7d6   : > { %v5030_v63 = vadd.f32 %v4998_v54, %v4962_v62  ;;  %v5657_v19 = vmul.f32 %v10788_v25, %v5203_v0  ;;  %v5686_v7 = vadd.f32 %v12429_v45, %v5618_v5  ;;  %v5687_v21 = vadd.f32 %v12432_v50, %v5619_v53 }
 0x7d7   : > { %v5099_v47 = vadd.f32 %v5067_v46, %v5031_v57  ;;  %v5724_v12 = vmul.f32 %v13818_v36, %v5310_v29  ;;  %v5725_v39 = vmul.f32 %v13818_v36, %v5347_v17  ;;  %v5790_v22 = vmul.f32 %v13820_v4, %v5274_v37  ;;  %v5204_v37 = vld [vmem:[#allocation2 + $0x108] sm:$0xff] }
 0x7d8   : > { %v5098_v60 = vadd.f32 %v5066_v41, %v5030_v63  ;;  %v5754_v1 = vadd.f32 %v12437_v11, %v5686_v7  ;;  %v5755_v49 = vadd.f32 %v12440_v32, %v5687_v21  ;;  %v5791_v54 = vmul.f32 %v13820_v4, %v5239_v52  ;;  %v5241_v41 = vld [vmem:[#allocation2 + $0x10f] sm:$0xff]  ;;  %v5315_v63 = vld [vmem:[#allocation2 + $0x121] sm:$0xff] }
 0x7d9   : > { %v5131_v48 = vmax.f32 %v5099_v47, 0.0  ;;  %v5858_v45 = vmul.f32 %v13821_v18, %v5202_v15  ;;  %v5859_v50 = vmul.f32 %v13821_v18, %v5203_v0  ;;  %v5926_v23 = vmul.f32 %v12412_v27, %v5310_v29  ;;  %v5312_v52 = vld [vmem:[#allocation2 + $0x109] sm:$0xff]  ;;  %v12518_v29 = vpop.f32.mrf.mxu1  ;;  %v5206_v47 = vld [vmem:[#allocation2 + $0x118] sm:$0xff] }
 0x7da   : > { %v5130_v3 = vmax.f32 %v5098_v60, 0.0  ;;  %v5822_v43 = vadd.f32 %v5790_v22, %v5754_v1  ;;  %v5823_v61 = vadd.f32 %v5791_v54, %v5755_v49  ;;  %v5276_v11 = vsel %vm14088_vm14, %v5240_v51, 0.0  ;;  %v5243_v22 = vld [vmem:[#allocation2 + $0x11f] sm:$0xff]  ;;  %vm14130_vm14 = vmmov %vm14123_vm0 }
 0x7db   : > { %v5927_v32 = vmul.f32 %v12412_v27, %v5347_v17  ;;  %v5349_v6 = vsel %vm14092_vm12, %v5313_v38, 0.0  ;;  %v5590_v15 = vmul.f32 %v10785_v55, %v5276_v11  ;;  %v5620_v0 = vadd.f32 %v5588_v33, %v12422_v40  ;;  %v5242_v33 = vld [vmem:[#allocation2 + $0x117] sm:$0xff]  ;;  %v6386_v5 = vpop.f32.mrf.mxu1  ;;  %v5207_v49 = vld [vmem:[#allocation2 + $0x120] sm:$0xff]  ;;  %v7862_v38 = vld [vmem:[%s12774_s2 + $0x128] sm:$0x3f]  }
 0x7dc   : > { %v6015_v58 = vpack.c.bf16 %v5131_v48, %v5130_v3  ;;  %v5890_v56 = vadd.f32 %v5858_v45, %v5822_v43  ;;  %v5891_v2 = vadd.f32 %v5859_v50, %v5823_v61  ;;  %v5621_v59 = vadd.f32 %v5589_v26, %v12434_v14  ;;  %vm14132_vm12 = vmmov %vm14123_vm0 }
 0x7dd   : > { %v5591_v16 = vmul.f32 %v10785_v55, %v5241_v41  ;;  %v5658_v46 = vmul.f32 %v10788_v25, %v5204_v37  ;;  %v5659_v17 = vmul.f32 %v10788_v25, %v5205_v28  ;;  %v5688_v31 = vadd.f32 %v5656_v20, %v5620_v0  ;;  %v7727_v3 = vpop.f32.mrf.mxu1 }
 0x7de   : > { %7753 = vmatmul.mubr.msk.bf16.gmra.mxu1 %vm14123_vm0, %v6015_v58  ;;  %v5958_v35 = vadd.f32 %v5926_v23, %v5890_v56  ;;  %v5959_v40 = vadd.f32 %v5927_v32, %v5891_v2  ;;  %v5689_v10 = vadd.f32 %v5657_v19, %v5621_v59  ;;  %v5726_v9 = vmul.f32 %v13818_v36, %v5312_v52  ;;  %v7863_v23 = vld [vmem:[%s12774_s2 + $0x120] sm:$0xf8]  }
 0x7df   : > { %v5727_v62 = vmul.f32 %v13818_v36, %v5349_v6  ;;  %v5756_v14 = vadd.f32 %v5724_v12, %v5688_v31  ;;  %v5792_v55 = vmul.f32 %v13820_v4, %v5276_v11  ;;  %v5793_v26 = vmul.f32 %v13820_v4, %v5241_v41  ;;  %v6146_v12 = vpop.f32.mrf.mxu0  ;;  %v6389_v56 = vpop.f32.mrf.mxu1 }
 0x7e0   : > { %v5990_v25 = vmax.f32 %v5958_v35, 0.0  ;;  %v5991_v53 = vmax.f32 %v5959_v40, 0.0  ;;  %v5757_v57 = vadd.f32 %v5725_v39, %v5689_v10  ;;  %v5860_v20 = vmul.f32 %v13821_v18, %v5204_v37  ;;  %v5314_v39 = vld [vmem:[#allocation2 + $0x119] sm:$0xff] }
 0x7e1   : > { %v5824_v7 = vadd.f32 %v5792_v55, %v5756_v14  ;;  %v5861_v19 = vmul.f32 %v13821_v18, %v5205_v28  ;;  %v5928_v21 = vmul.f32 %v12412_v27, %v5312_v52  ;;  %v5278_v36 = vsel %vm14110_vm9, %v5242_v33, 0.0  ;;  %v7691_v30 = vpop.f32.mrf.mxu0  ;;  %vm14136_vm9 = vmmov %vm14123_vm0 }
 0x7e2   : > { %v6032_v51 = vpack.c.bf16 %v5991_v53, %v5990_v25  ;;  %v5825_v60 = vadd.f32 %v5793_v26, %v5757_v57  ;;  %v5929_v1 = vmul.f32 %v12412_v27, %v5349_v6  ;;  %v5622_v54 = vadd.f32 %v5590_v15, %v12494_v34 }
 0x7e3   : > { %v5892_v48 = vadd.f32 %v5860_v20, %v5824_v7  ;;  %v5351_v45 = vsel %vm14113_vm8, %v5315_v63, 0.0  ;;  %v5623_v8 = vadd.f32 %v5591_v16, %v12496_v42  ;;  %v5794_v50 = vmul.f32 %v13820_v4, %v5278_v36  ;;  %v6149_v35 = vpop.f32.mrf.mxu0  ;;  %vm14137_vm8 = vmmov %vm14123_vm0 }
 0x7e4   : > { %7713 = vmatmul.mubr.msk.bf16.gmra.mxu0 %vm14124_vm1, %v6032_v51  ;;  %v5893_v34 = vadd.f32 %v5861_v19, %v5825_v60  ;;  %v5690_v43 = vadd.f32 %v5658_v46, %v5622_v54  ;;  %v5795_v61 = vmul.f32 %v13820_v4, %v5243_v22  ;;  %v5862_v37 = vmul.f32 %v13821_v18, %v5206_v47  ;;  %vm14139_vm1 = vmmov %vm14123_vm0 }
 0x7e5   : > { %v5960_v28 = vadd.f32 %v5928_v21, %v5892_v48  ;;  %v5691_v24 = vadd.f32 %v5659_v17, %v5623_v8  ;;  %v5863_v41 = vmul.f32 %v13821_v18, %v5207_v49  ;;  %v5930_v42 = vmul.f32 %v12412_v27, %v5314_v39 }
 0x7e6   : > { %v5961_v11 = vadd.f32 %v5929_v1, %v5893_v34  ;;  %v5758_v32 = vadd.f32 %v5726_v9, %v5690_v43  ;;  %v6589_v52 = vshrl.u32 %v7862_v38, 16  ;;  %v6592_v44 = vshll.u32 %v7862_v38, 16 }
 0x7e7   : > { %v5992_v6 = vmax.f32 %v5960_v28, 0.0  ;;  %v5759_v15 = vadd.f32 %v5727_v62, %v5691_v24  ;;  %v6581_v0 = vshrl.u32 %v7863_v23, 16  ;;  %v6584_v58 = vshll.u32 %v7863_v23, 16  ;;  %v7730_v62 = vpop.f32.mrf.mxu1 }
 0x7e8   : > { %v5993_v2 = vmax.f32 %v5961_v11, 0.0  ;;  %v5826_v4 = vadd.f32 %v5794_v50, %v5758_v32  ;;  %v6591_v59 = vrot.slane %v6589_v52, 3  ;;  %v6594_v16 = vrot.slane %v6592_v44, 4 }
 0x7e9   : > { %v5827_v46 = vadd.f32 %v5795_v61, %v5759_v15  ;;  %v5931_v17 = vmul.f32 %v12412_v27, %v5351_v45  ;;  %v6583_v18 = vrot.slane %v6581_v0, 3  ;;  %v6586_v31 = vrot.slane %v6584_v58, 4  ;;  %v6402_v19 = vpop.f32.mrf.mxu1 }
 0x7ea   : > { %v6033_v40 = vpack.c.bf16 %v5993_v2, %v5992_v6  ;;  %v5894_v10 = vadd.f32 %v5862_v37, %v5826_v4  ;;  %v6595_v9 = vor.u32 %v6594_v16, %v6591_v59  ;;  %v6387_v33 = vadd.f32 %v6386_v5, %v6146_v12 }
 0x7eb   : > { %v5895_v14 = vadd.f32 %v5863_v41, %v5827_v46  ;;  %v6587_v55 = vor.u32 %v6586_v31, %v6583_v18  ;;  %vm14126_vm10 = vcmask 1041408   ;;  %v6390_v53 = vadd.f32 %v6389_v56, %v6149_v35  ;;  %v7731_v51 = vpop.f32.mrf.mxu1 }
 0x7ec   : > { %7716 = vmatprep.mubr.msk.bf16.mxu0 %vm14125_vm4, %v6033_v40  ;;  %v5962_v26 = vadd.f32 %v5930_v42, %v5894_v10  ;;  %7803 = vmatprep.subr.msk.bf16.mxu0 %vm14126_vm10, %v6595_v9  ;;  %vm14127_vm7 = vmmov %vm14126_vm10  ;;  %vm14128_vm3 = vsmask.f32 4352  ;;  %v6513_v20 = vmax.f32 %v6387_v33, 0.0  ;;  %v6398_v22 = vadd.f32 %v7727_v3, %v7691_v30  ;;  %v7694_v36 = vpop.f32.mrf.mxu0 }
 0x7ed   : > { %v6647_v25 = vsel %vm14127_vm7, %v6595_v9, 0  ;;  %v5963_v57 = vadd.f32 %v5931_v17, %v5895_v14  ;;  %v6596_v27 = vsel %vm14128_vm3, %v6587_v55, %v6595_v9  ;;  %v6514_v63 = vmax.f32 %v6390_v53, 0.0  ;;  %v6405_v38 = vpop.f32.mrf.mxu1  ;;  %vm14140_vm4 = vmmov %vm14123_vm0 }
 0x7ee   : > { %7757 = vmatpush3.bf16.msra.mxu0 %v6647_v25  ;;  %v5994_v7 = vmax.f32 %v5962_v26, 0.0  ;;  %v6395_v12 = vadd.f32 %v12518_v29, %v12524_v13  ;;  %v6162_v60 = vpop.f32.mrf.mxu0  ;;  %v6516_v1 = vmax.f32 %v6398_v22, 0.0  ;;  %v6411_v34 = vadd.f32 %v7730_v62, %v7694_v36  ;;  %vm14141_vm10 = vmmov %vm14123_vm0 }
 0x7ef   : > { %7758 = vmatprep.subr.bf16.mxu0 %v6596_v27  ;;  %v5995_v5 = vmax.f32 %v5963_v57, 0.0  ;;  %v6549_v21 = vpack.c.bf16 %v6514_v63, %v6513_v20  ;;  %v6403_v39 = vadd.f32 %v6402_v19, %v6162_v60  ;;  %v7734_v37 = vpop.f32.mrf.mxu1  ;;  %vm14142_vm7 = vmmov %vm14123_vm0 }
 0x7f0   : > { %v7695_v49 = vpop.f32.mrf.mxu0  ;;  %v6515_v54 = vmax.f32 %v6395_v12, 0.0  ;;  %v6519_v13 = vmax.f32 %v6411_v34, 0.0  ;;  %vm14143_vm3 = vmmov %vm14123_vm0 }
 0x7f1   : > { %v6034_v47 = vpack.c.bf16 %v5995_v5, %v5994_v7  ;;  %v6414_v50 = vadd.f32 %v7731_v51, %v7695_v49  ;;  %v6517_v23 = vmax.f32 %v6403_v39, 0.0  ;;  %v6418_v28 = vpop.f32.mrf.mxu1 }
 0x7f2   : > { %7759 = vmatpush3.bf16.msra.mxu0 %v6596_v27  ;;  %v6165_v48 = vpop.f32.mrf.mxu0  ;;  %v6550_v8 = vpack.c.bf16 %v6516_v1, %v6515_v54 }
 0x7f3   : > { %7717 = vmatmul.mubr.msk.bf16.gmra.mxu0 %vm14129_vm5, %v6034_v47  ;;  %v6406_v45 = vadd.f32 %v6405_v38, %v6165_v48  ;;  %v6520_v29 = vmax.f32 %v6414_v50, 0.0  ;;  %v7735_v41 = vpop.f32.mrf.mxu1  ;;  %vm14144_vm5 = vmmov %vm14123_vm0 }
 0x7f4   : > { %7760 = vmatprep.mubr.msk.bf16.mxu0 %vm14130_vm14, %v6549_v21 }
 0x7f5   : > { %v6518_v3 = vmax.f32 %v6406_v45, 0.0  ;;  %v6552_v61 = vpack.c.bf16 %v6520_v29, %v6519_v13  ;;  %v6421_v52 = vpop.f32.mrf.mxu1 }
 0x7f7   : > { %v6551_v43 = vpack.c.bf16 %v6518_v3, %v6517_v23 }
 0x7fb   : > { %7761 = vmatmul.mubr.msk.bf16.vlgmr.msra.gmra.mxu0 %vm14131_vm15, %v6550_v8 }
 0x7fc   : > { %7764 = vmatprep.mubr.msk.bf16.mxu0 %vm14132_vm12, %v6551_v43  ;;  %vm14145_vm12 = vcmask 23552  }
 0x801   : > { %v7738_v16 = vpop.f32.mrf.mxu1 }
 0x803   : > { %7765 = vmatmul.mubr.msk.bf16.gmra.mxu0 %vm14133_vm11, %v6552_v61  ;;  %v6434_v46 = vpop.f32.mrf.mxu1 }
 0x805   : > { %v7739_v18 = vpop.f32.mrf.mxu1 }
 0x807   : > { %v6437_v9 = vpop.f32.mrf.mxu1 }
 0x814   : > { %v7698_v24 = vpop.f32.mrf.mxu0 }
 0x815   : > { %v6427_v44 = vadd.f32 %v7734_v37, %v7698_v24 }
 0x816   : > { %v6178_v42 = vpop.f32.mrf.mxu0 }
 0x817   : > { %v6419_v11 = vadd.f32 %v6418_v28, %v6178_v42  ;;  %v6523_v2 = vmax.f32 %v6427_v44, 0.0 }
 0x818   : > { %v7699_v30 = vpop.f32.mrf.mxu0 }
 0x819   : > { %v6430_v32 = vadd.f32 %v7735_v41, %v7699_v30  ;;  %v6521_v58 = vmax.f32 %v6419_v11, 0.0 }
 0x81a   : > { %v6181_v6 = vpop.f32.mrf.mxu0 }
 0x81b   : > { %v6422_v15 = vadd.f32 %v6421_v52, %v6181_v6  ;;  %v6524_v0 = vmax.f32 %v6430_v32, 0.0 }
 0x81d   : > { %v6522_v56 = vmax.f32 %v6422_v15, 0.0  ;;  %v6554_v59 = vpack.c.bf16 %v6524_v0, %v6523_v2 }
 0x81f   : > { %v6553_v4 = vpack.c.bf16 %v6522_v56, %v6521_v58 }
 0x821   : > { %7768 = vmatprep.mubr.msk.bf16.mxu0 %vm14134_vm13, %v6553_v4  ;;  %vm14146_vm13 = vmmov %vm14145_vm12 }
 0x822   : > { %7769 = vmatmul.mubr.msk.bf16.gmra.mxu0 %vm14135_vm2, %v6554_v59 }
 0x829   : > { %v7742_v20 = vpop.f32.mrf.mxu1 }
 0x82b   : > { %v6450_v63 = vpop.f32.mrf.mxu1 }
 0x82d   : > { %v7743_v5 = vpop.f32.mrf.mxu1 }
 0x82f   : > { %v6453_v36 = vpop.f32.mrf.mxu1 }
 0x83c   : > { %v7702_v17 = vpop.f32.mrf.mxu0 }
 0x83d   : > { %v6443_v33 = vadd.f32 %v7738_v16, %v7702_v17 }
 0x83e   : > { %v6194_v31 = vpop.f32.mrf.mxu0 }
 0x83f   : > { %v6435_v40 = vadd.f32 %v6434_v46, %v6194_v31  ;;  %v6527_v53 = vmax.f32 %v6443_v33, 0.0 }
 0x840   : > { %v7703_v35 = vpop.f32.mrf.mxu0 }
 0x841   : > { %v6446_v10 = vadd.f32 %v7739_v18, %v7703_v35  ;;  %v6525_v26 = vmax.f32 %v6435_v40, 0.0 }
 0x842   : > { %v6197_v14 = vpop.f32.mrf.mxu0 }
 0x843   : > { %v6438_v55 = vadd.f32 %v6437_v9, %v6197_v14  ;;  %v6528_v62 = vmax.f32 %v6446_v10, 0.0 }
 0x845   : > { %v6526_v25 = vmax.f32 %v6438_v55, 0.0  ;;  %v6556_v27 = vpack.c.bf16 %v6528_v62, %v6527_v53 }
 0x847   : > { %v6555_v57 = vpack.c.bf16 %v6526_v25, %v6525_v26 }
 0x849   : > { %7772 = vmatprep.mubr.msk.bf16.mxu0 %vm14136_vm9, %v6555_v57  ;;  %vm14147_vm9 = vmmov %vm14145_vm12 }
 0x84a   : > { %7773 = vmatmul.mubr.msk.bf16.gmra.mxu0 %vm14137_vm8, %v6556_v27 }
 0x851   : > { %v7746_v45 = vpop.f32.mrf.mxu1 }
 0x853   : > { %v6466_v8 = vpop.f32.mrf.mxu1 }
 0x855   : > { %v7747_v23 = vpop.f32.mrf.mxu1 }
 0x857   : > { %v6469_v13 = vpop.f32.mrf.mxu1 }
 0x864   : > { %v7706_v7 = vpop.f32.mrf.mxu0 }
 0x865   : > { %v6459_v12 = vadd.f32 %v7742_v20, %v7706_v7 }
 0x866   : > { %v6210_v19 = vpop.f32.mrf.mxu0 }
 0x867   : > { %v6451_v47 = vadd.f32 %v6450_v63, %v6210_v19  ;;  %v6531_v54 = vmax.f32 %v6459_v12, 0.0  ;;  %v12578_v63 = vld [vmem:[%s12773_s1 + $0x41] ss:$0 sm:$0xff] }
 0x868   : > { %v7707_v21 = vpop.f32.mrf.mxu0 }
 0x869   : > { %v6462_v22 = vadd.f32 %v7743_v5, %v7707_v21  ;;  %v6529_v49 = vmax.f32 %v6451_v47, 0.0 }
 0x86a   : > { %v6213_v51 = vpop.f32.mrf.mxu0 }
 0x86b   : > { %v6454_v60 = vadd.f32 %v6453_v36, %v6213_v51  ;;  %v6532_v1 = vmax.f32 %v6462_v22, 0.0 }
 0x86d   : > { %v6530_v39 = vmax.f32 %v6454_v60, 0.0  ;;  %v6558_v48 = vpack.c.bf16 %v6532_v1, %v6531_v54 }
 0x86f   : > { %v6557_v38 = vpack.c.bf16 %v6530_v39, %v6529_v49 }
 0x871   : > { %7776 = vmatprep.mubr.msk.bf16.mxu0 %vm14138_vm6, %v6557_v38  ;;  %vm14148_vm6 = vmmov %vm14147_vm9 }
 0x872   : > { %7777 = vmatmul.mubr.msk.bf16.gmra.mxu0 %vm14123_vm0, %v6558_v48 }
 0x879   : > { %v7750_v52 = vpop.f32.mrf.mxu1 }
 0x87b   : > { %v6482_v44 = vpop.f32.mrf.mxu1 }
 0x87d   : > { %v7751_v15 = vpop.f32.mrf.mxu1 }
 0x87f   : > { %v6485_v56 = vpop.f32.mrf.mxu1 }
 0x88a   : > { %v7710_v50 = vpop.f32.mrf.mxu0 }
 0x88b   : > { %v6475_v61 = vadd.f32 %v7746_v45, %v7710_v50 }
 0x88c   : > { %v6226_v3 = vpop.f32.mrf.mxu0 }
 0x88d   : > { %v6467_v43 = vadd.f32 %v6466_v8, %v6226_v3  ;;  %v6535_v30 = vmax.f32 %v6475_v61, 0.0 }
 0x88e   : > { %v7711_v34 = vpop.f32.mrf.mxu0 }
 0x88f   : > { %v6478_v29 = vadd.f32 %v7747_v23, %v7711_v34  ;;  %v6533_v41 = vmax.f32 %v6467_v43, 0.0 }
 0x890   : > { %v6229_v37 = vpop.f32.mrf.mxu0 }
 0x891   : > { %v6470_v28 = vadd.f32 %v6469_v13, %v6229_v37  ;;  %v6536_v24 = vmax.f32 %v6478_v29, 0.0 }
 0x893   : > { %v6534_v42 = vmax.f32 %v6470_v28, 0.0  ;;  %v6560_v32 = vpack.c.bf16 %v6536_v24, %v6535_v30 }
 0x895   : > { %v6559_v11 = vpack.c.bf16 %v6534_v42, %v6533_v41 }
 0x897   : > { %7780 = vmatprep.mubr.msk.bf16.mxu0 %vm14139_vm1, %v6559_v11 }
 0x898   : > { %7781 = vmatmul.mubr.msk.bf16.gmra.mxu0 %vm14140_vm4, %v6560_v32  ;;  %vm14149_vm4 = vmmov %vm14148_vm6 }
 0x89e   : > { %v7754_v18 = vpop.f32.mrf.mxu1 }
 0x8a0   : > { %v6498_v33 = vpop.f32.mrf.mxu1 }
 0x8a2   : > { %v7755_v55 = vpop.f32.mrf.mxu1 }
 0x8a4   : > { %v7714_v6 = vpop.f32.mrf.mxu0  ;;  %v6501_v57 = vpop.f32.mrf.mxu1 }
 0x8a5   : > { %v6491_v59 = vadd.f32 %v7750_v52, %v7714_v6 }
 0x8a6   : > { %v6242_v0 = vpop.f32.mrf.mxu0 }
 0x8a7   : > { %v6483_v2 = vadd.f32 %v6482_v44, %v6242_v0  ;;  %v6539_v40 = vmax.f32 %v6491_v59, 0.0 }
 0x8a8   : > { %v7715_v58 = vpop.f32.mrf.mxu0 }
 0x8a9   : > { %v6494_v4 = vadd.f32 %v7751_v15, %v7715_v58  ;;  %v6537_v31 = vmax.f32 %v6483_v2, 0.0 }
 0x8aa   : > { %v6245_v16 = vpop.f32.mrf.mxu0 }
 0x8ab   : > { %v6486_v46 = vadd.f32 %v6485_v56, %v6245_v16  ;;  %v6540_v17 = vmax.f32 %v6494_v4, 0.0 }
 0x8ad   : > { %v6538_v35 = vmax.f32 %v6486_v46, 0.0  ;;  %v6562_v9 = vpack.c.bf16 %v6540_v17, %v6539_v40 }
 0x8af   : > { %v6561_v10 = vpack.c.bf16 %v6538_v35, %v6537_v31 }
 0x8b1   : > { %7784 = vmatprep.mubr.msk.bf16.mxu0 %vm14141_vm10, %v6561_v10 }
 0x8b2   : > { %7785 = vmatmul.mubr.msk.bf16.gmra.mxu0 %vm14142_vm7, %v6562_v9  ;;  %vm14150_vm7 = vmmov %vm14149_vm4 }
 0x8b3   : > { %v7718_v14 = vpop.f32.mrf.mxu0 }
 0x8b4   : > { %v6507_v27 = vadd.f32 %v7754_v18, %v7718_v14 }
 0x8b5   : > { %v6258_v62 = vpop.f32.mrf.mxu0 }
 0x8b6   : > { %v6499_v25 = vadd.f32 %v6498_v33, %v6258_v62  ;;  %v6543_v36 = vmax.f32 %v6507_v27, 0.0 }
 0x8b7   : > { %v7719_v26 = vpop.f32.mrf.mxu0 }
 0x8b8   : > { %v6510_v53 = vadd.f32 %v7755_v55, %v7719_v26  ;;  %v6541_v21 = vmax.f32 %v6499_v25, 0.0 }
 0x8b9   : > { %v6261_v20 = vpop.f32.mrf.mxu0 }
 0x8ba   : > { %v6502_v7 = vadd.f32 %v6501_v57, %v6261_v20  ;;  %v6544_v5 = vmax.f32 %v6510_v53, 0.0 }
 0x8bb   : > { %v7762_v19 = vpop.f32.mrf.mxu0 }
 0x8bc   : > { %v6542_v47 = vmax.f32 %v6502_v7, 0.0  ;;  %v12581_v22 = vadd.f32 %v7762_v19, %v12578_v63  ;;  %v6564_v49 = vpack.c.bf16 %v6544_v5, %v6543_v36 }
 0x8bd   : > { %v6683_v12 = vpop.f32.mrf.mxu0 }
 0x8be   : > { %v6563_v51 = vpack.c.bf16 %v6542_v47, %v6541_v21  ;;  %v6812_v60 = vand.u32 2147483647, %v12581_v22  ;;  %v12585_v1 = vadd.f32 %v12578_v63, %v6683_v12  ;;  %vm6940_vm14 = vcmp.ge.f32.partialorder %v12581_v22, 0.0 }
 0x8bf   : > { %v7763_v39 = vpop.f32.mrf.mxu0 }
 0x8c0   : > { %7788 = vmatprep.mubr.msk.bf16.mxu0 %vm14143_vm3, %v6563_v51  ;;  %v6844_v54 = vsub.f32 0.0, %v6812_v60  ;;  %v6810_v38 = vand.u32 2147483647, %v12585_v1  ;;  %v12590_v48 = vadd.f32 %v7763_v39, %v12578_v63  ;;  %vm6938_vm15 = vcmp.ge.f32.partialorder %v12585_v1, 0.0  ;;  %vm14151_vm3 = vmmov %vm14149_vm4 }
 0x8c1   : > { %7789 = vmatmul.mubr.msk.bf16.gmra.mxu0 %vm14144_vm5, %v6564_v49  ;;  %v6686_v45 = vpop.f32.mrf.mxu0  ;;  %vm14152_vm5 = vmmov %vm14151_vm3 }
 0x8c2   : > { %v6878_v8 = vmul.f32 1.442695, %v6844_v54  ;;  %v6842_v50 = vsub.f32 0.0, %v6810_v38  ;;  %v6813_v23 = vand.u32 2147483647, %v12590_v48  ;;  %v12595_v3 = vadd.f32 %v12578_v63, %v6686_v45 }
 0x8c3   : > { %v7766_v34 = vpop.f32.mrf.mxu0  ;;  %vm6941_vm11 = vcmp.ge.f32.partialorder %v12590_v48, 0.0 }
 0x8c4   : > { %7864 = vpow2.f32 %v6878_v8  ;;  %v6874_v43 = vmul.f32 1.442695, %v6842_v50  ;;  %v6845_v29 = vsub.f32 0.0, %v6813_v23  ;;  %v12598_v13 = vadd.f32 %v7766_v34, %v12578_v63 }
 0x8c5   : > { %v6811_v61 = vand.u32 2147483647, %v12595_v3  ;;  %v6699_v37 = vpop.f32.mrf.mxu0  ;;  %vm6939_vm2 = vcmp.ge.f32.partialorder %v12595_v3, 0.0 }
 0x8c6   : > { %7866 = vpow2.f32 %v6874_v43  ;;  %v6880_v28 = vmul.f32 1.442695, %v6845_v29  ;;  %v6816_v24 = vand.u32 2147483647, %v12598_v13  ;;  %v12603_v42 = vadd.f32 %v12578_v63, %v6699_v37 }
 0x8c7   : > { %v6843_v41 = vsub.f32 0.0, %v6811_v61  ;;  %v7767_v30 = vpop.f32.mrf.mxu0  ;;  %vm6944_vm8 = vcmp.ge.f32.partialorder %v12598_v13, 0.0 }
 0x8c8   : > { %7868 = vpow2.f32 %v6880_v28  ;;  %v6848_v11 = vsub.f32 0.0, %v6816_v24  ;;  %v12606_v32 = vadd.f32 %v7767_v30, %v12578_v63  ;;  %v6814_v44 = vand.u32 2147483647, %v12603_v42 }
 0x8c9   : > { %v6876_v52 = vmul.f32 1.442695, %v6843_v41  ;;  %v6702_v6 = vpop.f32.mrf.mxu0  ;;  %vm6942_vm0 = vcmp.ge.f32.partialorder %v12603_v42, 0.0 }
 0x8ca   : > { %v6886_v15 = vmul.f32 1.442695, %v6848_v11  ;;  %v6817_v0 = vand.u32 2147483647, %v12606_v32  ;;  %v12611_v58 = vadd.f32 %v12578_v63, %v6702_v6  ;;  %v6846_v56 = vsub.f32 0.0, %v6814_v44 }
 0x8cb   : > { %7870 = vpow2.f32 %v6876_v52  ;;  %vm6945_vm1 = vcmp.ge.f32.partialorder %v12606_v32, 0.0 }
 0x8cc   : > { %7872 = vpow2.f32 %v6886_v15  ;;  %v6849_v2 = vsub.f32 0.0, %v6817_v0  ;;  %v6815_v4 = vand.u32 2147483647, %v12611_v58  ;;  %v6882_v59 = vmul.f32 1.442695, %v6846_v56 }
 0x8cd   : > { %vm6943_vm10 = vcmp.ge.f32.partialorder %v12611_v58, 0.0 }
 0x8ce   : > { %v6888_v16 = vmul.f32 1.442695, %v6849_v2  ;;  %v6847_v46 = vsub.f32 0.0, %v6815_v4  ;;  %7874 = vpow2.f32 %v6882_v59 }
 0x8d0   : > { %7876 = vpow2.f32 %v6888_v16  ;;  %v6884_v17 = vmul.f32 1.442695, %v6847_v46 }
 0x8d1   : > { %v7865_v18 = vpop.eup %7864 }
 0x8d2   : > { %v7004_v31 = vadd.f32 1.0, %v7865_v18  ;;  %7878 = vpow2.f32 %v6884_v17  ;;  %v6972_v5 = vsel %vm6940_vm14, 1.0, %v7865_v18 }
 0x8d3   : > { %v7867_v35 = vpop.eup %7866 }
 0x8d4   : > { %7880 = vrcp.f32 %v7004_v31  ;;  %v7002_v40 = vadd.f32 1.0, %v7867_v35  ;;  %v6970_v47 = vsel %vm6938_vm15, 1.0, %v7867_v35 }
 0x8d5   : > { %v7869_v10 = vpop.eup %7868 }
 0x8d6   : > { %7882 = vrcp.f32 %v7002_v40  ;;  %v7005_v9 = vadd.f32 1.0, %v7869_v10  ;;  %v6973_v12 = vsel %vm6941_vm11, 1.0, %v7869_v10 }
 0x8d8   : > { %v7871_v33 = vpop.eup %7870  ;;  %7884 = vrcp.f32 %v7005_v9 }
 0x8d9   : > { %v7873_v14 = vpop.eup %7872  ;;  %v7003_v55 = vadd.f32 1.0, %v7871_v33  ;;  %v6971_v54 = vsel %vm6939_vm2, 1.0, %v7871_v33 }
 0x8da   : > { %v7008_v62 = vadd.f32 1.0, %v7873_v14  ;;  %v6976_v50 = vsel %vm6944_vm8, 1.0, %v7873_v14  ;;  %vm14156_vm8 = vmmov %vm14151_vm3 }
 0x8db   : > { %7886 = vrcp.f32 %v7003_v55  ;;  %v7875_v26 = vpop.eup %7874 }
 0x8dc   : > { %7888 = vrcp.f32 %v7008_v62  ;;  %v7006_v53 = vadd.f32 1.0, %v7875_v26  ;;  %v6974_v37 = vsel %vm6942_vm0, 1.0, %v7875_v26 }
 0x8dd   : > { %v7877_v25 = vpop.eup %7876 }
 0x8de   : > { %v7009_v57 = vadd.f32 1.0, %v7877_v25  ;;  %7890 = vrcp.f32 %v7006_v53  ;;  %v6977_v52 = vsel %vm6945_vm1, 1.0, %v7877_v25  ;;  %vm14157_vm1 = vmmov %vm14151_vm3 }
 0x8df   : > { %v7879_v27 = vpop.eup %7878 }
 0x8e0   : > { %7892 = vrcp.f32 %v7009_v57  ;;  %v7007_v20 = vadd.f32 1.0, %v7879_v27  ;;  %v6975_v0 = vsel %vm6943_vm10, 1.0, %v7879_v27  ;;  %vm14158_vm10 = vmmov %vm14157_vm1 }
 0x8e1   : > { %v7881_v7 = vpop.eup %7880 }
 0x8e2   : > { %v7039_v19 = vmul.f32 %v7881_v7, %v6972_v5  ;;  %7894 = vrcp.f32 %v7007_v20  ;;  %v7770_v51 = vpop.f32.mrf.mxu0 }
 0x8e3   : > { %v7883_v21 = vpop.eup %7882  ;;  %v12629_v49 = vadd.f32 %v7770_v51, %v12578_v63 }
 0x8e4   : > { %7100 = vst.msk [vmem:[%s12620_s21 + $0x10] sm:$0xff] %vm14145_vm12, %v7039_v19  ;;  %v7035_v22 = vmul.f32 %v7883_v21, %v6970_v47  ;;  %v6715_v1 = vpop.f32.mrf.mxu0  ;;  %vm14153_vm12 = vmmov %vm14151_vm3 }
 0x8e5   : > { %v7885_v36 = vpop.eup %7884  ;;  %v6820_v38 = vand.u32 2147483647, %v12629_v49  ;;  %v6716_v48 = vadd.f32 %v12578_v63, %v6715_v1  ;;  %vm6948_vm14 = vcmp.ge.f32.partialorder %v12629_v49, 0.0 }
 0x8e6   : > { %7098 = vst.msk [vmem:[%s12620_s21] sm:$0xff] %vm14146_vm13, %v7035_v22  ;;  %v7041_v60 = vmul.f32 %v7885_v36, %v6973_v12  ;;  %v7771_v23 = vpop.f32.mrf.mxu0  ;;  %vm14154_vm13 = vmmov %vm14151_vm3 }
 0x8e7   : > { %v6852_v43 = vsub.f32 0.0, %v6820_v38  ;;  %v6818_v29 = vand.u32 2147483647, %v6716_v48  ;;  %v6727_v3 = vadd.f32 %v7771_v23, %v12578_v63  ;;  %vm6946_vm15 = vcmp.ge.f32.partialorder %v6716_v48, 0.0 }
 0x8e8   : > { %v7887_v39 = vpop.eup %7886  ;;  %7101 = vst.msk [vmem:[%s12620_s21 + $0x18] sm:$0xff] %vm14147_vm9, %v7041_v60  ;;  %v6718_v13 = vpop.f32.mrf.mxu0  ;;  %vm14155_vm9 = vmmov %vm14151_vm3 }
 0x8e9   : > { %v7889_v45 = vpop.eup %7888  ;;  %v7037_v8 = vmul.f32 %v7887_v39, %v6971_v54  ;;  %v6894_v28 = vmul.f32 1.442695, %v6852_v43  ;;  %v6850_v24 = vsub.f32 0.0, %v6818_v29  ;;  %v6719_v41 = vadd.f32 %v12578_v63, %v6718_v13 }
 0x8ea   : > { %v7047_v34 = vmul.f32 %v7889_v45, %v6976_v50  ;;  %v6821_v42 = vand.u32 2147483647, %v6727_v3  ;;  %vm6949_vm11 = vcmp.ge.f32.partialorder %v6727_v3, 0.0 }
 0x8eb   : > { %7099 = vst.msk [vmem:[%s12620_s21 + $0x8] sm:$0xff] %vm14148_vm6, %v7037_v8  ;;  %v7891_v61 = vpop.eup %7890  ;;  %7896 = vpow2.f32 %v6894_v28  ;;  %v6890_v44 = vmul.f32 1.442695, %v6850_v24  ;;  %v6819_v6 = vand.u32 2147483647, %v6719_v41  ;;  %vm6947_vm2 = vcmp.ge.f32.partialorder %v6719_v41, 0.0 }
 0x8ec   : > { %7104 = vst.msk [vmem:[%s12620_s21 + $0x30] sm:$0xff] %vm14149_vm4, %v7047_v34  ;;  %v7043_v11 = vmul.f32 %v7891_v61, %v6974_v37  ;;  %v6853_v56 = vsub.f32 0.0, %v6821_v42 }
 0x8ed   : > { %v7893_v30 = vpop.eup %7892  ;;  %7898 = vpow2.f32 %v6890_v44  ;;  %v6851_v4 = vsub.f32 0.0, %v6819_v6 }
 0x8ee   : > { %v7049_v32 = vmul.f32 %v7893_v30, %v6977_v52  ;;  %7102 = vst.msk [vmem:[%s12620_s21 + $0x20] sm:$0xff] %vm14150_vm7, %v7043_v11  ;;  %v6896_v59 = vmul.f32 1.442695, %v6853_v56 }
 0x8ef   : > { %v7895_v15 = vpop.eup %7894  ;;  %v6892_v16 = vmul.f32 1.442695, %v6851_v4 }
 0x8f0   : > { %7105 = vst.msk [vmem:[%s12620_s21 + $0x38] sm:$0xff] %vm14151_vm3, %v7049_v32  ;;  %v7045_v2 = vmul.f32 %v7895_v15, %v6975_v0  ;;  %7900 = vpow2.f32 %v6896_v59  ;;  %vm14159_vm3 = vmmov %vm14157_vm1 }
 0x8f1   : > { %7902 = vpow2.f32 %v6892_v16 }
 0x8f2   : > { %7103 = vst.msk [vmem:[%s12620_s21 + $0x28] sm:$0xff] %vm14152_vm5, %v7045_v2  ;;  %vm14160_vm5 = vmmov %vm14157_vm1 }
 0x8f8   : > { %v7897_v58 = vpop.eup %7896 }
 0x8f9   : > { %v7012_v46 = vadd.f32 1.0, %v7897_v58  ;;  %v6980_v33 = vsel %vm6948_vm14, 1.0, %v7897_v58 }
 0x8fa   : > { %v7899_v17 = vpop.eup %7898 }
 0x8fb   : > { %7904 = vrcp.f32 %v7012_v46  ;;  %v7010_v18 = vadd.f32 1.0, %v7899_v17  ;;  %v6978_v26 = vsel %vm6946_vm15, 1.0, %v7899_v17 }
 0x8fd   : > { %v7901_v31 = vpop.eup %7900  ;;  %7906 = vrcp.f32 %v7010_v18 }
 0x8fe   : > { %v7903_v35 = vpop.eup %7902  ;;  %v7013_v40 = vadd.f32 1.0, %v7901_v31  ;;  %v6981_v5 = vsel %vm6949_vm11, 1.0, %v7901_v31 }
 0x8ff   : > { %v7011_v10 = vadd.f32 1.0, %v7903_v35  ;;  %v6979_v22 = vsel %vm6947_vm2, 1.0, %v7903_v35  ;;  %vm14162_vm2 = vmmov %vm14157_vm1 }
 0x900   : > { %7908 = vrcp.f32 %v7013_v40 }
 0x901   : > { %7910 = vrcp.f32 %v7011_v10 }
 0x908   : > { %v7905_v9 = vpop.eup %7904 }
 0x909   : > { %v7055_v14 = vmul.f32 %v7905_v9, %v6980_v33 }
 0x90a   : > { %v7774_v55 = vpop.f32.mrf.mxu0  ;;  %v7907_v62 = vpop.eup %7906 }
 0x90b   : > { %v6740_v25 = vadd.f32 %v7774_v55, %v12578_v63  ;;  %7108 = vst.msk [vmem:[%s12620_s21 + $0x50] sm:$0xff] %vm14153_vm12, %v7055_v14  ;;  %v7051_v53 = vmul.f32 %v7907_v62, %v6978_v26  ;;  %vm14161_vm12 = vmmov %vm14157_vm1 }
 0x90c   : > { %v6731_v57 = vpop.f32.mrf.mxu0 }
 0x90d   : > { %v6824_v27 = vand.u32 2147483647, %v6740_v25  ;;  %v6732_v20 = vadd.f32 %v12578_v63, %v6731_v57  ;;  %v7909_v7 = vpop.eup %7908  ;;  %7106 = vst.msk [vmem:[%s12620_s21 + $0x40] sm:$0xff] %vm14154_vm13, %v7051_v53  ;;  %vm6952_vm6 = vcmp.ge.f32.partialorder %v6740_v25, 0.0 }
 0x90e   : > { %v7775_v19 = vpop.f32.mrf.mxu0  ;;  %v7911_v21 = vpop.eup %7910  ;;  %v7057_v47 = vmul.f32 %v7909_v7, %v6981_v5 }
 0x90f   : > { %v6856_v36 = vsub.f32 0.0, %v6824_v27  ;;  %v6822_v12 = vand.u32 2147483647, %v6732_v20  ;;  %v7053_v51 = vmul.f32 %v7911_v21, %v6979_v22  ;;  %v6743_v60 = vadd.f32 %v7775_v19, %v12578_v63 }
 0x910   : > { %v6734_v49 = vpop.f32.mrf.mxu0  ;;  %7109 = vst.msk [vmem:[%s12620_s21 + $0x58] sm:$0xff] %vm14155_vm9, %v7057_v47  ;;  %vm6950_vm0 = vcmp.ge.f32.partialorder %v6732_v20, 0.0  ;;  %vm14163_vm9 = vmmov %vm14157_vm1 }
 0x911   : > { %v6902_v1 = vmul.f32 1.442695, %v6856_v36  ;;  %v6854_v39 = vsub.f32 0.0, %v6822_v12  ;;  %v6735_v54 = vadd.f32 %v12578_v63, %v6734_v49  ;;  %7107 = vst.msk [vmem:[%s12620_s21 + $0x48] sm:$0xff] %vm14156_vm8, %v7053_v51  ;;  %v6825_v38 = vand.u32 2147483647, %v6743_v60  ;;  %vm14164_vm8 = vmmov %vm14157_vm1 }
 0x912   : > { %vm6953_vm4 = vcmp.ge.f32.partialorder %v6743_v60, 0.0 }
 0x913   : > { %7912 = vpow2.f32 %v6902_v1  ;;  %v6898_v48 = vmul.f32 1.442695, %v6854_v39  ;;  %v6823_v45 = vand.u32 2147483647, %v6735_v54  ;;  %v6857_v8 = vsub.f32 0.0, %v6825_v38 }
 0x914   : > { %vm6951_vm7 = vcmp.ge.f32.partialorder %v6735_v54, 0.0 }
 0x915   : > { %7914 = vpow2.f32 %v6898_v48  ;;  %v6855_v50 = vsub.f32 0.0, %v6823_v45  ;;  %v6904_v23 = vmul.f32 1.442695, %v6857_v8 }
 0x917   : > { %v6900_v34 = vmul.f32 1.442695, %v6855_v50  ;;  %7916 = vpow2.f32 %v6904_v23 }
 0x919   : > { %7918 = vpow2.f32 %v6900_v34 }
 0x920   : > { %v7913_v43 = vpop.eup %7912 }
 0x921   : > { %v7016_v29 = vadd.f32 1.0, %v7913_v43  ;;  %v6984_v30 = vsel %vm6952_vm6, 1.0, %v7913_v43 }
 0x922   : > { %v7915_v3 = vpop.eup %7914 }
 0x923   : > { %7920 = vrcp.f32 %v7016_v29  ;;  %v7014_v13 = vadd.f32 1.0, %v7915_v3  ;;  %v6982_v32 = vsel %vm6950_vm0, 1.0, %v7915_v3 }
 0x924   : > { %v7917_v61 = vpop.eup %7916 }
 0x925   : > { %7922 = vrcp.f32 %v7014_v13  ;;  %v7017_v28 = vadd.f32 1.0, %v7917_v61  ;;  %v6985_v4 = vsel %vm6953_vm4, 1.0, %v7917_v61 }
 0x926   : > { %v7919_v37 = vpop.eup %7918 }
 0x927   : > { %v7015_v24 = vadd.f32 1.0, %v7919_v37  ;;  %7924 = vrcp.f32 %v7017_v28  ;;  %v6983_v46 = vsel %vm6951_vm7, 1.0, %v7919_v37 }
 0x929   : > { %7926 = vrcp.f32 %v7015_v24 }
 0x930   : > { %v7921_v41 = vpop.eup %7920 }
 0x931   : > { %v7063_v11 = vmul.f32 %v7921_v41, %v6984_v30 }
 0x932   : > { %v7778_v52 = vpop.f32.mrf.mxu0  ;;  %v7923_v42 = vpop.eup %7922 }
 0x933   : > { %v6756_v44 = vadd.f32 %v7778_v52, %v12578_v63  ;;  %7112 = vst.msk [vmem:[%s12620_s21 + $0x70] sm:$0xff] %vm14157_vm1, %v7063_v11  ;;  %v7059_v6 = vmul.f32 %v7923_v42, %v6982_v32 }
 0x934   : > { %v6747_v15 = vpop.f32.mrf.mxu0  ;;  %v7925_v2 = vpop.eup %7924 }
 0x935   : > { %v6828_v0 = vand.u32 2147483647, %v6756_v44  ;;  %v6748_v56 = vadd.f32 %v12578_v63, %v6747_v15  ;;  %7110 = vst.msk [vmem:[%s12620_s21 + $0x60] sm:$0xff] %vm14158_vm10, %v7059_v6  ;;  %v7065_v58 = vmul.f32 %v7925_v2, %v6985_v4  ;;  %vm6956_vm14 = vcmp.ge.f32.partialorder %v6756_v44, 0.0  ;;  %vm14165_vm10 = vmmov %vm14157_vm1 }
 0x936   : > { %v7779_v59 = vpop.f32.mrf.mxu0  ;;  %v7927_v16 = vpop.eup %7926 }
 0x937   : > { %v6860_v17 = vsub.f32 0.0, %v6828_v0  ;;  %v6826_v18 = vand.u32 2147483647, %v6748_v56  ;;  %v7061_v31 = vmul.f32 %v7927_v16, %v6983_v46  ;;  %v6759_v35 = vadd.f32 %v7779_v59, %v12578_v63  ;;  %7113 = vst.msk [vmem:[%s12620_s21 + $0x78] sm:$0xff] %vm14159_vm3, %v7065_v58  ;;  %vm14166_vm3 = vmmov %vm14157_vm1 }
 0x938   : > { %v6750_v40 = vpop.f32.mrf.mxu0  ;;  %vm6954_vm15 = vcmp.ge.f32.partialorder %v6748_v56, 0.0 }
 0x939   : > { %v6910_v10 = vmul.f32 1.442695, %v6860_v17  ;;  %v6858_v9 = vsub.f32 0.0, %v6826_v18  ;;  %v6751_v33 = vadd.f32 %v12578_v63, %v6750_v40  ;;  %7111 = vst.msk [vmem:[%s12620_s21 + $0x68] sm:$0xff] %vm14160_vm5, %v7061_v31  ;;  %v6829_v14 = vand.u32 2147483647, %v6759_v35  ;;  %vm14167_vm5 = vmmov %vm14157_vm1 }
 0x93a   : > { %vm6957_vm11 = vcmp.ge.f32.partialorder %v6759_v35, 0.0 }
 0x93b   : > { %7928 = vpow2.f32 %v6910_v10  ;;  %v6906_v55 = vmul.f32 1.442695, %v6858_v9  ;;  %v6827_v62 = vand.u32 2147483647, %v6751_v33  ;;  %v6861_v26 = vsub.f32 0.0, %v6829_v14 }
 0x93c   : > { %vm6955_vm13 = vcmp.ge.f32.partialorder %v6751_v33, 0.0 }
 0x93d   : > { %7930 = vpow2.f32 %v6906_v55  ;;  %v6859_v25 = vsub.f32 0.0, %v6827_v62  ;;  %v6912_v53 = vmul.f32 1.442695, %v6861_v26 }
 0x93f   : > { %v6908_v57 = vmul.f32 1.442695, %v6859_v25  ;;  %7932 = vpow2.f32 %v6912_v53 }
 0x941   : > { %7934 = vpow2.f32 %v6908_v57 }
 0x948   : > { %v7929_v27 = vpop.eup %7928 }
 0x949   : > { %v7020_v20 = vadd.f32 1.0, %v7929_v27  ;;  %v6988_v51 = vsel %vm6956_vm14, 1.0, %v7929_v27 }
 0x94a   : > { %v7931_v7 = vpop.eup %7930 }
 0x94b   : > { %7936 = vrcp.f32 %v7020_v20  ;;  %v7018_v5 = vadd.f32 1.0, %v7931_v7  ;;  %v6986_v54 = vsel %vm6954_vm15, 1.0, %v7931_v7 }
 0x94c   : > { %v7933_v19 = vpop.eup %7932 }
 0x94d   : > { %7938 = vrcp.f32 %v7018_v5  ;;  %v7021_v47 = vadd.f32 1.0, %v7933_v19  ;;  %v6989_v29 = vsel %vm6957_vm11, 1.0, %v7933_v19 }
 0x94e   : > { %v7935_v21 = vpop.eup %7934 }
 0x94f   : > { %v7019_v22 = vadd.f32 1.0, %v7935_v21  ;;  %7940 = vrcp.f32 %v7021_v47  ;;  %v6987_v3 = vsel %vm6955_vm13, 1.0, %v7935_v21  ;;  %vm14169_vm13 = vmmov %vm14157_vm1 }
 0x951   : > { %7942 = vrcp.f32 %v7019_v22 }
 0x958   : > { %v7782_v36 = vpop.f32.mrf.mxu0  ;;  %v7937_v12 = vpop.eup %7936 }
 0x959   : > { %v12678_v60 = vadd.f32 %v7782_v36, %v12578_v63  ;;  %v7071_v49 = vmul.f32 %v7937_v12, %v6988_v51 }
 0x95a   : > { %v6763_v1 = vpop.f32.mrf.mxu0  ;;  %v7939_v39 = vpop.eup %7938 }
 0x95b   : > { %v6832_v38 = vand.u32 2147483647, %v12678_v60  ;;  %v12682_v48 = vadd.f32 %v12578_v63, %v6763_v1  ;;  %7116 = vst.msk [vmem:[%s12620_s21 + $0x90] sm:$0xff] %vm14161_vm12, %v7071_v49  ;;  %v7067_v45 = vmul.f32 %v7939_v39, %v6986_v54  ;;  %vm6960_vm6 = vcmp.ge.f32.partialorder %v12678_v60, 0.0  ;;  %vm14168_vm12 = vmmov %vm14157_vm1 }
 0x95c   : > { %v7783_v8 = vpop.f32.mrf.mxu0  ;;  %v7941_v43 = vpop.eup %7940 }
 0x95d   : > { %v6864_v50 = vsub.f32 0.0, %v6832_v38  ;;  %v6830_v23 = vand.u32 2147483647, %v12682_v48  ;;  %v12688_v34 = vadd.f32 %v7783_v8, %v12578_v63  ;;  %7114 = vst.msk [vmem:[%s12620_s21 + $0x80] sm:$0xff] %vm14162_vm2, %v7067_v45  ;;  %v7073_v37 = vmul.f32 %v7941_v43, %v6989_v29 }
 0x95e   : > { %v6766_v13 = vpop.f32.mrf.mxu0  ;;  %v7943_v61 = vpop.eup %7942  ;;  %vm6958_vm0 = vcmp.ge.f32.partialorder %v12682_v48, 0.0 }
 0x95f   : > { %v6918_v28 = vmul.f32 1.442695, %v6864_v50  ;;  %v6862_v24 = vsub.f32 0.0, %v6830_v23  ;;  %v6833_v41 = vand.u32 2147483647, %v12688_v34  ;;  %v7069_v30 = vmul.f32 %v7943_v61, %v6987_v3  ;;  %7117 = vst.msk [vmem:[%s12620_s21 + $0x98] sm:$0xff] %vm14163_vm9, %v7073_v37  ;;  %vm14170_vm9 = vmmov %vm14157_vm1 }
 0x960   : > { %v12694_v11 = vadd.f32 %v12578_v63, %v6766_v13  ;;  %vm6961_vm4 = vcmp.ge.f32.partialorder %v12688_v34, 0.0 }
 0x961   : > { %7944 = vpow2.f32 %v6918_v28  ;;  %v6914_v52 = vmul.f32 1.442695, %v6862_v24  ;;  %v6865_v42 = vsub.f32 0.0, %v6833_v41  ;;  %7115 = vst.msk [vmem:[%s12620_s21 + $0x88] sm:$0xff] %vm14164_vm8, %v7069_v30  ;;  %vm14171_vm8 = vmmov %vm14157_vm1 }
 0x962   : > { %v6831_v32 = vand.u32 2147483647, %v12694_v11  ;;  %vm6959_vm7 = vcmp.ge.f32.partialorder %v12694_v11, 0.0 }
 0x963   : > { %7946 = vpow2.f32 %v6914_v52  ;;  %v6920_v44 = vmul.f32 1.442695, %v6865_v42 }
 0x964   : > { %v6863_v6 = vsub.f32 0.0, %v6831_v32 }
 0x965   : > { %7948 = vpow2.f32 %v6920_v44 }
 0x966   : > { %v6916_v15 = vmul.f32 1.442695, %v6863_v6 }
 0x968   : > { %7950 = vpow2.f32 %v6916_v15 }
 0x96e   : > { %v7945_v0 = vpop.eup %7944 }
 0x96f   : > { %v7024_v56 = vadd.f32 1.0, %v7945_v0  ;;  %v6992_v19 = vsel %vm6960_vm6, 1.0, %v7945_v0 }
 0x970   : > { %v7947_v2 = vpop.eup %7946 }
 0x971   : > { %7952 = vrcp.f32 %v7024_v56  ;;  %v7022_v4 = vadd.f32 1.0, %v7947_v2  ;;  %v6990_v36 = vsel %vm6958_vm0, 1.0, %v7947_v2 }
 0x972   : > { %v7949_v59 = vpop.eup %7948  ;;  %v7786_v16 = vpop.f32.mrf.mxu0 }
 0x973   : > { %7954 = vrcp.f32 %v7022_v4  ;;  %v7025_v58 = vadd.f32 1.0, %v7949_v59  ;;  %v12702_v46 = vadd.f32 %v7786_v16, %v12578_v63  ;;  %v6993_v1 = vsel %vm6961_vm4, 1.0, %v7949_v59  ;;  %vm14172_vm4 = vmmov %vm14157_vm1 }
 0x974   : > { %v6779_v17 = vpop.f32.mrf.mxu0 }
 0x975   : > { %v7951_v18 = vpop.eup %7950  ;;  %7956 = vrcp.f32 %v7025_v58  ;;  %v6836_v31 = vand.u32 2147483647, %v12702_v46  ;;  %v12706_v35 = vadd.f32 %v12578_v63, %v6779_v17  ;;  %vm6964_vm14 = vcmp.ge.f32.partialorder %v12702_v46, 0.0 }
 0x976   : > { %v7023_v40 = vadd.f32 1.0, %v7951_v18  ;;  %v7787_v10 = vpop.f32.mrf.mxu0  ;;  %v6991_v50 = vsel %vm6959_vm7, 1.0, %v7951_v18 }
 0x977   : > { %v6868_v9 = vsub.f32 0.0, %v6836_v31  ;;  %v6834_v33 = vand.u32 2147483647, %v12706_v35  ;;  %v12710_v14 = vadd.f32 %v7787_v10, %v12578_v63  ;;  %vm6962_vm15 = vcmp.ge.f32.partialorder %v12706_v35, 0.0 }
 0x978   : > { %7958 = vrcp.f32 %v7023_v40  ;;  %v6782_v55 = vpop.f32.mrf.mxu0 }
 0x979   : > { %v6926_v62 = vmul.f32 1.442695, %v6868_v9  ;;  %v6866_v26 = vsub.f32 0.0, %v6834_v33  ;;  %v6837_v25 = vand.u32 2147483647, %v12710_v14  ;;  %v12714_v53 = vadd.f32 %v12578_v63, %v6782_v55 }
 0x97a   : > { %vm6965_vm11 = vcmp.ge.f32.partialorder %v12710_v14, 0.0 }
 0x97b   : > { %7960 = vpow2.f32 %v6926_v62  ;;  %v6922_v57 = vmul.f32 1.442695, %v6866_v26  ;;  %v6869_v27 = vsub.f32 0.0, %v6837_v25  ;;  %v6835_v20 = vand.u32 2147483647, %v12714_v53 }
 0x97c   : > { %vm6963_vm2 = vcmp.ge.f32.partialorder %v12714_v53, 0.0 }
 0x97d   : > { %7962 = vpow2.f32 %v6922_v57  ;;  %v6928_v7 = vmul.f32 1.442695, %v6869_v27  ;;  %v6867_v21 = vsub.f32 0.0, %v6835_v20 }
 0x97e   : > { %v7953_v5 = vpop.eup %7952 }
 0x97f   : > { %v7079_v47 = vmul.f32 %v7953_v5, %v6992_v19  ;;  %7964 = vpow2.f32 %v6928_v7  ;;  %v6924_v12 = vmul.f32 1.442695, %v6867_v21 }
 0x980   : > { %v7955_v22 = vpop.eup %7954 }
 0x981   : > { %7120 = vst.msk [vmem:[%s12620_s21 + $0xb0] sm:$0xff] %vm14157_vm1, %v7079_v47  ;;  %v7075_v51 = vmul.f32 %v7955_v22, %v6990_v36  ;;  %v7790_v60 = vpop.f32.mrf.mxu0  ;;  %7966 = vpow2.f32 %v6924_v12 }
 0x982   : > { %v7957_v49 = vpop.eup %7956  ;;  %v12723_v39 = vadd.f32 %v7790_v60, %v12578_v63 }
 0x983   : > { %7118 = vst.msk [vmem:[%s12620_s21 + $0xa0] sm:$0xff] %vm14165_vm10, %v7075_v51  ;;  %v7081_v54 = vmul.f32 %v7957_v49, %v6993_v1  ;;  %v6795_v38 = vpop.f32.mrf.mxu0 }
 0x984   : > { %v6840_v48 = vand.u32 2147483647, %v12723_v39  ;;  %v12730_v45 = vadd.f32 %v12578_v63, %v6795_v38  ;;  %vm6968_vm6 = vcmp.ge.f32.partialorder %v12723_v39, 0.0 }
 0x985   : > { %v7959_v8 = vpop.eup %7958  ;;  %7121 = vst.msk [vmem:[%s12620_s21 + $0xb8] sm:$0xff] %vm14166_vm3, %v7081_v54  ;;  %v7791_v23 = vpop.f32.mrf.mxu0  ;;  %vm14173_vm3 = vmmov %vm14157_vm1 }
 0x986   : > { %v7077_v34 = vmul.f32 %v7959_v8, %v6991_v50  ;;  %v6872_v43 = vsub.f32 0.0, %v6840_v48  ;;  %v6838_v29 = vand.u32 2147483647, %v12730_v45  ;;  %v12736_v3 = vadd.f32 %v7791_v23, %v12578_v63 }
 0x987   : > { %v6798_v13 = vpop.f32.mrf.mxu0  ;;  %vm6966_vm0 = vcmp.ge.f32.partialorder %v12730_v45, 0.0 }
 0x988   : > { %v7961_v61 = vpop.eup %7960  ;;  %7119 = vst.msk [vmem:[%s12620_s21 + $0xa8] sm:$0xff] %vm14167_vm5, %v7077_v34  ;;  %v6934_v37 = vmul.f32 1.442695, %v6872_v43  ;;  %v6870_v28 = vsub.f32 0.0, %v6838_v29  ;;  %v12741_v24 = vadd.f32 %v12578_v63, %v6798_v13  ;;  %v6841_v30 = vand.u32 2147483647, %v12736_v3  ;;  %vm14174_vm5 = vmmov %vm14157_vm1 }
 0x989   : > { %v7028_v41 = vadd.f32 1.0, %v7961_v61  ;;  %v6996_v58 = vsel %vm6964_vm14, 1.0, %v7961_v61  ;;  %vm6969_vm10 = vcmp.ge.f32.partialorder %v12736_v3, 0.0 }
 0x98a   : > { %v7963_v11 = vpop.eup %7962  ;;  %7968 = vpow2.f32 %v6934_v37  ;;  %v6930_v52 = vmul.f32 1.442695, %v6870_v28  ;;  %v6839_v42 = vand.u32 2147483647, %v12741_v24  ;;  %v6873_v44 = vsub.f32 0.0, %v6841_v30 }
 0x98b   : > { %7970 = vrcp.f32 %v7028_v41  ;;  %v7026_v32 = vadd.f32 1.0, %v7963_v11  ;;  %v6994_v10 = vsel %vm6962_vm15, 1.0, %v7963_v11  ;;  %vm6967_vm7 = vcmp.ge.f32.partialorder %v12741_v24, 0.0 }
 0x98c   : > { %v7965_v6 = vpop.eup %7964  ;;  %7972 = vpow2.f32 %v6930_v52  ;;  %v6871_v15 = vsub.f32 0.0, %v6839_v42  ;;  %v6936_v56 = vmul.f32 1.442695, %v6873_v44 }
 0x98d   : > { %7974 = vrcp.f32 %v7026_v32  ;;  %v7029_v0 = vadd.f32 1.0, %v7965_v6  ;;  %v6997_v46 = vsel %vm6965_vm11, 1.0, %v7965_v6 }
 0x98e   : > { %v6932_v2 = vmul.f32 1.442695, %v6871_v15  ;;  %v7967_v63 = vpop.eup %7966 }
 0x98f   : > { %7976 = vrcp.f32 %v7029_v0  ;;  %v7027_v4 = vadd.f32 1.0, %v7967_v63  ;;  %v6995_v27 = vsel %vm6963_vm2, 1.0, %v7967_v63 }
 0x990   : > { %7978 = vpow2.f32 %v6936_v56 }
 0x991   : > { %7980 = vpow2.f32 %v6932_v2 }
 0x992   : > { %7982 = vrcp.f32 %v7027_v4 }
 0x997   : > { %v7969_v59 = vpop.eup %7968 }
 0x998   : > { %v7971_v16 = vpop.eup %7970  ;;  %v7032_v17 = vadd.f32 1.0, %v7969_v59  ;;  %v7000_v5 = vsel %vm6968_vm6, 1.0, %v7969_v59 }
 0x999   : > { %v7973_v18 = vpop.eup %7972  ;;  %v7087_v31 = vmul.f32 %v7971_v16, %v6996_v58 }
 0x99a   : > { %v7975_v40 = vpop.eup %7974  ;;  %7984 = vrcp.f32 %v7032_v17  ;;  %v7030_v9 = vadd.f32 1.0, %v7973_v18  ;;  %v6998_v21 = vsel %vm6966_vm0, 1.0, %v7973_v18 }
 0x99b   : > { %7124 = vst.msk [vmem:[%s12620_s21 + $0xd0] sm:$0xff] %vm14168_vm12, %v7087_v31  ;;  %v7083_v33 = vmul.f32 %v7975_v40, %v6994_v10 }
 0x99c   : > { %v7977_v55 = vpop.eup %7976  ;;  %7986 = vrcp.f32 %v7030_v9 }
 0x99d   : > { %v7979_v62 = vpop.eup %7978  ;;  %7122 = vst.msk [vmem:[%s12620_s21 + $0xc0] sm:$0xff] %vm14169_vm13, %v7083_v33  ;;  %v7089_v26 = vmul.f32 %v7977_v55, %v6997_v46 }
 0x99e   : > { %v7981_v25 = vpop.eup %7980  ;;  %v7033_v35 = vadd.f32 1.0, %v7979_v62  ;;  %v7001_v36 = vsel %vm6969_vm10, 1.0, %v7979_v62 }
 0x99f   : > { %v7983_v57 = vpop.eup %7982  ;;  %7125 = vst.msk [vmem:[%s12620_s21 + $0xd8] sm:$0xff] %vm14170_vm9, %v7089_v26  ;;  %v7031_v20 = vadd.f32 1.0, %v7981_v25  ;;  %v6999_v60 = vsel %vm6967_vm7, 1.0, %v7981_v25 }
 0x9a0   : > { %v7085_v14 = vmul.f32 %v7983_v57, %v6995_v27  ;;  %7988 = vrcp.f32 %v7033_v35 }
 0x9a1   : > { %7990 = vrcp.f32 %v7031_v20 }
 0x9a2   : > { %7123 = vst.msk [vmem:[%s12620_s21 + $0xc8] sm:$0xff] %vm14171_vm8, %v7085_v14 }
 0x9a7   : > { %v7985_v7 = vpop.eup %7984 }
 0x9a8   : > { %v7095_v19 = vmul.f32 %v7985_v7, %v7000_v5 }
 0x9a9   : > { %v7987_v53 = vpop.eup %7986 }
 0x9aa   : > { %7128 = vst.msk [vmem:[%s12620_s21 + $0xf0] sm:$0xff] %vm14157_vm1, %v7095_v19  ;;  %v7091_v47 = vmul.f32 %v7987_v53, %v6998_v21 }
 0x9ac   : > { %7126 = vst.msk [vmem:[%s12620_s21 + $0xe0] sm:$0xff] %vm14172_vm4, %v7091_v47 }
 0x9ad   : > { %v7989_v22 = vpop.eup %7988 }
 0x9ae   : > { %v7991_v12 = vpop.eup %7990  ;;  %v7097_v51 = vmul.f32 %v7989_v22, %v7001_v36 }
 0x9af   : > { %v7093_v49 = vmul.f32 %v7991_v12, %v6999_v60 }
 0x9b0   : > { %7129 = vst.msk [vmem:[%s12620_s21 + $0xf8] sm:$0xff] %vm14173_vm3, %v7097_v51 }
 0x9b1   : > { %7127 = vst.msk [vmem:[%s12620_s21 + $0xe8] sm:$0xff] %vm14174_vm5, %v7093_v49 }
 0x9b2 PF: > { %s13_s12 = sadd.s32 1, %s8011_s12  }
 0x9b3   : > { %p10_p4 = scmp.ge.s32.totalorder %s13_s12, 4  }
 0x9b5   :  { %12 = sbr.rel (!%p10_p4) target bundleno = 1 (0x1), region = 117 }

</bundles_post_ra>
